<compile_context>
chip_gen: v6e
topology: v6e:2x2x1
jax: 0.10.0
libtpu: 0.0.40
codegen_flags: <defaults>
</compile_context>

<pallas_src>
import functools

import jax
import jax.numpy as jnp
import numpy as np
from jax.experimental import pallas as pl
from jax.experimental.pallas import tpu as pltpu

D = 768        # GCNConv in/out channels (BERT hidden size), fixed by the module
C = 2          # classifier classes
C_PAD = 128    # lane-dense padded classifier output width
ROW_PAD = 16   # bf16 packs 16 sublanes per vreg -> pad sentence rows to x16


# ------------------------------ Pallas kernel ------------------------------

def _gcn_lexicon_kernel(a_ref, x_ref, use_ref,
                        w1_ref, b1_ref, w2_ref, b2_ref, w3_ref, b3_ref,
                        wc_ref, bc_ref, o_ref):
  """One sentence-block: 3 fused GCNConv+tanh layers + pair classifier.

  a_ref   [R, R]       bf16  block-diagonal normalized adjacency (group sents)
  x_ref   [R, D]       bf16  packed token activations
  use_ref [R, 1]       f32   1.0 -> use conv stack, 0.0 -> h = x (no edges)
  w*_ref  [D, D]       bf16  GCN weights (VMEM-resident: constant block index)
  wc_ref  [D, 2*C_PAD] bf16  merged classifier weight (left half -> h[i],
                             right half -> h[i+1])
  o_ref   [R, C_PAD]   f32   lane-dense logits slab (cols >= C are padding)
  """
  a = a_ref[...]
  x_bf = x_ref[...]

  def layer(h, w_ref, b_ref):
    # bf16 MXU operands, f32 accumulation; bias-add + tanh stay in f32.
    xw = jnp.dot(h, w_ref[...], preferred_element_type=jnp.float32)
    agg = jnp.dot(a, xw.astype(jnp.bfloat16),
                  preferred_element_type=jnp.float32)
    return jnp.tanh(agg + b_ref[...]).astype(jnp.bfloat16)

  h = layer(x_bf, w1_ref, b1_ref)
  h = layer(h, w2_ref, b2_ref)
  h = layer(h, w3_ref, b3_ref)

  # Sentences whose lexicon produced no edges bypass the convolutions entirely
  # (original module: `if edge_index.shape[0] == 0: h = x`).  f32 blend with a
  # lane-broadcast [R, 1] flag (same broadcast pattern as flash-attn rescale).
  m = use_ref[...]                                     # [R, 1] of {0.0, 1.0}
  h = (m * h.astype(jnp.float32)
       + (1.0 - m) * x_bf.astype(jnp.float32)).astype(jnp.bfloat16)

  # Pair classifier: logits[i] = h[i] @ Wc_lo + h[i+1] @ Wc_hi + bc.
  # One MXU pass over the merged [D, 256] weight; the "+1" row shift is applied
  # to the tiny [R, 128] result instead of re-packing the full h.
  zy = jnp.dot(h, wc_ref[...], preferred_element_type=jnp.float32)
  z = zy[:, :C_PAD]
  y = zy[:, C_PAD:]
  r = z.shape[0]
  # y_next[i] = y[i + 1]; the wrapped last row of each sentence slot is never
  # read back (the wrapper only extracts rows 0..len-2 of each sentence).
  y_next = jnp.concatenate([y[1:r, :], y[0:1, :]], axis=0)
  o_ref[...] = z + y_next + bc_ref[...]


# ------------------------------ jitted forward -----------------------------

# Double-buffered resident bf16 weights ~7.6 MiB + per-step blocks well under
# 1 MiB: 32 MiB leaves ample headroom on every generation, incl. v7x 64 MiB/TC.
_COMPILER_PARAMS = pltpu.CompilerParams(
    dimension_semantics=("parallel",),
    vmem_limit_bytes=32 * 1024 * 1024,
)


@functools.partial(jax.jit, static_argnames=("group",))
def _forward_core(x_pad, edges, edge_w, lengths, use_flag, gcn_w, clf_w, *,
                  group):
  """x_pad: [S, n_pad, D] f32; edges: [S, 2, E] i32; edge_w/use_flag: f32."""
  s_pad, n_pad, _ = x_pad.shape
  num_blocks = s_pad // group
  r = group * n_pad

  # Per-sentence GCN-normalized adjacency (add_self_loops + D^-1/2 norm);
  # duplicate edges accumulate like PyG's uncoalesced sum aggregation.
  def one_a_hat(e, w, length):
    a = jnp.zeros((n_pad, n_pad), jnp.float32).at[e[1], e[0]].add(w)
    valid = (jnp.arange(n_pad) < length).astype(jnp.float32)
    a = a + jnp.eye(n_pad, dtype=jnp.float32) * valid[:, None]
    deg = jnp.sum(a, axis=1)
    d_inv_sqrt = jnp.where(deg > 0.0, jax.lax.rsqrt(deg), 0.0)
    return a * d_inv_sqrt[:, None] * d_inv_sqrt[None, :]

  a_local = jax.vmap(one_a_hat)(edges, edge_w, lengths)   # [S, n_pad, n_pad]

  # Block-diagonal packing: `group` sentences per [r, r] grid block.
  a_local = a_local.reshape(num_blocks, group, n_pad, n_pad)
  eye_g = jnp.eye(group, dtype=jnp.float32)[None, :, None, :, None]
  a_packed = (a_local[:, :, :, None, :] * eye_g).reshape(num_blocks * r, r)
  a_packed = a_packed.astype(jnp.bfloat16)

  x_packed = x_pad.reshape(num_blocks * r, D).astype(jnp.bfloat16)
  use_rows = jnp.repeat(use_flag, n_pad).reshape(num_blocks * r, 1)

  w1, b1, w2, b2, w3, b3 = gcn_w
  wc, bc = clf_w

  resident = lambda b: (0, 0)   # constant block index -> weights fetched once
  out = pl.pallas_call(
      _gcn_lexicon_kernel,
      grid=(num_blocks,),
      out_shape=jax.ShapeDtypeStruct((num_blocks * r, C_PAD), jnp.float32),
      in_specs=[
          pl.BlockSpec((r, r), lambda b: (b, 0)),        # A_hat block
          pl.BlockSpec((r, D), lambda b: (b, 0)),        # X rows
          pl.BlockSpec((r, 1), lambda b: (b, 0)),        # use-conv flag / row
          pl.BlockSpec((D, D), resident),                # W1
          pl.BlockSpec((1, D), resident),                # b1
          pl.BlockSpec((D, D), resident),                # W2
          pl.BlockSpec((1, D), resident),                # b2
          pl.BlockSpec((D, D), resident),                # W3
          pl.BlockSpec((1, D), resident),                # b3
          pl.BlockSpec((D, 2 * C_PAD), resident),        # merged Wc
          pl.BlockSpec((1, C_PAD), resident),            # bc
      ],
      out_specs=pl.BlockSpec((r, C_PAD), lambda b: (b, 0)),
      compiler_params=_COMPILER_PARAMS,
  )(a_packed, x_packed, use_rows, w1, b1, w2, b2, w3, b3, wc, bc)

  return out.reshape(s_pad, n_pad, C_PAD)


# ------------------------------ host wrappers ------------------------------

def prepare_params(params):
  """One-time weight prep (bf16 casts, classifier merge + lane padding).

  Hoisted out of the per-forward path so the recast 3.4 MiB of GCN weights is
  not re-materialized (and re-DMA'd) on every call.
  """
  w1 = jnp.asarray(params["w1"], jnp.bfloat16)
  w2 = jnp.asarray(params["w2"], jnp.bfloat16)
  w3 = jnp.asarray(params["w3"], jnp.bfloat16)
  b1 = jnp.asarray(params["b1"], jnp.float32).reshape(1, D)
  b2 = jnp.asarray(params["b2"], jnp.float32).reshape(1, D)
  b3 = jnp.asarray(params["b3"], jnp.float32).reshape(1, D)
  wc = jnp.asarray(params["wc"], jnp.float32)                  # [2D, C]
  wc_m = jnp.zeros((D, 2 * C_PAD), jnp.float32)
  wc_m = wc_m.at[:, :C].set(wc[:D, :])                         # -> h[i]
  wc_m = wc_m.at[:, C_PAD:C_PAD + C].set(wc[D:, :])            # -> h[i+1]
  bc = jnp.zeros((1, C_PAD), jnp.float32)
  bc = bc.at[:, :C].set(jnp.asarray(params["bc"], jnp.float32).reshape(1, C))
  return (w1, b1, w2, b2, w3, b3), (wc_m.astype(jnp.bfloat16), bc)


def _round_up(n, m):
  return -(-n // m) * m


def gcn_lexicon_forward_batch(xs, edge_indices, prepped, *, group=4):
  """Batched forward: lists of [N_s, 768] activations and [2, E_s] edges.

  Sentences are padded to a common row count (multiple of 16) and packed
  `group` per grid block so the GCN/classifier weights are fetched once for
  the whole batch.  Returns a list of [N_s - 1, 2] logits.
  """
  gcn_w, clf_w = prepped
  num_s = len(xs)
  assert num_s >= 1 and len(edge_indices) == num_s
  n_pad = _round_up(max(int(x.shape[0]) for x in xs), ROW_PAD)
  s_pad = _round_up(num_s, group)
  e_max = max(1, max(int(np.asarray(e).size) // 2 for e in edge_indices))

  x_list, len_list = [], []
  edges = np.zeros((s_pad, 2, e_max), np.int32)
  edge_w = np.zeros((s_pad, e_max), np.float32)
  use_flag = np.zeros((s_pad,), np.float32)
  for s, (x, e) in enumerate(zip(xs, edge_indices)):
    n = int(x.shape[0])
    assert n >= 2, "need at least two tokens to form a pair"
    x_list.append(jnp.pad(jnp.asarray(x, jnp.float32),
                          ((0, n_pad - n), (0, 0))))
    len_list.append(n)
    if np.asarray(e).size:
      e_np = np.asarray(e, np.int32).reshape(2, -1)
      ne = e_np.shape[1]
      edges[s, :, :ne] = e_np
      edge_w[s, :ne] = 1.0
      use_flag[s] = 1.0
  for _ in range(s_pad - num_s):          # dummy sentences to fill the group
    x_list.append(jnp.zeros((n_pad, D), jnp.float32))
    len_list.append(0)

  out = _forward_core(jnp.stack(x_list), jnp.asarray(edges),
                      jnp.asarray(edge_w), jnp.asarray(len_list, jnp.int32),
                      jnp.asarray(use_flag), gcn_w, clf_w, group=group)
  return [out[s, : int(xs[s].shape[0]) - 1, :C] for s in range(num_s)]


def gcn_lexicon_forward(x, edge_index, prepped):
  """Single-sentence forward matching GCN_lexicon.forward (labels=None path)."""
  return gcn_lexicon_forward_batch([x], [edge_index], prepped, group=1)[0]


# ------------------------------ reference & demo ---------------------------

def _reference_forward(x, edge_index, params):
  """Pure-JAX f32 reference of the module's tensor path (for validation)."""
  n = x.shape[0]
  if int(np.asarray(edge_index).size) == 0:
    h = x
  else:
    e = jnp.asarray(np.asarray(edge_index, np.int32).reshape(2, -1))
    a = jnp.zeros((n, n), jnp.float32).at[e[1], e[0]].add(1.0)
    a = a + jnp.eye(n, dtype=jnp.float32)
    deg = jnp.sum(a, axis=1)
    dis = jnp.where(deg > 0.0, 1.0 / jnp.sqrt(deg), 0.0)
    a_hat = a * dis[:, None] * dis[None, :]
    h = x
    for wk, bk in (("w1", "b1"), ("w2", "b2"), ("w3", "b3")):
      h = jnp.tanh(a_hat @ (h @ params[wk]) + params[bk])
  pairs = jnp.concatenate([h[:-1], h[1:]], axis=1)     # [n-1, 2D]
  return pairs @ params["wc"] + params["bc"]


def _glorot(key, shape):
  fan_in, fan_out = shape
  limit = jnp.sqrt(6.0 / (fan_in + fan_out))
  return jax.random.uniform(key, shape, jnp.float32, -limit, limit)


if __name__ == "__main__":
  key = jax.random.PRNGKey(0)
  kp, kx = jax.random.split(key)
  k1, k2, k3, kc = jax.random.split(kp, 4)

  params = {
      "w1": _glorot(k1, (D, D)), "b1": jnp.zeros((1, D), jnp.float32),
      "w2": _glorot(k2, (D, D)), "b2": jnp.zeros((1, D), jnp.float32),
      "w3": _glorot(k3, (D, D)), "b3": jnp.zeros((1, D), jnp.float32),
      "wc": _glorot(kc, (2 * D, C)), "bc": jnp.zeros((1, C), jnp.float32),
  }
  prepped = prepare_params(params)

  # A small batch of "sentences": stand-ins for hidden_states[12][0] plus
  # deterministic jieba-style symmetric word-span edges.  Sentence 4 has no
  # lexicon edges (exercises the original module's `h = x` bypass).
  sent_lens = [8, 11, 7, 13, 9, 6]
  xkeys = jax.random.split(kx, len(sent_lens))
  xs, edge_list = [], []
  for s, (n, kk) in enumerate(zip(sent_lens, xkeys)):
    xs.append(jax.random.normal(kk, (n, D), dtype=jnp.float32))
    if s == 4:
      edge_list.append(np.zeros((2, 0), np.int32))   # no multi-char words
    else:
      spans = [(i, i + 1 + (i % 2)) for i in range(0, n - 2, 3)]
      src = [a for a, b in spans] + [b for a, b in spans]
      dst = [b for a, b in spans] + [a for a, b in spans]
      edge_list.append(np.asarray([src, dst], np.int32))

  # Batched path: 4 sentences per grid block, weights fetched once.
  results = gcn_lexicon_forward_batch(xs, edge_list, prepped, group=4)
  jax.block_until_ready(results)

  max_err = 0.0
  for x, e, out in zip(xs, edge_list, results):
    ref = _reference_forward(x, e, params)
    assert out.shape == (x.shape[0] - 1, C), out.shape
    assert bool(jnp.all(jnp.isfinite(out)))
    max_err = max(max_err, float(jnp.max(jnp.abs(out - ref))))
  # Generous tolerance: catches structural/indexing bugs, not bf16 noise.
  assert max_err < 0.5, max_err

  # Single-sentence path (canonical module semantics, one block).
  single = gcn_lexicon_forward(xs[0], edge_list[0], prepped)
  jax.block_until_ready(single)
  assert single.shape == (sent_lens[0] - 1, C), single.shape

  print("KERNEL_OK")
</pallas_src>

<mosaic_0001>
module attributes {stable_mosaic.version = 11 : i64} {
  func.func private @main(%arg0: i32) attributes {dimension_semantics = [#tpu.dimension_semantics<core_parallel>], iteration_bounds = array<i64: 2>, tpu.core_type = #tpu.core_type<sc_scalar_subcore>, window_params = []} {
    return
  }
}

module attributes {stable_mosaic.version = 11 : i64} {
  func.func private @main(%arg0: i32) attributes {dimension_semantics = [#tpu.dimension_semantics<core_parallel>], iteration_bounds = array<i64: 2>, tpu.core_type = #tpu.core_type<sc_scalar_subcore>, window_params = []} {
    return
  }
}

module attributes {stable_mosaic.version = 11 : i64} {
  func.func @_gcn_lexicon_kernel(%arg0: i32, %arg1: memref<64x64xbf16, #tpu.memory_space<vmem>>, %arg2: memref<64x768xbf16, #tpu.memory_space<vmem>>, %arg3: memref<64x1xf32, #tpu.memory_space<vmem>>, %arg4: memref<768x768xbf16, #tpu.memory_space<vmem>>, %arg5: memref<1x768xf32, #tpu.memory_space<vmem>>, %arg6: memref<768x768xbf16, #tpu.memory_space<vmem>>, %arg7: memref<1x768xf32, #tpu.memory_space<vmem>>, %arg8: memref<768x768xbf16, #tpu.memory_space<vmem>>, %arg9: memref<1x768xf32, #tpu.memory_space<vmem>>, %arg10: memref<768x256xbf16, #tpu.memory_space<vmem>>, %arg11: memref<1x128xf32, #tpu.memory_space<vmem>>, %arg12: memref<64x128xf32, #tpu.memory_space<vmem>>) attributes {dimension_semantics = [#tpu.dimension_semantics<parallel>], iteration_bounds = array<i64: 2>, scalar_prefetch = 0 : i64, scratch_operands = 0 : i64, tpu.core_type = #tpu.core_type<tc>, window_params = [{transform_indices = @transform_0, window_bounds = array<i64: 64, 64>}, {transform_indices = @transform_1, window_bounds = array<i64: 64, 768>}, {transform_indices = @transform_2, window_bounds = array<i64: 64, 1>}, {pipeline_mode = #tpu.pipeline_mode<synchronous>, transform_indices = @transform_3, window_bounds = array<i64: 768, 768>}, {pipeline_mode = #tpu.pipeline_mode<synchronous>, transform_indices = @transform_4, window_bounds = array<i64: 1, 768>}, {pipeline_mode = #tpu.pipeline_mode<synchronous>, transform_indices = @transform_5, window_bounds = array<i64: 768, 768>}, {pipeline_mode = #tpu.pipeline_mode<synchronous>, transform_indices = @transform_6, window_bounds = array<i64: 1, 768>}, {pipeline_mode = #tpu.pipeline_mode<synchronous>, transform_indices = @transform_7, window_bounds = array<i64: 768, 768>}, {pipeline_mode = #tpu.pipeline_mode<synchronous>, transform_indices = @transform_8, window_bounds = array<i64: 1, 768>}, {pipeline_mode = #tpu.pipeline_mode<synchronous>, transform_indices = @transform_9, window_bounds = array<i64: 768, 256>}, {pipeline_mode = #tpu.pipeline_mode<synchronous>, transform_indices = @transform_10, window_bounds = array<i64: 1, 128>}, {transform_indices = @transform_11, window_bounds = array<i64: 64, 128>}]} {
    %c0 = arith.constant 0 : index
    %c0_0 = arith.constant 0 : index
    %0 = vector.load %arg1[%c0, %c0_0] : memref<64x64xbf16, #tpu.memory_space<vmem>>, vector<64x64xbf16>
    %c0_1 = arith.constant 0 : index
    %c0_2 = arith.constant 0 : index
    %1 = vector.load %arg2[%c0_1, %c0_2] : memref<64x768xbf16, #tpu.memory_space<vmem>>, vector<64x768xbf16>
    %c0_3 = arith.constant 0 : index
    %c0_4 = arith.constant 0 : index
    %2 = vector.load %arg4[%c0_3, %c0_4] : memref<768x768xbf16, #tpu.memory_space<vmem>>, vector<768x768xbf16>
    %cst = arith.constant dense<0.000000e+00> : vector<64x768xf32>
    %3 = tpu.matmul %1, %2, %cst {dimension_numbers = #tpu.dot_dimension_numbers<[1], [0], [0], [1], [0, 0, 1, 1], [], []>} : vector<64x768xbf16>, vector<768x768xbf16>, vector<64x768xf32> -> vector<64x768xf32>
    %4 = arith.truncf %3 : vector<64x768xf32> to vector<64x768xbf16>
    %cst_5 = arith.constant dense<0.000000e+00> : vector<64x768xf32>
    %5 = tpu.matmul %0, %4, %cst_5 {dimension_numbers = #tpu.dot_dimension_numbers<[1], [0], [0], [1], [0, 0, 1, 1], [], []>} : vector<64x64xbf16>, vector<64x768xbf16>, vector<64x768xf32> -> vector<64x768xf32>
    %c0_6 = arith.constant 0 : index
    %c0_7 = arith.constant 0 : index
    %6 = vector.load %arg5[%c0_6, %c0_7] : memref<1x768xf32, #tpu.memory_space<vmem>>, vector<1x768xf32>
    %7 = vector.broadcast %6 : vector<1x768xf32> to vector<64x768xf32>
    %8 = arith.addf %5, %7 : vector<64x768xf32>
    %9 = math.tanh %8 : vector<64x768xf32>
    %10 = arith.truncf %9 : vector<64x768xf32> to vector<64x768xbf16>
    %c0_8 = arith.constant 0 : index
    %c0_9 = arith.constant 0 : index
    %11 = vector.load %arg6[%c0_8, %c0_9] : memref<768x768xbf16, #tpu.memory_space<vmem>>, vector<768x768xbf16>
    %cst_10 = arith.constant dense<0.000000e+00> : vector<64x768xf32>
    %12 = tpu.matmul %10, %11, %cst_10 {dimension_numbers = #tpu.dot_dimension_numbers<[1], [0], [0], [1], [0, 0, 1, 1], [], []>} : vector<64x768xbf16>, vector<768x768xbf16>, vector<64x768xf32> -> vector<64x768xf32>
    %13 = arith.truncf %12 : vector<64x768xf32> to vector<64x768xbf16>
    %cst_11 = arith.constant dense<0.000000e+00> : vector<64x768xf32>
    %14 = tpu.matmul %0, %13, %cst_11 {dimension_numbers = #tpu.dot_dimension_numbers<[1], [0], [0], [1], [0, 0, 1, 1], [], []>} : vector<64x64xbf16>, vector<64x768xbf16>, vector<64x768xf32> -> vector<64x768xf32>
    %c0_12 = arith.constant 0 : index
    %c0_13 = arith.constant 0 : index
    %15 = vector.load %arg7[%c0_12, %c0_13] : memref<1x768xf32, #tpu.memory_space<vmem>>, vector<1x768xf32>
    %16 = vector.broadcast %15 : vector<1x768xf32> to vector<64x768xf32>
    %17 = arith.addf %14, %16 : vector<64x768xf32>
    %18 = math.tanh %17 : vector<64x768xf32>
    %19 = arith.truncf %18 : vector<64x768xf32> to vector<64x768xbf16>
    %c0_14 = arith.constant 0 : index
    %c0_15 = arith.constant 0 : index
    %20 = vector.load %arg8[%c0_14, %c0_15] : memref<768x768xbf16, #tpu.memory_space<vmem>>, vector<768x768xbf16>
    %cst_16 = arith.constant dense<0.000000e+00> : vector<64x768xf32>
    %21 = tpu.matmul %19, %20, %cst_16 {dimension_numbers = #tpu.dot_dimension_numbers<[1], [0], [0], [1], [0, 0, 1, 1], [], []>} : vector<64x768xbf16>, vector<768x768xbf16>, vector<64x768xf32> -> vector<64x768xf32>
    %22 = arith.truncf %21 : vector<64x768xf32> to vector<64x768xbf16>
    %cst_17 = arith.constant dense<0.000000e+00> : vector<64x768xf32>
    %23 = tpu.matmul %0, %22, %cst_17 {dimension_numbers = #tpu.dot_dimension_numbers<[1], [0], [0], [1], [0, 0, 1, 1], [], []>} : vector<64x64xbf16>, vector<64x768xbf16>, vector<64x768xf32> -> vector<64x768xf32>
    %c0_18 = arith.constant 0 : index
    %c0_19 = arith.constant 0 : index
    %24 = vector.load %arg9[%c0_18, %c0_19] : memref<1x768xf32, #tpu.memory_space<vmem>>, vector<1x768xf32>
    %25 = vector.broadcast %24 : vector<1x768xf32> to vector<64x768xf32>
    %26 = arith.addf %23, %25 : vector<64x768xf32>
    %27 = math.tanh %26 : vector<64x768xf32>
    %28 = arith.truncf %27 : vector<64x768xf32> to vector<64x768xbf16>
    %c0_20 = arith.constant 0 : index
    %c0_21 = arith.constant 0 : index
    %29 = vector.load %arg3[%c0_20, %c0_21] : memref<64x1xf32, #tpu.memory_space<vmem>>, vector<64x1xf32>
    %30 = arith.extf %28 : vector<64x768xbf16> to vector<64x768xf32>
    %31 = vector.broadcast %29 : vector<64x1xf32> to vector<64x768xf32>
    %32 = arith.mulf %31, %30 : vector<64x768xf32>
    %cst_22 = arith.constant 1.000000e+00 : f32
    %33 = vector.broadcast %cst_22 : f32 to vector<64x1xf32>
    %34 = arith.subf %33, %29 : vector<64x1xf32>
    %35 = arith.extf %1 : vector<64x768xbf16> to vector<64x768xf32>
    %36 = vector.broadcast %34 : vector<64x1xf32> to vector<64x768xf32>
    %37 = arith.mulf %36, %35 : vector<64x768xf32>
    %38 = arith.addf %32, %37 : vector<64x768xf32>
    %39 = arith.truncf %38 : vector<64x768xf32> to vector<64x768xbf16>
    %c0_23 = arith.constant 0 : index
    %c0_24 = arith.constant 0 : index
    %40 = vector.load %arg10[%c0_23, %c0_24] : memref<768x256xbf16, #tpu.memory_space<vmem>>, vector<768x256xbf16>
    %cst_25 = arith.constant dense<0.000000e+00> : vector<64x256xf32>
    %41 = tpu.matmul %39, %40, %cst_25 {dimension_numbers = #tpu.dot_dimension_numbers<[1], [0], [0], [1], [0, 0, 1, 1], [], []>} : vector<64x768xbf16>, vector<768x256xbf16>, vector<64x256xf32> -> vector<64x256xf32>
    %42 = vector.extract_strided_slice %41 {offsets = [0, 0], sizes = [64, 128], strides = [1, 1]} : vector<64x256xf32> to vector<64x128xf32>
    %43 = vector.extract_strided_slice %41 {offsets = [0, 128], sizes = [64, 128], strides = [1, 1]} : vector<64x256xf32> to vector<64x128xf32>
    %44 = vector.extract_strided_slice %43 {offsets = [1, 0], sizes = [63, 128], strides = [1, 1]} : vector<64x128xf32> to vector<63x128xf32>
    %45 = vector.extract_strided_slice %43 {offsets = [0, 0], sizes = [1, 128], strides = [1, 1]} : vector<64x128xf32> to vector<1x128xf32>
    %46 = tpu.concatenate %44, %45 in 0 : vector<63x128xf32>, vector<1x128xf32> -> vector<64x128xf32>
    %47 = arith.addf %42, %46 : vector<64x128xf32>
    %c0_26 = arith.constant 0 : index
    %c0_27 = arith.constant 0 : index
    %48 = vector.load %arg11[%c0_26, %c0_27] : memref<1x128xf32, #tpu.memory_space<vmem>>, vector<1x128xf32>
    %49 = vector.broadcast %48 : vector<1x128xf32> to vector<64x128xf32>
    %50 = arith.addf %47, %49 : vector<64x128xf32>
    %c0_28 = arith.constant 0 : index
    %c0_29 = arith.constant 0 : index
    %51 = vector.load %arg12[%c0_28, %c0_29] : memref<64x128xf32, #tpu.memory_space<vmem>>, vector<64x128xf32>
    tpu.vector_store %arg12[%c0_28, %c0_29], %50 {strides = array<i32>} : memref<64x128xf32, #tpu.memory_space<vmem>>, vector<64x128xf32>,
    return
  }
  func.func @transform_0(%arg0: i32) -> (i32, i32) {
    %c0_i32 = arith.constant 0 : i32
    %c0_i32_0 = arith.constant 0 : i32
    return %arg0, %c0_i32 : i32, i32
  }
  func.func @transform_1(%arg0: i32) -> (i32, i32) {
    %c0_i32 = arith.constant 0 : i32
    %c0_i32_0 = arith.constant 0 : i32
    return %arg0, %c0_i32 : i32, i32
  }
  func.func @transform_2(%arg0: i32) -> (i32, i32) {
    %c0_i32 = arith.constant 0 : i32
    %c0_i32_0 = arith.constant 0 : i32
    return %arg0, %c0_i32 : i32, i32
  }
  func.func @transform_3(%arg0: i32) -> (i32, i32) {
    %c0_i32 = arith.constant 0 : i32
    %c0_i32_0 = arith.constant 0 : i32
    %c0_i32_1 = arith.constant 0 : i32
    return %c0_i32, %c0_i32_0 : i32, i32
  }
  func.func @transform_4(%arg0: i32) -> (i32, i32) {
    %c0_i32 = arith.constant 0 : i32
    %c0_i32_0 = arith.constant 0 : i32
    %c0_i32_1 = arith.constant 0 : i32
    return %c0_i32, %c0_i32_0 : i32, i32
  }
  func.func @transform_5(%arg0: i32) -> (i32, i32) {
    %c0_i32 = arith.constant 0 : i32
    %c0_i32_0 = arith.constant 0 : i32
    %c0_i32_1 = arith.constant 0 : i32
    return %c0_i32, %c0_i32_0 : i32, i32
  }
  func.func @transform_6(%arg0: i32) -> (i32, i32) {
    %c0_i32 = arith.constant 0 : i32
    %c0_i32_0 = arith.constant 0 : i32
    %c0_i32_1 = arith.constant 0 : i32
    return %c0_i32, %c0_i32_0 : i32, i32
  }
  func.func @transform_7(%arg0: i32) -> (i32, i32) {
    %c0_i32 = arith.constant 0 : i32
    %c0_i32_0 = arith.constant 0 : i32
    %c0_i32_1 = arith.constant 0 : i32
    return %c0_i32, %c0_i32_0 : i32, i32
  }
  func.func @transform_8(%arg0: i32) -> (i32, i32) {
    %c0_i32 = arith.constant 0 : i32
    %c0_i32_0 = arith.constant 0 : i32
    %c0_i32_1 = arith.constant 0 : i32
    return %c0_i32, %c0_i32_0 : i32, i32
  }
  func.func @transform_9(%arg0: i32) -> (i32, i32) {
    %c0_i32 = arith.constant 0 : i32
    %c0_i32_0 = arith.constant 0 : i32
    %c0_i32_1 = arith.constant 0 : i32
    return %c0_i32, %c0_i32_0 : i32, i32
  }
  func.func @transform_10(%arg0: i32) -> (i32, i32) {
    %c0_i32 = arith.constant 0 : i32
    %c0_i32_0 = arith.constant 0 : i32
    %c0_i32_1 = arith.constant 0 : i32
    return %c0_i32, %c0_i32_0 : i32, i32
  }
  func.func @transform_11(%arg0: i32) -> (i32, i32) {
    %c0_i32 = arith.constant 0 : i32
    %c0_i32_0 = arith.constant 0 : i32
    return %arg0, %c0_i32 : i32, i32
  }
}

</mosaic_0001>

<bundles_post_ra>
// kernel: _forward_core.1
= control target key start
LH: loop header
LB: loop body
LE: loop exit
PB: predicated region body
PF: predicated region fallthrough
CT: control target
= control target key end

     0   :  { %16 = vsyncpa [#allocation3], 0  ;;  %s17857_s0 = inlined_call_operand.vmem [shape: bf16[128,64], index: 0, kind: input, shape index: {}]   ;;  %s17858_s1 = inlined_call_operand.vmem [shape: bf16[128,768], index: 1, kind: input, shape index: {}]   ;;  %s17859_s2 = inlined_call_operand.vmem [shape: f32[128,1], index: 2, kind: input, shape index: {}]   ;;  %s17860_s3 = inlined_call_operand.vmem [shape: bf16[768,768], index: 3, kind: input, shape index: {}]   ;;  %s17861_s4 = inlined_call_operand.vmem [shape: f32[1,768], index: 4, kind: input, shape index: {}]   ;;  %s17862_s5 = inlined_call_operand.vmem [shape: bf16[768,768], index: 5, kind: input, shape index: {}]   ;;  %s17863_s6 = inlined_call_operand.vmem [shape: f32[1,768], index: 6, kind: input, shape index: {}]   ;;  %s17864_s7 = inlined_call_operand.vmem [shape: bf16[768,768], index: 7, kind: input, shape index: {}]   ;;  %s17865_s8 = inlined_call_operand.vmem [shape: f32[1,768], index: 8, kind: input, shape index: {}]   ;;  %s17866_s9 = inlined_call_operand.vmem [shape: bf16[768,256], index: 9, kind: input, shape index: {}]   ;;  %s17867_s10 = inlined_call_operand.vmem [shape: f32[1,128], index: 10, kind: input, shape index: {}]   ;;  %s17868_s11 = inlined_call_operand.hbm [shape: f32[128,128], index: 11, kind: output, shape index: {}]  }
   0x1   :  { %18 = vsyncpa [#allocation3 + $0x1], 0  ;;  %s13146_s17 = smov 0   ;;  %s13148_s18 = smov 0  }
   0x2   :  { %s13150_s19 = smov 0   ;;  %s13152_s20 = smov 0  }
   0x3 LB: > { %17886 = sst [smem:[#allocation5_spill]] %s13076_s19  ;;  %s13167_s21 = sadd.s32 4294967295, %s13080_s20   ;;  %s13080_s20 = sphi %s13152_s20, %s17937_s20   ;;  %s13076_s19 = sphi %s13150_s19, %s17939_s19   ;;  %s13072_s18 = sphi %s13148_s18, %s17941_s18   ;;  %s13068_s17 = sphi %s13146_s17, %s17940_s17  }
   0x4   : > { %s10137_s22 = sadd.s32 4294967294, %s13080_s20   ;;  %s13171_s23 = sadd.s32 1, %s13080_s20  }
   0x5   : > { %17887 = sst [smem:[#allocation6_spill]] %s13171_s23  ;;  %s277_s24 = sadd.s32 1, %s13076_s19 }
   0x6   : > { %s274_s25 = ssub.s32 %s13080_s20, %s13171_s23  ;;  %p287_p0 = scmp.ne.s32.totalorder %s13076_s19, %s13072_s18 }
   0x7   : > { %p275_p1 = scmp.eq.s32.totalorder %s274_s25, 0  ;;  %p288_p2 = scmp.eq.s32.totalorder %s13167_s21, 1 }
   0x8   : > { %p293_p3 = scmp.ne.s32.totalorder %s13072_s18, %s13068_s17  ;;  %p294_p4 = scmp.eq.s32.totalorder %s10137_s22, 1 }
   0x9   : > { %s13182_s26 = scalar_select %p275_p1, %s13076_s19, %s277_s24  }
   0xa   : > { %p13184_p5 = por %p288_p2, %p287_p0  ;;  %p13188_p6 = por %p294_p4, %p293_p3 }
   0xb   : > { %17888 = sst [smem:[#allocation7_spill]] %s13182_s26  ;;  %p10140_p7 = scmp.ge.s32.totalorder %s13080_s20, 1 }
   0xc   : > { %p364_p8 = scmp.lt.s32.totalorder %s13080_s20, 3 }
   0xe   : > { %p365_p9 = pnand %p10140_p7, %p364_p8 }
  0x10   : > { %368 = sbr.rel (%p365_p9) target bundleno = 2364 (0x93c), region = 64 }
  0x15   : > { %v11232_v0 = vld [vmem:[%s17860_s3 + $0x154] ss:$24 sps:$4 sm:$0xff]   ;;  %v11236_v2 = vld [vmem:[%s17860_s3 + $0x150] ss:$24 sps:$4 sm:$0xff]   ;;  %v11238_v4 = vld [vmem:[%s17860_s3 + $0x124] ss:$24 sps:$4 sm:$0xff]  }
  0x16   : > { %v11234_v1 = vld [vmem:[%s17860_s3 + $0x454] ss:$24 sps:$4 sm:$0xff]   ;;  %2316 = vmatprep.subr.bf16.mxu0 %v11232_v0  ;;  %v11237_v3 = vld [vmem:[%s17860_s3 + $0x450] ss:$24 sps:$4 sm:$0xff]   ;;  %v11240_v5 = vld [vmem:[%s17860_s3 + $0x424] ss:$24 sps:$4 sm:$0xff]  }
  0x17   : > { %2389 = vmatprep.subr.bf16.mxu1 %v11234_v1  ;;  %2317 = vmatpush1.bf16.msra.mxu0 %v11236_v2  ;;  %v11242_v6 = vld [vmem:[%s17860_s3 + $0x120] ss:$24 sps:$4 sm:$0xff]   ;;  %v11244_v8 = vld [vmem:[%s17860_s3 + $0xf4] ss:$24 sps:$4 sm:$0xff]   ;;  %v11248_v10 = vld [vmem:[%s17860_s3 + $0xf0] ss:$24 sps:$4 sm:$0xff]  }
  0x18   : > { %2390 = vmatpush1.bf16.msra.mxu1 %v11237_v3  ;;  %2318 = vmatprep.subr.bf16.mxu0 %v11238_v4  ;;  %v11243_v7 = vld [vmem:[%s17860_s3 + $0x420] ss:$24 sps:$4 sm:$0xff]   ;;  %v11246_v9 = vld [vmem:[%s17860_s3 + $0x3f4] ss:$24 sps:$4 sm:$0xff]   ;;  %v11249_v11 = vld [vmem:[%s17860_s3 + $0x3f0] ss:$24 sps:$4 sm:$0xff]  }
  0x19   : > { %2391 = vmatprep.subr.bf16.mxu1 %v11240_v5  ;;  %v11250_v12 = vld [vmem:[%s17860_s3 + $0xc4] ss:$24 sps:$4 sm:$0xff]   ;;  %v11254_v14 = vld [vmem:[%s17860_s3 + $0xc0] ss:$24 sps:$4 sm:$0xff]   ;;  %v11256_v16 = vld [vmem:[%s17860_s3 + $0x94] ss:$24 sps:$4 sm:$0xff]  }
  0x1a   : > { %v11252_v13 = vld [vmem:[%s17860_s3 + $0x3c4] ss:$24 sps:$4 sm:$0xff]   ;;  %v11255_v15 = vld [vmem:[%s17860_s3 + $0x3c0] ss:$24 sps:$4 sm:$0xff]   ;;  %v11258_v17 = vld [vmem:[%s17860_s3 + $0x394] ss:$24 sps:$4 sm:$0xff]  }
  0x1b   : > { %2319 = vmatpush1.bf16.msra.mxu0 %v11242_v6  ;;  %v11260_v18 = vld [vmem:[%s17860_s3 + $0x90] ss:$24 sps:$4 sm:$0xff]   ;;  %v11262_v20 = vld [vmem:[%s17860_s3 + $0x64] ss:$24 sps:$4 sm:$0xff]   ;;  %v11266_v22 = vld [vmem:[%s17860_s3 + $0x60] ss:$24 sps:$4 sm:$0xff]  }
  0x1c   : > { %2392 = vmatpush1.bf16.msra.mxu1 %v11243_v7  ;;  %2320 = vmatprep.subr.bf16.mxu0 %v11244_v8  ;;  %v11261_v19 = vld [vmem:[%s17860_s3 + $0x390] ss:$24 sps:$4 sm:$0xff]   ;;  %v11264_v21 = vld [vmem:[%s17860_s3 + $0x364] ss:$24 sps:$4 sm:$0xff]   ;;  %v11267_v23 = vld [vmem:[%s17860_s3 + $0x360] ss:$24 sps:$4 sm:$0xff]  }
  0x1d   : > { %2393 = vmatprep.subr.bf16.mxu1 %v11246_v9  ;;  %v11268_v24 = vld [vmem:[%s17860_s3 + $0x34] ss:$24 sps:$4 sm:$0xff]   ;;  %v11272_v26 = vld [vmem:[%s17860_s3 + $0x30] ss:$24 sps:$4 sm:$0xff]   ;;  %v11274_v28 = vld [vmem:[%s17860_s3 + $0x4] ss:$24 sps:$4 sm:$0xff]  }
  0x1e   : > { %v11270_v25 = vld [vmem:[%s17860_s3 + $0x334] ss:$24 sps:$4 sm:$0xff]   ;;  %v11273_v27 = vld [vmem:[%s17860_s3 + $0x330] ss:$24 sps:$4 sm:$0xff]   ;;  %s10142_s24 = sshll.u32 %s13167_s21, 3  ;;  %vm3049_vm0 = vcmask 523264  }
  0x1f   : > { %2321 = vmatpush1.bf16.msra.mxu0 %v11248_v10  ;;  %v11276_v29 = vld [vmem:[%s17860_s3 + $0x304] ss:$24 sps:$4 sm:$0xff]   ;;  %v11278_v30 = vld [vmem:[%s17860_s3] ss:$24 sps:$4 sm:$0xff]   ;;  %p416_p10 = scmp.lt.s32.totalorder %s10142_s24, 15  ;;  %vm9980_vm1 = vcmask 1046528  }
  0x20   : > { %2394 = vmatpush1.bf16.msra.mxu1 %v11249_v11  ;;  %2322 = vmatprep.subr.bf16.mxu0 %v11250_v12  ;;  %v11279_v31 = vld [vmem:[%s17860_s3 + $0x300] ss:$24 sps:$4 sm:$0xff]   ;;  %v11280_v32 = vld [vmem:[%s17860_s3 + $0x2d4] ss:$24 sps:$4 sm:$0xff]   ;;  %v11284_v34 = vld [vmem:[%s17860_s3 + $0x2d0] ss:$24 sps:$4 sm:$0xff]  }
  0x21   : > { %2395 = vmatprep.subr.bf16.mxu1 %v11252_v13  ;;  %v11282_v33 = vld [vmem:[%s17860_s3 + $0x5d4] ss:$24 sps:$4 sm:$0xff]   ;;  %v11285_v35 = vld [vmem:[%s17860_s3 + $0x5d0] ss:$24 sps:$4 sm:$0xff]   ;;  %s17943_s24 = smov (!%p416_p10, %s10142_s24), 15  ;;  %s11178_s19 = sshll.u32 %s13167_s21, 10 }
  0x22   : > { %v11286_v36 = vld [vmem:[%s17860_s3 + $0x2a4] ss:$24 sps:$4 sm:$0xff]   ;;  %v11290_v38 = vld [vmem:[%s17860_s3 + $0x2a0] ss:$24 sps:$4 sm:$0xff]   ;;  %s11187_s26 = smul.u32 24, %s17943_s24  ;;  %s10143_s15 = sshll.u32 %s17943_s24, 2 }
  0x23   : > { %2323 = vmatpush1.bf16.msra.mxu0 %v11254_v14  ;;  %v11288_v37 = vld [vmem:[%s17860_s3 + $0x5a4] ss:$24 sps:$4 sm:$0xff]   ;;  %v11291_v39 = vld [vmem:[%s17860_s3 + $0x5a0] ss:$24 sps:$4 sm:$0xff]   ;;  %v11292_v40 = vld [vmem:[%s17860_s3 + $0x274] ss:$24 sps:$4 sm:$0xff]   ;;  %s14219_s22 = scalar_lea.vmem %s17857_s0, %s10143_s15 }
  0x24   : > { %2396 = vmatpush1.bf16.msra.mxu1 %v11255_v15  ;;  %2324 = vmatprep.subr.bf16.mxu0 %v11256_v16  ;;  %v11294_v41 = vld [vmem:[%s17860_s3 + $0x574] ss:$24 sps:$4 sm:$0xff]   ;;  %v11296_v42 = vld [vmem:[%s17860_s3 + $0x270] ss:$24 sps:$4 sm:$0xff]   ;;  %s13333_s23 = scalar_lea.vmem %s17858_s1, %s11187_s26  ;;  %v11298_v44 = vld [vmem:[%s17860_s3 + $0x244] ss:$24 sps:$4 sm:$0xff]   ;;  %s17807_s26 = scalar_lea.hbm %s17868_s11, %s11178_s19 }
  0x25   : > { %2397 = vmatprep.subr.bf16.mxu1 %v11258_v17  ;;  %v11297_v43 = vld [vmem:[%s17860_s3 + $0x570] ss:$24 sps:$4 sm:$0xff]   ;;  %v11300_v45 = vld [vmem:[%s17860_s3 + $0x544] ss:$24 sps:$4 sm:$0xff]   ;;  %v11302_v46 = vld [vmem:[%s17860_s3 + $0x240] ss:$24 sps:$4 sm:$0xff]  }
  0x26   : > { %v11303_v47 = vld [vmem:[%s17860_s3 + $0x540] ss:$24 sps:$4 sm:$0xff]   ;;  %v445_v50 = vld [vmem:[%s13333_s23 + $0x8] sm:$0xff]  ;;  %v11310_v58 = vld [vmem:[%s17860_s3 + $0x1e4] ss:$24 sps:$4 sm:$0xff]  }
  0x27   : > { %2325 = vmatpush1.bf16.msra.mxu0 %v11260_v18  ;;  %v444_v48 = vld [vmem:[%s13333_s23] sm:$0xff]  ;;  %v447_v49 = vld [vmem:[%s13333_s23 + $0x18] sm:$0xff]  ;;  %v11304_v52 = vld [vmem:[%s17860_s3 + $0x214] ss:$24 sps:$4 sm:$0xff]  }
  0x28   : > { %2398 = vmatpush1.bf16.msra.mxu1 %v11261_v19  ;;  %2326 = vmatprep.subr.bf16.mxu0 %v11262_v20  ;;  %v448_v51 = vld [vmem:[%s13333_s23 + $0x20] sm:$0xff]  ;;  %v13354_v53 = vcombine.high %v444_v48, %v447_v49  ;;  %v11306_v55 = vld [vmem:[%s17860_s3 + $0x514] ss:$24 sps:$4 sm:$0xff]   ;;  %v11308_v56 = vld [vmem:[%s17860_s3 + $0x210] ss:$24 sps:$4 sm:$0xff]   ;;  %v13411_v8 = vcombine.low %v444_v48, %v447_v49 }
  0x29   : > { %2399 = vmatprep.subr.bf16.mxu1 %v11264_v21  ;;  %v13356_v54 = vcombine.high %v445_v50, %v448_v51  ;;  %v11309_v57 = vld [vmem:[%s17860_s3 + $0x510] ss:$24 sps:$4 sm:$0xff]   ;;  %v11312_v59 = vld [vmem:[%s17860_s3 + $0x4e4] ss:$24 sps:$4 sm:$0xff]   ;;  %v11314_v60 = vld [vmem:[%s17860_s3 + $0x1e0] ss:$24 sps:$4 sm:$0xff]   ;;  %v13413_v9 = vcombine.low %v445_v50, %v448_v51 }
  0x2a   : > { %2348 = vmatprep.mubr.bf16.mxu0 %v13354_v53  ;;  %v11315_v61 = vld [vmem:[%s17860_s3 + $0x4e0] ss:$24 sps:$4 sm:$0xff]   ;;  %v11316_v62 = vld [vmem:[%s17860_s3 + $0x1b4] ss:$24 sps:$4 sm:$0xff]   ;;  %v11320_v0 = vld [vmem:[%s17860_s3 + $0x1b0] ss:$24 sps:$4 sm:$0xff]  }
  0x2b   : > { %2327 = vmatpush1.bf16.msra.mxu0 %v11266_v22  ;;  %2421 = vmatprep.mubr.bf16.mxu1 %v13356_v54  ;;  %v11318_v63 = vld [vmem:[%s17860_s3 + $0x4b4] ss:$24 sps:$4 sm:$0xff]   ;;  %v11321_v1 = vld [vmem:[%s17860_s3 + $0x4b0] ss:$24 sps:$4 sm:$0xff]   ;;  %v11322_v2 = vld [vmem:[%s17860_s3 + $0x184] ss:$24 sps:$4 sm:$0xff]  }
  0x2c   : > { %2400 = vmatpush1.bf16.msra.mxu1 %v11267_v23  ;;  %2328 = vmatprep.subr.bf16.mxu0 %v11268_v24  ;;  %v11324_v3 = vld [vmem:[%s17860_s3 + $0x484] ss:$24 sps:$4 sm:$0xff]   ;;  %v11326_v4 = vld [vmem:[%s17860_s3 + $0x180] ss:$24 sps:$4 sm:$0xff]   ;;  %v11334_v6 = vld [vmem:[%s17860_s3 + $0x754] ss:$24 sps:$4 sm:$0xff]  }
  0x2d   : > { %2401 = vmatprep.subr.bf16.mxu1 %v11270_v25  ;;  %v11327_v5 = vld [vmem:[%s17860_s3 + $0x480] ss:$24 sps:$4 sm:$0xff]   ;;  %v11337_v7 = vld [vmem:[%s17860_s3 + $0x15c] ss:$24 sps:$4 sm:$0xff]   ;;  %v11332_v10 = vld [vmem:[%s17860_s3 + $0x750] ss:$24 sps:$4 sm:$0xff]  }
  0x2e   : > { %v11335_v11 = vld [vmem:[%s17860_s3 + $0x158] ss:$24 sps:$4 sm:$0xff]   ;;  %v11340_v12 = vld [vmem:[%s17860_s3 + $0x724] ss:$24 sps:$4 sm:$0xff]   ;;  %v11341_v15 = vld [vmem:[%s17860_s3 + $0x128] ss:$24 sps:$4 sm:$0xff]  }
  0x2f   : > { %2329 = vmatpush1.bf16.msra.mxu0 %v11272_v26  ;;  %v11343_v13 = vld [vmem:[%s17860_s3 + $0x12c] ss:$24 sps:$4 sm:$0xff]   ;;  %v11338_v14 = vld [vmem:[%s17860_s3 + $0x720] ss:$24 sps:$4 sm:$0xff]   ;;  %v11349_v17 = vld [vmem:[%s17860_s3 + $0xfc] ss:$24 sps:$4 sm:$0xff]  }
  0x30   : > { %2402 = vmatpush1.bf16.msra.mxu1 %v11273_v27  ;;  %2330 = vmatprep.subr.bf16.mxu0 %v11274_v28  ;;  %v11346_v16 = vld [vmem:[%s17860_s3 + $0x6f4] ss:$24 sps:$4 sm:$0xff]   ;;  %v451_v20 = vld [vmem:[%s13333_s23 + $0x38] sm:$0xff]  ;;  %v11344_v24 = vld [vmem:[%s17860_s3 + $0x6f0] ss:$24 sps:$4 sm:$0xff]  }
  0x31   : > { %2403 = vmatprep.subr.bf16.mxu1 %v11276_v29  ;;  %v450_v18 = vld [vmem:[%s13333_s23 + $0x30] sm:$0xff]  ;;  %v453_v19 = vld [vmem:[%s13333_s23 + $0x48] sm:$0xff]  ;;  %v11352_v28 = vld [vmem:[%s17860_s3 + $0x6c4] ss:$24 sps:$4 sm:$0xff]  }
  0x32   : > { %v13444_v21 = vcombine.high %v450_v18, %v453_v19  ;;  %v454_v22 = vld [vmem:[%s13333_s23 + $0x50] sm:$0xff]  ;;  %v13456_v26 = vcombine.low %v450_v18, %v453_v19  ;;  %v11355_v29 = vld [vmem:[%s17860_s3 + $0xcc] ss:$24 sps:$4 sm:$0xff]   ;;  %v463_v49 = vld [vmem:[%s13333_s23 + $0x98] sm:$0xff] }
  0x33   : > { %2331 = vmatpush1.bf16.msra.mxu0 %v11278_v30  ;;  %v13447_v23 = vcombine.high %v451_v20, %v454_v22  ;;  %v11347_v25 = vld [vmem:[%s17860_s3 + $0xf8] ss:$24 sps:$4 sm:$0xff]   ;;  %v13458_v27 = vcombine.low %v451_v20, %v454_v22  ;;  %v11408_v19 = vld [vmem:[%s17860_s3 + $0x844] ss:$24 sps:$4 sm:$0xff]  }
  0x34   : > { %2404 = vmatpush1.bf16.msra.mxu1 %v11279_v31  ;;  %2332 = vmatprep.subr.bf16.mxu0 %v11280_v32  ;;  %v11350_v30 = vld [vmem:[%s17860_s3 + $0x6c0] ss:$24 sps:$4 sm:$0xff]   ;;  %v466_v50 = vld [vmem:[%s13333_s23 + $0xb0] sm:$0xff]  ;;  %v11411_v20 = vld [vmem:[%s17860_s3 + $0x24c] ss:$24 sps:$4 sm:$0xff]  }
  0x35   : > { %2405 = vmatprep.subr.bf16.mxu1 %v11282_v33  ;;  %v11353_v31 = vld [vmem:[%s17860_s3 + $0xc8] ss:$24 sps:$4 sm:$0xff]   ;;  %v459_v33 = vld [vmem:[%s13333_s23 + $0x78] sm:$0xff] }
  0x36   : > { %v456_v32 = vld [vmem:[%s13333_s23 + $0x60] sm:$0xff]  ;;  %v11399_v18 = vld [vmem:[%s17860_s3 + $0x278] ss:$24 sps:$4 sm:$0xff]  }
  0x37   : > { %2333 = vmatpush2.bf16.msra.mxu0 %v11284_v34  ;;  %v457_v34 = vld [vmem:[%s13333_s23 + $0x68] sm:$0xff]  ;;  %v11362_v51 = vld [vmem:[%s17860_s3 + $0x660] ss:$24 sps:$4 sm:$0xff]  }
  0x38   : > { %2406 = vmatpush2.bf16.msra.mxu1 %v11285_v35  ;;  %2334 = vmatprep.subr.bf16.mxu0 %v11286_v36  ;;  %v460_v35 = vld [vmem:[%s13333_s23 + $0x80] sm:$0xff]  ;;  %v11358_v36 = vld [vmem:[%s17860_s3 + $0x694] ss:$24 sps:$4 sm:$0xff]  }
  0x39   : > { %2407 = vmatprep.subr.bf16.mxu1 %v11288_v37  ;;  %v13482_v37 = vcombine.high %v456_v32, %v459_v33  ;;  %v11406_v22 = vld [vmem:[%s17860_s3 + $0x840] ss:$24 sps:$4 sm:$0xff]  }
  0x3b   : > { %2335 = vmatpush2.bf16.msra.mxu0 %v11290_v38  ;;  %v13484_v38 = vcombine.high %v457_v34, %v460_v35 }
  0x3c   : > { %2408 = vmatpush2.bf16.msra.mxu1 %v11291_v39  ;;  %2336 = vmatprep.subr.bf16.mxu0 %v11292_v40  ;;  %v11361_v39 = vld [vmem:[%s17860_s3 + $0x9c] ss:$24 sps:$4 sm:$0xff]   ;;  %v11356_v40 = vld [vmem:[%s17860_s3 + $0x690] ss:$24 sps:$4 sm:$0xff]  }
  0x3d   : > { %2409 = vmatprep.subr.bf16.mxu1 %v11294_v41  ;;  %v11359_v41 = vld [vmem:[%s17860_s3 + $0x98] ss:$24 sps:$4 sm:$0xff]  }
  0x3f   : > { %2337 = vmatpush2.bf16.msra.mxu0 %v11296_v42  ;;  %v13497_v42 = vcombine.low %v456_v32, %v459_v33  ;;  %v11427_v32 = vld [vmem:[%s17860_s3 + $0x1ec] ss:$24 sps:$4 sm:$0xff]   ;;  %v11422_v33 = vld [vmem:[%s17860_s3 + $0x7e0] ss:$24 sps:$4 sm:$0xff]  }
  0x40   : > { %2410 = vmatpush2.bf16.msra.mxu1 %v11297_v43  ;;  %2338 = vmatprep.subr.bf16.mxu0 %v11298_v44  ;;  %v13499_v43 = vcombine.low %v457_v34, %v460_v35  ;;  %v11364_v44 = vld [vmem:[%s17860_s3 + $0x664] ss:$24 sps:$4 sm:$0xff]   ;;  %v11425_v34 = vld [vmem:[%s17860_s3 + $0x1e8] ss:$24 sps:$4 sm:$0xff]   ;;  %v11430_v35 = vld [vmem:[%s17860_s3 + $0x7b4] ss:$24 sps:$4 sm:$0xff]  }
  0x41   : > { %2411 = vmatprep.subr.bf16.mxu1 %v11300_v45  ;;  %v11367_v45 = vld [vmem:[%s17860_s3 + $0x6c] ss:$24 sps:$4 sm:$0xff]  }
  0x43   : > { %2339 = vmatpush2.bf16.msra.mxu0 %v11302_v46  ;;  %v462_v46 = vld [vmem:[%s13333_s23 + $0x90] sm:$0xff] }
  0x44   : > { %2412 = vmatpush2.bf16.msra.mxu1 %v11303_v47  ;;  %2340 = vmatprep.subr.bf16.mxu0 %v11304_v52  ;;  %v465_v47 = vld [vmem:[%s13333_s23 + $0xa8] sm:$0xff] }
  0x45   : > { %2413 = vmatprep.subr.bf16.mxu1 %v11306_v55  ;;  %v13509_v48 = vcombine.high %v462_v46, %v465_v47  ;;  %v11365_v52 = vld [vmem:[%s17860_s3 + $0x68] ss:$24 sps:$4 sm:$0xff]   ;;  %v13521_v55 = vcombine.high %v463_v49, %v466_v50 }
  0x47   : > { %2341 = vmatpush2.bf16.msra.mxu0 %v11308_v56  ;;  %v11370_v56 = vld [vmem:[%s17860_s3 + $0x634] ss:$24 sps:$4 sm:$0xff]  }
  0x48   : > { %2414 = vmatpush2.bf16.msra.mxu1 %v11309_v57  ;;  %2342 = vmatprep.subr.bf16.mxu0 %v11310_v58  ;;  %v11373_v57 = vld [vmem:[%s17860_s3 + $0x3c] ss:$24 sps:$4 sm:$0xff]   ;;  %v11368_v58 = vld [vmem:[%s17860_s3 + $0x630] ss:$24 sps:$4 sm:$0xff]  }
  0x49   : > { %2415 = vmatprep.subr.bf16.mxu1 %v11312_v59  ;;  %v11371_v59 = vld [vmem:[%s17860_s3 + $0x38] ss:$24 sps:$4 sm:$0xff]  }
  0x4b   : > { %2343 = vmatpush2.bf16.msra.mxu0 %v11314_v60  ;;  %v13537_v60 = vcombine.low %v462_v46, %v465_v47  ;;  %v11437_v46 = vld [vmem:[%s17860_s3 + $0x188] ss:$24 sps:$4 sm:$0xff]   ;;  %v11444_v47 = vld [vmem:[%s17860_s3 + $0x45c] ss:$24 sps:$4 sm:$0xff]  }
  0x4c   : > { %2416 = vmatpush2.bf16.msra.mxu1 %v11315_v61  ;;  %2344 = vmatprep.subr.bf16.mxu0 %v11316_v62  ;;  %v13539_v61 = vcombine.low %v463_v49, %v466_v50  ;;  %v11376_v62 = vld [vmem:[%s17860_s3 + $0x604] ss:$24 sps:$4 sm:$0xff]   ;;  %v11442_v50 = vld [vmem:[%s17860_s3 + $0x458] ss:$24 sps:$4 sm:$0xff]  }
  0x4d   : > { %2417 = vmatprep.subr.bf16.mxu1 %v11318_v63  ;;  %v11379_v63 = vld [vmem:[%s17860_s3 + $0xc] ss:$24 sps:$4 sm:$0xff]   ;;  %v11447_v49 = vld [vmem:[%s17860_s3 + $0x75c] ss:$24 sps:$4 sm:$0xff]  }
  0x4f   : > { %2345 = vmatpush2.bf16.msra.mxu0 %v11320_v0  ;;  %v13548_v0 = vld [vmem:[%s13333_s23 + $0x10] sm:$0xff] }
  0x50   : > { %2418 = vmatpush2.bf16.msra.mxu1 %v11321_v1  ;;  %2346 = vmatprep.subr.bf16.mxu0 %v11322_v2  ;;  %v13553_v1 = vld [vmem:[%s13333_s23 + $0x28] sm:$0xff]  ;;  %v11374_v2 = vld [vmem:[%s17860_s3 + $0x600] ss:$24 sps:$4 sm:$0xff]  }
  0x51   : > { %2419 = vmatprep.subr.bf16.mxu1 %v11324_v3  ;;  %v11377_v3 = vld [vmem:[%s17860_s3 + $0x8] ss:$24 sps:$4 sm:$0xff]  }
  0x53   : > { %2347 = vmatpush2.bf16.msra.mxu0 %v11326_v4  ;;  %v13563_v4 = vcombine.high %v13548_v0, %v13553_v1 }
  0x54   : > { %2420 = vmatpush2.bf16.msra.mxu1 %v11327_v5  ;;  %2462 = vmatprep.subr.bf16.mxu0 %v11334_v6  ;;  %v11382_v5 = vld [vmem:[%s17860_s3 + $0x8d4] ss:$24 sps:$4 sm:$0xff]  }
  0x55   : > { %2535 = vmatprep.subr.bf16.mxu1 %v11337_v7  ;;  %v11385_v6 = vld [vmem:[%s17860_s3 + $0x2dc] ss:$24 sps:$4 sm:$0xff]   ;;  %v11380_v7 = vld [vmem:[%s17860_s3 + $0x8d0] ss:$24 sps:$4 sm:$0xff]  }
  0x56   : > { %2349 = vmatmul.mubr.bf16.vlgmr.msra.gmra.mxu0 %v13411_v8 }
  0x57   : > { %2422 = vmatmul.mubr.bf16.vlgmr.msra.gmra.mxu1 %v13413_v9  ;;  %2463 = vmatpush1.bf16.msra.mxu0 %v11332_v10  ;;  %v11383_v10 = vld [vmem:[%s17860_s3 + $0x2d8] ss:$24 sps:$4 sm:$0xff]  }
  0x58   : > { %2536 = vmatpush1.bf16.msra.mxu1 %v11335_v11  ;;  %2464 = vmatprep.subr.bf16.mxu0 %v11340_v12  ;;  %v11392_v11 = vld [vmem:[%s17860_s3 + $0x8a4] ss:$24 sps:$4 sm:$0xff]  }
  0x59   : > { %2537 = vmatprep.subr.bf16.mxu1 %v11343_v13  ;;  %2358 = vmatprep.mubr.bf16.mxu0 %v13444_v21  ;;  %v11395_v12 = vld [vmem:[%s17860_s3 + $0x2ac] ss:$24 sps:$4 sm:$0xff]   ;;  %v11390_v13 = vld [vmem:[%s17860_s3 + $0x8a0] ss:$24 sps:$4 sm:$0xff]  }
  0x5a   : > { %2431 = vmatprep.mubr.bf16.mxu1 %v13447_v23 }
  0x5b   : > { %2465 = vmatpush1.bf16.msra.mxu0 %v11338_v14  ;;  %v11393_v14 = vld [vmem:[%s17860_s3 + $0x2a8] ss:$24 sps:$4 sm:$0xff]  }
  0x5c   : > { %2538 = vmatpush1.bf16.msra.mxu1 %v11341_v15  ;;  %2466 = vmatprep.subr.bf16.mxu0 %v11346_v16  ;;  %v11398_v15 = vld [vmem:[%s17860_s3 + $0x874] ss:$24 sps:$4 sm:$0xff]  }
  0x5d   : > { %2539 = vmatprep.subr.bf16.mxu1 %v11349_v17  ;;  %v11401_v16 = vld [vmem:[%s17860_s3 + $0x27c] ss:$24 sps:$4 sm:$0xff]   ;;  %v11396_v17 = vld [vmem:[%s17860_s3 + $0x870] ss:$24 sps:$4 sm:$0xff]  }
  0x5e   : > { %2359 = vmatmul.mubr.bf16.gmra.mxu0 %v13456_v26 }
  0x5f   : > { %2432 = vmatmul.mubr.bf16.gmra.mxu1 %v13458_v27  ;;  %2467 = vmatpush1.bf16.msra.mxu0 %v11344_v24  ;;  %v11409_v24 = vld [vmem:[%s17860_s3 + $0x248] ss:$24 sps:$4 sm:$0xff]  }
  0x60   : > { %2540 = vmatpush1.bf16.msra.mxu1 %v11347_v25  ;;  %2468 = vmatprep.subr.bf16.mxu0 %v11352_v28  ;;  %v11414_v25 = vld [vmem:[%s17860_s3 + $0x814] ss:$24 sps:$4 sm:$0xff]  }
  0x61   : > { %2541 = vmatprep.subr.bf16.mxu1 %v11355_v29  ;;  %2368 = vmatprep.mubr.bf16.mxu0 %v13482_v37  ;;  %v11417_v28 = vld [vmem:[%s17860_s3 + $0x21c] ss:$24 sps:$4 sm:$0xff]   ;;  %v11412_v29 = vld [vmem:[%s17860_s3 + $0x810] ss:$24 sps:$4 sm:$0xff]  }
  0x62   : > { %2441 = vmatprep.mubr.bf16.mxu1 %v13484_v38 }
  0x63   : > { %2469 = vmatpush1.bf16.msra.mxu0 %v11350_v30  ;;  %v11415_v30 = vld [vmem:[%s17860_s3 + $0x218] ss:$24 sps:$4 sm:$0xff]  }
  0x64   : > { %2542 = vmatpush1.bf16.msra.mxu1 %v11353_v31  ;;  %2470 = vmatprep.subr.bf16.mxu0 %v11358_v36  ;;  %v11424_v31 = vld [vmem:[%s17860_s3 + $0x7e4] ss:$24 sps:$4 sm:$0xff]  }
  0x65   : > { %2543 = vmatprep.subr.bf16.mxu1 %v11361_v39  ;;  %v11433_v36 = vld [vmem:[%s17860_s3 + $0x1bc] ss:$24 sps:$4 sm:$0xff]   ;;  %v11428_v39 = vld [vmem:[%s17860_s3 + $0x7b0] ss:$24 sps:$4 sm:$0xff]  }
  0x66   : > { %2369 = vmatmul.mubr.bf16.gmra.mxu0 %v13497_v42 }
  0x67   : > { %2442 = vmatmul.mubr.bf16.gmra.mxu1 %v13499_v43  ;;  %2471 = vmatpush1.bf16.msra.mxu0 %v11356_v40  ;;  %v11431_v40 = vld [vmem:[%s17860_s3 + $0x1b8] ss:$24 sps:$4 sm:$0xff]  }
  0x68   : > { %2544 = vmatpush1.bf16.msra.mxu1 %v11359_v41  ;;  %2472 = vmatprep.subr.bf16.mxu0 %v11364_v44  ;;  %v11436_v41 = vld [vmem:[%s17860_s3 + $0x784] ss:$24 sps:$4 sm:$0xff]  }
  0x69   : > { %2545 = vmatprep.subr.bf16.mxu1 %v11367_v45  ;;  %2378 = vmatprep.mubr.bf16.mxu0 %v13509_v48  ;;  %v11439_v44 = vld [vmem:[%s17860_s3 + $0x18c] ss:$24 sps:$4 sm:$0xff]   ;;  %v11434_v45 = vld [vmem:[%s17860_s3 + $0x780] ss:$24 sps:$4 sm:$0xff]  }
  0x6a   : > { %2451 = vmatprep.mubr.bf16.mxu1 %v13521_v55 }
  0x6b   : > { %2473 = vmatpush1.bf16.msra.mxu0 %v11362_v51  ;;  %v11445_v51 = vld [vmem:[%s17860_s3 + $0x758] ss:$24 sps:$4 sm:$0xff]  }
  0x6c   : > { %2546 = vmatpush1.bf16.msra.mxu1 %v11365_v52  ;;  %2474 = vmatprep.subr.bf16.mxu0 %v11370_v56  ;;  %v13677_v52 = vcombine.low %v13548_v0, %v13553_v1  ;;  %v452_v56 = vld [vmem:[%s13333_s23 + $0x40] sm:$0xff]  ;;  %v11458_v1 = vld [vmem:[%s17860_s3 + $0x3fc] ss:$24 sps:$4 sm:$0xff]  }
  0x6d   : > { %2547 = vmatprep.subr.bf16.mxu1 %v11373_v57  ;;  %v455_v57 = vld [vmem:[%s13333_s23 + $0x58] sm:$0xff]  ;;  %v11451_v0 = vld [vmem:[%s17860_s3 + $0x728] ss:$24 sps:$4 sm:$0xff]  }
  0x6e   : > { %2379 = vmatmul.mubr.bf16.gmra.mxu0 %v13537_v60 }
  0x6f   : > { %2452 = vmatmul.mubr.bf16.gmra.mxu1 %v13539_v61  ;;  %2475 = vmatpush1.bf16.msra.mxu0 %v11368_v58  ;;  %v11450_v58 = vld [vmem:[%s17860_s3 + $0x42c] ss:$24 sps:$4 sm:$0xff]  }
  0x70   : > { %2548 = vmatpush1.bf16.msra.mxu1 %v11371_v59  ;;  %2476 = vmatprep.subr.bf16.mxu0 %v11376_v62  ;;  %v11453_v59 = vld [vmem:[%s17860_s3 + $0x72c] ss:$24 sps:$4 sm:$0xff]   ;;  %v13687_v62 = vcombine.high %v452_v56, %v455_v57 }
  0x71   : > { %2549 = vmatprep.subr.bf16.mxu1 %v11379_v63  ;;  %2494 = vmatprep.mubr.bf16.mxu0 %v13563_v4  ;;  %v11448_v63 = vld [vmem:[%s17860_s3 + $0x428] ss:$24 sps:$4 sm:$0xff]  }
  0x72   : > { %2567 = vmatprep.mubr.bf16.mxu1 %v13354_v53 }
  0x73   : > { %2477 = vmatpush1.bf16.msra.mxu0 %v11374_v2  ;;  %v11461_v2 = vld [vmem:[%s17860_s3 + $0x6fc] ss:$24 sps:$4 sm:$0xff]  }
  0x74   : > { %2550 = vmatpush1.bf16.msra.mxu1 %v11377_v3  ;;  %2478 = vmatprep.subr.bf16.mxu0 %v11382_v5  ;;  %v11456_v3 = vld [vmem:[%s17860_s3 + $0x3f8] ss:$24 sps:$4 sm:$0xff]  }
  0x75   : > { %2551 = vmatprep.subr.bf16.mxu1 %v11385_v6  ;;  %v11459_v5 = vld [vmem:[%s17860_s3 + $0x6f8] ss:$24 sps:$4 sm:$0xff]   ;;  %v13711_v6 = vcombine.low %v452_v56, %v455_v57  ;;  %v11502_v56 = vld [vmem:[%s17860_s3 + $0x5a8] ss:$24 sps:$4 sm:$0xff]  }
  0x76   : > { %v11505_v57 = vld [vmem:[%s17860_s3 + $0x8a8] ss:$24 sps:$4 sm:$0xff]  }
  0x77   : > { %2479 = vmatpush2.bf16.msra.mxu0 %v11380_v7  ;;  %v458_v7 = vld [vmem:[%s13333_s23 + $0x70] sm:$0xff] }
  0x78   : > { %2552 = vmatpush2.bf16.msra.mxu1 %v11383_v10  ;;  %2480 = vmatprep.subr.bf16.mxu0 %v11392_v11  ;;  %v461_v10 = vld [vmem:[%s13333_s23 + $0x88] sm:$0xff] }
  0x79   : > { %2553 = vmatprep.subr.bf16.mxu1 %v11395_v12  ;;  %v11464_v11 = vld [vmem:[%s17860_s3 + $0x3cc] ss:$24 sps:$4 sm:$0xff]  }
  0x7a   : > { %v11467_v12 = vld [vmem:[%s17860_s3 + $0x6cc] ss:$24 sps:$4 sm:$0xff]  }
  0x7b   : > { %2481 = vmatpush2.bf16.msra.mxu0 %v11390_v13  ;;  %v13721_v13 = vcombine.high %v458_v7, %v461_v10 }
  0x7c   : > { %2554 = vmatpush2.bf16.msra.mxu1 %v11393_v14  ;;  %2482 = vmatprep.subr.bf16.mxu0 %v11398_v15  ;;  %v11462_v14 = vld [vmem:[%s17860_s3 + $0x3c8] ss:$24 sps:$4 sm:$0xff]  }
  0x7d   : > { %2555 = vmatprep.subr.bf16.mxu1 %v11401_v16  ;;  %v11465_v15 = vld [vmem:[%s17860_s3 + $0x6c8] ss:$24 sps:$4 sm:$0xff]   ;;  %v11472_v16 = vld [vmem:[%s17860_s3 + $0x39c] ss:$24 sps:$4 sm:$0xff]  }
  0x7f   : > { %2483 = vmatpush2.bf16.msra.mxu0 %v11396_v17  ;;  %v11475_v17 = vld [vmem:[%s17860_s3 + $0x69c] ss:$24 sps:$4 sm:$0xff]  }
  0x80   : > { %2556 = vmatpush2.bf16.msra.mxu1 %v11399_v18  ;;  %2484 = vmatprep.subr.bf16.mxu0 %v11408_v19  ;;  %v11470_v18 = vld [vmem:[%s17860_s3 + $0x398] ss:$24 sps:$4 sm:$0xff]  }
  0x81   : > { %2557 = vmatprep.subr.bf16.mxu1 %v11411_v20  ;;  %v11473_v19 = vld [vmem:[%s17860_s3 + $0x698] ss:$24 sps:$4 sm:$0xff]   ;;  %v13745_v20 = vcombine.low %v458_v7, %v461_v10  ;;  %v11522_v7 = vld [vmem:[%s17860_s3 + $0x51c] ss:$24 sps:$4 sm:$0xff]  }
  0x82   : > { %v11525_v10 = vld [vmem:[%s17860_s3 + $0x81c] ss:$24 sps:$4 sm:$0xff]  }
  0x83   : > { %2485 = vmatpush2.bf16.msra.mxu0 %v11406_v22  ;;  %v464_v22 = vld [vmem:[%s13333_s23 + $0xa0] sm:$0xff] }
  0x84   : > { %2558 = vmatpush2.bf16.msra.mxu1 %v11409_v24  ;;  %2486 = vmatprep.subr.bf16.mxu0 %v11414_v25  ;;  %v467_v24 = vld [vmem:[%s13333_s23 + $0xb8] sm:$0xff]  ;;  %v11478_v25 = vld [vmem:[%s17860_s3 + $0x36c] ss:$24 sps:$4 sm:$0xff]  }
  0x85   : > { %2559 = vmatprep.subr.bf16.mxu1 %v11417_v28  ;;  %v11481_v28 = vld [vmem:[%s17860_s3 + $0x66c] ss:$24 sps:$4 sm:$0xff]  }
  0x87   : > { %2487 = vmatpush2.bf16.msra.mxu0 %v11412_v29  ;;  %v13755_v29 = vcombine.high %v464_v22, %v467_v24 }
  0x88   : > { %2560 = vmatpush2.bf16.msra.mxu1 %v11415_v30  ;;  %2488 = vmatprep.subr.bf16.mxu0 %v11424_v31  ;;  %v11476_v30 = vld [vmem:[%s17860_s3 + $0x368] ss:$24 sps:$4 sm:$0xff]  }
  0x89   : > { %2561 = vmatprep.subr.bf16.mxu1 %v11427_v32  ;;  %v11479_v31 = vld [vmem:[%s17860_s3 + $0x668] ss:$24 sps:$4 sm:$0xff]   ;;  %v11486_v32 = vld [vmem:[%s17860_s3 + $0x33c] ss:$24 sps:$4 sm:$0xff]  }
  0x8b   : > { %2489 = vmatpush2.bf16.msra.mxu0 %v11422_v33  ;;  %v11489_v33 = vld [vmem:[%s17860_s3 + $0x63c] ss:$24 sps:$4 sm:$0xff]  }
  0x8c   : > { %2562 = vmatpush2.bf16.msra.mxu1 %v11425_v34  ;;  %2490 = vmatprep.subr.bf16.mxu0 %v11430_v35  ;;  %v13773_v34 = vcombine.low %v464_v22, %v467_v24  ;;  %v11484_v35 = vld [vmem:[%s17860_s3 + $0x338] ss:$24 sps:$4 sm:$0xff]  }
  0x8d   : > { %2563 = vmatprep.subr.bf16.mxu1 %v11433_v36  ;;  %v11487_v36 = vld [vmem:[%s17860_s3 + $0x638] ss:$24 sps:$4 sm:$0xff]  }
  0x8e   : > { %v11532_v22 = vld [vmem:[%s17860_s3 + $0x4b8] ss:$24 sps:$4 sm:$0xff]  }
  0x8f   : > { %2491 = vmatpush2.bf16.msra.mxu0 %v11428_v39  ;;  %v11492_v39 = vld [vmem:[%s17860_s3 + $0x30c] ss:$24 sps:$4 sm:$0xff]   ;;  %v11535_v24 = vld [vmem:[%s17860_s3 + $0x7b8] ss:$24 sps:$4 sm:$0xff]  }
  0x90   : > { %2564 = vmatpush2.bf16.msra.mxu1 %v11431_v40  ;;  %2492 = vmatprep.subr.bf16.mxu0 %v11436_v41  ;;  %v11495_v40 = vld [vmem:[%s17860_s3 + $0x60c] ss:$24 sps:$4 sm:$0xff]   ;;  %v11490_v41 = vld [vmem:[%s17860_s3 + $0x308] ss:$24 sps:$4 sm:$0xff]  }
  0x91   : > { %2565 = vmatprep.subr.bf16.mxu1 %v11439_v44  ;;  %v11493_v44 = vld [vmem:[%s17860_s3 + $0x608] ss:$24 sps:$4 sm:$0xff]  }
  0x93   : > { %2493 = vmatpush2.bf16.msra.mxu0 %v11434_v45  ;;  %v11498_v45 = vld [vmem:[%s17860_s3 + $0x5dc] ss:$24 sps:$4 sm:$0xff]  }
  0x94   : > { %2566 = vmatpush2.bf16.msra.mxu1 %v11437_v46  ;;  %2608 = vmatprep.subr.bf16.mxu0 %v11444_v47  ;;  %v11501_v46 = vld [vmem:[%s17860_s3 + $0x8dc] ss:$24 sps:$4 sm:$0xff]   ;;  %v11496_v47 = vld [vmem:[%s17860_s3 + $0x5d8] ss:$24 sps:$4 sm:$0xff]  }
  0x95   : > { %2681 = vmatprep.subr.bf16.mxu1 %v11447_v49  ;;  %v11499_v49 = vld [vmem:[%s17860_s3 + $0x8d8] ss:$24 sps:$4 sm:$0xff]  }
  0x96   : > { %2495 = vmatmul.mubr.bf16.vlgmr.msra.gmra.mxu0 %v13677_v52 }
  0x97   : > { %2568 = vmatmul.mubr.bf16.vlgmr.msra.gmra.mxu1 %v13411_v8  ;;  %2609 = vmatpush1.bf16.msra.mxu0 %v11442_v50  ;;  %v11504_v50 = vld [vmem:[%s17860_s3 + $0x5ac] ss:$24 sps:$4 sm:$0xff]  }
  0x98   : > { %2682 = vmatpush1.bf16.msra.mxu1 %v11445_v51  ;;  %2610 = vmatprep.subr.bf16.mxu0 %v11450_v58  ;;  %v11507_v51 = vld [vmem:[%s17860_s3 + $0x8ac] ss:$24 sps:$4 sm:$0xff]   ;;  %v11510_v58 = vld [vmem:[%s17860_s3 + $0x57c] ss:$24 sps:$4 sm:$0xff]  }
  0x99   : > { %2683 = vmatprep.subr.bf16.mxu1 %v11453_v59  ;;  %2504 = vmatprep.mubr.bf16.mxu0 %v13687_v62  ;;  %v11513_v59 = vld [vmem:[%s17860_s3 + $0x87c] ss:$24 sps:$4 sm:$0xff]  }
  0x9a   : > { %2577 = vmatprep.mubr.bf16.mxu1 %v13444_v21 }
  0x9b   : > { %2611 = vmatpush1.bf16.msra.mxu0 %v11448_v63  ;;  %v11508_v63 = vld [vmem:[%s17860_s3 + $0x578] ss:$24 sps:$4 sm:$0xff]  }
  0x9c   : > { %2684 = vmatpush1.bf16.msra.mxu1 %v11451_v0  ;;  %2612 = vmatprep.subr.bf16.mxu0 %v11458_v1  ;;  %v11511_v0 = vld [vmem:[%s17860_s3 + $0x878] ss:$24 sps:$4 sm:$0xff]   ;;  %v11516_v1 = vld [vmem:[%s17860_s3 + $0x54c] ss:$24 sps:$4 sm:$0xff]  }
  0x9d   : > { %2685 = vmatprep.subr.bf16.mxu1 %v11461_v2  ;;  %v11519_v2 = vld [vmem:[%s17860_s3 + $0x84c] ss:$24 sps:$4 sm:$0xff]  }
  0x9e   : > { %2505 = vmatmul.mubr.bf16.gmra.mxu0 %v13711_v6 }
  0x9f   : > { %2578 = vmatmul.mubr.bf16.gmra.mxu1 %v13456_v26  ;;  %2613 = vmatpush1.bf16.msra.mxu0 %v11456_v3  ;;  %v11514_v3 = vld [vmem:[%s17860_s3 + $0x548] ss:$24 sps:$4 sm:$0xff]  }
  0xa0   : > { %2686 = vmatpush1.bf16.msra.mxu1 %v11459_v5  ;;  %2614 = vmatprep.subr.bf16.mxu0 %v11464_v11  ;;  %v11517_v5 = vld [vmem:[%s17860_s3 + $0x848] ss:$24 sps:$4 sm:$0xff]   ;;  %v11520_v11 = vld [vmem:[%s17860_s3 + $0x518] ss:$24 sps:$4 sm:$0xff]  }
  0xa1   : > { %2687 = vmatprep.subr.bf16.mxu1 %v11467_v12  ;;  %2514 = vmatprep.mubr.bf16.mxu0 %v13721_v13  ;;  %v11523_v12 = vld [vmem:[%s17860_s3 + $0x818] ss:$24 sps:$4 sm:$0xff]  }
  0xa2   : > { %2587 = vmatprep.mubr.bf16.mxu1 %v13482_v37 }
  0xa3   : > { %2615 = vmatpush1.bf16.msra.mxu0 %v11462_v14  ;;  %v11528_v14 = vld [vmem:[%s17860_s3 + $0x4ec] ss:$24 sps:$4 sm:$0xff]  }
  0xa4   : > { %2688 = vmatpush1.bf16.msra.mxu1 %v11465_v15  ;;  %2616 = vmatprep.subr.bf16.mxu0 %v11472_v16  ;;  %v11531_v15 = vld [vmem:[%s17860_s3 + $0x7ec] ss:$24 sps:$4 sm:$0xff]   ;;  %v11526_v16 = vld [vmem:[%s17860_s3 + $0x4e8] ss:$24 sps:$4 sm:$0xff]  }
  0xa5   : > { %2689 = vmatprep.subr.bf16.mxu1 %v11475_v17  ;;  %v11529_v17 = vld [vmem:[%s17860_s3 + $0x7e8] ss:$24 sps:$4 sm:$0xff]  }
  0xa6   : > { %2515 = vmatmul.mubr.bf16.gmra.mxu0 %v13745_v20 }
  0xa7   : > { %2588 = vmatmul.mubr.bf16.gmra.mxu1 %v13497_v42  ;;  %2617 = vmatpush1.bf16.msra.mxu0 %v11470_v18  ;;  %v11534_v18 = vld [vmem:[%s17860_s3 + $0x4bc] ss:$24 sps:$4 sm:$0xff]  }
  0xa8   : > { %2690 = vmatpush1.bf16.msra.mxu1 %v11473_v19  ;;  %2618 = vmatprep.subr.bf16.mxu0 %v11478_v25  ;;  %v11537_v19 = vld [vmem:[%s17860_s3 + $0x7bc] ss:$24 sps:$4 sm:$0xff]   ;;  %v11540_v25 = vld [vmem:[%s17860_s3 + $0x48c] ss:$24 sps:$4 sm:$0xff]  }
  0xa9   : > { %2691 = vmatprep.subr.bf16.mxu1 %v11481_v28  ;;  %2524 = vmatprep.mubr.bf16.mxu0 %v13755_v29  ;;  %v11543_v28 = vld [vmem:[%s17860_s3 + $0x78c] ss:$24 sps:$4 sm:$0xff]  }
  0xaa   : > { %2597 = vmatprep.mubr.bf16.mxu1 %v13509_v48 }
  0xab   : > { %2619 = vmatpush1.bf16.msra.mxu0 %v11476_v30  ;;  %v11538_v30 = vld [vmem:[%s17860_s3 + $0x488] ss:$24 sps:$4 sm:$0xff]  }
  0xac   : > { %2692 = vmatpush1.bf16.msra.mxu1 %v11479_v31  ;;  %2620 = vmatprep.subr.bf16.mxu0 %v11486_v32  ;;  %v11541_v31 = vld [vmem:[%s17860_s3 + $0x788] ss:$24 sps:$4 sm:$0xff]   ;;  %v11546_v32 = vld [vmem:[%s17860_s3 + $0x164] ss:$24 sps:$4 sm:$0xff]  }
  0xad   : > { %2693 = vmatprep.subr.bf16.mxu1 %v11489_v33  ;;  %v11549_v33 = vld [vmem:[%s17860_s3 + $0x464] ss:$24 sps:$4 sm:$0xff]  }
  0xae   : > { %2525 = vmatmul.mubr.bf16.gmra.mxu0 %v13773_v34 }
  0xaf   : > { %2598 = vmatmul.mubr.bf16.gmra.mxu1 %v13537_v60  ;;  %2621 = vmatpush1.bf16.msra.mxu0 %v11484_v35  ;;  %v11544_v35 = vld [vmem:[%s17860_s3 + $0x160] ss:$24 sps:$4 sm:$0xff]  }
  0xb0   : > { %2694 = vmatpush1.bf16.msra.mxu1 %v11487_v36  ;;  %2622 = vmatprep.subr.bf16.mxu0 %v11492_v39  ;;  %v11547_v36 = vld [vmem:[%s17860_s3 + $0x460] ss:$24 sps:$4 sm:$0xff]   ;;  %v11552_v39 = vld [vmem:[%s17860_s3 + $0x134] ss:$24 sps:$4 sm:$0xff]  }
  0xb1   : > { %2695 = vmatprep.subr.bf16.mxu1 %v11495_v40  ;;  %2640 = vmatprep.mubr.bf16.mxu0 %v13356_v54  ;;  %v11555_v40 = vld [vmem:[%s17860_s3 + $0x434] ss:$24 sps:$4 sm:$0xff]  }
  0xb2   : > { %2713 = vmatprep.mubr.bf16.mxu1 %v13563_v4 }
  0xb3   : > { %2623 = vmatpush1.bf16.msra.mxu0 %v11490_v41  ;;  %v11550_v41 = vld [vmem:[%s17860_s3 + $0x130] ss:$24 sps:$4 sm:$0xff]  }
  0xb4   : > { %2696 = vmatpush1.bf16.msra.mxu1 %v11493_v44  ;;  %2624 = vmatprep.subr.bf16.mxu0 %v11498_v45  ;;  %v11553_v44 = vld [vmem:[%s17860_s3 + $0x430] ss:$24 sps:$4 sm:$0xff]   ;;  %v11558_v45 = vld [vmem:[%s17860_s3 + $0x104] ss:$24 sps:$4 sm:$0xff]  }
  0xb5   : > { %2697 = vmatprep.subr.bf16.mxu1 %v11501_v46  ;;  %v11561_v46 = vld [vmem:[%s17860_s3 + $0x404] ss:$24 sps:$4 sm:$0xff]  }
  0xb7   : > { %2625 = vmatpush2.bf16.msra.mxu0 %v11496_v47  ;;  %v11556_v47 = vld [vmem:[%s17860_s3 + $0x100] ss:$24 sps:$4 sm:$0xff]  }
  0xb8   : > { %2698 = vmatpush2.bf16.msra.mxu1 %v11499_v49  ;;  %2626 = vmatprep.subr.bf16.mxu0 %v11504_v50  ;;  %v11559_v49 = vld [vmem:[%s17860_s3 + $0x400] ss:$24 sps:$4 sm:$0xff]   ;;  %v11564_v50 = vld [vmem:[%s17860_s3 + $0xd4] ss:$24 sps:$4 sm:$0xff]  }
  0xb9   : > { %2699 = vmatprep.subr.bf16.mxu1 %v11507_v51  ;;  %v11567_v51 = vld [vmem:[%s17860_s3 + $0x3d4] ss:$24 sps:$4 sm:$0xff]  }
  0xbb   : > { %2627 = vmatpush2.bf16.msra.mxu0 %v11502_v56  ;;  %v11562_v56 = vld [vmem:[%s17860_s3 + $0xd0] ss:$24 sps:$4 sm:$0xff]  }
  0xbc   : > { %2700 = vmatpush2.bf16.msra.mxu1 %v11505_v57  ;;  %2628 = vmatprep.subr.bf16.mxu0 %v11510_v58  ;;  %v11565_v57 = vld [vmem:[%s17860_s3 + $0x3d0] ss:$24 sps:$4 sm:$0xff]   ;;  %v11570_v58 = vld [vmem:[%s17860_s3 + $0xa4] ss:$24 sps:$4 sm:$0xff]  }
  0xbd   : > { %2701 = vmatprep.subr.bf16.mxu1 %v11513_v59  ;;  %v11573_v59 = vld [vmem:[%s17860_s3 + $0x3a4] ss:$24 sps:$4 sm:$0xff]  }
  0xbf   : > { %2629 = vmatpush2.bf16.msra.mxu0 %v11508_v63  ;;  %v11568_v63 = vld [vmem:[%s17860_s3 + $0xa0] ss:$24 sps:$4 sm:$0xff]  }
  0xc0   : > { %2702 = vmatpush2.bf16.msra.mxu1 %v11511_v0  ;;  %2630 = vmatprep.subr.bf16.mxu0 %v11516_v1  ;;  %v11571_v0 = vld [vmem:[%s17860_s3 + $0x3a0] ss:$24 sps:$4 sm:$0xff]   ;;  %v11576_v1 = vld [vmem:[%s17860_s3 + $0x74] ss:$24 sps:$4 sm:$0xff]  }
  0xc1   : > { %2703 = vmatprep.subr.bf16.mxu1 %v11519_v2  ;;  %v11579_v2 = vld [vmem:[%s17860_s3 + $0x374] ss:$24 sps:$4 sm:$0xff]  }
  0xc3   : > { %2631 = vmatpush2.bf16.msra.mxu0 %v11514_v3  ;;  %v11574_v3 = vld [vmem:[%s17860_s3 + $0x70] ss:$24 sps:$4 sm:$0xff]  }
  0xc4   : > { %2704 = vmatpush2.bf16.msra.mxu1 %v11517_v5  ;;  %2632 = vmatprep.subr.bf16.mxu0 %v11522_v7  ;;  %v11577_v5 = vld [vmem:[%s17860_s3 + $0x370] ss:$24 sps:$4 sm:$0xff]   ;;  %v11582_v7 = vld [vmem:[%s17860_s3 + $0x44] ss:$24 sps:$4 sm:$0xff]  }
  0xc5   : > { %2705 = vmatprep.subr.bf16.mxu1 %v11525_v10  ;;  %v11585_v10 = vld [vmem:[%s17860_s3 + $0x344] ss:$24 sps:$4 sm:$0xff]  }
  0xc7   : > { %2633 = vmatpush2.bf16.msra.mxu0 %v11520_v11  ;;  %v11580_v11 = vld [vmem:[%s17860_s3 + $0x40] ss:$24 sps:$4 sm:$0xff]  }
  0xc8   : > { %2706 = vmatpush2.bf16.msra.mxu1 %v11523_v12  ;;  %2634 = vmatprep.subr.bf16.mxu0 %v11528_v14  ;;  %v11583_v12 = vld [vmem:[%s17860_s3 + $0x340] ss:$24 sps:$4 sm:$0xff]   ;;  %v11588_v14 = vld [vmem:[%s17860_s3 + $0x14] ss:$24 sps:$4 sm:$0xff]  }
  0xc9   : > { %2707 = vmatprep.subr.bf16.mxu1 %v11531_v15  ;;  %v11591_v15 = vld [vmem:[%s17860_s3 + $0x314] ss:$24 sps:$4 sm:$0xff]  }
  0xcb   : > { %2635 = vmatpush2.bf16.msra.mxu0 %v11526_v16  ;;  %v11586_v16 = vld [vmem:[%s17860_s3 + $0x10] ss:$24 sps:$4 sm:$0xff]  }
  0xcc   : > { %2708 = vmatpush2.bf16.msra.mxu1 %v11529_v17  ;;  %2636 = vmatprep.subr.bf16.mxu0 %v11534_v18  ;;  %v11589_v17 = vld [vmem:[%s17860_s3 + $0x310] ss:$24 sps:$4 sm:$0xff]   ;;  %v11594_v18 = vld [vmem:[%s17860_s3 + $0x2e4] ss:$24 sps:$4 sm:$0xff]  }
  0xcd   : > { %2709 = vmatprep.subr.bf16.mxu1 %v11537_v19  ;;  %v11597_v19 = vld [vmem:[%s17860_s3 + $0x5e4] ss:$24 sps:$4 sm:$0xff]  }
  0xcf   : > { %2637 = vmatpush2.bf16.msra.mxu0 %v11532_v22  ;;  %v11592_v22 = vld [vmem:[%s17860_s3 + $0x2e0] ss:$24 sps:$4 sm:$0xff]  }
  0xd0   : > { %2710 = vmatpush2.bf16.msra.mxu1 %v11535_v24  ;;  %2638 = vmatprep.subr.bf16.mxu0 %v11540_v25  ;;  %v11595_v24 = vld [vmem:[%s17860_s3 + $0x5e0] ss:$24 sps:$4 sm:$0xff]   ;;  %v11600_v25 = vld [vmem:[%s17860_s3 + $0x2b4] ss:$24 sps:$4 sm:$0xff]  }
  0xd1   : > { %2711 = vmatprep.subr.bf16.mxu1 %v11543_v28  ;;  %v11603_v28 = vld [vmem:[%s17860_s3 + $0x5b4] ss:$24 sps:$4 sm:$0xff]  }
  0xd3   : > { %2639 = vmatpush2.bf16.msra.mxu0 %v11538_v30  ;;  %v11598_v30 = vld [vmem:[%s17860_s3 + $0x2b0] ss:$24 sps:$4 sm:$0xff]  }
  0xd4   : > { %2712 = vmatpush2.bf16.msra.mxu1 %v11541_v31  ;;  %2754 = vmatprep.subr.bf16.mxu0 %v11546_v32  ;;  %v11609_v31 = vld [vmem:[%s17860_s3 + $0x584] ss:$24 sps:$4 sm:$0xff]   ;;  %v11604_v32 = vld [vmem:[%s17860_s3 + $0x280] ss:$24 sps:$4 sm:$0xff]  }
  0xd5   : > { %2827 = vmatprep.subr.bf16.mxu1 %v11549_v33  ;;  %v11607_v33 = vld [vmem:[%s17860_s3 + $0x580] ss:$24 sps:$4 sm:$0xff]  }
  0xd6   : > { %2641 = vmatmul.mubr.bf16.vlgmr.msra.gmra.mxu0 %v13413_v9 }
  0xd7   : > { %2714 = vmatmul.mubr.bf16.vlgmr.msra.gmra.mxu1 %v13677_v52  ;;  %2755 = vmatpush1.bf16.msra.mxu0 %v11544_v35  ;;  %v11612_v35 = vld [vmem:[%s17860_s3 + $0x254] ss:$24 sps:$4 sm:$0xff]  }
  0xd8   : > { %2828 = vmatpush1.bf16.msra.mxu1 %v11547_v36  ;;  %2756 = vmatprep.subr.bf16.mxu0 %v11552_v39  ;;  %v11615_v36 = vld [vmem:[%s17860_s3 + $0x554] ss:$24 sps:$4 sm:$0xff]   ;;  %v11610_v39 = vld [vmem:[%s17860_s3 + $0x250] ss:$24 sps:$4 sm:$0xff]  }
  0xd9   : > { %2829 = vmatprep.subr.bf16.mxu1 %v11555_v40  ;;  %2650 = vmatprep.mubr.bf16.mxu0 %v13447_v23  ;;  %v11613_v40 = vld [vmem:[%s17860_s3 + $0x550] ss:$24 sps:$4 sm:$0xff]  }
  0xda   : > { %2723 = vmatprep.mubr.bf16.mxu1 %v13687_v62 }
  0xdb   : > { %2757 = vmatpush1.bf16.msra.mxu0 %v11550_v41  ;;  %v11618_v41 = vld [vmem:[%s17860_s3 + $0x224] ss:$24 sps:$4 sm:$0xff]  }
  0xdc   : > { %2830 = vmatpush1.bf16.msra.mxu1 %v11553_v44  ;;  %2758 = vmatprep.subr.bf16.mxu0 %v11558_v45  ;;  %v11621_v44 = vld [vmem:[%s17860_s3 + $0x524] ss:$24 sps:$4 sm:$0xff]   ;;  %v11616_v45 = vld [vmem:[%s17860_s3 + $0x220] ss:$24 sps:$4 sm:$0xff]  }
  0xdd   : > { %2831 = vmatprep.subr.bf16.mxu1 %v11561_v46  ;;  %v11619_v46 = vld [vmem:[%s17860_s3 + $0x520] ss:$24 sps:$4 sm:$0xff]  }
  0xde   : > { %2651 = vmatmul.mubr.bf16.gmra.mxu0 %v13458_v27 }
  0xdf   : > { %2724 = vmatmul.mubr.bf16.gmra.mxu1 %v13711_v6  ;;  %2759 = vmatpush1.bf16.msra.mxu0 %v11556_v47  ;;  %v11624_v47 = vld [vmem:[%s17860_s3 + $0x1f4] ss:$24 sps:$4 sm:$0xff]  }
  0xe0   : > { %2832 = vmatpush1.bf16.msra.mxu1 %v11559_v49  ;;  %2760 = vmatprep.subr.bf16.mxu0 %v11564_v50  ;;  %v11627_v49 = vld [vmem:[%s17860_s3 + $0x4f4] ss:$24 sps:$4 sm:$0xff]   ;;  %v11622_v50 = vld [vmem:[%s17860_s3 + $0x1f0] ss:$24 sps:$4 sm:$0xff]  }
  0xe1   : > { %2833 = vmatprep.subr.bf16.mxu1 %v11567_v51  ;;  %2660 = vmatprep.mubr.bf16.mxu0 %v13484_v38  ;;  %v11625_v51 = vld [vmem:[%s17860_s3 + $0x4f0] ss:$24 sps:$4 sm:$0xff]  }
  0xe2   : > { %2733 = vmatprep.mubr.bf16.mxu1 %v13721_v13 }
  0xe3   : > { %2761 = vmatpush1.bf16.msra.mxu0 %v11562_v56  ;;  %v11630_v56 = vld [vmem:[%s17860_s3 + $0x1c4] ss:$24 sps:$4 sm:$0xff]  }
  0xe4   : > { %2834 = vmatpush1.bf16.msra.mxu1 %v11565_v57  ;;  %2762 = vmatprep.subr.bf16.mxu0 %v11570_v58  ;;  %v11633_v57 = vld [vmem:[%s17860_s3 + $0x4c4] ss:$24 sps:$4 sm:$0xff]   ;;  %v11628_v58 = vld [vmem:[%s17860_s3 + $0x1c0] ss:$24 sps:$4 sm:$0xff]  }
  0xe5   : > { %2835 = vmatprep.subr.bf16.mxu1 %v11573_v59  ;;  %v11631_v59 = vld [vmem:[%s17860_s3 + $0x4c0] ss:$24 sps:$4 sm:$0xff]  }
  0xe6   : > { %2661 = vmatmul.mubr.bf16.gmra.mxu0 %v13499_v43 }
  0xe7   : > { %2734 = vmatmul.mubr.bf16.gmra.mxu1 %v13745_v20  ;;  %2763 = vmatpush1.bf16.msra.mxu0 %v11568_v63  ;;  %v11636_v63 = vld [vmem:[%s17860_s3 + $0x194] ss:$24 sps:$4 sm:$0xff]  }
  0xe8   : > { %2836 = vmatpush1.bf16.msra.mxu1 %v11571_v0  ;;  %2764 = vmatprep.subr.bf16.mxu0 %v11576_v1  ;;  %v11639_v0 = vld [vmem:[%s17860_s3 + $0x494] ss:$24 sps:$4 sm:$0xff]   ;;  %v11634_v1 = vld [vmem:[%s17860_s3 + $0x190] ss:$24 sps:$4 sm:$0xff]  }
  0xe9   : > { %2837 = vmatprep.subr.bf16.mxu1 %v11579_v2  ;;  %2670 = vmatprep.mubr.bf16.mxu0 %v13521_v55  ;;  %v11637_v2 = vld [vmem:[%s17860_s3 + $0x490] ss:$24 sps:$4 sm:$0xff]  }
  0xea   : > { %2743 = vmatprep.mubr.bf16.mxu1 %v13755_v29 }
  0xeb   : > { %2765 = vmatpush1.bf16.msra.mxu0 %v11574_v3  ;;  %v11642_v3 = vld [vmem:[%s17860_s3 + $0x764] ss:$24 sps:$4 sm:$0xff]  }
  0xec   : > { %2838 = vmatpush1.bf16.msra.mxu1 %v11577_v5  ;;  %2766 = vmatprep.subr.bf16.mxu0 %v11582_v7  ;;  %v11640_v5 = vld [vmem:[%s17860_s3 + $0x760] ss:$24 sps:$4 sm:$0xff]   ;;  %v11645_v7 = vld [vmem:[%s17860_s3 + $0x734] ss:$24 sps:$4 sm:$0xff]  }
  0xed   : > { %2839 = vmatprep.subr.bf16.mxu1 %v11585_v10  ;;  %v11643_v10 = vld [vmem:[%s17860_s3 + $0x730] ss:$24 sps:$4 sm:$0xff]  }
  0xee   : > { %2671 = vmatmul.mubr.bf16.gmra.mxu0 %v13539_v61 }
  0xef   : > { %2744 = vmatmul.mubr.bf16.gmra.mxu1 %v13773_v34  ;;  %2767 = vmatpush1.bf16.msra.mxu0 %v11580_v11  ;;  %v11648_v11 = vld [vmem:[%s17860_s3 + $0x704] ss:$24 sps:$4 sm:$0xff]  }
  0xf0   : > { %2840 = vmatpush1.bf16.msra.mxu1 %v11583_v12  ;;  %2768 = vmatprep.subr.bf16.mxu0 %v11588_v14  ;;  %v11646_v12 = vld [vmem:[%s17860_s3 + $0x700] ss:$24 sps:$4 sm:$0xff]  }
  0xf1   : > { %2841 = vmatprep.subr.bf16.mxu1 %v11591_v15  ;;  %2786 = vmatprep.mubr.bf16.mxu0 %v13354_v53  ;;  %v11601_v53 = vld [vmem:[%s17860_s3 + $0x5b0] ss:$24 sps:$4 sm:$0xff]  }
  0xf2   : > { %2859 = vmatprep.mubr.bf16.mxu1 %v13356_v54  ;;  %v11606_v54 = vld [vmem:[%s17860_s3 + $0x284] ss:$24 sps:$4 sm:$0xff]  }
  0xf3   : > { %2769 = vmatpush1.bf16.msra.mxu0 %v11586_v16  ;;  %v11654_v16 = vld [vmem:[%s17860_s3 + $0x6a4] ss:$24 sps:$4 sm:$0xff]  }
  0xf4   : > { %2842 = vmatpush1.bf16.msra.mxu1 %v11589_v17  ;;  %2770 = vmatprep.subr.bf16.mxu0 %v11594_v18  ;;  %v11652_v17 = vld [vmem:[%s17860_s3 + $0x6a0] ss:$24 sps:$4 sm:$0xff]  }
  0xf5   : > { %2843 = vmatprep.subr.bf16.mxu1 %v11597_v19 }
  0xf7   : > { %2771 = vmatpush2.bf16.msra.mxu0 %v11592_v22  ;;  %v11660_v22 = vld [vmem:[%s17860_s3 + $0x644] ss:$24 sps:$4 sm:$0xff]  }
  0xf8   : > { %2844 = vmatpush2.bf16.msra.mxu1 %v11595_v24  ;;  %2772 = vmatprep.subr.bf16.mxu0 %v11600_v25 }
  0xf9   : > { %2845 = vmatprep.subr.bf16.mxu1 %v11603_v28  ;;  %v11658_v28 = vld [vmem:[%s17860_s3 + $0x640] ss:$24 sps:$4 sm:$0xff]  }
  0xfb   : > { %2773 = vmatpush2.bf16.msra.mxu0 %v11598_v30  ;;  %v11661_v30 = vld [vmem:[%s17860_s3 + $0x610] ss:$24 sps:$4 sm:$0xff]  }
  0xfc   : > { %2846 = vmatpush2.bf16.msra.mxu1 %v11601_v53  ;;  %2774 = vmatprep.subr.bf16.mxu0 %v11606_v54 }
  0xfd   : > { %2847 = vmatprep.subr.bf16.mxu1 %v11609_v31  ;;  %v11664_v31 = vld [vmem:[%s17860_s3 + $0x8e0] ss:$24 sps:$4 sm:$0xff]  }
  0xff   : > { %2775 = vmatpush2.bf16.msra.mxu0 %v11604_v32  ;;  %v11669_v32 = vld [vmem:[%s17860_s3 + $0x8b4] ss:$24 sps:$4 sm:$0xff]  }
 0x100   : > { %2848 = vmatpush2.bf16.msra.mxu1 %v11607_v33  ;;  %2776 = vmatprep.subr.bf16.mxu0 %v11612_v35  ;;  %v11672_v33 = vld [vmem:[%s17860_s3 + $0x884] ss:$24 sps:$4 sm:$0xff]  }
 0x101   : > { %2849 = vmatprep.subr.bf16.mxu1 %v11615_v36 }
 0x103   : > { %2777 = vmatpush2.bf16.msra.mxu0 %v11610_v39  ;;  %v11670_v39 = vld [vmem:[%s17860_s3 + $0x880] ss:$24 sps:$4 sm:$0xff]  }
 0x104   : > { %2850 = vmatpush2.bf16.msra.mxu1 %v11613_v40  ;;  %2778 = vmatprep.subr.bf16.mxu0 %v11618_v41  ;;  %v11675_v40 = vld [vmem:[%s17860_s3 + $0x854] ss:$24 sps:$4 sm:$0xff]   ;;  %v17884_v41 = vmov 0  }
 0x105   : > { %2851 = vmatprep.subr.bf16.mxu1 %v11621_v44  ;;  %11231 = vset.pattern.permute.xlu1 %v17884_v41 }
 0x106   : > { %11230 = vset.pattern.permute.xlu0 %v17884_v41 }
 0x107   : > { %2779 = vmatpush2.bf16.msra.mxu0 %v11616_v45 }
 0x108   : > { %2852 = vmatpush2.bf16.msra.mxu1 %v11619_v46  ;;  %2780 = vmatprep.subr.bf16.mxu0 %v11624_v47  ;;  %v11673_v46 = vld [vmem:[%s17860_s3 + $0x850] ss:$24 sps:$4 sm:$0xff]  }
 0x109   : > { %2853 = vmatprep.subr.bf16.mxu1 %v11627_v49 }
 0x10b   : > { %2781 = vmatpush2.bf16.msra.mxu0 %v11622_v50  ;;  %v11678_v50 = vld [vmem:[%s17860_s3 + $0x824] ss:$24 sps:$4 sm:$0xff]  }
 0x10c   : > { %2854 = vmatpush2.bf16.msra.mxu1 %v11625_v51  ;;  %2782 = vmatprep.subr.bf16.mxu0 %v11630_v56  ;;  %v11676_v51 = vld [vmem:[%s17860_s3 + $0x820] ss:$24 sps:$4 sm:$0xff]   ;;  %v11681_v56 = vld [vmem:[%s17860_s3 + $0x7f4] ss:$24 sps:$4 sm:$0xff]  }
 0x10d   : > { %2855 = vmatprep.subr.bf16.mxu1 %v11633_v57 }
 0x10f   : > { %2783 = vmatpush2.bf16.msra.mxu0 %v11628_v58 }
 0x110   : > { %2856 = vmatpush2.bf16.msra.mxu1 %v11631_v59  ;;  %2784 = vmatprep.subr.bf16.mxu0 %v11636_v63  ;;  %v11679_v59 = vld [vmem:[%s17860_s3 + $0x7f0] ss:$24 sps:$4 sm:$0xff]  }
 0x111   : > { %2857 = vmatprep.subr.bf16.mxu1 %v11639_v0 }
 0x113   : > { %2785 = vmatpush2.bf16.msra.mxu0 %v11634_v1  ;;  %v11684_v1 = vld [vmem:[%s17860_s3 + $0x7c4] ss:$24 sps:$4 sm:$0xff]  }
 0x114   : > { %2858 = vmatpush2.bf16.msra.mxu1 %v11637_v2  ;;  %2900 = vmatprep.subr.bf16.mxu0 %v11642_v3  ;;  %v11682_v2 = vld [vmem:[%s17860_s3 + $0x7c0] ss:$24 sps:$4 sm:$0xff]   ;;  %v11687_v3 = vld [vmem:[%s17860_s3 + $0x794] ss:$24 sps:$4 sm:$0xff]  }
 0x116   : > { %2787 = vmatmul.mubr.bf16.vlgmr.msra.gmra.mxu0 %v13411_v8  ;;  %v14123_v14 = vpop.f32.mrf.mxu0  ;;  %v11651_v8 = vld [vmem:[%s17860_s3 + $0x6d4] ss:$24 sps:$4 sm:$0xff]  }
 0x117   : > { %2860 = vmatmul.mubr.bf16.vlgmr.msra.gmra.mxu1 %v13413_v9  ;;  %2901 = vmatpush1.bf16.msra.mxu0 %v11640_v5  ;;  %v14125_v15 = vpop.f32.mrf.mxu1  ;;  %v11649_v9 = vld [vmem:[%s17860_s3 + $0x6d0] ss:$24 sps:$4 sm:$0xff]  }
 0x118   : > { %2796 = vmatprep.mubr.bf16.mxu0 %v13444_v21  ;;  %2902 = vmatprep.subr.bf16.mxu0 %v11645_v7  ;;  %v14133_v21 = vpop.f32.mrf.mxu0 }
 0x119   : > { %2869 = vmatprep.mubr.bf16.mxu1 %v13447_v23  ;;  %v14135_v23 = vpop.f32.mrf.mxu1 }
 0x11a   : > { %v14147_v18 = vpop.f32.mrf.mxu0 }
 0x11b   : > { %2903 = vmatpush1.bf16.msra.mxu0 %v11643_v10  ;;  %v14149_v19 = vpop.f32.mrf.mxu1  ;;  %v11685_v10 = vld [vmem:[%s17860_s3 + $0x790] ss:$24 sps:$4 sm:$0xff]  }
 0x11c   : > { %2904 = vmatprep.subr.bf16.mxu0 %v11648_v11 }
 0x11e   : > { %2797 = vmatmul.mubr.bf16.gmra.mxu0 %v13456_v26  ;;  %v11657_v26 = vld [vmem:[%s17860_s3 + $0x674] ss:$24 sps:$4 sm:$0xff]  }
 0x11f   : > { %2870 = vmatmul.mubr.bf16.gmra.mxu1 %v13458_v27  ;;  %2905 = vmatpush1.bf16.msra.mxu0 %v11646_v12  ;;  %v11655_v27 = vld [vmem:[%s17860_s3 + $0x670] ss:$24 sps:$4 sm:$0xff]  }
 0x120   : > { %2806 = vmatprep.mubr.bf16.mxu0 %v13482_v37  ;;  %2906 = vmatprep.subr.bf16.mxu0 %v11651_v8  ;;  %v14157_v37 = vpop.f32.mrf.mxu0 }
 0x121   : > { %2879 = vmatprep.mubr.bf16.mxu1 %v13484_v38  ;;  %v14159_v38 = vpop.f32.mrf.mxu1 }
 0x122   : > { %v14167_v24 = vpop.f32.mrf.mxu0 }
 0x123   : > { %2907 = vmatpush1.bf16.msra.mxu0 %v11649_v9  ;;  %v14169_v25 = vpop.f32.mrf.mxu1 }
 0x124   : > { %2908 = vmatprep.subr.bf16.mxu0 %v11654_v16 }
 0x126   : > { %2807 = vmatmul.mubr.bf16.gmra.mxu0 %v13497_v42  ;;  %v11663_v42 = vld [vmem:[%s17860_s3 + $0x614] ss:$24 sps:$4 sm:$0xff]  }
 0x127   : > { %2880 = vmatmul.mubr.bf16.gmra.mxu1 %v13499_v43  ;;  %2909 = vmatpush1.bf16.msra.mxu0 %v11652_v17  ;;  %v14178_v43 = vpop.f32.mrf.mxu0 }
 0x128   : > { %2816 = vmatprep.mubr.bf16.mxu0 %v13509_v48  ;;  %2910 = vmatprep.subr.bf16.mxu0 %v11657_v26  ;;  %v14180_v48 = vpop.f32.mrf.mxu1 }
 0x129   : > { %2889 = vmatprep.mubr.bf16.mxu1 %v13521_v55  ;;  %v11666_v55 = vld [vmem:[%s17860_s3 + $0x8e4] ss:$24 sps:$4 sm:$0xff]   ;;  %v14191_v53 = vpop.f32.mrf.mxu0 }
 0x12a   : > { %v14193_v54 = vpop.f32.mrf.mxu1 }
 0x12b   : > { %2911 = vmatpush1.bf16.msra.mxu0 %v11655_v27  ;;  %v2424_v27 = vadd.f32 %v14125_v15, %v14123_v14 }
 0x12c   : > { %2912 = vmatprep.subr.bf16.mxu0 %v11660_v22  ;;  %v2428_v22 = vadd.f32 %v14149_v19, %v14147_v18 }
 0x12e   : > { %2817 = vmatmul.mubr.bf16.gmra.mxu0 %v13537_v60  ;;  %v14201_v60 = vpop.f32.mrf.mxu0 }
 0x12f   : > { %2890 = vmatmul.mubr.bf16.gmra.mxu1 %v13539_v61  ;;  %2913 = vmatpush1.bf16.msra.mxu0 %v11658_v28  ;;  %v14203_v61 = vpop.f32.mrf.mxu1 }
 0x130   : > { %2932 = vmatprep.mubr.bf16.mxu0 %v13563_v4  ;;  %2914 = vmatprep.subr.bf16.mxu0 %v11663_v42  ;;  %v11667_v4 = vld [vmem:[%s17860_s3 + $0x8b0] ss:$24 sps:$4 sm:$0xff]   ;;  %v14212_v35 = vpop.f32.mrf.mxu0 }
 0x131   : > { %v14214_v36 = vpop.f32.mrf.mxu1  ;;  %3114 = vmatprep.mubr.bf16.mxu1 %v17884_v41 }
 0x132   : > { %v14230_v44 = vpop.f32.mrf.mxu0 }
 0x133   : > { %2915 = vmatpush1.bf16.msra.mxu0 %v11661_v30  ;;  %v14232_v45 = vpop.f32.mrf.mxu1 }
 0x134   : > { %2916 = vmatprep.subr.bf16.mxu0 %v11666_v55  ;;  %v14237_v47 = vpop.f32.mrf.mxu0 }
 0x135   : > { %v14239_v49 = vpop.f32.mrf.mxu1 }
 0x136   : > { %v2376_v57 = vpop.f32.mrf.mxu0 }
 0x137   : > { %2917 = vmatpush2.bf16.msra.mxu0 %v11664_v31  ;;  %v2449_v58 = vpop.f32.mrf.mxu1 }
 0x138   : > { %2918 = vmatprep.subr.bf16.mxu0 %v11669_v32  ;;  %v2380_v63 = vpop.f32.mrf.mxu0 }
 0x139   : > { %v2453_v0 = vpop.f32.mrf.mxu1 }
 0x13a   : > { %v2382_v5 = vpop.f32.mrf.mxu0 }
 0x13b   : > { %2919 = vmatpush2.bf16.msra.mxu0 %v11667_v4  ;;  %v2455_v7 = vpop.f32.mrf.mxu1 }
 0x13c   : > { %2920 = vmatprep.subr.bf16.mxu0 %v11672_v33  ;;  %v2384_v11 = vpop.f32.mrf.mxu0 }
 0x13d   : > { %v2457_v12 = vpop.f32.mrf.mxu1 }
 0x13e   : > { %v2386_v8 = vpop.f32.mrf.mxu0 }
 0x13f   : > { %2921 = vmatpush2.bf16.msra.mxu0 %v11670_v39  ;;  %v2459_v9 = vpop.f32.mrf.mxu1 }
 0x140   : > { %2922 = vmatprep.subr.bf16.mxu0 %v11675_v40 }
 0x143   : > { %2923 = vmatpush2.bf16.msra.mxu0 %v11673_v46 }
 0x144   : > { %2924 = vmatprep.subr.bf16.mxu0 %v11678_v50 }
 0x147   : > { %2925 = vmatpush2.bf16.msra.mxu0 %v11676_v51 }
 0x148   : > { %2926 = vmatprep.subr.bf16.mxu0 %v11681_v56  ;;  %v2458_v56 = vadd.f32 %v2457_v12, %v2384_v11 }
 0x14b   : > { %2927 = vmatpush2.bf16.msra.mxu0 %v11679_v59 }
 0x14c   : > { %2928 = vmatprep.subr.bf16.mxu0 %v11684_v1  ;;  %v2450_v1 = vadd.f32 %v2449_v58, %v2376_v57  ;;  %v2440_v57 = vadd.f32 %v14203_v61, %v14201_v60  ;;  %v2430_v61 = vadd.f32 %v14159_v38, %v14157_v37 }
 0x14f   : > { %2929 = vmatpush2.bf16.msra.mxu0 %v11682_v2  ;;  %v2456_v2 = vadd.f32 %v2455_v7, %v2382_v5 }
 0x150   : > { %2930 = vmatprep.subr.bf16.mxu0 %v11687_v3  ;;  %v2454_v3 = vadd.f32 %v2453_v0, %v2380_v63  ;;  %v2444_v63 = vadd.f32 %v14214_v36, %v14212_v35 }
 0x153   : > { %2931 = vmatpush2.bf16.msra.mxu0 %v11685_v10 }
 0x156   : > { %v2496_v16 = vpop.f32.mrf.mxu0  ;;  %2933 = vmatmul.mubr.bf16.vlgmr.msra.gmra.mxu0 %v13677_v52 }
 0x157   : > { %v14266_v17 = vpop.f32.mrf.mxu1  ;;  %2942 = vmatprep.mubr.bf16.mxu0 %v13687_v62  ;;  %v2497_v30 = vadd.f32 %v2496_v16, %v2424_v27  ;;  %v2446_v27 = vadd.f32 %v14232_v45, %v14230_v44  ;;  %v2436_v44 = vadd.f32 %v14180_v48, %v14178_v43  ;;  %v2434_v43 = vadd.f32 %v14169_v25, %v14167_v24 }
 0x158   : > { %v14269_v26 = vpop.f32.mrf.mxu0 }
 0x159   : > { %v14275_v42 = vpop.f32.mrf.mxu1 }
 0x15a   : > { %v2500_v28 = vpop.f32.mrf.mxu0 }
 0x15b   : > { %v2501_v55 = vadd.f32 %v2500_v28, %v2428_v22  ;;  %v14284_v62 = vpop.f32.mrf.mxu1 }
 0x15c   : > { %v14277_v31 = vpop.f32.mrf.mxu0 }
 0x15d   : > { %v14279_v52 = vpack.c.bf16 %v2501_v55, %v2497_v30  ;;  %v14287_v18 = vpop.f32.mrf.mxu1  ;;  %v2448_v30 = vadd.f32 %v14239_v49, %v14237_v47  ;;  %v2438_v47 = vadd.f32 %v14193_v54, %v14191_v53  ;;  %v2503_v53 = vadd.f32 %v14277_v31, %v2430_v61  ;;  %v14332_v31 = vld [vmem:[%s14219_s22] sm:$0xff]  }
 0x15e   : > { %v14281_v32 = vpop.f32.mrf.mxu0  ;;  %2943 = vmatmul.mubr.bf16.gmra.mxu0 %v13711_v6 }
 0x15f   : > { %2952 = vmatprep.mubr.bf16.mxu0 %v13721_v13  ;;  %v14290_v33 = vpop.f32.mrf.mxu1 }
 0x160   : > { %v2508_v14 = vpop.f32.mrf.mxu0 }
 0x161   : > { %v14293_v46 = vpop.f32.mrf.mxu1  ;;  %v2509_v35 = vadd.f32 %v2508_v14, %v2436_v44  ;;  %v14343_v14 = vld [vmem:[%s14219_s22 + $0x18] sm:$0xff]  }
 0x162   : > { %v2510_v15 = vpop.f32.mrf.mxu0 }
 0x163   : > { %v14296_v13 = vpop.f32.mrf.mxu1  ;;  %v2511_v48 = vadd.f32 %v2510_v15, %v2438_v47  ;;  %v14346_v15 = vld [vmem:[%s14219_s22 + $0x8] sm:$0xff]  }
 0x164   : > { %v2512_v19 = vpop.f32.mrf.mxu0 }
 0x165   : > { %v2513_v45 = vadd.f32 %v2512_v19, %v2440_v57 }
 0x166   : > { %v2516_v4 = vpop.f32.mrf.mxu0  ;;  %2953 = vmatmul.mubr.bf16.gmra.mxu0 %v13745_v20  ;;  %v14299_v20 = vpop.f32.mrf.mxu1 }
 0x167   : > { %2962 = vmatprep.mubr.bf16.mxu0 %v13755_v29  ;;  %v2460_v29 = vadd.f32 %v2459_v9, %v2386_v8  ;;  %v2517_v49 = vadd.f32 %v2516_v4, %v2444_v63  ;;  %v2426_v8 = vadd.f32 %v14135_v23, %v14133_v21  ;;  %v2980_v54 = vpack.c.bf16 %v2513_v45, %v2509_v35  ;;  %v14329_v23 = vld [vmem:[%s14219_s22 + $0x10] sm:$0xff]  }
 0x168   : > { %v2518_v39 = vpop.f32.mrf.mxu0  ;;  %v14305_v11 = vpop.f32.mrf.mxu1  ;;  %v2507_v9 = vadd.f32 %v14281_v32, %v2434_v43 }
 0x169   : > { %v2519_v58 = vadd.f32 %v2518_v39, %v2446_v27  ;;  %v2499_v38 = vadd.f32 %v14269_v26, %v2426_v8 }
 0x16a   : > { %v2520_v40 = vpop.f32.mrf.mxu0  ;;  %v14315_v60 = vpop.f32.mrf.mxu1  ;;  %v2979_v24 = vpack.c.bf16 %v2511_v48, %v2507_v9 }
 0x16b   : > { %v2521_v0 = vadd.f32 %v2520_v40, %v2448_v30  ;;  %v2974_v25 = vpack.c.bf16 %v2503_v53, %v2499_v38 }
 0x16c   : > { %v2522_v6 = vpop.f32.mrf.mxu0  ;;  %v14325_v37 = vpop.f32.mrf.mxu1 }
 0x16d   : > { %v2523_v22 = vadd.f32 %v2522_v6, %v2450_v1  ;;  %v2985_v36 = vpack.c.bf16 %v2521_v0, %v2517_v49 }
 0x16e   : > { %v2526_v50 = vpop.f32.mrf.mxu0  ;;  %2963 = vmatmul.mubr.bf16.gmra.mxu0 %v13773_v34  ;;  %v2595_v21 = vpop.f32.mrf.mxu1 }
 0x16f   : > { %3094 = vmatprep.mubr.bf16.mxu0 %v17884_v41  ;;  %v2527_v55 = vadd.f32 %v2526_v50, %v2454_v3  ;;  %v2986_v12 = vpack.c.bf16 %v2523_v22, %v2519_v58 }
 0x170   : > { %v2528_v51 = vpop.f32.mrf.mxu0  ;;  %v2599_v26 = vpop.f32.mrf.mxu1 }
 0x171   : > { %v2529_v34 = vadd.f32 %v2528_v51, %v2456_v2 }
 0x172   : > { %v2530_v59 = vpop.f32.mrf.mxu0  ;;  %v2601_v32 = vpop.f32.mrf.mxu1 }
 0x173   : > { %v2531_v10 = vadd.f32 %v2530_v59, %v2458_v56 }
 0x174   : > { %v2532_v16 = vpop.f32.mrf.mxu0  ;;  %v2603_v19 = vpop.f32.mrf.mxu1 }
 0x175   : > { %v2533_v28 = vadd.f32 %v2532_v16, %v2460_v29  ;;  %v2991_v7 = vpack.c.bf16 %v2531_v10, %v2527_v55 }
 0x177   : > { %v2992_v5 = vpack.c.bf16 %v2533_v28, %v2529_v34 }
 0x179   : > { %3070 = vmatprep.subr.bf16.mxu0 %v2992_v5  ;;  %11179 = vmatprep.subr.bf16.mxu1 %v2992_v5 }
 0x17a   : > { %3071 = vmatpush1.bf16.msra.mxu0 %v2991_v7  ;;  %11183 = vmatpush1.bf16.msra.mxu1 %v2991_v7 }
 0x17b   : > { %3072 = vmatprep.subr.bf16.mxu0 %v2986_v12  ;;  %11180 = vmatprep.subr.bf16.mxu1 %v2986_v12 }
 0x17e   : > { %3073 = vmatpush1.bf16.msra.mxu0 %v2985_v36  ;;  %11184 = vmatpush1.bf16.msra.mxu1 %v2985_v36 }
 0x17f   : > { %3074 = vmatprep.subr.bf16.mxu0 %v2980_v54  ;;  %11181 = vmatprep.subr.bf16.mxu1 %v2980_v54 }
 0x182   : > { %3075 = vmatpush1.bf16.msra.mxu0 %v2979_v24  ;;  %11185 = vmatpush1.bf16.msra.mxu1 %v2979_v24 }
 0x183   : > { %3076 = vmatprep.subr.bf16.mxu0 %v2974_v25  ;;  %11182 = vmatprep.subr.bf16.mxu1 %v2974_v25 }
 0x186   : > { %3077 = vmatpush1.bf16.msra.mxu0 %v14279_v52  ;;  %11186 = vmatpush1.bf16.msra.mxu1 %v14279_v52  ;;  %v2605_v52 = vpop.f32.mrf.mxu1 }
 0x189   : > { %10466 = vmatmul.mubr.msk.bf16.vlgmr.msra.gmra.mxu1 %vm3049_vm0, %v14329_v23  ;;  %10464 = vmatmul.mubr.msk.bf16.vlgmr.msra.gmra.mxu0 %vm3049_vm0, %v14332_v31 }
 0x18a   : > { %3124 = vmatprep.mubr.bf16.mxu1 %v17884_v41  ;;  %3104 = vmatprep.mubr.bf16.mxu0 %v17884_v41 }
 0x191   : > { %10467 = vmatmul.mubr.msk.bf16.gmra.mxu1 %vm3049_vm0, %v14343_v14  ;;  %10465 = vmatmul.mubr.msk.bf16.gmra.mxu0 %vm3049_vm0, %v14346_v15 }
 0x192   : > { %3167 = vmatprep.mubr.bf16.mxu1 %v17884_v41  ;;  %3240 = vmatprep.mubr.bf16.mxu0 %v17884_v41 }
 0x196   : > { %v2642_v4 = vpop.f32.mrf.mxu0 }
 0x197   : > { %v2715_v39 = vpop.f32.mrf.mxu1  ;;  %v2643_v50 = vadd.f32 %v2642_v4, %v14266_v17 }
 0x198   : > { %v14354_v40 = vpop.f32.mrf.mxu0 }
 0x199   : > { %v14356_v6 = vpop.f32.mrf.mxu1  ;;  %v14360_v29 = vadd.f32 %v2715_v39, %v2643_v50 }
 0x19a   : > { %v2646_v51 = vpop.f32.mrf.mxu0 }
 0x19b   : > { %v2719_v56 = vpop.f32.mrf.mxu1  ;;  %v2647_v59 = vadd.f32 %v2646_v51, %v14284_v62 }
 0x19c   : > { %v2648_v1 = vpop.f32.mrf.mxu0 }
 0x19d   : > { %v2721_v2 = vpop.f32.mrf.mxu1  ;;  %v14362_v3 = vadd.f32 %v2719_v56, %v2647_v59 }
 0x19e   : > { %v2652_v10 = vpop.f32.mrf.mxu0 }
 0x19f   : > { %v2725_v16 = vpop.f32.mrf.mxu1  ;;  %v2975_v27 = vpack.c.bf16 %v14362_v3, %v14360_v29 }
 0x1a0   : > { %v2654_v22 = vpop.f32.mrf.mxu0 }
 0x1a1   : > { %v2727_v34 = vpop.f32.mrf.mxu1  ;;  %v2655_v53 = vadd.f32 %v2654_v22, %v14293_v46 }
 0x1a2   : > { %v2656_v28 = vpop.f32.mrf.mxu0 }
 0x1a3   : > { %v2729_v30 = vpop.f32.mrf.mxu1  ;;  %v2657_v46 = vadd.f32 %v2656_v28, %v14296_v13  ;;  %v2728_v22 = vadd.f32 %v2727_v34, %v2655_v53  ;;  %v11733_v53 = vld [vmem:[%s17862_s5 + $0x154] ss:$24 sps:$4 sm:$0xff]  }
 0x1a4   : > { %v2658_v17 = vpop.f32.mrf.mxu0 }
 0x1a5   : > { %v2731_v55 = vpop.f32.mrf.mxu1  ;;  %v2659_v54 = vadd.f32 %v2658_v17, %v14299_v20 }
 0x1a6   : > { %v2662_v57 = vpop.f32.mrf.mxu0 }
 0x1a7   : > { %v2735_v58 = vpop.f32.mrf.mxu1  ;;  %v2663_v38 = vadd.f32 %v2662_v57, %v14305_v11  ;;  %v2732_v11 = vadd.f32 %v2731_v55, %v2659_v54  ;;  %v2649_v57 = vadd.f32 %v2648_v1, %v14287_v18  ;;  %v11739_v54 = vld [vmem:[%s17862_s5 + $0x124] ss:$24 sps:$4 sm:$0xff]  }
 0x1a8   : > { %v2664_v62 = vpop.f32.mrf.mxu0 }
 0x1a9   : > { %v2737_v5 = vpop.f32.mrf.mxu1  ;;  %v2665_v47 = vadd.f32 %v2664_v62, %v14315_v60  ;;  %v2736_v59 = vadd.f32 %v2735_v58, %v2663_v38  ;;  %v2722_v13 = vadd.f32 %v2721_v2, %v2649_v57  ;;  %v11737_v38 = vld [vmem:[%s17862_s5 + $0x120] ss:$24 sps:$4 sm:$0xff]  }
 0x1aa   : > { %v2666_v63 = vpop.f32.mrf.mxu0 }
 0x1ab   : > { %v2739_v0 = vpop.f32.mrf.mxu1  ;;  %v2667_v24 = vadd.f32 %v2666_v63, %v14325_v37  ;;  %v2738_v25 = vadd.f32 %v2737_v5, %v2665_v47  ;;  %v2730_v5 = vadd.f32 %v2729_v30, %v2657_v46  ;;  %v11751_v46 = vld [vmem:[%s17862_s5 + $0xc4] ss:$24 sps:$4 sm:$0xff]  }
 0x1ac   : > { %v2668_v7 = vpop.f32.mrf.mxu0 }
 0x1ad   : > { %v2741_v44 = vpop.f32.mrf.mxu1  ;;  %v2669_v43 = vadd.f32 %v2668_v7, %v2595_v21  ;;  %v2740_v20 = vadd.f32 %v2739_v0, %v2667_v24 }
 0x1ae   : > { %v2672_v45 = vpop.f32.mrf.mxu0 }
 0x1af   : > { %v2745_v12 = vpop.f32.mrf.mxu1  ;;  %v2673_v49 = vadd.f32 %v2672_v45, %v2599_v26  ;;  %v2742_v26 = vadd.f32 %v2741_v44, %v2669_v43  ;;  %v2987_v63 = vpack.c.bf16 %v2740_v20, %v2736_v59 }
 0x1b0   : > { %v2674_v61 = vpop.f32.mrf.mxu0 }
 0x1b1   : > { %v2747_v35 = vpop.f32.mrf.mxu1  ;;  %v2675_v48 = vadd.f32 %v2674_v61, %v2601_v32  ;;  %v2746_v4 = vadd.f32 %v2745_v12, %v2673_v49  ;;  %v2653_v32 = vadd.f32 %v2652_v10, %v14290_v33  ;;  %v2988_v17 = vpack.c.bf16 %v2742_v26, %v2738_v25 }
 0x1b2   : > { %v2676_v36 = vpop.f32.mrf.mxu0  ;;  %v2645_v33 = vadd.f32 %v14354_v40, %v14275_v42 }
 0x1b3   : > { %v2749_v8 = vpop.f32.mrf.mxu1  ;;  %v2677_v9 = vadd.f32 %v2676_v36, %v2603_v19  ;;  %v2748_v50 = vadd.f32 %v2747_v35, %v2675_v48  ;;  %v2726_v62 = vadd.f32 %v2725_v16, %v2653_v32 }
 0x1b4   : > { %v2678_v39 = vpop.f32.mrf.mxu0  ;;  %v2718_v34 = vadd.f32 %v14356_v6, %v2645_v33 }
 0x1b5   : > { %v2751_v60 = vpop.f32.mrf.mxu1  ;;  %v2679_v51 = vadd.f32 %v2678_v39, %v2605_v52  ;;  %v2750_v21 = vadd.f32 %v2749_v8, %v2677_v9  ;;  %v2982_v52 = vpack.c.bf16 %v2732_v11, %v2728_v22  ;;  %v2981_v10 = vpack.c.bf16 %v2730_v5, %v2726_v62  ;;  %v11731_v8 = vld [vmem:[%s17862_s5 + $0x150] ss:$24 sps:$4 sm:$0xff]   ;;  %v11757_v62 = vld [vmem:[%s17862_s5 + $0x94] ss:$24 sps:$4 sm:$0xff]  }
 0x1b6   : > { %v2976_v28 = vpack.c.bf16 %v2722_v13, %v2718_v34  ;;  %v11763_v13 = vld [vmem:[%s17862_s5 + $0x64] ss:$24 sps:$4 sm:$0xff]   ;;  %v11761_v34 = vld [vmem:[%s17862_s5 + $0x60] ss:$24 sps:$4 sm:$0xff]  }
 0x1b7   : > { %v2752_v56 = vadd.f32 %v2751_v60, %v2679_v51  ;;  %v2993_v19 = vpack.c.bf16 %v2750_v21, %v2746_v4  ;;  %v11745_v4 = vld [vmem:[%s17862_s5 + $0xf4] ss:$24 sps:$4 sm:$0xff]   ;;  %v11743_v21 = vld [vmem:[%s17862_s5 + $0xf0] ss:$24 sps:$4 sm:$0xff]  }
 0x1b9   : > { %v2994_v37 = vpack.c.bf16 %v2752_v56, %v2748_v50 }
 0x1bb   : > { %3143 = vmatprep.subr.bf16.mxu1 %v2994_v37 }
 0x1bc   : > { %3144 = vmatpush1.bf16.msra.mxu1 %v2993_v19  ;;  %v11749_v19 = vld [vmem:[%s17862_s5 + $0xc0] ss:$24 sps:$4 sm:$0xff]  }
 0x1bd   : > { %3145 = vmatprep.subr.bf16.mxu1 %v2988_v17 }
 0x1c0   : > { %3146 = vmatpush1.bf16.msra.mxu1 %v2987_v63  ;;  %v11755_v63 = vld [vmem:[%s17862_s5 + $0x90] ss:$24 sps:$4 sm:$0xff]  }
 0x1c1   : > { %3147 = vmatprep.subr.bf16.mxu1 %v2982_v52 }
 0x1c4   : > { %3148 = vmatpush1.bf16.msra.mxu1 %v2981_v10 }
 0x1c5   : > { %3149 = vmatprep.subr.bf16.mxu1 %v2976_v28 }
 0x1c8   : > { %3150 = vmatpush1.bf16.msra.mxu1 %v2975_v27 }
 0x1c9   : > { %5081 = vmatprep.subr.bf16.mxu1 %v11733_v53 }
 0x1cb   : > { %10468 = vmatmul.mubr.msk.bf16.vlgmr.msra.gmra.mxu1 %vm3049_vm0, %v14332_v31 }
 0x1cc   : > { %3177 = vmatprep.mubr.bf16.mxu1 %v17884_v41  ;;  %5082 = vmatpush1.bf16.msra.mxu1 %v11731_v8 }
 0x1cd   : > { %5083 = vmatprep.subr.bf16.mxu1 %v11739_v54  ;;  %v11775_v54 = vld [vmem:[%s17862_s5 + $0x4] ss:$24 sps:$4 sm:$0xff]  }
 0x1d0   : > { %5084 = vmatpush1.bf16.msra.mxu1 %v11737_v38 }
 0x1d1   : > { %5085 = vmatprep.subr.bf16.mxu1 %v11745_v4  ;;  %v11773_v4 = vld [vmem:[%s17862_s5] ss:$24 sps:$4 sm:$0xff]  }
 0x1d3   : > { %10469 = vmatmul.mubr.msk.bf16.gmra.mxu1 %vm3049_vm0, %v14346_v15 }
 0x1d4   : > { %3187 = vmatprep.mubr.bf16.mxu1 %v17884_v41  ;;  %5086 = vmatpush1.bf16.msra.mxu1 %v11743_v21 }
 0x1d5   : > { %5087 = vmatprep.subr.bf16.mxu1 %v11751_v46 }
 0x1d6   : > { %v2788_v42 = vpop.f32.mrf.mxu0 }
 0x1d7   : > { %v2861_v16 = vpop.f32.mrf.mxu1 }
 0x1d8   : > { %v14389_v18 = vpop.f32.mrf.mxu0  ;;  %v2862_v39 = vadd.f32 %v2861_v16, %v2788_v42  ;;  %5088 = vmatpush1.bf16.msra.mxu1 %v11749_v19 }
 0x1d9   : > { %v14405_v30 = vpop.f32.mrf.mxu1  ;;  %5089 = vmatprep.subr.bf16.mxu1 %v11757_v62 }
 0x1da   : > { %v2792_v40 = vpop.f32.mrf.mxu0 }
 0x1db   : > { %10470 = vmatmul.mubr.msk.bf16.gmra.mxu1 %vm3049_vm0, %v14329_v23  ;;  %v2865_v58 = vpop.f32.mrf.mxu1 }
 0x1dc   : > { %3197 = vmatprep.mubr.bf16.mxu1 %v17884_v41  ;;  %v14393_v6 = vpop.f32.mrf.mxu0  ;;  %v2866_v60 = vadd.f32 %v2865_v58, %v2792_v40  ;;  %5090 = vmatpush1.bf16.msra.mxu1 %v11755_v63  ;;  %v11769_v40 = vld [vmem:[%s17862_s5 + $0x34] ss:$24 sps:$4 sm:$0xff]   ;;  %v11767_v58 = vld [vmem:[%s17862_s5 + $0x30] ss:$24 sps:$4 sm:$0xff]  }
 0x1dd   : > { %v14411_v7 = vpop.f32.mrf.mxu1  ;;  %5091 = vmatprep.subr.bf16.mxu1 %v11763_v13 }
 0x1de   : > { %v14395_v1 = vpop.f32.mrf.mxu0 }
 0x1df   : > { %v14413_v44 = vpop.f32.mrf.mxu1 }
 0x1e0   : > { %v14397_v2 = vpop.f32.mrf.mxu0  ;;  %5092 = vmatpush1.bf16.msra.mxu1 %v11761_v34  ;;  %v11781_v34 = vld [vmem:[%s17862_s5 + $0x2d4] ss:$24 sps:$4 sm:$0xff]  }
 0x1e1   : > { %v14417_v12 = vpop.f32.mrf.mxu1  ;;  %5093 = vmatprep.subr.bf16.mxu1 %v11769_v40 }
 0x1e2   : > { %v14399_v29 = vpop.f32.mrf.mxu0 }
 0x1e3   : > { %10471 = vmatmul.mubr.msk.bf16.gmra.mxu1 %vm3049_vm0, %v14343_v14  ;;  %v14421_v49 = vpop.f32.mrf.mxu1 }
 0x1e4   : > { %v14401_v3 = vpop.f32.mrf.mxu0  ;;  %5094 = vmatpush1.bf16.msra.mxu1 %v11767_v58  ;;  %v11692_v58 = vld [vmem:[%s17862_s5 + $0x450] ss:$24 sps:$4 sm:$0xff]  }
 0x1e5   : > { %v14425_v35 = vpop.f32.mrf.mxu1  ;;  %5095 = vmatprep.subr.bf16.mxu1 %v11775_v54  ;;  %v11697_v54 = vld [vmem:[%s17862_s5 + $0x424] ss:$24 sps:$4 sm:$0xff]  }
 0x1e6   : > { %v14403_v27 = vpop.f32.mrf.mxu0 }
 0x1e7   : > { %v14427_v48 = vpop.f32.mrf.mxu1 }
 0x1e8   : > { %v14407_v55 = vpop.f32.mrf.mxu0  ;;  %5096 = vmatpush1.bf16.msra.mxu1 %v11773_v4  ;;  %v11809_v4 = vld [vmem:[%s17862_s5 + $0x1e0] ss:$24 sps:$4 sm:$0xff]  }
 0x1e9   : > { %v2883_v24 = vpop.f32.mrf.mxu1  ;;  %5097 = vmatprep.subr.bf16.mxu1 %v11781_v34 }
 0x1ea   : > { %v14409_v0 = vpop.f32.mrf.mxu0  ;;  %v2884_v62 = vadd.f32 %v2883_v24, %v14407_v55  ;;  %v2882_v55 = vadd.f32 %v14427_v48, %v14403_v27  ;;  %v11785_v27 = vld [vmem:[%s17862_s5 + $0x2a0] ss:$24 sps:$4 sm:$0xff]   ;;  %v2868_v48 = vadd.f32 %v14411_v7, %v14393_v6  ;;  %v11793_v6 = vld [vmem:[%s17862_s5 + $0x274] ss:$24 sps:$4 sm:$0xff]  }
 0x1eb   : > { %v2885_v32 = vpop.f32.mrf.mxu1 }
 0x1ec   : > { %v14415_v45 = vpop.f32.mrf.mxu0 }
 0x1ed   : > { %v2887_v22 = vpop.f32.mrf.mxu1 }
 0x1ee   : > { %v14419_v47 = vpop.f32.mrf.mxu0 }
 0x1ef   : > { %v2891_v37 = vpop.f32.mrf.mxu1 }
 0x1f0   : > { %v14423_v61 = vpop.f32.mrf.mxu0  ;;  %v2892_v21 = vadd.f32 %v2891_v37, %v14419_v47  ;;  %v2878_v47 = vadd.f32 %v14425_v35, %v14401_v3  ;;  %v2876_v3 = vadd.f32 %v14421_v49, %v14399_v29  ;;  %v2864_v29 = vadd.f32 %v14405_v30, %v14389_v18 }
 0x1f1   : > { %v2893_v33 = vpop.f32.mrf.mxu1 }
 0x1f2   : > { %v2822_v43 = vpop.f32.mrf.mxu0 }
 0x1f3   : > { %v2895_v28 = vpop.f32.mrf.mxu1 }
 0x1f4   : > { %v2824_v36 = vpop.f32.mrf.mxu0 }
 0x1f5   : > { %v2897_v8 = vpop.f32.mrf.mxu1 }
 0x216   : > { %v2934_v9 = vpop.f32.mrf.mxu0 }
 0x217   : > { %v14446_v50 = vadd.f32 %v2934_v9, %v2862_v39  ;;  %v2896_v9 = vadd.f32 %v2895_v28, %v2822_v43  ;;  %v2888_v39 = vadd.f32 %v2887_v22, %v14415_v45  ;;  %v2886_v45 = vadd.f32 %v2885_v32, %v14409_v0 }
 0x218   : > { %v14441_v25 = vpop.f32.mrf.mxu0  ;;  %v2874_v0 = vadd.f32 %v14417_v12, %v14397_v2  ;;  %v2872_v12 = vadd.f32 %v14413_v44, %v14395_v1  ;;  %v11791_v1 = vld [vmem:[%s17862_s5 + $0x270] ss:$24 sps:$4 sm:$0xff]  }
 0x219   : > { %v2937_v44 = vadd.f32 %v14441_v25, %v2864_v29  ;;  %v11694_v25 = vld [vmem:[%s17862_s5 + $0x454] ss:$24 sps:$4 sm:$0xff]  }
 0x21a   : > { %v2938_v26 = vpop.f32.mrf.mxu0 }
 0x21b   : > { %v14448_v51 = vadd.f32 %v2938_v26, %v2866_v60  ;;  %v2894_v60 = vadd.f32 %v2893_v33, %v14423_v61  ;;  %v2898_v26 = vadd.f32 %v2897_v8, %v2824_v36  ;;  %v11779_v61 = vld [vmem:[%s17862_s5 + $0x2d0] ss:$24 sps:$4 sm:$0xff]   ;;  %v14564_v8 = vld [vmem:[%s17861_s4] sm:$0x3f] }
 0x21c   : > { %v14453_v56 = vpop.f32.mrf.mxu0  ;;  %5098 = vmatpush2.bf16.msra.mxu1 %v11779_v61  ;;  %v11821_v61 = vld [vmem:[%s17862_s5 + $0x180] ss:$24 sps:$4 sm:$0xff]  }
 0x21d   : > { %v2977_v59 = vpack.c.bf16 %v14448_v51, %v14446_v50  ;;  %v2941_v49 = vadd.f32 %v14453_v56, %v2868_v48 }
 0x21e   : > { %v14460_v20 = vpop.f32.mrf.mxu0 }
 0x21f   : > { %v2945_v7 = vadd.f32 %v14460_v20, %v2872_v12  ;;  %v2978_v30 = vpack.c.bf16 %v2941_v49, %v2937_v44  ;;  %v11797_v20 = vld [vmem:[%s17862_s5 + $0x240] ss:$24 sps:$4 sm:$0xff]  }
 0x220   : > { %v14465_v11 = vpop.f32.mrf.mxu0  ;;  %v11713_v12 = vld [vmem:[%s17862_s5 + $0x300] ss:$24 sps:$4 sm:$0xff]  }
 0x221   : > { %v2947_v2 = vadd.f32 %v14465_v11, %v2874_v0  ;;  %v11799_v11 = vld [vmem:[%s17862_s5 + $0x244] ss:$24 sps:$4 sm:$0xff]   ;;  %v11842_v44 = vld [vmem:[%s17862_s5 + $0x720] ss:$24 sps:$4 sm:$0xff]  }
 0x222   : > { %v14467_v17 = vpop.f32.mrf.mxu0 }
 0x224   : > { %v2950_v57 = vpop.f32.mrf.mxu0 }
 0x225   : > { %v2951_v32 = vadd.f32 %v2950_v57, %v2878_v47  ;;  %v2949_v57 = vadd.f32 %v14467_v17, %v2876_v3  ;;  %v11704_v47 = vld [vmem:[%s17862_s5 + $0x390] ss:$24 sps:$4 sm:$0xff]  }
 0x226   : > { %v2954_v5 = vpop.f32.mrf.mxu0 }
 0x227   : > { %v2955_v35 = vadd.f32 %v2954_v5, %v2882_v55  ;;  %v2984_v5 = vpack.c.bf16 %v2951_v32, %v2947_v2  ;;  %v2983_v18 = vpack.c.bf16 %v2949_v57, %v2945_v7  ;;  %v11707_v55 = vld [vmem:[%s17862_s5 + $0x360] ss:$24 sps:$4 sm:$0xff]   ;;  %v11838_v2 = vld [vmem:[%s17862_s5 + $0x754] ss:$24 sps:$4 sm:$0xff]   ;;  %v11716_v7 = vld [vmem:[%s17862_s5 + $0x5d0] ss:$24 sps:$4 sm:$0xff]  }
 0x228   : > { %v2956_v52 = vpop.f32.mrf.mxu0 }
 0x229   : > { %v2957_v36 = vadd.f32 %v2956_v52, %v2884_v62 }
 0x22a   : > { %v2958_v10 = vpop.f32.mrf.mxu0 }
 0x22b   : > { %v2959_v24 = vadd.f32 %v2958_v10, %v2886_v45  ;;  %v2999_v10 = vlaneseq  ;;  %v11823_v45 = vld [vmem:[%s17862_s5 + $0x184] ss:$24 sps:$4 sm:$0xff]  }
 0x22c   : > { %v2960_v42 = vpop.f32.mrf.mxu0 }
 0x22d   : > { %v2961_v63 = vadd.f32 %v2960_v42, %v2888_v39  ;;  %v11787_v42 = vld [vmem:[%s17862_s5 + $0x2a4] ss:$24 sps:$4 sm:$0xff]   ;;  %v2989_v52 = vpack.c.bf16 %v2959_v24, %v2955_v35  ;;  %v14535_v56 = vshrl.u32 %v2999_v10, 7  ;;  %v11712_v24 = vld [vmem:[%s17862_s5 + $0x334] ss:$24 sps:$4 sm:$0xff]  }
 0x22e   : > { %v2964_v16 = vpop.f32.mrf.mxu0  ;;  %5099 = vmatprep.subr.bf16.mxu1 %v11787_v42  ;;  %v11715_v42 = vld [vmem:[%s17862_s5 + $0x304] ss:$24 sps:$4 sm:$0xff]  }
 0x22f   : > { %v2965_v22 = vadd.f32 %v2964_v16, %v2892_v21  ;;  %v2990_v28 = vpack.c.bf16 %v2961_v63, %v2957_v36  ;;  %5100 = vmatpush2.bf16.msra.mxu1 %v11785_v27  ;;  %v14547_v17 = vsub.s32 0, %v14535_v56  ;;  %v14550_v40 = vsub.s32 1, %v14535_v56  ;;  %v11805_v16 = vld [vmem:[%s17862_s5 + $0x214] ss:$24 sps:$4 sm:$0xff]   ;;  %v11815_v63 = vld [vmem:[%s17862_s5 + $0x1b0] ss:$24 sps:$4 sm:$0xff]  }
 0x230   : > { %v2966_v53 = vpop.f32.mrf.mxu0  ;;  %5101 = vmatprep.subr.bf16.mxu1 %v11793_v6  ;;  %v11709_v36 = vld [vmem:[%s17862_s5 + $0x364] ss:$24 sps:$4 sm:$0xff]  }
 0x231   : > { %v2967_v43 = vadd.f32 %v2966_v53, %v2894_v60  ;;  %17891 = vst [vmem:[#allocation8_spill] sm:$0xff] %v14547_v17  ;;  %17892 = vst [vmem:[#allocation9_spill] sm:$0xff] %v14550_v40  ;;  %v11803_v53 = vld [vmem:[%s17862_s5 + $0x210] ss:$24 sps:$4 sm:$0xff]   ;;  %v14574_v50 = vrot.slane %v14564_v8, %v14547_v17  ;;  %v14578_v51 = vrot.slane %v14564_v8, %v14550_v40  ;;  %v11844_v6 = vld [vmem:[%s17862_s5 + $0x724] ss:$24 sps:$4 sm:$0xff]  }
 0x232   : > { %v2968_v38 = vpop.f32.mrf.mxu0 }
 0x233   : > { %v2969_v46 = vadd.f32 %v2968_v38, %v2896_v9  ;;  %5102 = vmatpush2.bf16.msra.mxu1 %v11791_v1  ;;  %v11811_v9 = vld [vmem:[%s17862_s5 + $0x1e4] ss:$24 sps:$4 sm:$0xff]   ;;  %v11695_v38 = vld [vmem:[%s17862_s5 + $0x420] ss:$24 sps:$4 sm:$0xff]  }
 0x234   : > { %v2970_v19 = vpop.f32.mrf.mxu0  ;;  %5103 = vmatprep.subr.bf16.mxu1 %v11799_v11 }
 0x235   : > { %v2971_v13 = vadd.f32 %v2970_v19, %v2898_v26  ;;  %v2995_v33 = vpack.c.bf16 %v2969_v46, %v2965_v22  ;;  %v11817_v46 = vld [vmem:[%s17862_s5 + $0x1b4] ss:$24 sps:$4 sm:$0xff]   ;;  %v11698_v19 = vld [vmem:[%s17862_s5 + $0x3f0] ss:$24 sps:$4 sm:$0xff]   ;;  %v11701_v22 = vld [vmem:[%s17862_s5 + $0x3c0] ss:$24 sps:$4 sm:$0xff]  }
 0x237   : > { %v2996_v37 = vpack.c.bf16 %v2971_v13, %v2967_v43  ;;  %5104 = vmatpush2.bf16.msra.mxu1 %v11797_v20  ;;  %v11703_v43 = vld [vmem:[%s17862_s5 + $0x3c4] ss:$24 sps:$4 sm:$0xff]  }
 0x238   : > { %5105 = vmatprep.subr.bf16.mxu1 %v11805_v16  ;;  %v11850_v16 = vld [vmem:[%s17862_s5 + $0x6f4] ss:$24 sps:$4 sm:$0xff]  }
 0x239   : > { %3216 = vmatprep.subr.bf16.mxu0 %v2996_v37 }
 0x23a   : > { %3217 = vmatpush1.bf16.msra.mxu0 %v2995_v33 }
 0x23b   : > { %3218 = vmatprep.subr.bf16.mxu0 %v2990_v28  ;;  %5106 = vmatpush2.bf16.msra.mxu1 %v11803_v53  ;;  %v11848_v53 = vld [vmem:[%s17862_s5 + $0x6f0] ss:$24 sps:$4 sm:$0xff]  }
 0x23c   : > { %5107 = vmatprep.subr.bf16.mxu1 %v11811_v9 }
 0x23e   : > { %3219 = vmatpush1.bf16.msra.mxu0 %v2989_v52  ;;  %v11836_v52 = vld [vmem:[%s17862_s5 + $0x750] ss:$24 sps:$4 sm:$0xff]  }
 0x23f   : > { %3220 = vmatprep.subr.bf16.mxu0 %v2984_v5  ;;  %5108 = vmatpush2.bf16.msra.mxu1 %v11809_v4 }
 0x240   : > { %5109 = vmatprep.subr.bf16.mxu1 %v11817_v46 }
 0x242   : > { %3221 = vmatpush1.bf16.msra.mxu0 %v2983_v18  ;;  %v11721_v18 = vld [vmem:[%s17862_s5 + $0x5a4] ss:$24 sps:$4 sm:$0xff]  }
 0x243   : > { %3222 = vmatprep.subr.bf16.mxu0 %v2978_v30  ;;  %5110 = vmatpush2.bf16.msra.mxu1 %v11815_v63  ;;  %v11860_v63 = vld [vmem:[%s17862_s5 + $0x690] ss:$24 sps:$4 sm:$0xff]  }
 0x244   : > { %5111 = vmatprep.subr.bf16.mxu1 %v11823_v45 }
 0x246   : > { %3223 = vmatpush1.bf16.msra.mxu0 %v2977_v59 }
 0x247   : > { %5154 = vmatprep.subr.bf16.mxu0 %v11694_v25  ;;  %5112 = vmatpush2.bf16.msra.mxu1 %v11821_v61  ;;  %v11868_v61 = vld [vmem:[%s17862_s5 + $0x664] ss:$24 sps:$4 sm:$0xff]  }
 0x248   : > { %5227 = vmatprep.subr.bf16.mxu1 %v11838_v2  ;;  %v11880_v2 = vld [vmem:[%s17862_s5 + $0x604] ss:$24 sps:$4 sm:$0xff]  }
 0x249   : > { %10472 = vmatmul.mubr.msk.bf16.vlgmr.msra.gmra.mxu0 %vm3049_vm0, %v14332_v31  ;;  %v3096_v59 = vpop.f32.mrf.mxu0  ;;  %v11700_v31 = vld [vmem:[%s17862_s5 + $0x3f4] ss:$24 sps:$4 sm:$0xff]   ;;  %v3116_v37 = vpop.f32.mrf.mxu1 }
 0x24a   : > { %3250 = vmatprep.mubr.bf16.mxu0 %v17884_v41  ;;  %5155 = vmatpush1.bf16.msra.mxu0 %v11692_v58  ;;  %v3097_v39 = vadd.f32 %v3096_v59, %v14574_v50  ;;  %v11719_v58 = vld [vmem:[%s17862_s5 + $0x5a0] ss:$24 sps:$4 sm:$0xff]   ;;  %v11724_v59 = vld [vmem:[%s17862_s5 + $0x574] ss:$24 sps:$4 sm:$0xff]  }
 0x24b   : > { %5156 = vmatprep.subr.bf16.mxu0 %v11697_v54  ;;  %v3098_v60 = vpop.f32.mrf.mxu0  ;;  %v3118_v32 = vpop.f32.mrf.mxu1  ;;  %v3117_v54 = vadd.f32 %v3116_v37, %v14574_v50  ;;  %v11866_v37 = vld [vmem:[%s17862_s5 + $0x660] ss:$24 sps:$4 sm:$0xff]  }
 0x24c   : > { %v3099_v26 = vadd.f32 %v3098_v60, %v14578_v51  ;;  %12700 = vtanh.f32 %v3097_v39  ;;  %v3119_v9 = vadd.f32 %v3118_v32, %v14578_v51  ;;  %v11722_v60 = vld [vmem:[%s17862_s5 + $0x570] ss:$24 sps:$4 sm:$0xff]  }
 0x24d   : > { %v3100_v21 = vpop.f32.mrf.mxu0  ;;  %v3120_v27 = vpop.f32.mrf.mxu1  ;;  %v11872_v32 = vld [vmem:[%s17862_s5 + $0x630] ss:$24 sps:$4 sm:$0xff]  }
 0x24e   : > { %5157 = vmatpush1.bf16.msra.mxu0 %v11695_v38  ;;  %v3101_v62 = vadd.f32 %v3100_v21, %v14574_v50  ;;  %12702 = vtanh.f32 %v3099_v26  ;;  %v3121_v38 = vadd.f32 %v3120_v27, %v14574_v50  ;;  %v11854_v26 = vld [vmem:[%s17862_s5 + $0x6c0] ss:$24 sps:$4 sm:$0xff]   ;;  %v11727_v21 = vld [vmem:[%s17862_s5 + $0x544] ss:$24 sps:$4 sm:$0xff]  }
 0x24f   : > { %5158 = vmatprep.subr.bf16.mxu0 %v11700_v31  ;;  %v3102_v13 = vpop.f32.mrf.mxu0  ;;  %v3122_v5 = vpop.f32.mrf.mxu1  ;;  %v11856_v31 = vld [vmem:[%s17862_s5 + $0x6c4] ss:$24 sps:$4 sm:$0xff]  }
 0x250   : > { %v3103_v34 = vadd.f32 %v3102_v13, %v14578_v51  ;;  %12704 = vtanh.f32 %v3101_v62  ;;  %v3123_v39 = vadd.f32 %v3122_v5, %v14578_v51  ;;  %v11725_v62 = vld [vmem:[%s17862_s5 + $0x540] ss:$24 sps:$4 sm:$0xff]  }
 0x251   : > { %10473 = vmatmul.mubr.msk.bf16.gmra.mxu0 %vm3049_vm0, %v14346_v15  ;;  %v11706_v15 = vld [vmem:[%s17862_s5 + $0x394] ss:$24 sps:$4 sm:$0xff]   ;;  %v3106_v57 = vpop.f32.mrf.mxu0  ;;  %v3126_v20 = vpop.f32.mrf.mxu1  ;;  %v11746_v5 = vld [vmem:[%s17862_s5 + $0x480] ss:$24 sps:$4 sm:$0xff]  }
 0x252   : > { %3260 = vmatprep.mubr.bf16.mxu0 %v17884_v41  ;;  %5159 = vmatpush1.bf16.msra.mxu0 %v11698_v19  ;;  %12706 = vtanh.f32 %v3103_v34  ;;  %v3107_v29 = vadd.f32 %v3106_v57, %v14574_v50  ;;  %v11862_v19 = vld [vmem:[%s17862_s5 + $0x694] ss:$24 sps:$4 sm:$0xff]   ;;  %v3127_v13 = vadd.f32 %v3126_v20, %v14574_v50  ;;  %v11740_v57 = vld [vmem:[%s17862_s5 + $0x4b0] ss:$24 sps:$4 sm:$0xff]   ;;  %v14793_v20 = vsub.s32 3, %v14535_v56 }
 0x253   : > { %5160 = vmatprep.subr.bf16.mxu0 %v11703_v43  ;;  %v3108_v49 = vpop.f32.mrf.mxu0  ;;  %v3128_v4 = vpop.f32.mrf.mxu1  ;;  %v11730_v43 = vld [vmem:[%s17862_s5 + $0x514] ss:$24 sps:$4 sm:$0xff]  }
 0x254   : > { %v3109_v10 = vadd.f32 %v3108_v49, %v14578_v51  ;;  %12708 = vtanh.f32 %v3107_v29  ;;  %v3129_v45 = vadd.f32 %v3128_v4, %v14578_v51  ;;  %v11748_v29 = vld [vmem:[%s17862_s5 + $0x484] ss:$24 sps:$4 sm:$0xff]   ;;  %v11886_v49 = vld [vmem:[%s17862_s5 + $0x8d4] ss:$24 sps:$4 sm:$0xff]   ;;  %17894 = vst [vmem:[#allocation11_spill] sm:$0xff] %v14793_v20 }
 0x255   : > { %v3110_v1 = vpop.f32.mrf.mxu0  ;;  %v3130_v46 = vpop.f32.mrf.mxu1 }
 0x256   : > { %5161 = vmatpush1.bf16.msra.mxu0 %v11701_v22  ;;  %v3111_v30 = vadd.f32 %v3110_v1, %v14574_v50  ;;  %12710 = vtanh.f32 %v3109_v10  ;;  %v11884_v10 = vld [vmem:[%s17862_s5 + $0x8d0] ss:$24 sps:$4 sm:$0xff]   ;;  %v11754_v1 = vld [vmem:[%s17862_s5 + $0x15c] ss:$24 sps:$4 sm:$0xff]  }
 0x257   : > { %5162 = vmatprep.subr.bf16.mxu0 %v11706_v15  ;;  %v3112_v11 = vpop.f32.mrf.mxu0  ;;  %v3132_v22 = vpop.f32.mrf.mxu1 }
 0x258   : > { %v3113_v25 = vadd.f32 %v3112_v11, %v14578_v51  ;;  %12712 = vtanh.f32 %v3111_v30  ;;  %v11892_v30 = vld [vmem:[%s17862_s5 + $0x8a4] ss:$24 sps:$4 sm:$0xff]  }
 0x259   : > { %10474 = vmatmul.mubr.msk.bf16.gmra.mxu0 %vm3049_vm0, %v14329_v23  ;;  %v12701_v33 = vpop.eup %12700  ;;  %v11710_v23 = vld [vmem:[%s17862_s5 + $0x330] ss:$24 sps:$4 sm:$0xff]  }
 0x25a   : > { %3270 = vmatprep.mubr.bf16.mxu0 %v17884_v41  ;;  %5163 = vmatpush1.bf16.msra.mxu0 %v11704_v47  ;;  %12714 = vtanh.f32 %v3113_v25  ;;  %v3133_v47 = vadd.f32 %v3132_v22, %v14578_v51  ;;  %v11874_v51 = vld [vmem:[%s17862_s5 + $0x634] ss:$24 sps:$4 sm:$0xff]   ;;  %v11890_v25 = vld [vmem:[%s17862_s5 + $0x8a0] ss:$24 sps:$4 sm:$0xff]  }
 0x25b   : > { %5164 = vmatprep.subr.bf16.mxu0 %v11709_v36  ;;  %v12703_v0 = vpop.eup %12702  ;;  %12716 = vtanh.f32 %v3117_v54  ;;  %v11728_v36 = vld [vmem:[%s17862_s5 + $0x510] ss:$24 sps:$4 sm:$0xff]   ;;  %v11898_v54 = vld [vmem:[%s17862_s5 + $0x874] ss:$24 sps:$4 sm:$0xff]  }
 0x25c   : > { %12718 = vtanh.f32 %v3119_v9  ;;  %v11896_v9 = vld [vmem:[%s17862_s5 + $0x870] ss:$24 sps:$4 sm:$0xff]  }
 0x25d   : > { %v12705_v28 = vpop.eup %12704  ;;  %12720 = vtanh.f32 %v3121_v38 }
 0x25e   : > { %5165 = vmatpush1.bf16.msra.mxu0 %v11707_v55  ;;  %v14647_v35 = vpack.c.bf16 %v12705_v28, %v12701_v33  ;;  %12722 = vtanh.f32 %v3123_v39  ;;  %v11736_v33 = vld [vmem:[%s17862_s5 + $0x4e4] ss:$24 sps:$4 sm:$0xff]  }
 0x25f   : > { %5166 = vmatprep.subr.bf16.mxu0 %v11712_v24  ;;  %v12707_v3 = vpop.eup %12706  ;;  %v3131_v24 = vadd.f32 %v3130_v46, %v14574_v50  ;;  %12724 = vtanh.f32 %v3127_v13  ;;  %v11734_v50 = vld [vmem:[%s17862_s5 + $0x4e0] ss:$24 sps:$4 sm:$0xff]  }
 0x260   : > { %v14651_v48 = vpack.c.bf16 %v12707_v3, %v12703_v0  ;;  %12726 = vtanh.f32 %v3129_v45  ;;  %v11902_v46 = vld [vmem:[%s17862_s5 + $0x840] ss:$24 sps:$4 sm:$0xff]  }
 0x261   : > { %10475 = vmatmul.mubr.msk.bf16.gmra.mxu0 %vm3049_vm0, %v14343_v14  ;;  %v11718_v14 = vld [vmem:[%s17862_s5 + $0x5d4] ss:$24 sps:$4 sm:$0xff]   ;;  %v12709_v34 = vpop.eup %12708  ;;  %12728 = vtanh.f32 %v3133_v47 }
 0x262   : > { %5167 = vmatpush1.bf16.msra.mxu0 %v11710_v23  ;;  %5113 = vmatprep.mubr.bf16.mxu1 %v14651_v48  ;;  %12730 = vtanh.f32 %v3131_v24 }
 0x263   : > { %5168 = vmatprep.subr.bf16.mxu0 %v11715_v42  ;;  %5114 = vmatmul.mubr.bf16.vlgmr.msra.gmra.mxu1 %v14647_v35  ;;  %v12711_v15 = vpop.eup %12710  ;;  %v11742_v42 = vld [vmem:[%s17862_s5 + $0x4b4] ss:$24 sps:$4 sm:$0xff]  }
 0x264   : > { %5228 = vmatpush1.bf16.msra.mxu1 %v11836_v52  ;;  %v11878_v52 = vld [vmem:[%s17862_s5 + $0x600] ss:$24 sps:$4 sm:$0xff]  }
 0x265   : > { %5229 = vmatprep.subr.bf16.mxu1 %v11844_v6  ;;  %v12713_v55 = vpop.eup %12712 }
 0x266   : > { %5169 = vmatpush1.bf16.msra.mxu0 %v11713_v12  ;;  %v14750_v23 = vpack.c.bf16 %v12713_v55, %v12709_v34  ;;  %v11908_v34 = vld [vmem:[%s17862_s5 + $0x810] ss:$24 sps:$4 sm:$0xff]  }
 0x267   : > { %5170 = vmatprep.subr.bf16.mxu0 %v11718_v14  ;;  %v12715_v0 = vpop.eup %12714 }
 0x268   : > { %5230 = vmatpush1.bf16.msra.mxu1 %v11842_v44  ;;  %v14748_v28 = vpack.c.bf16 %v12715_v0, %v12711_v15  ;;  %v12717_v3 = vpop.eup %12716  ;;  %v14786_v44 = vsub.s32 2, %v14535_v56  ;;  %v11916_v15 = vld [vmem:[%s17862_s5 + $0x7e4] ss:$24 sps:$4 sm:$0xff]  }
 0x269   : > { %5231 = vmatprep.subr.bf16.mxu1 %v11850_v16  ;;  %v12719_v27 = vpop.eup %12718 }
 0x26a   : > { %5171 = vmatpush2.bf16.msra.mxu0 %v11716_v7  ;;  %5123 = vmatprep.mubr.bf16.mxu1 %v14748_v28  ;;  %v12721_v12 = vpop.eup %12720  ;;  %17893 = vst [vmem:[#allocation10_spill] sm:$0xff] %v14786_v44 }
 0x26b   : > { %5172 = vmatprep.subr.bf16.mxu0 %v11721_v18  ;;  %5124 = vmatmul.mubr.bf16.gmra.mxu1 %v14750_v23  ;;  %v12723_v14 = vpop.eup %12722  ;;  %v14780_v7 = vpack.c.bf16 %v12721_v12, %v12717_v3 }
 0x26c   : > { %5232 = vmatpush1.bf16.msra.mxu1 %v11848_v53  ;;  %v14778_v6 = vpack.c.bf16 %v12723_v14, %v12719_v27  ;;  %v12725_v18 = vpop.eup %12724  ;;  %v14801_v53 = vrot.slane %v14564_v8, %v14786_v44  ;;  %v11928_v27 = vld [vmem:[%s17862_s5 + $0x784] ss:$24 sps:$4 sm:$0xff]  }
 0x26d   : > { %5233 = vmatprep.subr.bf16.mxu1 %v11856_v31  ;;  %v12727_v11 = vpop.eup %12726 }
 0x26e   : > { %5173 = vmatpush2.bf16.msra.mxu0 %v11719_v58  ;;  %5133 = vmatprep.mubr.bf16.mxu1 %v14778_v6  ;;  %v12729_v16 = vpop.eup %12728 }
 0x26f   : > { %5174 = vmatprep.subr.bf16.mxu0 %v11724_v59  ;;  %v12731_v58 = vpop.eup %12730  ;;  %v14808_v59 = vrot.slane %v14564_v8, %v14793_v20  ;;  %v14813_v38 = vpack.c.bf16 %v12729_v16, %v12727_v11 }
 0x270   : > { %5234 = vmatpush1.bf16.msra.mxu1 %v11854_v26  ;;  %v14815_v31 = vpack.c.bf16 %v12731_v58, %v12725_v18  ;;  %v11904_v26 = vld [vmem:[%s17862_s5 + $0x844] ss:$24 sps:$4 sm:$0xff]  }
 0x271   : > { %5235 = vmatprep.subr.bf16.mxu1 %v11862_v19 }
 0x272   : > { %5175 = vmatpush2.bf16.msra.mxu0 %v11722_v60 }
 0x273   : > { %5176 = vmatprep.subr.bf16.mxu0 %v11727_v21  ;;  %5134 = vmatmul.mubr.bf16.gmra.mxu1 %v14780_v7 }
 0x274   : > { %5236 = vmatpush1.bf16.msra.mxu1 %v11860_v63  ;;  %5143 = vmatprep.mubr.bf16.mxu1 %v14813_v38 }
 0x275   : > { %5237 = vmatprep.subr.bf16.mxu1 %v11868_v61 }
 0x276   : > { %5177 = vmatpush2.bf16.msra.mxu0 %v11725_v62 }
 0x277   : > { %5178 = vmatprep.subr.bf16.mxu0 %v11730_v43  ;;  %v11910_v43 = vld [vmem:[%s17862_s5 + $0x814] ss:$24 sps:$4 sm:$0xff]  }
 0x278   : > { %5238 = vmatpush1.bf16.msra.mxu1 %v11866_v37 }
 0x279   : > { %5239 = vmatprep.subr.bf16.mxu1 %v11874_v51  ;;  %v11920_v51 = vld [vmem:[%s17862_s5 + $0x7b0] ss:$24 sps:$4 sm:$0xff]  }
 0x27a   : > { %5179 = vmatpush2.bf16.msra.mxu0 %v11728_v36  ;;  %v11914_v36 = vld [vmem:[%s17862_s5 + $0x7e0] ss:$24 sps:$4 sm:$0xff]  }
 0x27b   : > { %5180 = vmatprep.subr.bf16.mxu0 %v11736_v33  ;;  %5144 = vmatmul.mubr.bf16.gmra.mxu1 %v14815_v31  ;;  %v11922_v33 = vld [vmem:[%s17862_s5 + $0x7b4] ss:$24 sps:$4 sm:$0xff]  }
 0x27c   : > { %5240 = vmatpush1.bf16.msra.mxu1 %v11872_v32 }
 0x27d   : > { %5241 = vmatprep.subr.bf16.mxu1 %v11880_v2 }
 0x27e   : > { %5181 = vmatpush2.bf16.msra.mxu0 %v11734_v50 }
 0x27f   : > { %5182 = vmatprep.subr.bf16.mxu0 %v11742_v42 }
 0x280   : > { %5242 = vmatpush1.bf16.msra.mxu1 %v11878_v52 }
 0x281   : > { %5243 = vmatprep.subr.bf16.mxu1 %v11886_v49 }
 0x282   : > { %5183 = vmatpush2.bf16.msra.mxu0 %v11740_v57  ;;  %v11926_v57 = vld [vmem:[%s17862_s5 + $0x780] ss:$24 sps:$4 sm:$0xff]  }
 0x283   : > { %5184 = vmatprep.subr.bf16.mxu0 %v11748_v29 }
 0x284   : > { %5244 = vmatpush2.bf16.msra.mxu1 %v11884_v10 }
 0x285   : > { %5245 = vmatprep.subr.bf16.mxu1 %v11892_v30  ;;  %v11752_v30 = vld [vmem:[%s17862_s5 + $0x158] ss:$24 sps:$4 sm:$0xff]  }
 0x286   : > { %5185 = vmatpush2.bf16.msra.mxu0 %v11746_v5 }
 0x287   : > { %5300 = vmatprep.subr.bf16.mxu0 %v11754_v1  ;;  %v11934_v1 = vld [vmem:[%s17862_s5 + $0x45c] ss:$24 sps:$4 sm:$0xff]  }
 0x288   : > { %5246 = vmatpush2.bf16.msra.mxu1 %v11890_v25  ;;  %v11760_v25 = vld [vmem:[%s17862_s5 + $0x12c] ss:$24 sps:$4 sm:$0xff]  }
 0x289   : > { %5247 = vmatprep.subr.bf16.mxu1 %v11898_v54 }
 0x28b   : > { %v3169_v4 = vpop.f32.mrf.mxu1 }
 0x28c   : > { %v3170_v39 = vadd.f32 %v3169_v4, %v14801_v53  ;;  %5248 = vmatpush2.bf16.msra.mxu1 %v11896_v9 }
 0x28d   : > { %v3171_v60 = vpop.f32.mrf.mxu1  ;;  %5249 = vmatprep.subr.bf16.mxu1 %v11904_v26 }
 0x28e   : > { %v3172_v21 = vadd.f32 %v3171_v60, %v14808_v59  ;;  %12732 = vtanh.f32 %v3170_v39  ;;  %v11758_v39 = vld [vmem:[%s17862_s5 + $0x128] ss:$24 sps:$4 sm:$0xff]  }
 0x28f   : > { %v3173_v19 = vpop.f32.mrf.mxu1 }
 0x290   : > { %v3174_v62 = vadd.f32 %v3173_v19, %v14801_v53  ;;  %12734 = vtanh.f32 %v3172_v21  ;;  %5250 = vmatpush2.bf16.msra.mxu1 %v11902_v46  ;;  %v11766_v21 = vld [vmem:[%s17862_s5 + $0xfc] ss:$24 sps:$4 sm:$0xff]  }
 0x291   : > { %v3175_v63 = vpop.f32.mrf.mxu1  ;;  %5251 = vmatprep.subr.bf16.mxu1 %v11910_v43 }
 0x292   : > { %12736 = vtanh.f32 %v3174_v62  ;;  %v3176_v13 = vadd.f32 %v3175_v63, %v14808_v59 }
 0x293   : > { %v3179_v45 = vpop.f32.mrf.mxu1 }
 0x294   : > { %12738 = vtanh.f32 %v3176_v13  ;;  %v3180_v22 = vadd.f32 %v3179_v45, %v14801_v53  ;;  %5252 = vmatpush2.bf16.msra.mxu1 %v11908_v34  ;;  %v11764_v13 = vld [vmem:[%s17862_s5 + $0xf8] ss:$24 sps:$4 sm:$0xff]  }
 0x295   : > { %v3181_v61 = vpop.f32.mrf.mxu1  ;;  %5253 = vmatprep.subr.bf16.mxu1 %v11916_v15  ;;  %v11770_v15 = vld [vmem:[%s17862_s5 + $0xc8] ss:$24 sps:$4 sm:$0xff]  }
 0x296   : > { %v3182_v47 = vadd.f32 %v3181_v61, %v14808_v59  ;;  %12740 = vtanh.f32 %v3180_v22 }
 0x297   : > { %v3183_v37 = vpop.f32.mrf.mxu1 }
 0x298   : > { %v3184_v55 = vadd.f32 %v3183_v37, %v14801_v53  ;;  %12742 = vtanh.f32 %v3182_v47  ;;  %5254 = vmatpush2.bf16.msra.mxu1 %v11914_v36  ;;  %v11778_v47 = vld [vmem:[%s17862_s5 + $0x9c] ss:$24 sps:$4 sm:$0xff]  }
 0x299   : > { %v3185_v24 = vpop.f32.mrf.mxu1  ;;  %5255 = vmatprep.subr.bf16.mxu1 %v11922_v33  ;;  %v11784_v33 = vld [vmem:[%s17862_s5 + $0x6c] ss:$24 sps:$4 sm:$0xff]  }
 0x29a   : > { %12744 = vtanh.f32 %v3184_v55  ;;  %v3186_v0 = vadd.f32 %v3185_v24, %v14808_v59  ;;  %v11776_v55 = vld [vmem:[%s17862_s5 + $0x98] ss:$24 sps:$4 sm:$0xff]  }
 0x29b   : > { %v3189_v50 = vpop.f32.mrf.mxu1  ;;  %v12733_v42 = vpop.eup %12732 }
 0x29c   : > { %12746 = vtanh.f32 %v3186_v0  ;;  %v3190_v32 = vadd.f32 %v3189_v50, %v14801_v53  ;;  %5256 = vmatpush2.bf16.msra.mxu1 %v11920_v51  ;;  %v11782_v50 = vld [vmem:[%s17862_s5 + $0x68] ss:$24 sps:$4 sm:$0xff]  }
 0x29d   : > { %v3191_v3 = vpop.f32.mrf.mxu1  ;;  %v12735_v2 = vpop.eup %12734  ;;  %5257 = vmatprep.subr.bf16.mxu1 %v11928_v27 }
 0x29e   : > { %v3192_v12 = vadd.f32 %v3191_v3, %v14808_v59  ;;  %12748 = vtanh.f32 %v3190_v32 }
 0x29f   : > { %v12737_v52 = vpop.eup %12736  ;;  %v3193_v14 = vpop.f32.mrf.mxu1 }
 0x2a0   : > { %v3194_v29 = vadd.f32 %v3193_v14, %v14801_v53  ;;  %v14860_v5 = vpack.c.bf16 %v12737_v52, %v12733_v42  ;;  %12750 = vtanh.f32 %v3192_v12  ;;  %5258 = vmatpush2.bf16.msra.mxu1 %v11926_v57  ;;  %v11790_v42 = vld [vmem:[%s17862_s5 + $0x3c] ss:$24 sps:$4 sm:$0xff]   ;;  %v11796_v57 = vld [vmem:[%s17862_s5 + $0xc] ss:$24 sps:$4 sm:$0xff]   ;;  %v11794_v52 = vld [vmem:[%s17862_s5 + $0x8] ss:$24 sps:$4 sm:$0xff]  }
 0x2a1   : > { %v12739_v49 = vpop.eup %12738  ;;  %v3195_v10 = vpop.f32.mrf.mxu1  ;;  %5373 = vmatprep.subr.bf16.mxu1 %v11934_v1  ;;  %v11802_v14 = vld [vmem:[%s17862_s5 + $0x2dc] ss:$24 sps:$4 sm:$0xff]  }
 0x2a2   : > { %v14865_v18 = vpack.c.bf16 %v12739_v49, %v12735_v2  ;;  %12752 = vtanh.f32 %v3194_v29  ;;  %v3196_v11 = vadd.f32 %v3195_v10, %v14808_v59  ;;  %v11788_v2 = vld [vmem:[%s17862_s5 + $0x38] ss:$24 sps:$4 sm:$0xff]   ;;  %v11808_v49 = vld [vmem:[%s17862_s5 + $0x2ac] ss:$24 sps:$4 sm:$0xff]   ;;  %v11806_v10 = vld [vmem:[%s17862_s5 + $0x2a8] ss:$24 sps:$4 sm:$0xff]  }
 0x2a3   : > { %v3199_v16 = vpop.f32.mrf.mxu1  ;;  %v12741_v54 = vpop.eup %12740  ;;  %v11800_v29 = vld [vmem:[%s17862_s5 + $0x2d8] ss:$24 sps:$4 sm:$0xff]   ;;  %v11814_v1 = vld [vmem:[%s17862_s5 + $0x27c] ss:$24 sps:$4 sm:$0xff]  }
 0x2a4   : > { %5186 = vmatprep.mubr.bf16.mxu0 %v14865_v18  ;;  %12754 = vtanh.f32 %v3196_v11  ;;  %v3200_v58 = vadd.f32 %v3199_v16, %v14801_v53  ;;  %v11820_v11 = vld [vmem:[%s17862_s5 + $0x24c] ss:$24 sps:$4 sm:$0xff]   ;;  %v11826_v16 = vld [vmem:[%s17862_s5 + $0x21c] ss:$24 sps:$4 sm:$0xff]  }
 0x2a5   : > { %5187 = vmatmul.mubr.bf16.vlgmr.msra.gmra.mxu0 %v14860_v5  ;;  %v3201_v9 = vpop.f32.mrf.mxu1  ;;  %v12743_v4 = vpop.eup %12742 }
 0x2a6   : > { %5301 = vmatpush1.bf16.msra.mxu0 %v11752_v30  ;;  %v3202_v60 = vadd.f32 %v3201_v9, %v14808_v59  ;;  %12756 = vtanh.f32 %v3200_v58  ;;  %v11812_v30 = vld [vmem:[%s17862_s5 + $0x278] ss:$24 sps:$4 sm:$0xff]   ;;  %v11827_v9 = vld [vmem:[%s17862_s5 + $0x1e8] ss:$24 sps:$4 sm:$0xff]  }
 0x2a7   : > { %v12745_v26 = vpop.eup %12744  ;;  %5302 = vmatprep.subr.bf16.mxu0 %v11760_v25  ;;  %v3203_v46 = vpop.f32.mrf.mxu1  ;;  %v11818_v25 = vld [vmem:[%s17862_s5 + $0x248] ss:$24 sps:$4 sm:$0xff]   ;;  %v11824_v58 = vld [vmem:[%s17862_s5 + $0x218] ss:$24 sps:$4 sm:$0xff]  }
 0x2a8   : > { %v3204_v19 = vadd.f32 %v3203_v46, %v14801_v53  ;;  %12758 = vtanh.f32 %v3202_v60  ;;  %v14885_v43 = vpack.c.bf16 %v12745_v26, %v12741_v54  ;;  %v11772_v53 = vld [vmem:[%s17862_s5 + $0xcc] ss:$24 sps:$4 sm:$0xff]   ;;  %v11833_v26 = vld [vmem:[%s17862_s5 + $0x188] ss:$24 sps:$4 sm:$0xff]   ;;  %v11839_v46 = vld [vmem:[%s17862_s5 + $0x758] ss:$24 sps:$4 sm:$0xff]  }
 0x2a9   : > { %v12747_v62 = vpop.eup %12746  ;;  %v3205_v63 = vpop.f32.mrf.mxu1  ;;  %v11829_v54 = vld [vmem:[%s17862_s5 + $0x1ec] ss:$24 sps:$4 sm:$0xff]  }
 0x2aa   : > { %5303 = vmatpush1.bf16.msra.mxu0 %v11758_v39  ;;  %12760 = vtanh.f32 %v3204_v19  ;;  %v3206_v34 = vadd.f32 %v3205_v63, %v14808_v59  ;;  %v14891_v45 = vpack.c.bf16 %v12747_v62, %v12743_v4  ;;  %v11832_v4 = vld [vmem:[%s17862_s5 + $0x1bc] ss:$24 sps:$4 sm:$0xff]   ;;  %v11830_v39 = vld [vmem:[%s17862_s5 + $0x1b8] ss:$24 sps:$4 sm:$0xff]   ;;  %v11835_v60 = vld [vmem:[%s17862_s5 + $0x18c] ss:$24 sps:$4 sm:$0xff]  }
 0x2ab   : > { %5304 = vmatprep.subr.bf16.mxu0 %v11766_v21  ;;  %v12749_v22 = vpop.eup %12748  ;;  %v11841_v21 = vld [vmem:[%s17862_s5 + $0x75c] ss:$24 sps:$4 sm:$0xff]   ;;  %v11847_v19 = vld [vmem:[%s17862_s5 + $0x72c] ss:$24 sps:$4 sm:$0xff]   ;;  %v11845_v62 = vld [vmem:[%s17862_s5 + $0x728] ss:$24 sps:$4 sm:$0xff]  }
 0x2ac   : > { %12762 = vtanh.f32 %v3206_v34  ;;  %5196 = vmatprep.mubr.bf16.mxu0 %v14891_v45  ;;  %v11853_v63 = vld [vmem:[%s17862_s5 + $0x6fc] ss:$24 sps:$4 sm:$0xff]   ;;  %v11859_v34 = vld [vmem:[%s17862_s5 + $0x6cc] ss:$24 sps:$4 sm:$0xff]  }
 0x2ad   : > { %5197 = vmatmul.mubr.bf16.gmra.mxu0 %v14885_v43  ;;  %v12751_v61 = vpop.eup %12750 }
 0x2ae   : > { %5305 = vmatpush1.bf16.msra.mxu0 %v11764_v13  ;;  %v11851_v13 = vld [vmem:[%s17862_s5 + $0x6f8] ss:$24 sps:$4 sm:$0xff]  }
 0x2af   : > { %v12753_v59 = vpop.eup %12752  ;;  %5306 = vmatprep.subr.bf16.mxu0 %v11772_v53  ;;  %v11857_v53 = vld [vmem:[%s17862_s5 + $0x6c8] ss:$24 sps:$4 sm:$0xff]  }
 0x2b0   : > { %v14904_v37 = vpack.c.bf16 %v12753_v59, %v12749_v22  ;;  %v11865_v22 = vld [vmem:[%s17862_s5 + $0x69c] ss:$24 sps:$4 sm:$0xff]   ;;  %v11869_v59 = vld [vmem:[%s17862_s5 + $0x668] ss:$24 sps:$4 sm:$0xff]  }
 0x2b1   : > { %v12755_v36 = vpop.eup %12754 }
 0x2b2   : > { %5307 = vmatpush1.bf16.msra.mxu0 %v11770_v15  ;;  %v14909_v24 = vpack.c.bf16 %v12755_v36, %v12751_v61  ;;  %v11863_v61 = vld [vmem:[%s17862_s5 + $0x698] ss:$24 sps:$4 sm:$0xff]   ;;  %v11871_v15 = vld [vmem:[%s17862_s5 + $0x66c] ss:$24 sps:$4 sm:$0xff]  }
 0x2b3   : > { %5308 = vmatprep.subr.bf16.mxu0 %v11778_v47  ;;  %v12757_v0 = vpop.eup %12756  ;;  %v11877_v47 = vld [vmem:[%s17862_s5 + $0x63c] ss:$24 sps:$4 sm:$0xff]   ;;  %v11875_v36 = vld [vmem:[%s17862_s5 + $0x638] ss:$24 sps:$4 sm:$0xff]  }
 0x2b4   : > { %5206 = vmatprep.mubr.bf16.mxu0 %v14909_v24 }
 0x2b5   : > { %5207 = vmatmul.mubr.bf16.gmra.mxu0 %v14904_v37  ;;  %v12759_v51 = vpop.eup %12758 }
 0x2b6   : > { %5309 = vmatpush1.bf16.msra.mxu0 %v11776_v55  ;;  %v11883_v55 = vld [vmem:[%s17862_s5 + $0x60c] ss:$24 sps:$4 sm:$0xff]  }
 0x2b7   : > { %v12761_v32 = vpop.eup %12760  ;;  %5310 = vmatprep.subr.bf16.mxu0 %v11784_v33  ;;  %v11881_v33 = vld [vmem:[%s17862_s5 + $0x608] ss:$24 sps:$4 sm:$0xff]  }
 0x2b8   : > { %v14922_v27 = vpack.c.bf16 %v12761_v32, %v12757_v0  ;;  %v11889_v0 = vld [vmem:[%s17862_s5 + $0x8dc] ss:$24 sps:$4 sm:$0xff]   ;;  %v15051_v32 = vsub.s32 5, %v14535_v56 }
 0x2b9   : > { %v12763_v3 = vpop.eup %12762 }
 0x2ba   : > { %5311 = vmatpush1.bf16.msra.mxu0 %v11782_v50  ;;  %v14927_v12 = vpack.c.bf16 %v12763_v3, %v12759_v51  ;;  %v11887_v51 = vld [vmem:[%s17862_s5 + $0x8d8] ss:$24 sps:$4 sm:$0xff]   ;;  %v11895_v50 = vld [vmem:[%s17862_s5 + $0x8ac] ss:$24 sps:$4 sm:$0xff]   ;;  %17895 = vst [vmem:[#allocation12_spill] sm:$0xff] %v15051_v32  ;;  %v15057_v3 = vsub.s32 4, %v14535_v56 }
 0x2bb   : > { %5312 = vmatprep.subr.bf16.mxu0 %v11790_v42  ;;  %v11893_v42 = vld [vmem:[%s17862_s5 + $0x8a8] ss:$24 sps:$4 sm:$0xff]  }
 0x2bc   : > { %5216 = vmatprep.mubr.bf16.mxu0 %v14927_v12  ;;  %17896 = vst [vmem:[#allocation13_spill] sm:$0xff] %v15057_v3 }
 0x2bd   : > { %5217 = vmatmul.mubr.bf16.gmra.mxu0 %v14922_v27 }
 0x2be   : > { %5313 = vmatpush1.bf16.msra.mxu0 %v11788_v2  ;;  %5332 = vmatprep.mubr.bf16.mxu0 %v14651_v48  ;;  %v11901_v2 = vld [vmem:[%s17862_s5 + $0x87c] ss:$24 sps:$4 sm:$0xff]  }
 0x2bf   : > { %5314 = vmatprep.subr.bf16.mxu0 %v11796_v57  ;;  %v15064_v57 = vrot.slane %v14564_v8, %v15051_v32 }
 0x2c2   : > { %5315 = vmatpush1.bf16.msra.mxu0 %v11794_v52 }
 0x2c3   : > { %5316 = vmatprep.subr.bf16.mxu0 %v11802_v14  ;;  %v11899_v14 = vld [vmem:[%s17862_s5 + $0x878] ss:$24 sps:$4 sm:$0xff]  }
 0x2c6   : > { %5317 = vmatpush2.bf16.msra.mxu0 %v11800_v29  ;;  %v15071_v29 = vrot.slane %v14564_v8, %v15057_v3 }
 0x2c7   : > { %5318 = vmatprep.subr.bf16.mxu0 %v11808_v49  ;;  %v11907_v49 = vld [vmem:[%s17862_s5 + $0x84c] ss:$24 sps:$4 sm:$0xff]  }
 0x2ca   : > { %5319 = vmatpush2.bf16.msra.mxu0 %v11806_v10 }
 0x2cb   : > { %5320 = vmatprep.subr.bf16.mxu0 %v11814_v1 }
 0x2ce   : > { %5321 = vmatpush2.bf16.msra.mxu0 %v11812_v30 }
 0x2cf   : > { %5322 = vmatprep.subr.bf16.mxu0 %v11820_v11  ;;  %v11905_v11 = vld [vmem:[%s17862_s5 + $0x848] ss:$24 sps:$4 sm:$0xff]  }
 0x2d2   : > { %5323 = vmatpush2.bf16.msra.mxu0 %v11818_v25 }
 0x2d3   : > { %5324 = vmatprep.subr.bf16.mxu0 %v11826_v16  ;;  %v11913_v16 = vld [vmem:[%s17862_s5 + $0x81c] ss:$24 sps:$4 sm:$0xff]  }
 0x2d6   : > { %5325 = vmatpush2.bf16.msra.mxu0 %v11824_v58 }
 0x2d7   : > { %5326 = vmatprep.subr.bf16.mxu0 %v11829_v54 }
 0x2da   : > { %5327 = vmatpush2.bf16.msra.mxu0 %v11827_v9 }
 0x2db   : > { %5328 = vmatprep.subr.bf16.mxu0 %v11832_v4  ;;  %v11911_v4 = vld [vmem:[%s17862_s5 + $0x818] ss:$24 sps:$4 sm:$0xff]  }
 0x2de   : > { %5329 = vmatpush2.bf16.msra.mxu0 %v11830_v39 }
 0x2df   : > { %5330 = vmatprep.subr.bf16.mxu0 %v11835_v60  ;;  %v11919_v60 = vld [vmem:[%s17862_s5 + $0x7ec] ss:$24 sps:$4 sm:$0xff]  }
 0x2e2   : > { %5331 = vmatpush2.bf16.msra.mxu0 %v11833_v26 }
 0x2e3   : > { %5446 = vmatprep.subr.bf16.mxu0 %v11841_v21 }
 0x2e5   : > { %5333 = vmatmul.mubr.bf16.vlgmr.msra.gmra.mxu0 %v14647_v35 }
 0x2e6   : > { %5447 = vmatpush1.bf16.msra.mxu0 %v11839_v46  ;;  %5342 = vmatprep.mubr.bf16.mxu0 %v14748_v28 }
 0x2e7   : > { %5448 = vmatprep.subr.bf16.mxu0 %v11847_v19  ;;  %v11917_v19 = vld [vmem:[%s17862_s5 + $0x7e8] ss:$24 sps:$4 sm:$0xff]  }
 0x2ea   : > { %5449 = vmatpush1.bf16.msra.mxu0 %v11845_v62 }
 0x2eb   : > { %5450 = vmatprep.subr.bf16.mxu0 %v11853_v63  ;;  %v11925_v63 = vld [vmem:[%s17862_s5 + $0x7bc] ss:$24 sps:$4 sm:$0xff]  }
 0x2ed   : > { %5343 = vmatmul.mubr.bf16.gmra.mxu0 %v14750_v23 }
 0x2ee   : > { %5451 = vmatpush1.bf16.msra.mxu0 %v11851_v13  ;;  %5352 = vmatprep.mubr.bf16.mxu0 %v14778_v6 }
 0x2ef   : > { %5452 = vmatprep.subr.bf16.mxu0 %v11859_v34 }
 0x2f2   : > { %5453 = vmatpush1.bf16.msra.mxu0 %v11857_v53 }
 0x2f3   : > { %5454 = vmatprep.subr.bf16.mxu0 %v11865_v22  ;;  %v11923_v22 = vld [vmem:[%s17862_s5 + $0x7b8] ss:$24 sps:$4 sm:$0xff]  }
 0x2f5   : > { %5353 = vmatmul.mubr.bf16.gmra.mxu0 %v14780_v7 }
 0x2f6   : > { %5455 = vmatpush1.bf16.msra.mxu0 %v11863_v61  ;;  %5362 = vmatprep.mubr.bf16.mxu0 %v14813_v38 }
 0x2f7   : > { %5456 = vmatprep.subr.bf16.mxu0 %v11871_v15  ;;  %v11931_v15 = vld [vmem:[%s17862_s5 + $0x78c] ss:$24 sps:$4 sm:$0xff]  }
 0x2fa   : > { %5457 = vmatpush1.bf16.msra.mxu0 %v11869_v59 }
 0x2fb   : > { %5458 = vmatprep.subr.bf16.mxu0 %v11877_v47 }
 0x2fd   : > { %5363 = vmatmul.mubr.bf16.gmra.mxu0 %v14815_v31 }
 0x2fe   : > { %5459 = vmatpush1.bf16.msra.mxu0 %v11875_v36 }
 0x2ff   : > { %5460 = vmatprep.subr.bf16.mxu0 %v11883_v55 }
 0x302   : > { %5461 = vmatpush1.bf16.msra.mxu0 %v11881_v33 }
 0x303   : > { %5462 = vmatprep.subr.bf16.mxu0 %v11889_v0  ;;  %v11929_v0 = vld [vmem:[%s17862_s5 + $0x788] ss:$24 sps:$4 sm:$0xff]  }
 0x306   : > { %5463 = vmatpush2.bf16.msra.mxu0 %v11887_v51 }
 0x307   : > { %5464 = vmatprep.subr.bf16.mxu0 %v11895_v50 }
 0x309   : > { %v3242_v52 = vpop.f32.mrf.mxu0 }
 0x30a   : > { %5465 = vmatpush2.bf16.msra.mxu0 %v11893_v42  ;;  %v3243_v25 = vadd.f32 %v3242_v52, %v15071_v29 }
 0x30b   : > { %v3244_v56 = vpop.f32.mrf.mxu0  ;;  %5466 = vmatprep.subr.bf16.mxu0 %v11901_v2 }
 0x30c   : > { %v3245_v10 = vadd.f32 %v3244_v56, %v15064_v57  ;;  %v11937_v56 = vld [vmem:[%s17862_s5 + $0x464] ss:$24 sps:$4 sm:$0xff]  }
 0x30d   : > { %v3246_v1 = vpop.f32.mrf.mxu0 }
 0x30e   : > { %v3247_v30 = vadd.f32 %v3246_v1, %v15071_v29  ;;  %5467 = vmatpush2.bf16.msra.mxu0 %v11899_v14  ;;  %12764 = vtanh.f32 %v3245_v10  ;;  %v11932_v14 = vld [vmem:[%s17862_s5 + $0x458] ss:$24 sps:$4 sm:$0xff]   ;;  %v11940_v1 = vld [vmem:[%s17862_s5 + $0x42c] ss:$24 sps:$4 sm:$0xff]  }
 0x30f   : > { %v3248_v8 = vpop.f32.mrf.mxu0  ;;  %5468 = vmatprep.subr.bf16.mxu0 %v11907_v49 }
 0x310   : > { %v3249_v58 = vadd.f32 %v3248_v8, %v15064_v57  ;;  %12766 = vtanh.f32 %v3247_v30 }
 0x311   : > { %v3252_v54 = vpop.f32.mrf.mxu0 }
 0x312   : > { %12768 = vtanh.f32 %v3249_v58  ;;  %v3253_v9 = vadd.f32 %v3252_v54, %v15071_v29  ;;  %5469 = vmatpush2.bf16.msra.mxu0 %v11905_v11  ;;  %v11935_v11 = vld [vmem:[%s17862_s5 + $0x460] ss:$24 sps:$4 sm:$0xff]  }
 0x313   : > { %12770 = vtanh.f32 %v3243_v25  ;;  %v3254_v39 = vpop.f32.mrf.mxu0  ;;  %5470 = vmatprep.subr.bf16.mxu0 %v11913_v16  ;;  %v11943_v16 = vld [vmem:[%s17862_s5 + $0x434] ss:$24 sps:$4 sm:$0xff]  }
 0x314   : > { %v3255_v26 = vadd.f32 %v3254_v39, %v15064_v57  ;;  %12772 = vtanh.f32 %v3253_v9  ;;  %v11938_v9 = vld [vmem:[%s17862_s5 + $0x428] ss:$24 sps:$4 sm:$0xff]  }
 0x315   : > { %v3256_v21 = vpop.f32.mrf.mxu0 }
 0x316   : > { %v3257_v46 = vadd.f32 %v3256_v21, %v15071_v29  ;;  %5471 = vmatpush2.bf16.msra.mxu0 %v11911_v4  ;;  %12774 = vtanh.f32 %v3255_v26  ;;  %v11941_v21 = vld [vmem:[%s17862_s5 + $0x430] ss:$24 sps:$4 sm:$0xff]  }
 0x317   : > { %v3258_v62 = vpop.f32.mrf.mxu0  ;;  %5472 = vmatprep.subr.bf16.mxu0 %v11919_v60  ;;  %v11946_v60 = vld [vmem:[%s17862_s5 + $0x3fc] ss:$24 sps:$4 sm:$0xff]  }
 0x318   : > { %12776 = vtanh.f32 %v3257_v46  ;;  %v3259_v13 = vadd.f32 %v3258_v62, %v15064_v57 }
 0x319   : > { %v3262_v34 = vpop.f32.mrf.mxu0 }
 0x31a   : > { %12778 = vtanh.f32 %v3259_v13  ;;  %v3263_v53 = vadd.f32 %v3262_v34, %v15071_v29  ;;  %5473 = vmatpush2.bf16.msra.mxu0 %v11917_v19  ;;  %v11949_v34 = vld [vmem:[%s17862_s5 + $0x404] ss:$24 sps:$4 sm:$0xff]  }
 0x31b   : > { %v3264_v61 = vpop.f32.mrf.mxu0  ;;  %5474 = vmatprep.subr.bf16.mxu0 %v11925_v63  ;;  %v12765_v47 = vpop.eup %12764 }
 0x31c   : > { %v3265_v59 = vadd.f32 %v3264_v61, %v15064_v57  ;;  %12780 = vtanh.f32 %v3263_v53  ;;  %v11952_v53 = vld [vmem:[%s17862_s5 + $0x3cc] ss:$24 sps:$4 sm:$0xff]  }
 0x31d   : > { %v3266_v36 = vpop.f32.mrf.mxu0  ;;  %v12767_v55 = vpop.eup %12766  ;;  %v11955_v61 = vld [vmem:[%s17862_s5 + $0x3d4] ss:$24 sps:$4 sm:$0xff]  }
 0x31e   : > { %v3267_v33 = vadd.f32 %v3266_v36, %v15071_v29  ;;  %5475 = vmatpush2.bf16.msra.mxu0 %v11923_v22  ;;  %12782 = vtanh.f32 %v3265_v59  ;;  %v11950_v59 = vld [vmem:[%s17862_s5 + $0x3c8] ss:$24 sps:$4 sm:$0xff]   ;;  %v11958_v36 = vld [vmem:[%s17862_s5 + $0x39c] ss:$24 sps:$4 sm:$0xff]  }
 0x31f   : > { %v12769_v51 = vpop.eup %12768  ;;  %v3268_v50 = vpop.f32.mrf.mxu0  ;;  %5476 = vmatprep.subr.bf16.mxu0 %v11931_v15 }
 0x320   : > { %v12771_v42 = vpop.eup %12770  ;;  %12784 = vtanh.f32 %v3267_v33  ;;  %v3269_v2 = vadd.f32 %v3268_v50, %v15064_v57  ;;  %v15115_v52 = vpack.c.bf16 %v12769_v51, %v12765_v47  ;;  %v11956_v50 = vld [vmem:[%s17862_s5 + $0x398] ss:$24 sps:$4 sm:$0xff]  }
 0x321   : > { %v3272_v49 = vpop.f32.mrf.mxu0  ;;  %v15123_v10 = vpack.c.bf16 %v12767_v55, %v12771_v42  ;;  %v12773_v25 = vpop.eup %12772  ;;  %v11953_v55 = vld [vmem:[%s17862_s5 + $0x3d0] ss:$24 sps:$4 sm:$0xff]   ;;  %v11961_v42 = vld [vmem:[%s17862_s5 + $0x3a4] ss:$24 sps:$4 sm:$0xff]  }
 0x322   : > { %12786 = vtanh.f32 %v3269_v2  ;;  %v3273_v30 = vadd.f32 %v3272_v49, %v15071_v29  ;;  %5477 = vmatpush2.bf16.msra.mxu0 %v11929_v0  ;;  %5259 = vmatprep.mubr.bf16.mxu1 %v15115_v52  ;;  %v11964_v2 = vld [vmem:[%s17862_s5 + $0x36c] ss:$24 sps:$4 sm:$0xff]  }
 0x323   : > { %5478 = vmatprep.mubr.bf16.mxu0 %v15115_v52  ;;  %v3274_v8 = vpop.f32.mrf.mxu0  ;;  %5260 = vmatmul.mubr.bf16.vlgmr.msra.gmra.mxu1 %v15123_v10  ;;  %v12775_v58 = vpop.eup %12774  ;;  %v11967_v49 = vld [vmem:[%s17862_s5 + $0x374] ss:$24 sps:$4 sm:$0xff]  }
 0x324   : > { %v3275_v54 = vadd.f32 %v3274_v8, %v15064_v57  ;;  %5374 = vmatpush1.bf16.msra.mxu1 %v11932_v14  ;;  %5592 = vmatprep.subr.bf16.mxu0 %v11937_v56  ;;  %12788 = vtanh.f32 %v3273_v30  ;;  %v11959_v14 = vld [vmem:[%s17862_s5 + $0x3a0] ss:$24 sps:$4 sm:$0xff]   ;;  %v11965_v8 = vld [vmem:[%s17862_s5 + $0x370] ss:$24 sps:$4 sm:$0xff]  }
 0x325   : > { %v12777_v4 = vpop.eup %12776  ;;  %5479 = vmatmul.mubr.bf16.vlgmr.msra.gmra.mxu0 %v15123_v10  ;;  %v3276_v39 = vpop.f32.mrf.mxu0  ;;  %5375 = vmatprep.subr.bf16.mxu1 %v11940_v1  ;;  %v11962_v30 = vld [vmem:[%s17862_s5 + $0x368] ss:$24 sps:$4 sm:$0xff]  }
 0x326   : > { %v3277_v26 = vadd.f32 %v3276_v39, %v15071_v29  ;;  %5593 = vmatpush1.bf16.msra.mxu0 %v11935_v11  ;;  %12790 = vtanh.f32 %v3275_v54  ;;  %v15150_v62 = vpack.c.bf16 %v12777_v4, %v12773_v25  ;;  %v11944_v29 = vld [vmem:[%s17862_s5 + $0x3f8] ss:$24 sps:$4 sm:$0xff]   ;;  %v11970_v25 = vld [vmem:[%s17862_s5 + $0x33c] ss:$24 sps:$4 sm:$0xff]  }
 0x327   : > { %v12779_v46 = vpop.eup %12778  ;;  %v3278_v19 = vpop.f32.mrf.mxu0  ;;  %5594 = vmatprep.subr.bf16.mxu0 %v11943_v16  ;;  %v11973_v4 = vld [vmem:[%s17862_s5 + $0x344] ss:$24 sps:$4 sm:$0xff]   ;;  %v11971_v39 = vld [vmem:[%s17862_s5 + $0x340] ss:$24 sps:$4 sm:$0xff]  }
 0x328   : > { %12792 = vtanh.f32 %v3277_v26  ;;  %v3279_v63 = vadd.f32 %v3278_v19, %v15064_v57  ;;  %5376 = vmatpush1.bf16.msra.mxu1 %v11938_v9  ;;  %v15153_v13 = vpack.c.bf16 %v12779_v46, %v12775_v58  ;;  %v11947_v57 = vld [vmem:[%s17862_s5 + $0x400] ss:$24 sps:$4 sm:$0xff]   ;;  %v11979_v26 = vld [vmem:[%s17862_s5 + $0x314] ss:$24 sps:$4 sm:$0xff]   ;;  %v11977_v19 = vld [vmem:[%s17862_s5 + $0x310] ss:$24 sps:$4 sm:$0xff]  }
 0x329   : > { %5377 = vmatprep.subr.bf16.mxu1 %v11946_v60  ;;  %v12781_v22 = vpop.eup %12780  ;;  %v11968_v9 = vld [vmem:[%s17862_s5 + $0x338] ss:$24 sps:$4 sm:$0xff]   ;;  %v11976_v60 = vld [vmem:[%s17862_s5 + $0x30c] ss:$24 sps:$4 sm:$0xff]   ;;  %v11982_v46 = vld [vmem:[%s17862_s5 + $0x5dc] ss:$24 sps:$4 sm:$0xff]  }
 0x32a   : > { %12794 = vtanh.f32 %v3279_v63  ;;  %5595 = vmatpush1.bf16.msra.mxu0 %v11941_v21  ;;  %5269 = vmatprep.mubr.bf16.mxu1 %v15153_v13  ;;  %v11974_v21 = vld [vmem:[%s17862_s5 + $0x308] ss:$24 sps:$4 sm:$0xff]   ;;  %v11985_v63 = vld [vmem:[%s17862_s5 + $0x5e4] ss:$24 sps:$4 sm:$0xff]  }
 0x32b   : > { %5270 = vmatmul.mubr.bf16.gmra.mxu1 %v15150_v62  ;;  %5488 = vmatprep.mubr.bf16.mxu0 %v15153_v13  ;;  %v12783_v15 = vpop.eup %12782 }
 0x32c   : > { %5378 = vmatpush1.bf16.msra.mxu1 %v11944_v29  ;;  %5596 = vmatprep.subr.bf16.mxu0 %v11949_v34  ;;  %v11980_v29 = vld [vmem:[%s17862_s5 + $0x5d8] ss:$24 sps:$4 sm:$0xff]  }
 0x32d   : > { %v12785_v47 = vpop.eup %12784  ;;  %5489 = vmatmul.mubr.bf16.gmra.mxu0 %v15150_v62  ;;  %5379 = vmatprep.subr.bf16.mxu1 %v11952_v53  ;;  %v11983_v34 = vld [vmem:[%s17862_s5 + $0x5e0] ss:$24 sps:$4 sm:$0xff]   ;;  %v11991_v53 = vld [vmem:[%s17862_s5 + $0x5b4] ss:$24 sps:$4 sm:$0xff]  }
 0x32e   : > { %5597 = vmatpush1.bf16.msra.mxu0 %v11947_v57  ;;  %v15183_v0 = vpack.c.bf16 %v12785_v47, %v12781_v22  ;;  %v11986_v57 = vld [vmem:[%s17862_s5 + $0x5a8] ss:$24 sps:$4 sm:$0xff]   ;;  %v11994_v22 = vld [vmem:[%s17862_s5 + $0x57c] ss:$24 sps:$4 sm:$0xff]   ;;  %v12000_v47 = vld [vmem:[%s17862_s5 + $0x54c] ss:$24 sps:$4 sm:$0xff]  }
 0x32f   : > { %v12787_v33 = vpop.eup %12786  ;;  %5598 = vmatprep.subr.bf16.mxu0 %v11955_v61  ;;  %v11989_v61 = vld [vmem:[%s17862_s5 + $0x5b0] ss:$24 sps:$4 sm:$0xff]  }
 0x330   : > { %5380 = vmatpush1.bf16.msra.mxu1 %v11950_v59  ;;  %v15185_v51 = vpack.c.bf16 %v12787_v33, %v12783_v15  ;;  %v11997_v15 = vld [vmem:[%s17862_s5 + $0x584] ss:$24 sps:$4 sm:$0xff]   ;;  %v11992_v59 = vld [vmem:[%s17862_s5 + $0x578] ss:$24 sps:$4 sm:$0xff]   ;;  %v11998_v33 = vld [vmem:[%s17862_s5 + $0x548] ss:$24 sps:$4 sm:$0xff]  }
 0x331   : > { %5381 = vmatprep.subr.bf16.mxu1 %v11958_v36  ;;  %v12789_v56 = vpop.eup %12788  ;;  %v11995_v36 = vld [vmem:[%s17862_s5 + $0x580] ss:$24 sps:$4 sm:$0xff]  }
 0x332   : > { %5599 = vmatpush1.bf16.msra.mxu0 %v11953_v55  ;;  %5279 = vmatprep.mubr.bf16.mxu1 %v15185_v51  ;;  %v12003_v55 = vld [vmem:[%s17862_s5 + $0x554] ss:$24 sps:$4 sm:$0xff]  }
 0x333   : > { %5280 = vmatmul.mubr.bf16.gmra.mxu1 %v15183_v0  ;;  %5498 = vmatprep.mubr.bf16.mxu0 %v15185_v51  ;;  %v12791_v1 = vpop.eup %12790 }
 0x334   : > { %5382 = vmatpush1.bf16.msra.mxu1 %v11956_v50  ;;  %5600 = vmatprep.subr.bf16.mxu0 %v11961_v42  ;;  %v12006_v50 = vld [vmem:[%s17862_s5 + $0x51c] ss:$24 sps:$4 sm:$0xff]   ;;  %v12001_v42 = vld [vmem:[%s17862_s5 + $0x550] ss:$24 sps:$4 sm:$0xff]  }
 0x335   : > { %v12793_v11 = vpop.eup %12792  ;;  %5499 = vmatmul.mubr.bf16.gmra.mxu0 %v15183_v0  ;;  %5383 = vmatprep.subr.bf16.mxu1 %v11964_v2  ;;  %v12009_v2 = vld [vmem:[%s17862_s5 + $0x524] ss:$24 sps:$4 sm:$0xff]  }
 0x336   : > { %5601 = vmatpush1.bf16.msra.mxu0 %v11959_v14  ;;  %v15215_v58 = vpack.c.bf16 %v12793_v11, %v12789_v56  ;;  %v12004_v14 = vld [vmem:[%s17862_s5 + $0x518] ss:$24 sps:$4 sm:$0xff]   ;;  %v12012_v56 = vld [vmem:[%s17862_s5 + $0x4ec] ss:$24 sps:$4 sm:$0xff]   ;;  %v12018_v11 = vld [vmem:[%s17862_s5 + $0x4bc] ss:$24 sps:$4 sm:$0xff]  }
 0x337   : > { %v12795_v16 = vpop.eup %12794  ;;  %5602 = vmatprep.subr.bf16.mxu0 %v11967_v49  ;;  %v12007_v49 = vld [vmem:[%s17862_s5 + $0x520] ss:$24 sps:$4 sm:$0xff]  }
 0x338   : > { %5384 = vmatpush1.bf16.msra.mxu1 %v11962_v30  ;;  %v15217_v54 = vpack.c.bf16 %v12795_v16, %v12791_v1  ;;  %v12015_v1 = vld [vmem:[%s17862_s5 + $0x4f4] ss:$24 sps:$4 sm:$0xff]   ;;  %v12010_v30 = vld [vmem:[%s17862_s5 + $0x4e8] ss:$24 sps:$4 sm:$0xff]   ;;  %v12016_v16 = vld [vmem:[%s17862_s5 + $0x4b8] ss:$24 sps:$4 sm:$0xff]  }
 0x339   : > { %5385 = vmatprep.subr.bf16.mxu1 %v11970_v25  ;;  %v12013_v25 = vld [vmem:[%s17862_s5 + $0x4f0] ss:$24 sps:$4 sm:$0xff]  }
 0x33a   : > { %5603 = vmatpush1.bf16.msra.mxu0 %v11965_v8  ;;  %5289 = vmatprep.mubr.bf16.mxu1 %v15217_v54  ;;  %v12021_v8 = vld [vmem:[%s17862_s5 + $0x4c4] ss:$24 sps:$4 sm:$0xff]  }
 0x33b   : > { %5290 = vmatmul.mubr.bf16.gmra.mxu1 %v15215_v58  ;;  %5508 = vmatprep.mubr.bf16.mxu0 %v15217_v54 }
 0x33c   : > { %5386 = vmatpush1.bf16.msra.mxu1 %v11968_v9  ;;  %5405 = vmatprep.mubr.bf16.mxu1 %v14865_v18  ;;  %v12024_v9 = vld [vmem:[%s17862_s5 + $0x48c] ss:$24 sps:$4 sm:$0xff]  }
 0x33d   : > { %5509 = vmatmul.mubr.bf16.gmra.mxu0 %v15215_v58  ;;  %5604 = vmatprep.subr.bf16.mxu0 %v11973_v4  ;;  %v12019_v4 = vld [vmem:[%s17862_s5 + $0x4c0] ss:$24 sps:$4 sm:$0xff]  }
 0x33e   : > { %5605 = vmatpush1.bf16.msra.mxu0 %v11971_v39  ;;  %5624 = vmatprep.mubr.bf16.mxu0 %v14865_v18  ;;  %v11988_v18 = vld [vmem:[%s17862_s5 + $0x5ac] ss:$24 sps:$4 sm:$0xff]  }
 0x33f   : > { %5387 = vmatprep.subr.bf16.mxu1 %v11976_v60  ;;  %5606 = vmatprep.subr.bf16.mxu0 %v11979_v26  ;;  %v12027_v39 = vld [vmem:[%s17862_s5 + $0x494] ss:$24 sps:$4 sm:$0xff]   ;;  %v12022_v60 = vld [vmem:[%s17862_s5 + $0x488] ss:$24 sps:$4 sm:$0xff]   ;;  %v12030_v26 = vld [vmem:[%s17862_s5 + $0x164] ss:$24 sps:$4 sm:$0xff]  }
 0x340   : > { %5388 = vmatpush1.bf16.msra.mxu1 %v11974_v21  ;;  %v12025_v21 = vld [vmem:[%s17862_s5 + $0x490] ss:$24 sps:$4 sm:$0xff]  }
 0x341   : > { %5389 = vmatprep.subr.bf16.mxu1 %v11982_v46  ;;  %v12028_v46 = vld [vmem:[%s17862_s5 + $0x160] ss:$24 sps:$4 sm:$0xff]  }
 0x342   : > { %5607 = vmatpush1.bf16.msra.mxu0 %v11977_v19  ;;  %v12033_v19 = vld [vmem:[%s17862_s5 + $0x134] ss:$24 sps:$4 sm:$0xff]  }
 0x343   : > { %5608 = vmatprep.subr.bf16.mxu0 %v11985_v63  ;;  %v12031_v63 = vld [vmem:[%s17862_s5 + $0x130] ss:$24 sps:$4 sm:$0xff]  }
 0x344   : > { %5390 = vmatpush2.bf16.msra.mxu1 %v11980_v29  ;;  %v12036_v29 = vld [vmem:[%s17862_s5 + $0x104] ss:$24 sps:$4 sm:$0xff]  }
 0x345   : > { %5391 = vmatprep.subr.bf16.mxu1 %v11988_v18  ;;  %v12034_v18 = vld [vmem:[%s17862_s5 + $0x100] ss:$24 sps:$4 sm:$0xff]  }
 0x346   : > { %5609 = vmatpush2.bf16.msra.mxu0 %v11983_v34  ;;  %v12039_v34 = vld [vmem:[%s17862_s5 + $0xd4] ss:$24 sps:$4 sm:$0xff]  }
 0x347   : > { %5610 = vmatprep.subr.bf16.mxu0 %v11991_v53  ;;  %v12040_v53 = vld [vmem:[%s17862_s5 + $0xa0] ss:$24 sps:$4 sm:$0xff]  }
 0x348   : > { %5392 = vmatpush2.bf16.msra.mxu1 %v11986_v57  ;;  %v12045_v57 = vld [vmem:[%s17862_s5 + $0x74] ss:$24 sps:$4 sm:$0xff]  }
 0x349   : > { %5393 = vmatprep.subr.bf16.mxu1 %v11994_v22  ;;  %v12046_v22 = vld [vmem:[%s17862_s5 + $0x40] ss:$24 sps:$4 sm:$0xff]  }
 0x34a   : > { %5611 = vmatpush2.bf16.msra.mxu0 %v11989_v61  ;;  %v12051_v61 = vld [vmem:[%s17862_s5 + $0x14] ss:$24 sps:$4 sm:$0xff]  }
 0x34b   : > { %5612 = vmatprep.subr.bf16.mxu0 %v11997_v15  ;;  %v12052_v15 = vld [vmem:[%s17862_s5 + $0x2e0] ss:$24 sps:$4 sm:$0xff]  }
 0x34c   : > { %5394 = vmatpush2.bf16.msra.mxu1 %v11992_v59  ;;  %v12060_v59 = vld [vmem:[%s17862_s5 + $0x284] ss:$24 sps:$4 sm:$0xff]  }
 0x34d   : > { %5395 = vmatprep.subr.bf16.mxu1 %v12000_v47  ;;  %v12058_v47 = vld [vmem:[%s17862_s5 + $0x280] ss:$24 sps:$4 sm:$0xff]  }
 0x34e   : > { %5613 = vmatpush2.bf16.msra.mxu0 %v11995_v36  ;;  %v12063_v36 = vld [vmem:[%s17862_s5 + $0x254] ss:$24 sps:$4 sm:$0xff]  }
 0x34f   : > { %5614 = vmatprep.subr.bf16.mxu0 %v12003_v55  ;;  %v12061_v55 = vld [vmem:[%s17862_s5 + $0x250] ss:$24 sps:$4 sm:$0xff]  }
 0x350   : > { %5396 = vmatpush2.bf16.msra.mxu1 %v11998_v33 }
 0x351   : > { %5397 = vmatprep.subr.bf16.mxu1 %v12006_v50  ;;  %v12066_v50 = vld [vmem:[%s17862_s5 + $0x224] ss:$24 sps:$4 sm:$0xff]  }
 0x352   : > { %5615 = vmatpush2.bf16.msra.mxu0 %v12001_v42  ;;  %v12064_v42 = vld [vmem:[%s17862_s5 + $0x220] ss:$24 sps:$4 sm:$0xff]  }
 0x353   : > { %5616 = vmatprep.subr.bf16.mxu0 %v12009_v2 }
 0x354   : > { %5398 = vmatpush2.bf16.msra.mxu1 %v12004_v14  ;;  %v12069_v14 = vld [vmem:[%s17862_s5 + $0x1f4] ss:$24 sps:$4 sm:$0xff]  }
 0x355   : > { %5399 = vmatprep.subr.bf16.mxu1 %v12012_v56  ;;  %v12067_v56 = vld [vmem:[%s17862_s5 + $0x1f0] ss:$24 sps:$4 sm:$0xff]  }
 0x356   : > { %5617 = vmatpush2.bf16.msra.mxu0 %v12007_v49 }
 0x357   : > { %5618 = vmatprep.subr.bf16.mxu0 %v12015_v1  ;;  %v12072_v1 = vld [vmem:[%s17862_s5 + $0x1c4] ss:$24 sps:$4 sm:$0xff]  }
 0x358   : > { %5400 = vmatpush2.bf16.msra.mxu1 %v12010_v30  ;;  %v12070_v30 = vld [vmem:[%s17862_s5 + $0x1c0] ss:$24 sps:$4 sm:$0xff]  }
 0x359   : > { %5401 = vmatprep.subr.bf16.mxu1 %v12018_v11 }
 0x35a   : > { %5619 = vmatpush2.bf16.msra.mxu0 %v12013_v25  ;;  %v12075_v25 = vld [vmem:[%s17862_s5 + $0x194] ss:$24 sps:$4 sm:$0xff]  }
 0x35b   : > { %5620 = vmatprep.subr.bf16.mxu0 %v12021_v8  ;;  %v12073_v8 = vld [vmem:[%s17862_s5 + $0x190] ss:$24 sps:$4 sm:$0xff]  }
 0x35c   : > { %5402 = vmatpush2.bf16.msra.mxu1 %v12016_v16 }
 0x35d   : > { %5403 = vmatprep.subr.bf16.mxu1 %v12024_v9  ;;  %v12078_v9 = vld [vmem:[%s17862_s5 + $0x764] ss:$24 sps:$4 sm:$0xff]  }
 0x35e   : > { %5621 = vmatpush2.bf16.msra.mxu0 %v12019_v4  ;;  %v12076_v4 = vld [vmem:[%s17862_s5 + $0x760] ss:$24 sps:$4 sm:$0xff]  }
 0x35f   : > { %5622 = vmatprep.subr.bf16.mxu0 %v12027_v39 }
 0x360   : > { %5404 = vmatpush2.bf16.msra.mxu1 %v12022_v60  ;;  %v12081_v60 = vld [vmem:[%s17862_s5 + $0x734] ss:$24 sps:$4 sm:$0xff]  }
 0x361   : > { %5519 = vmatprep.subr.bf16.mxu1 %v12030_v26  ;;  %v12079_v26 = vld [vmem:[%s17862_s5 + $0x730] ss:$24 sps:$4 sm:$0xff]  }
 0x362   : > { %5623 = vmatpush2.bf16.msra.mxu0 %v12025_v21 }
 0x363   : > { %5406 = vmatmul.mubr.bf16.vlgmr.msra.gmra.mxu1 %v14860_v5 }
 0x364   : > { %5415 = vmatprep.mubr.bf16.mxu1 %v14891_v45  ;;  %5520 = vmatpush1.bf16.msra.mxu1 %v12028_v46  ;;  %v12084_v46 = vld [vmem:[%s17862_s5 + $0x704] ss:$24 sps:$4 sm:$0xff]  }
 0x365   : > { %5625 = vmatmul.mubr.bf16.vlgmr.msra.gmra.mxu0 %v14860_v5  ;;  %5521 = vmatprep.subr.bf16.mxu1 %v12033_v19  ;;  %v12037_v5 = vld [vmem:[%s17862_s5 + $0xd0] ss:$24 sps:$4 sm:$0xff]   ;;  %v15430_v33 = vpop.f32.mrf.mxu0  ;;  %v15485_v19 = vpop.f32.mrf.mxu1 }
 0x366   : > { %5634 = vmatprep.mubr.bf16.mxu0 %v14891_v45  ;;  %v12042_v45 = vld [vmem:[%s17862_s5 + $0xa4] ss:$24 sps:$4 sm:$0xff]  }
 0x367   : > { %v15438_v2 = vpop.f32.mrf.mxu0 }
 0x368   : > { %5522 = vmatpush1.bf16.msra.mxu1 %v12031_v63  ;;  %v12087_v63 = vld [vmem:[%s17862_s5 + $0x6d4] ss:$24 sps:$4 sm:$0xff]  }
 0x369   : > { %5523 = vmatprep.subr.bf16.mxu1 %v12036_v29  ;;  %v15446_v49 = vpop.f32.mrf.mxu0  ;;  %v15495_v29 = vpop.f32.mrf.mxu1 }
 0x36b   : > { %5416 = vmatmul.mubr.bf16.gmra.mxu1 %v14885_v43  ;;  %v15454_v11 = vpop.f32.mrf.mxu0 }
 0x36c   : > { %5425 = vmatprep.mubr.bf16.mxu1 %v14909_v24  ;;  %5524 = vmatpush1.bf16.msra.mxu1 %v12034_v18  ;;  %v12085_v18 = vld [vmem:[%s17862_s5 + $0x6d0] ss:$24 sps:$4 sm:$0xff]  }
 0x36d   : > { %5635 = vmatmul.mubr.bf16.gmra.mxu0 %v14885_v43  ;;  %5525 = vmatprep.subr.bf16.mxu1 %v12039_v34  ;;  %v12043_v43 = vld [vmem:[%s17862_s5 + $0x70] ss:$24 sps:$4 sm:$0xff]   ;;  %v15462_v16 = vpop.f32.mrf.mxu0 }
 0x36e   : > { %5644 = vmatprep.mubr.bf16.mxu0 %v14909_v24  ;;  %v12048_v24 = vld [vmem:[%s17862_s5 + $0x44] ss:$24 sps:$4 sm:$0xff]  }
 0x36f   : > { %v15470_v39 = vpop.f32.mrf.mxu0 }
 0x370   : > { %5526 = vmatpush1.bf16.msra.mxu1 %v12037_v5  ;;  %v12090_v5 = vld [vmem:[%s17862_s5 + $0x6a4] ss:$24 sps:$4 sm:$0xff]  }
 0x371   : > { %5527 = vmatprep.subr.bf16.mxu1 %v12042_v45  ;;  %v15480_v21 = vpop.f32.mrf.mxu0  ;;  %v15507_v45 = vpop.f32.mrf.mxu1 }
 0x373   : > { %5426 = vmatmul.mubr.bf16.gmra.mxu1 %v14904_v37 }
 0x374   : > { %5435 = vmatprep.mubr.bf16.mxu1 %v14927_v12  ;;  %5528 = vmatpush1.bf16.msra.mxu1 %v12040_v53  ;;  %v12093_v53 = vld [vmem:[%s17862_s5 + $0x674] ss:$24 sps:$4 sm:$0xff]  }
 0x375   : > { %5645 = vmatmul.mubr.bf16.gmra.mxu0 %v14904_v37  ;;  %5529 = vmatprep.subr.bf16.mxu1 %v12045_v57  ;;  %v12049_v37 = vld [vmem:[%s17862_s5 + $0x10] ss:$24 sps:$4 sm:$0xff]   ;;  %v15517_v57 = vpop.f32.mrf.mxu1 }
 0x376   : > { %5654 = vmatprep.mubr.bf16.mxu0 %v14927_v12  ;;  %v12054_v12 = vld [vmem:[%s17862_s5 + $0x2e4] ss:$24 sps:$4 sm:$0xff]  }
 0x378   : > { %5530 = vmatpush1.bf16.msra.mxu1 %v12043_v43  ;;  %v12091_v43 = vld [vmem:[%s17862_s5 + $0x670] ss:$24 sps:$4 sm:$0xff]  }
 0x379   : > { %5531 = vmatprep.subr.bf16.mxu1 %v12048_v24 }
 0x37b   : > { %5436 = vmatmul.mubr.bf16.gmra.mxu1 %v14922_v27 }
 0x37c   : > { %5532 = vmatpush1.bf16.msra.mxu1 %v12046_v22  ;;  %5551 = vmatprep.mubr.bf16.mxu1 %v14651_v48  ;;  %v12057_v48 = vld [vmem:[%s17862_s5 + $0x2b4] ss:$24 sps:$4 sm:$0xff]   ;;  %v12096_v22 = vld [vmem:[%s17862_s5 + $0x644] ss:$24 sps:$4 sm:$0xff]  }
 0x37d   : > { %5655 = vmatmul.mubr.bf16.gmra.mxu0 %v14922_v27  ;;  %5533 = vmatprep.subr.bf16.mxu1 %v12051_v61  ;;  %v12055_v27 = vld [vmem:[%s17862_s5 + $0x2b0] ss:$24 sps:$4 sm:$0xff]   ;;  %v15529_v61 = vpop.f32.mrf.mxu1 }
 0x37e   : > { %5826 = vmatprep.mubr.bf16.mxu0 %v17884_v41 }
 0x380   : > { %5534 = vmatpush1.bf16.msra.mxu1 %v12049_v37  ;;  %v15536_v37 = vpop.f32.mrf.mxu1 }
 0x381   : > { %5535 = vmatprep.subr.bf16.mxu1 %v12054_v12  ;;  %v12099_v12 = vld [vmem:[%s17862_s5 + $0x614] ss:$24 sps:$4 sm:$0xff]  }
 0x384   : > { %5536 = vmatpush2.bf16.msra.mxu1 %v12052_v15  ;;  %v12097_v15 = vld [vmem:[%s17862_s5 + $0x610] ss:$24 sps:$4 sm:$0xff]  }
 0x385   : > { %5537 = vmatprep.subr.bf16.mxu1 %v12057_v48 }
 0x388   : > { %5538 = vmatpush2.bf16.msra.mxu1 %v12055_v27  ;;  %v15548_v27 = vpop.f32.mrf.mxu1 }
 0x389   : > { %5539 = vmatprep.subr.bf16.mxu1 %v12060_v59  ;;  %v12102_v59 = vld [vmem:[%s17862_s5 + $0x8e4] ss:$24 sps:$4 sm:$0xff]  }
 0x38c   : > { %5540 = vmatpush2.bf16.msra.mxu1 %v12058_v47 }
 0x38d   : > { %5541 = vmatprep.subr.bf16.mxu1 %v12063_v36  ;;  %v12105_v36 = vld [vmem:[%s17862_s5 + $0x8b4] ss:$24 sps:$4 sm:$0xff]  }
 0x390   : > { %5542 = vmatpush2.bf16.msra.mxu1 %v12061_v55  ;;  %v12103_v55 = vld [vmem:[%s17862_s5 + $0x8b0] ss:$24 sps:$4 sm:$0xff]  }
 0x391   : > { %5543 = vmatprep.subr.bf16.mxu1 %v12066_v50 }
 0x394   : > { %5544 = vmatpush2.bf16.msra.mxu1 %v12064_v42 }
 0x395   : > { %5545 = vmatprep.subr.bf16.mxu1 %v12069_v14  ;;  %v12108_v14 = vld [vmem:[%s17862_s5 + $0x884] ss:$24 sps:$4 sm:$0xff]  }
 0x398   : > { %5546 = vmatpush2.bf16.msra.mxu1 %v12067_v56  ;;  %v12106_v56 = vld [vmem:[%s17862_s5 + $0x880] ss:$24 sps:$4 sm:$0xff]  }
 0x399   : > { %5547 = vmatprep.subr.bf16.mxu1 %v12072_v1 }
 0x39c   : > { %5548 = vmatpush2.bf16.msra.mxu1 %v12070_v30 }
 0x39d   : > { %5549 = vmatprep.subr.bf16.mxu1 %v12075_v25  ;;  %v12111_v25 = vld [vmem:[%s17862_s5 + $0x854] ss:$24 sps:$4 sm:$0xff]  }
 0x3a0   : > { %5550 = vmatpush2.bf16.msra.mxu1 %v12073_v8  ;;  %v12109_v8 = vld [vmem:[%s17862_s5 + $0x850] ss:$24 sps:$4 sm:$0xff]  }
 0x3a1   : > { %5665 = vmatprep.subr.bf16.mxu1 %v12078_v9 }
 0x3a3   : > { %5552 = vmatmul.mubr.bf16.vlgmr.msra.gmra.mxu1 %v14647_v35  ;;  %v12082_v35 = vld [vmem:[%s17862_s5 + $0x700] ss:$24 sps:$4 sm:$0xff]  }
 0x3a4   : > { %5561 = vmatprep.mubr.bf16.mxu1 %v14748_v28  ;;  %5666 = vmatpush1.bf16.msra.mxu1 %v12076_v4  ;;  %v15490_v28 = vpop.f32.mrf.mxu0 }
 0x3a5   : > { %5667 = vmatprep.subr.bf16.mxu1 %v12081_v60  ;;  %v12114_v60 = vld [vmem:[%s17862_s5 + $0x824] ss:$24 sps:$4 sm:$0xff]  }
 0x3a6   : > { %v15502_v34 = vpop.f32.mrf.mxu0 }
 0x3a8   : > { %5668 = vmatpush1.bf16.msra.mxu1 %v12079_v26  ;;  %v12112_v26 = vld [vmem:[%s17862_s5 + $0x820] ss:$24 sps:$4 sm:$0xff]  }
 0x3a9   : > { %5669 = vmatprep.subr.bf16.mxu1 %v12084_v46 }
 0x3ab   : > { %5562 = vmatmul.mubr.bf16.gmra.mxu1 %v14750_v23  ;;  %v12088_v23 = vld [vmem:[%s17862_s5 + $0x6a0] ss:$24 sps:$4 sm:$0xff]  }
 0x3ac   : > { %5571 = vmatprep.mubr.bf16.mxu1 %v14778_v6  ;;  %5670 = vmatpush1.bf16.msra.mxu1 %v12082_v35  ;;  %v15512_v6 = vpop.f32.mrf.mxu0 }
 0x3ad   : > { %5671 = vmatprep.subr.bf16.mxu1 %v12087_v63  ;;  %v12117_v63 = vld [vmem:[%s17862_s5 + $0x7f4] ss:$24 sps:$4 sm:$0xff]  }
 0x3ae   : > { %v15524_v24 = vpop.f32.mrf.mxu0 }
 0x3b0   : > { %5672 = vmatpush1.bf16.msra.mxu1 %v12085_v18  ;;  %v12115_v18 = vld [vmem:[%s17862_s5 + $0x7f0] ss:$24 sps:$4 sm:$0xff]  }
 0x3b1   : > { %5673 = vmatprep.subr.bf16.mxu1 %v12090_v5 }
 0x3b3   : > { %5572 = vmatmul.mubr.bf16.gmra.mxu1 %v14780_v7  ;;  %v12094_v7 = vld [vmem:[%s17862_s5 + $0x640] ss:$24 sps:$4 sm:$0xff]  }
 0x3b4   : > { %5581 = vmatprep.mubr.bf16.mxu1 %v14813_v38  ;;  %5674 = vmatpush1.bf16.msra.mxu1 %v12088_v23  ;;  %v15534_v38 = vpop.f32.mrf.mxu0 }
 0x3b5   : > { %5675 = vmatprep.subr.bf16.mxu1 %v12093_v53  ;;  %v12120_v53 = vld [vmem:[%s17862_s5 + $0x7c4] ss:$24 sps:$4 sm:$0xff]  }
 0x3b6   : > { %v15546_v48 = vpop.f32.mrf.mxu0 }
 0x3b8   : > { %5676 = vmatpush1.bf16.msra.mxu1 %v12091_v43  ;;  %v15556_v47 = vpop.f32.mrf.mxu0  ;;  %v12118_v43 = vld [vmem:[%s17862_s5 + $0x7c0] ss:$24 sps:$4 sm:$0xff]  }
 0x3b9   : > { %5677 = vmatprep.subr.bf16.mxu1 %v12096_v22 }
 0x3ba   : > { %v15566_v50 = vpop.f32.mrf.mxu0 }
 0x3bb   : > { %5582 = vmatmul.mubr.bf16.gmra.mxu1 %v14815_v31  ;;  %v12100_v31 = vld [vmem:[%s17862_s5 + $0x8e0] ss:$24 sps:$4 sm:$0xff]  }
 0x3bc   : > { %5678 = vmatpush1.bf16.msra.mxu1 %v12094_v7  ;;  %5697 = vmatprep.mubr.bf16.mxu1 %v15115_v52  ;;  %v15558_v52 = vpop.f32.mrf.mxu1  ;;  %v15576_v1 = vpop.f32.mrf.mxu0 }
 0x3bd   : > { %5679 = vmatprep.subr.bf16.mxu1 %v12099_v12  ;;  %v12123_v12 = vld [vmem:[%s17862_s5 + $0x794] ss:$24 sps:$4 sm:$0xff]  }
 0x3be   : > { %v15568_v42 = vpop.f32.mrf.mxu1  ;;  %v15586_v9 = vpop.f32.mrf.mxu0 }
 0x3bf   : > { %17897 = vst [vmem:[#allocation14_spill] sm:$0xff] %v15586_v9 }
 0x3c0   : > { %5680 = vmatpush1.bf16.msra.mxu1 %v12097_v15  ;;  %v15578_v30 = vpop.f32.mrf.mxu1  ;;  %v15596_v46 = vpop.f32.mrf.mxu0 }
 0x3c1   : > { %5681 = vmatprep.subr.bf16.mxu1 %v12102_v59  ;;  %17898 = vst [vmem:[#allocation15_spill] sm:$0xff] %v15596_v46  ;;  %v12121_v59 = vld [vmem:[%s17862_s5 + $0x790] ss:$24 sps:$4 sm:$0xff]  }
 0x3c2   : > { %v15588_v4 = vpop.f32.mrf.mxu1  ;;  %v15604_v5 = vpop.f32.mrf.mxu0 }
 0x3c3   : > { %17899 = vst [vmem:[#allocation16_spill] sm:$0xff] %v15604_v5 }
 0x3c4   : > { %5682 = vmatpush2.bf16.msra.mxu1 %v12100_v31  ;;  %v5141_v35 = vpop.f32.mrf.mxu1  ;;  %v15612_v22 = vpop.f32.mrf.mxu0 }
 0x3c5   : > { %5683 = vmatprep.subr.bf16.mxu1 %v12105_v36 }
 0x3c6   : > { %v5145_v23 = vpop.f32.mrf.mxu1  ;;  %v15617_v15 = vpop.f32.mrf.mxu0 }
 0x3c7   : > { %17900 = vst [vmem:[#allocation17_spill] sm:$0xff] %v15617_v15  ;;  %v5219_v17 = vadd.f32 %v15546_v48, %v5145_v23 }
 0x3c8   : > { %5684 = vmatpush2.bf16.msra.mxu1 %v12103_v55  ;;  %v5147_v7 = vpop.f32.mrf.mxu1  ;;  %v15622_v36 = vpop.f32.mrf.mxu0 }
 0x3c9   : > { %5685 = vmatprep.subr.bf16.mxu1 %v12108_v14  ;;  %v5221_v44 = vadd.f32 %v15556_v47, %v5147_v7  ;;  %v5205_v47 = vadd.f32 %v15490_v28, %v15558_v52  ;;  %v5195_v28 = vadd.f32 %v15454_v11, %v15517_v57 }
 0x3ca   : > { %v5149_v31 = vpop.f32.mrf.mxu1  ;;  %v15624_v14 = vpop.f32.mrf.mxu0 }
 0x3cc   : > { %5686 = vmatpush2.bf16.msra.mxu1 %v12106_v56  ;;  %v5151_v55 = vpop.f32.mrf.mxu1 }
 0x3cd   : > { %5687 = vmatprep.subr.bf16.mxu1 %v12111_v25  ;;  %v5225_v40 = vadd.f32 %v15576_v1, %v5151_v55 }
 0x3d0   : > { %5688 = vmatpush2.bf16.msra.mxu1 %v12109_v8  ;;  %v5189_v8 = vadd.f32 %v15430_v33, %v15485_v19 }
 0x3d1   : > { %5689 = vmatprep.subr.bf16.mxu1 %v12114_v60  ;;  %v5193_v60 = vadd.f32 %v15446_v49, %v15507_v45 }
 0x3d4   : > { %5690 = vmatpush2.bf16.msra.mxu1 %v12112_v26  ;;  %v15634_v26 = vpop.f32.mrf.mxu0 }
 0x3d5   : > { %5691 = vmatprep.subr.bf16.mxu1 %v12117_v63 }
 0x3d8   : > { %5692 = vmatpush2.bf16.msra.mxu1 %v12115_v18 }
 0x3d9   : > { %5693 = vmatprep.subr.bf16.mxu1 %v12120_v53 }
 0x3dc   : > { %5694 = vmatpush2.bf16.msra.mxu1 %v12118_v43 }
 0x3dd   : > { %5695 = vmatprep.subr.bf16.mxu1 %v12123_v12 }
 0x3e0   : > { %5696 = vmatpush2.bf16.msra.mxu1 %v12121_v59 }
 0x3e3   : > { %5698 = vmatmul.mubr.bf16.vlgmr.msra.gmra.mxu1 %v15123_v10  ;;  %v5261_v56 = vpop.f32.mrf.mxu1 }
 0x3e4   : > { %5707 = vmatprep.mubr.bf16.mxu1 %v15153_v13  ;;  %v15636_v18 = vadd.f32 %v5261_v56, %v5189_v8  ;;  %v15642_v13 = vpop.f32.mrf.mxu0 }
 0x3e5   : > { %v15628_v25 = vpop.f32.mrf.mxu1 }
 0x3e6   : > { %v15646_v49 = vpop.f32.mrf.mxu0 }
 0x3e7   : > { %v5265_v63 = vpop.f32.mrf.mxu1 }
 0x3e8   : > { %v15638_v53 = vadd.f32 %v5265_v63, %v5193_v60  ;;  %v15648_v59 = vpop.f32.mrf.mxu0 }
 0x3e9   : > { %v5267_v43 = vpop.f32.mrf.mxu1 }
 0x3ea   : > { %v15652_v60 = vpop.f32.mrf.mxu0 }
 0x3eb   : > { %5708 = vmatmul.mubr.bf16.gmra.mxu1 %v15150_v62  ;;  %v5271_v12 = vpop.f32.mrf.mxu1 }
 0x3ec   : > { %5717 = vmatprep.mubr.bf16.mxu1 %v15185_v51  ;;  %v15654_v10 = vpop.f32.mrf.mxu0 }
 0x3ed   : > { %v5273_v33 = vpop.f32.mrf.mxu1 }
 0x3ee   : > { %v15658_v32 = vpop.f32.mrf.mxu0 }
 0x3ef   : > { %v5275_v19 = vpop.f32.mrf.mxu1 }
 0x3f1   : > { %v5277_v45 = vpop.f32.mrf.mxu1 }
 0x3f3   : > { %5718 = vmatmul.mubr.bf16.gmra.mxu1 %v15183_v0  ;;  %v5281_v56 = vpop.f32.mrf.mxu1  ;;  %v5223_v0 = vadd.f32 %v15566_v50, %v5149_v31  ;;  %v5213_v50 = vadd.f32 %v15524_v24, %v15588_v4  ;;  %v15669_v31 = vpop.f32.mrf.mxu0  ;;  %v15700_v4 = vld [vmem:[%s14219_s22] sm:$0xff]  }
 0x3f4   : > { %5727 = vmatprep.mubr.bf16.mxu1 %v15217_v54  ;;  %v5215_v54 = vadd.f32 %v15534_v38, %v5141_v35 }
 0x3f5   : > { %v5283_v8 = vpop.f32.mrf.mxu1 }
 0x3f7   : > { %v5285_v63 = vpop.f32.mrf.mxu1 }
 0x3f8   : > { %v5286_v48 = vadd.f32 %v5285_v63, %v5213_v50  ;;  %v15726_v63 = vld [vmem:[%s14219_s22 + $0x18] sm:$0xff]  }
 0x3f9   : > { %v5287_v62 = vpop.f32.mrf.mxu1 }
 0x3fb   : > { %5728 = vmatmul.mubr.bf16.gmra.mxu1 %v15215_v58  ;;  %v5291_v51 = vpop.f32.mrf.mxu1  ;;  %v5211_v58 = vadd.f32 %v15512_v6, %v15578_v30  ;;  %v5203_v6 = vadd.f32 %v15480_v21, %v15548_v27  ;;  %v5191_v21 = vadd.f32 %v15438_v2, %v15495_v29  ;;  %v17901_v2 = vpack.c.bf16 %v15638_v53, %v15636_v18 }
 0x3fc   : > { %5972 = vmatprep.mubr.bf16.mxu1 %v17884_v41  ;;  %v5288_v41 = vadd.f32 %v5287_v62, %v5215_v54  ;;  %v5292_v38 = vadd.f32 %v5291_v51, %v5219_v17  ;;  %v15679_v17 = vpop.f32.mrf.mxu0 }
 0x3fd   : > { %v5293_v3 = vpop.f32.mrf.mxu1  ;;  %v5284_v1 = vadd.f32 %v5283_v8, %v5211_v58  ;;  %v5264_v11 = vadd.f32 %v15628_v25, %v5191_v21 }
 0x3fe   : > { %v5294_v46 = vadd.f32 %v5293_v3, %v5221_v44  ;;  %v5201_v44 = vadd.f32 %v15470_v39, %v15536_v37  ;;  %v5276_v39 = vadd.f32 %v5275_v19, %v5203_v6  ;;  %v5268_v37 = vadd.f32 %v5267_v43, %v5195_v28  ;;  %v15720_v43 = vld [vmem:[%s14219_s22 + $0x10] sm:$0xff]  }
 0x3ff   : > { %v5295_v20 = vpop.f32.mrf.mxu1  ;;  %v5751_v3 = vpack.c.bf16 %v5288_v41, %v5284_v1 }
 0x400   : > { %v5296_v9 = vadd.f32 %v5295_v20, %v5223_v0  ;;  %v5209_v20 = vadd.f32 %v15502_v34, %v15568_v42  ;;  %v5274_v52 = vadd.f32 %v5273_v33, %v5201_v44  ;;  %v5199_v34 = vadd.f32 %v15462_v16, %v15529_v61  ;;  %v15685_v42 = vpop.f32.mrf.mxu0 }
 0x401   : > { %v5297_v5 = vpop.f32.mrf.mxu1  ;;  %v5739_v16 = vpack.c.bf16 %v5268_v37, %v5264_v11 }
 0x402   : > { %v5298_v15 = vadd.f32 %v5297_v5, %v5225_v40  ;;  %v5756_v23 = vpack.c.bf16 %v5296_v9, %v5292_v38  ;;  %v5278_v40 = vadd.f32 %v5277_v45, %v5205_v47  ;;  %v5282_v24 = vadd.f32 %v5281_v56, %v5209_v20  ;;  %v15690_v57 = vpop.f32.mrf.mxu0 }
 0x403   : > { %v5272_v30 = vadd.f32 %v5271_v12, %v5199_v34  ;;  %v17902_v5 = vmov 0  }
 0x404   : > { %v5757_v35 = vpack.c.bf16 %v5298_v15, %v5294_v46  ;;  %v5750_v41 = vpack.c.bf16 %v5286_v48, %v5282_v24  ;;  %v5745_v27 = vpack.c.bf16 %v5278_v40, %v5274_v52  ;;  %v15692_v61 = vpop.f32.mrf.mxu0  ;;  %v15710_v15 = vld [vmem:[%s14219_s22 + $0x8] sm:$0xff]  }
 0x405   : > { %v5744_v9 = vpack.c.bf16 %v5276_v39, %v5272_v30 }
 0x406   : > { %5802 = vmatprep.subr.bf16.mxu0 %v5757_v35  ;;  %v15697_v29 = vpop.f32.mrf.mxu0 }
 0x407   : > { %5803 = vmatpush1.bf16.msra.mxu0 %v5756_v23 }
 0x408   : > { %5804 = vmatprep.subr.bf16.mxu0 %v5751_v3  ;;  %v15704_v46 = vpop.f32.mrf.mxu0 }
 0x40a   : > { %v15707_v7 = vpop.f32.mrf.mxu0 }
 0x40b   : > { %5805 = vmatpush1.bf16.msra.mxu0 %v5750_v41 }
 0x40c   : > { %5806 = vmatprep.subr.bf16.mxu0 %v5745_v27  ;;  %v15714_v55 = vpop.f32.mrf.mxu0 }
 0x40e   : > { %v5496_v25 = vpop.f32.mrf.mxu0 }
 0x40f   : > { %5807 = vmatpush1.bf16.msra.mxu0 %v5744_v9 }
 0x410   : > { %5808 = vmatprep.subr.bf16.mxu0 %v5739_v16  ;;  %v5500_v12 = vpop.f32.mrf.mxu0 }
 0x412   : > { %v5502_v45 = vpop.f32.mrf.mxu0 }
 0x413   : > { %5809 = vmatpush1.bf16.msra.mxu0 %v17901_v2 }
 0x414   : > { %v5504_v62 = vpop.f32.mrf.mxu0 }
 0x416   : > { %10764 = vmatmul.mubr.msk.bf16.vlgmr.msra.gmra.mxu0 %vm3049_vm0, %v15700_v4  ;;  %v5506_v54 = vpop.f32.mrf.mxu0 }
 0x417   : > { %5836 = vmatprep.mubr.bf16.mxu0 %v17902_v5 }
 0x418   : > { %v5510_v38 = vpop.f32.mrf.mxu0 }
 0x41a   : > { %v5512_v35 = vpop.f32.mrf.mxu0 }
 0x41c   : > { %v5514_v23 = vpop.f32.mrf.mxu0 }
 0x41e   : > { %10765 = vmatmul.mubr.msk.bf16.gmra.mxu0 %vm3049_vm0, %v15710_v15  ;;  %v5516_v39 = vpop.f32.mrf.mxu0 }
 0x41f   : > { %5846 = vmatprep.mubr.bf16.mxu0 %v17902_v5 }
 0x423   : > { %v15717_v18 = vpop.f32.mrf.mxu1 }
 0x425   : > { %v5409_v53 = vpop.f32.mrf.mxu1 }
 0x426   : > { %10766 = vmatmul.mubr.msk.bf16.gmra.mxu0 %vm3049_vm0, %v15720_v43 }
 0x427   : > { %v5411_v33 = vpop.f32.mrf.mxu1  ;;  %5856 = vmatprep.mubr.bf16.mxu0 %v17902_v5 }
 0x429   : > { %v5413_v19 = vpop.f32.mrf.mxu1 }
 0x42a   : > { %v5414_v2 = vadd.f32 %v5413_v19, %v15612_v22 }
 0x42b   : > { %v5417_v56 = vpop.f32.mrf.mxu1 }
 0x42d   : > { %v5419_v8 = vpop.f32.mrf.mxu1 }
 0x42e   : > { %10767 = vmatmul.mubr.msk.bf16.gmra.mxu0 %vm3049_vm0, %v15726_v63 }
 0x42f   : > { %v5421_v51 = vpop.f32.mrf.mxu1  ;;  %5899 = vmatprep.mubr.bf16.mxu0 %v17902_v5 }
 0x431   : > { %v5423_v0 = vpop.f32.mrf.mxu1 }
 0x432   : > { %v5424_v37 = vadd.f32 %v5423_v0, %v15634_v26  ;;  %v17903_v26 = vld [vmem:[#allocation17_spill] sm:$0xff] }
 0x433   : > { %v5427_v58 = vpop.f32.mrf.mxu1  ;;  %v5418_v0 = vadd.f32 %v5417_v56, %v17903_v26  ;;  %v12177_v26 = vld [vmem:[%s17864_s7 + $0xf4] ss:$24 sps:$4 sm:$0xff]  }
 0x435   : > { %v5429_v50 = vpop.f32.mrf.mxu1  ;;  %v5491_v56 = vadd.f32 %v15704_v46, %v5418_v0 }
 0x436   : > { %v5430_v52 = vadd.f32 %v5429_v50, %v15646_v49  ;;  %v5422_v49 = vadd.f32 %v5421_v51, %v15624_v14 }
 0x437   : > { %v5431_v47 = vpop.f32.mrf.mxu1 }
 0x438   : > { %v5432_v41 = vadd.f32 %v5431_v47, %v15648_v59  ;;  %v5497_v59 = vadd.f32 %v5496_v25, %v5424_v37  ;;  %v17904_v47 = vld [vmem:[#allocation15_spill] sm:$0xff]  ;;  %v5495_v14 = vadd.f32 %v15714_v55, %v5422_v49  ;;  %v17906_v25 = vld [vmem:[#allocation14_spill] sm:$0xff] }
 0x439   : > { %v5433_v1 = vpop.f32.mrf.mxu1  ;;  %v5408_v19 = vadd.f32 %v15717_v18, %v17906_v25  ;;  %v12169_v49 = vld [vmem:[%s17864_s7 + $0x120] ss:$24 sps:$4 sm:$0xff]  }
 0x43a   : > { %v5434_v40 = vadd.f32 %v5433_v1, %v15652_v60  ;;  %v5505_v16 = vadd.f32 %v5504_v62, %v5432_v41  ;;  %v5487_v62 = vadd.f32 %v15697_v29, %v5414_v2 }
 0x43b   : > { %v5437_v20 = vpop.f32.mrf.mxu1 }
 0x43c   : > { %v5438_v24 = vadd.f32 %v5437_v20, %v15654_v10  ;;  %v5507_v27 = vadd.f32 %v5506_v54, %v5434_v40  ;;  %v5503_v10 = vadd.f32 %v5502_v45, %v5430_v52 }
 0x43d   : > { %v5439_v48 = vpop.f32.mrf.mxu1 }
 0x43e   : > { %v5440_v3 = vadd.f32 %v5439_v48, %v15658_v32  ;;  %v5428_v32 = vadd.f32 %v5427_v58, %v15642_v13  ;;  %v5511_v11 = vadd.f32 %v5510_v38, %v5438_v24  ;;  %v5753_v50 = vpack.c.bf16 %v5507_v27, %v5503_v10  ;;  %v12165_v27 = vld [vmem:[%s17864_s7 + $0x154] ss:$24 sps:$4 sm:$0xff]  }
 0x43f   : > { %v5441_v44 = vpop.f32.mrf.mxu1  ;;  %v5410_v13 = vadd.f32 %v5409_v53, %v17904_v47  ;;  %v5746_v53 = vpack.c.bf16 %v5495_v14, %v5491_v56  ;;  %v12187_v56 = vld [vmem:[%s17864_s7 + $0x90] ss:$24 sps:$4 sm:$0xff]  }
 0x440   : > { %v5442_v6 = vadd.f32 %v5441_v44, %v15669_v31  ;;  %v5513_v30 = vadd.f32 %v5512_v35, %v5440_v3  ;;  %v5420_v31 = vadd.f32 %v5419_v8, %v15622_v36  ;;  %v5501_v54 = vadd.f32 %v5500_v12, %v5428_v32  ;;  %v17905_v36 = vld [vmem:[#allocation16_spill] sm:$0xff]  ;;  %v5626_v35 = vpop.f32.mrf.mxu0 }
 0x441   : > { %v5443_v28 = vpop.f32.mrf.mxu1  ;;  %v5412_v45 = vadd.f32 %v5411_v33, %v17905_v36  ;;  %v5483_v12 = vadd.f32 %v15690_v57, %v5410_v13  ;;  %v5481_v33 = vadd.f32 %v15685_v42, %v5408_v19  ;;  %v12181_v36 = vld [vmem:[%s17864_s7 + $0xc0] ss:$24 sps:$4 sm:$0xff]  }
 0x442   : > { %v5444_v34 = vadd.f32 %v5443_v28, %v15679_v17  ;;  %v5515_v21 = vadd.f32 %v5514_v23, %v5442_v6  ;;  %v5493_v58 = vadd.f32 %v15707_v7, %v5420_v31  ;;  %v5752_v8 = vpack.c.bf16 %v5505_v16, %v5501_v54  ;;  %v15780_v48 = vpop.f32.mrf.mxu0  ;;  %v12171_v31 = vld [vmem:[%s17864_s7 + $0x124] ss:$24 sps:$4 sm:$0xff]   ;;  %v12175_v54 = vld [vmem:[%s17864_s7 + $0xf0] ss:$24 sps:$4 sm:$0xff]  }
 0x443   : > { %v5485_v7 = vadd.f32 %v15692_v61, %v5412_v45  ;;  %v5741_v51 = vpack.c.bf16 %v5487_v62, %v5483_v12  ;;  %v12183_v45 = vld [vmem:[%s17864_s7 + $0xc4] ss:$24 sps:$4 sm:$0xff]  }
 0x444   : > { %v5517_v60 = vadd.f32 %v5516_v39, %v5444_v34  ;;  %v5758_v17 = vpack.c.bf16 %v5515_v21, %v5511_v11  ;;  %v5747_v22 = vpack.c.bf16 %v5497_v59, %v5493_v58  ;;  %v5630_v44 = vpop.f32.mrf.mxu0 }
 0x445   : > { %v5740_v55 = vpack.c.bf16 %v5485_v7, %v5481_v33  ;;  %v12195_v7 = vld [vmem:[%s17864_s7 + $0x64] ss:$24 sps:$4 sm:$0xff]   ;;  %v12193_v33 = vld [vmem:[%s17864_s7 + $0x60] ss:$24 sps:$4 sm:$0xff]  }
 0x446   : > { %v5759_v9 = vpack.c.bf16 %v5517_v60, %v5513_v30  ;;  %v15786_v3 = vpop.f32.mrf.mxu0  ;;  %v12163_v30 = vld [vmem:[%s17864_s7 + $0x150] ss:$24 sps:$4 sm:$0xff]  }
 0x448   : > { %5875 = vmatprep.subr.bf16.mxu0 %v5759_v9  ;;  %v15790_v24 = vpop.f32.mrf.mxu0 }
 0x449   : > { %5876 = vmatpush1.bf16.msra.mxu0 %v5758_v17 }
 0x44a   : > { %5877 = vmatprep.subr.bf16.mxu0 %v5753_v50  ;;  %v15794_v52 = vpop.f32.mrf.mxu0 }
 0x44c   : > { %v15798_v39 = vpop.f32.mrf.mxu0 }
 0x44d   : > { %5878 = vmatpush1.bf16.msra.mxu0 %v5752_v8 }
 0x44e   : > { %5879 = vmatprep.subr.bf16.mxu0 %v5747_v22  ;;  %v15800_v21 = vpop.f32.mrf.mxu0  ;;  %v12189_v22 = vld [vmem:[%s17864_s7 + $0x94] ss:$24 sps:$4 sm:$0xff]  }
 0x450   : > { %v15808_v60 = vpop.f32.mrf.mxu0 }
 0x451   : > { %5880 = vmatpush1.bf16.msra.mxu0 %v5746_v53 }
 0x452   : > { %5881 = vmatprep.subr.bf16.mxu0 %v5741_v51  ;;  %v5648_v16 = vpop.f32.mrf.mxu0 }
 0x454   : > { %v5650_v47 = vpop.f32.mrf.mxu0 }
 0x455   : > { %5882 = vmatpush1.bf16.msra.mxu0 %v5740_v55 }
 0x456   : > { %7813 = vmatprep.subr.bf16.mxu0 %v12165_v27  ;;  %v5652_v14 = vpop.f32.mrf.mxu0 }
 0x458   : > { %10768 = vmatmul.mubr.msk.bf16.vlgmr.msra.gmra.mxu0 %vm3049_vm0, %v15700_v4  ;;  %v5656_v25 = vpop.f32.mrf.mxu0 }
 0x459   : > { %5909 = vmatprep.mubr.bf16.mxu0 %v17902_v5  ;;  %7814 = vmatpush1.bf16.msra.mxu0 %v12163_v30  ;;  %v12207_v30 = vld [vmem:[%s17864_s7 + $0x4] ss:$24 sps:$4 sm:$0xff]  }
 0x45a   : > { %7815 = vmatprep.subr.bf16.mxu0 %v12171_v31  ;;  %v5658_v53 = vpop.f32.mrf.mxu0 }
 0x45d   : > { %7816 = vmatpush1.bf16.msra.mxu0 %v12169_v49 }
 0x45e   : > { %7817 = vmatprep.subr.bf16.mxu0 %v12177_v26 }
 0x460   : > { %10769 = vmatmul.mubr.msk.bf16.gmra.mxu0 %vm3049_vm0, %v15710_v15 }
 0x461   : > { %5919 = vmatprep.mubr.bf16.mxu0 %v17902_v5  ;;  %7818 = vmatpush1.bf16.msra.mxu0 %v12175_v54 }
 0x462   : > { %7819 = vmatprep.subr.bf16.mxu0 %v12183_v45 }
 0x463   : > { %v5553_v57 = vpop.f32.mrf.mxu1 }
 0x464   : > { %v5627_v10 = vadd.f32 %v5626_v35, %v5553_v57  ;;  %v12201_v57 = vld [vmem:[%s17864_s7 + $0x34] ss:$24 sps:$4 sm:$0xff]  }
 0x465   : > { %v15763_v61 = vpop.f32.mrf.mxu1  ;;  %7820 = vmatpush1.bf16.msra.mxu0 %v12181_v36 }
 0x466   : > { %7821 = vmatprep.subr.bf16.mxu0 %v12189_v22 }
 0x467   : > { %v5557_v42 = vpop.f32.mrf.mxu1 }
 0x468   : > { %10770 = vmatmul.mubr.msk.bf16.gmra.mxu0 %vm3049_vm0, %v15720_v43  ;;  %v5631_v9 = vadd.f32 %v5630_v44, %v5557_v42  ;;  %v5660_v42 = vpop.f32.mrf.mxu0  ;;  %v12199_v44 = vld [vmem:[%s17864_s7 + $0x30] ss:$24 sps:$4 sm:$0xff]  }
 0x469   : > { %5929 = vmatprep.mubr.bf16.mxu0 %v17902_v5  ;;  %v15768_v29 = vpop.f32.mrf.mxu1  ;;  %7822 = vmatpush1.bf16.msra.mxu0 %v12187_v56 }
 0x46a   : > { %7823 = vmatprep.subr.bf16.mxu0 %v12195_v7 }
 0x46b   : > { %v15770_v46 = vpop.f32.mrf.mxu1 }
 0x46d   : > { %v15772_v18 = vpop.f32.mrf.mxu1  ;;  %7824 = vmatpush1.bf16.msra.mxu0 %v12193_v33  ;;  %v12213_v33 = vld [vmem:[%s17864_s7 + $0x2d4] ss:$24 sps:$4 sm:$0xff]  }
 0x46e   : > { %7825 = vmatprep.subr.bf16.mxu0 %v12201_v57  ;;  %v12219_v57 = vld [vmem:[%s17864_s7 + $0x2a4] ss:$24 sps:$4 sm:$0xff]  }
 0x46f   : > { %v15774_v38 = vpop.f32.mrf.mxu1 }
 0x470   : > { %10771 = vmatmul.mubr.msk.bf16.gmra.mxu0 %vm3049_vm0, %v15726_v63 }
 0x471   : > { %v15776_v1 = vpop.f32.mrf.mxu1  ;;  %7826 = vmatpush1.bf16.msra.mxu0 %v12199_v44  ;;  %v12235_v44 = vld [vmem:[%s17864_s7 + $0x210] ss:$24 sps:$4 sm:$0xff]  }
 0x472   : > { %7827 = vmatprep.subr.bf16.mxu0 %v12207_v30  ;;  %v12243_v30 = vld [vmem:[%s17864_s7 + $0x1e4] ss:$24 sps:$4 sm:$0xff]  }
 0x473   : > { %v15778_v20 = vpop.f32.mrf.mxu1 }
 0x475   : > { %v15782_v23 = vpop.f32.mrf.mxu1 }
 0x476   : > { %v5649_v22 = vadd.f32 %v5648_v16, %v15782_v23  ;;  %v5647_v23 = vadd.f32 %v15808_v60, %v15778_v20  ;;  %v12217_v20 = vld [vmem:[%s17864_s7 + $0x2a0] ss:$24 sps:$4 sm:$0xff]   ;;  %v5633_v60 = vadd.f32 %v15786_v3, %v15768_v29  ;;  %v12225_v29 = vld [vmem:[%s17864_s7 + $0x274] ss:$24 sps:$4 sm:$0xff]  }
 0x477   : > { %v15784_v40 = vpop.f32.mrf.mxu1 }
 0x479   : > { %v15788_v6 = vpop.f32.mrf.mxu1 }
 0x47a   : > { %v5653_v49 = vadd.f32 %v5652_v14, %v15788_v6  ;;  %v5651_v6 = vadd.f32 %v5650_v47, %v15784_v40  ;;  %v5639_v40 = vadd.f32 %v15794_v52, %v15772_v18  ;;  %v5637_v52 = vadd.f32 %v15790_v24, %v15770_v46  ;;  %v12223_v46 = vld [vmem:[%s17864_s7 + $0x270] ss:$24 sps:$4 sm:$0xff]  }
 0x47b   : > { %v15792_v28 = vpop.f32.mrf.mxu1 }
 0x47c   : > { %v5657_v54 = vadd.f32 %v5656_v25, %v15792_v28  ;;  %v5643_v28 = vadd.f32 %v15800_v21, %v15776_v1  ;;  %v5641_v1 = vadd.f32 %v15798_v39, %v15774_v38  ;;  %v5629_v38 = vadd.f32 %v15780_v48, %v15763_v61  ;;  %v12231_v48 = vld [vmem:[%s17864_s7 + $0x244] ss:$24 sps:$4 sm:$0xff]  }
 0x47d   : > { %v15796_v34 = vpop.f32.mrf.mxu1 }
 0x47f   : > { %v5587_v41 = vpop.f32.mrf.mxu1 }
 0x480   : > { %v5661_v31 = vadd.f32 %v5660_v42, %v5587_v41  ;;  %v17907_v42 = vld [vmem:[#allocation8_spill] sm:$0xff] }
 0x481   : > { %v5589_v37 = vpop.f32.mrf.mxu1 }
 0x4a3   : > { %v5699_v32 = vpop.f32.mrf.mxu1 }
 0x4a4   : > { %v15818_v2 = vadd.f32 %v5699_v32, %v5627_v10  ;;  %v5662_v32 = vpop.f32.mrf.mxu0 }
 0x4a5   : > { %v15810_v11 = vpop.f32.mrf.mxu1  ;;  %v5663_v26 = vadd.f32 %v5662_v32, %v5589_v37  ;;  %v12127_v32 = vld [vmem:[%s17864_s7 + $0x420] ss:$24 sps:$4 sm:$0xff]  }
 0x4a6   : > { %v5702_v24 = vadd.f32 %v15810_v11, %v5629_v38  ;;  %v15922_v11 = vld [vmem:[%s17863_s6] sm:$0x3f]  ;;  %v12268_v38 = vld [vmem:[%s17864_s7 + $0x750] ss:$24 sps:$4 sm:$0xff]  }
 0x4a7   : > { %v5703_v17 = vpop.f32.mrf.mxu1 }
 0x4a8   : > { %v15820_v59 = vadd.f32 %v5703_v17, %v5631_v9  ;;  %v12205_v9 = vld [vmem:[%s17864_s7] ss:$24 sps:$4 sm:$0xff]   ;;  %v5659_v17 = vadd.f32 %v5658_v53, %v15796_v34  ;;  %v12211_v34 = vld [vmem:[%s17864_s7 + $0x2d0] ss:$24 sps:$4 sm:$0xff]  }
 0x4a9   : > { %v15822_v50 = vpop.f32.mrf.mxu1  ;;  %7828 = vmatpush1.bf16.msra.mxu0 %v12205_v9 }
 0x4aa   : > { %v5742_v0 = vpack.c.bf16 %v15820_v59, %v15818_v2  ;;  %7829 = vmatprep.subr.bf16.mxu0 %v12213_v33  ;;  %v5706_v39 = vadd.f32 %v15822_v50, %v5633_v60  ;;  %v12229_v50 = vld [vmem:[%s17864_s7 + $0x240] ss:$24 sps:$4 sm:$0xff]   ;;  %v17908_v2 = vld [vmem:[#allocation9_spill] sm:$0xff]  ;;  %v12255_v33 = vld [vmem:[%s17864_s7 + $0x184] ss:$24 sps:$4 sm:$0xff]  }
 0x4ab   : > { %v15832_v13 = vpop.f32.mrf.mxu1  ;;  %v15945_v59 = vrot.slane %v15922_v11, %v17908_v2  ;;  %v12147_v60 = vld [vmem:[%s17864_s7 + $0x304] ss:$24 sps:$4 sm:$0xff]  }
 0x4ac   : > { %v5710_v3 = vadd.f32 %v15832_v13, %v5637_v52  ;;  %v5743_v61 = vpack.c.bf16 %v5706_v39, %v5702_v24  ;;  %v12126_v13 = vld [vmem:[%s17864_s7 + $0x454] ss:$24 sps:$4 sm:$0xff]  }
 0x4ad   : > { %v15834_v58 = vpop.f32.mrf.mxu1  ;;  %7830 = vmatpush2.bf16.msra.mxu0 %v12211_v34 }
 0x4ae   : > { %v5712_v18 = vadd.f32 %v15834_v58, %v5639_v40  ;;  %7831 = vmatprep.subr.bf16.mxu0 %v12219_v57 }
 0x4af   : > { %v15842_v8 = vpop.f32.mrf.mxu1 }
 0x4b1   : > { %v5715_v62 = vpop.f32.mrf.mxu1  ;;  %7832 = vmatpush2.bf16.msra.mxu0 %v12217_v20 }
 0x4b2   : > { %v5716_v47 = vadd.f32 %v5715_v62, %v5643_v28  ;;  %v5714_v62 = vadd.f32 %v15842_v8, %v5641_v1  ;;  %7833 = vmatprep.subr.bf16.mxu0 %v12225_v29  ;;  %v12237_v8 = vld [vmem:[%s17864_s7 + $0x214] ss:$24 sps:$4 sm:$0xff]  }
 0x4b3   : > { %v5719_v19 = vpop.f32.mrf.mxu1 }
 0x4b4   : > { %v5720_v21 = vadd.f32 %v5719_v19, %v5647_v23  ;;  %v5749_v19 = vpack.c.bf16 %v5716_v47, %v5712_v18  ;;  %v5748_v58 = vpack.c.bf16 %v5714_v62, %v5710_v3  ;;  %v12144_v47 = vld [vmem:[%s17864_s7 + $0x334] ss:$24 sps:$4 sm:$0xff]  }
 0x4b5   : > { %v5721_v12 = vpop.f32.mrf.mxu1  ;;  %7834 = vmatpush2.bf16.msra.mxu0 %v12223_v46  ;;  %v12270_v62 = vld [vmem:[%s17864_s7 + $0x754] ss:$24 sps:$4 sm:$0xff]   ;;  %v12276_v46 = vld [vmem:[%s17864_s7 + $0x724] ss:$24 sps:$4 sm:$0xff]  }
 0x4b6   : > { %v5722_v37 = vadd.f32 %v5721_v12, %v5649_v22  ;;  %7835 = vmatprep.subr.bf16.mxu0 %v12231_v48  ;;  %v12135_v22 = vld [vmem:[%s17864_s7 + $0x3c4] ss:$24 sps:$4 sm:$0xff]  }
 0x4b7   : > { %v5723_v51 = vpop.f32.mrf.mxu1  ;;  %v12153_v48 = vld [vmem:[%s17864_s7 + $0x5a4] ss:$24 sps:$4 sm:$0xff]  }
 0x4b8   : > { %v5724_v16 = vadd.f32 %v5723_v51, %v5651_v6  ;;  %v12124_v51 = vld [vmem:[%s17864_s7 + $0x450] ss:$24 sps:$4 sm:$0xff]   ;;  %v12133_v6 = vld [vmem:[%s17864_s7 + $0x3c0] ss:$24 sps:$4 sm:$0xff]  }
 0x4b9   : > { %v5725_v55 = vpop.f32.mrf.mxu1  ;;  %7836 = vmatpush2.bf16.msra.mxu0 %v12229_v50 }
 0x4ba   : > { %v5726_v56 = vadd.f32 %v5725_v55, %v5653_v49  ;;  %v5754_v12 = vpack.c.bf16 %v5724_v16, %v5720_v21  ;;  %7837 = vmatprep.subr.bf16.mxu0 %v12237_v8  ;;  %v12151_v8 = vld [vmem:[%s17864_s7 + $0x5a0] ss:$24 sps:$4 sm:$0xff]  }
 0x4bb   : > { %v5729_v35 = vpop.f32.mrf.mxu1 }
 0x4bc   : > { %v5730_v14 = vadd.f32 %v5729_v35, %v5657_v54  ;;  %v5755_v55 = vpack.c.bf16 %v5726_v56, %v5722_v37  ;;  %v15935_v35 = vrot.slane %v15922_v11, %v17907_v42  ;;  %v12130_v54 = vld [vmem:[%s17864_s7 + $0x3f0] ss:$24 sps:$4 sm:$0xff]  }
 0x4bd   : > { %v5731_v27 = vpop.f32.mrf.mxu1  ;;  %7838 = vmatpush2.bf16.msra.mxu0 %v12235_v44  ;;  %v12136_v37 = vld [vmem:[%s17864_s7 + $0x390] ss:$24 sps:$4 sm:$0xff]  }
 0x4be   : > { %v5732_v41 = vadd.f32 %v5731_v27, %v5659_v17  ;;  %v12129_v27 = vld [vmem:[%s17864_s7 + $0x424] ss:$24 sps:$4 sm:$0xff]   ;;  %7839 = vmatprep.subr.bf16.mxu0 %v12243_v30 }
 0x4bf   : > { %v5733_v10 = vpop.f32.mrf.mxu1 }
 0x4c0   : > { %v5734_v36 = vadd.f32 %v5733_v10, %v5661_v31  ;;  %v12241_v10 = vld [vmem:[%s17864_s7 + $0x1e0] ss:$24 sps:$4 sm:$0xff]  }
 0x4c1   : > { %v5735_v45 = vpop.f32.mrf.mxu1  ;;  %7840 = vmatpush2.bf16.msra.mxu0 %v12241_v10 }
 0x4c2   : > { %v5736_v7 = vadd.f32 %v5735_v45, %v5663_v26  ;;  %v5760_v53 = vpack.c.bf16 %v5734_v36, %v5730_v14  ;;  %v12249_v26 = vld [vmem:[%s17864_s7 + $0x1b4] ss:$24 sps:$4 sm:$0xff]   ;;  %v12247_v45 = vld [vmem:[%s17864_s7 + $0x1b0] ss:$24 sps:$4 sm:$0xff]   ;;  %v12253_v14 = vld [vmem:[%s17864_s7 + $0x180] ss:$24 sps:$4 sm:$0xff]  }
 0x4c3   : > { %7841 = vmatprep.subr.bf16.mxu0 %v12249_v26  ;;  %v12294_v26 = vld [vmem:[%s17864_s7 + $0x694] ss:$24 sps:$4 sm:$0xff]  }
 0x4c4   : > { %v5761_v25 = vpack.c.bf16 %v5736_v7, %v5732_v41 }
 0x4c5   : > { %7842 = vmatpush2.bf16.msra.mxu0 %v12247_v45  ;;  %v12162_v45 = vld [vmem:[%s17864_s7 + $0x514] ss:$24 sps:$4 sm:$0xff]  }
 0x4c6   : > { %5948 = vmatprep.subr.bf16.mxu1 %v5761_v25  ;;  %7843 = vmatprep.subr.bf16.mxu0 %v12255_v33  ;;  %v12141_v25 = vld [vmem:[%s17864_s7 + $0x364] ss:$24 sps:$4 sm:$0xff]  }
 0x4c7   : > { %5949 = vmatpush1.bf16.msra.mxu1 %v5760_v53  ;;  %v12139_v53 = vld [vmem:[%s17864_s7 + $0x360] ss:$24 sps:$4 sm:$0xff]  }
 0x4c8   : > { %5950 = vmatprep.subr.bf16.mxu1 %v5755_v55 }
 0x4c9   : > { %7844 = vmatpush2.bf16.msra.mxu0 %v12253_v14 }
 0x4ca   : > { %7959 = vmatprep.subr.bf16.mxu0 %v12270_v62  ;;  %v12180_v62 = vld [vmem:[%s17864_s7 + $0x484] ss:$24 sps:$4 sm:$0xff]  }
 0x4cb   : > { %5951 = vmatpush1.bf16.msra.mxu1 %v5754_v12  ;;  %v12145_v12 = vld [vmem:[%s17864_s7 + $0x300] ss:$24 sps:$4 sm:$0xff]  }
 0x4cc   : > { %5952 = vmatprep.subr.bf16.mxu1 %v5749_v19 }
 0x4cf   : > { %5953 = vmatpush1.bf16.msra.mxu1 %v5748_v58  ;;  %v12148_v58 = vld [vmem:[%s17864_s7 + $0x5d0] ss:$24 sps:$4 sm:$0xff]  }
 0x4d0   : > { %5954 = vmatprep.subr.bf16.mxu1 %v5743_v61  ;;  %v12274_v61 = vld [vmem:[%s17864_s7 + $0x720] ss:$24 sps:$4 sm:$0xff]  }
 0x4d3   : > { %5955 = vmatpush1.bf16.msra.mxu1 %v5742_v0 }
 0x4d4   : > { %7886 = vmatprep.subr.bf16.mxu1 %v12126_v13  ;;  %v12282_v13 = vld [vmem:[%s17864_s7 + $0x6f4] ss:$24 sps:$4 sm:$0xff]  }
 0x4d6   : > { %10772 = vmatmul.mubr.msk.bf16.vlgmr.msra.gmra.mxu1 %vm3049_vm0, %v15700_v4  ;;  %v5828_v0 = vpop.f32.mrf.mxu0  ;;  %v12132_v4 = vld [vmem:[%s17864_s7 + $0x3f4] ss:$24 sps:$4 sm:$0xff]  }
 0x4d7   : > { %5982 = vmatprep.mubr.bf16.mxu1 %v17902_v5  ;;  %7887 = vmatpush1.bf16.msra.mxu1 %v12124_v51  ;;  %v5829_v31 = vadd.f32 %v5828_v0, %v15935_v35  ;;  %v12280_v51 = vld [vmem:[%s17864_s7 + $0x6f0] ss:$24 sps:$4 sm:$0xff]  }
 0x4d8   : > { %7888 = vmatprep.subr.bf16.mxu1 %v12129_v27  ;;  %v5830_v9 = vpop.f32.mrf.mxu0  ;;  %v12156_v27 = vld [vmem:[%s17864_s7 + $0x574] ss:$24 sps:$4 sm:$0xff]  }
 0x4d9   : > { %v5831_v49 = vadd.f32 %v5830_v9, %v15945_v59  ;;  %12796 = vtanh.f32 %v5829_v31  ;;  %v12288_v31 = vld [vmem:[%s17864_s7 + $0x6c4] ss:$24 sps:$4 sm:$0xff]   ;;  %v12286_v9 = vld [vmem:[%s17864_s7 + $0x6c0] ss:$24 sps:$4 sm:$0xff]  }
 0x4da   : > { %v5832_v17 = vpop.f32.mrf.mxu0 }
 0x4db   : > { %7889 = vmatpush1.bf16.msra.mxu1 %v12127_v32  ;;  %v5833_v36 = vadd.f32 %v5832_v17, %v15935_v35  ;;  %12798 = vtanh.f32 %v5831_v49  ;;  %v12159_v49 = vld [vmem:[%s17864_s7 + $0x544] ss:$24 sps:$4 sm:$0xff]  }
 0x4dc   : > { %7890 = vmatprep.subr.bf16.mxu1 %v12132_v4  ;;  %v5834_v56 = vpop.f32.mrf.mxu0  ;;  %v12154_v4 = vld [vmem:[%s17864_s7 + $0x570] ss:$24 sps:$4 sm:$0xff]  }
 0x4dd   : > { %12800 = vtanh.f32 %v5833_v36  ;;  %v5835_v41 = vadd.f32 %v5834_v56, %v15945_v59  ;;  %v12292_v36 = vld [vmem:[%s17864_s7 + $0x690] ss:$24 sps:$4 sm:$0xff]  }
 0x4de   : > { %10773 = vmatmul.mubr.msk.bf16.gmra.mxu1 %vm3049_vm0, %v15710_v15  ;;  %v5838_v7 = vpop.f32.mrf.mxu0  ;;  %v12138_v15 = vld [vmem:[%s17864_s7 + $0x394] ss:$24 sps:$4 sm:$0xff]  }
 0x4df   : > { %5992 = vmatprep.mubr.bf16.mxu1 %v17902_v5  ;;  %7891 = vmatpush1.bf16.msra.mxu1 %v12130_v54  ;;  %12802 = vtanh.f32 %v5835_v41  ;;  %v5839_v39 = vadd.f32 %v5838_v7, %v15935_v35  ;;  %v12157_v54 = vld [vmem:[%s17864_s7 + $0x540] ss:$24 sps:$4 sm:$0xff]  }
 0x4e0   : > { %7892 = vmatprep.subr.bf16.mxu1 %v12135_v22  ;;  %v5840_v34 = vpop.f32.mrf.mxu0 }
 0x4e1   : > { %v5841_v19 = vadd.f32 %v5840_v34, %v15945_v59  ;;  %12804 = vtanh.f32 %v5839_v39  ;;  %v12160_v34 = vld [vmem:[%s17864_s7 + $0x510] ss:$24 sps:$4 sm:$0xff]  }
 0x4e2   : > { %v5842_v28 = vpop.f32.mrf.mxu0  ;;  %v12316_v39 = vld [vmem:[%s17864_s7 + $0x8d0] ss:$24 sps:$4 sm:$0xff]  }
 0x4e3   : > { %7893 = vmatpush1.bf16.msra.mxu1 %v12133_v6  ;;  %v5843_v29 = vadd.f32 %v5842_v28, %v15935_v35  ;;  %12806 = vtanh.f32 %v5841_v19  ;;  %v12300_v6 = vld [vmem:[%s17864_s7 + $0x664] ss:$24 sps:$4 sm:$0xff]   ;;  %v12298_v28 = vld [vmem:[%s17864_s7 + $0x660] ss:$24 sps:$4 sm:$0xff]  }
 0x4e4   : > { %7894 = vmatprep.subr.bf16.mxu1 %v12138_v15  ;;  %v5844_v23 = vpop.f32.mrf.mxu0 }
 0x4e5   : > { %v5845_v24 = vadd.f32 %v5844_v23, %v15945_v59  ;;  %12808 = vtanh.f32 %v5843_v29  ;;  %v12168_v23 = vld [vmem:[%s17864_s7 + $0x4e4] ss:$24 sps:$4 sm:$0xff]  }
 0x4e6   : > { %10774 = vmatmul.mubr.msk.bf16.gmra.mxu1 %vm3049_vm0, %v15720_v43  ;;  %v5848_v16 = vpop.f32.mrf.mxu0  ;;  %v12797_v40 = vpop.eup %12796  ;;  %v12142_v43 = vld [vmem:[%s17864_s7 + $0x330] ss:$24 sps:$4 sm:$0xff]   ;;  %v12186_v29 = vld [vmem:[%s17864_s7 + $0x15c] ss:$24 sps:$4 sm:$0xff]  }
 0x4e7   : > { %6002 = vmatprep.mubr.bf16.mxu1 %v17902_v5  ;;  %7895 = vmatpush1.bf16.msra.mxu1 %v12136_v37  ;;  %12810 = vtanh.f32 %v5845_v24  ;;  %v5849_v44 = vadd.f32 %v5848_v16, %v15935_v35  ;;  %v12166_v16 = vld [vmem:[%s17864_s7 + $0x4e0] ss:$24 sps:$4 sm:$0xff]  }
 0x4e8   : > { %7896 = vmatprep.subr.bf16.mxu1 %v12141_v25  ;;  %v12799_v55 = vpop.eup %12798  ;;  %v5850_v1 = vpop.f32.mrf.mxu0 }
 0x4e9   : > { %v5851_v0 = vadd.f32 %v5850_v1, %v15945_v59  ;;  %12812 = vtanh.f32 %v5849_v44  ;;  %v12312_v1 = vld [vmem:[%s17864_s7 + $0x604] ss:$24 sps:$4 sm:$0xff]  }
 0x4ea   : > { %v12801_v57 = vpop.eup %12800  ;;  %v5852_v52 = vpop.f32.mrf.mxu0 }
 0x4eb   : > { %7897 = vmatpush1.bf16.msra.mxu1 %v12139_v53  ;;  %v16011_v20 = vpack.c.bf16 %v12801_v57, %v12797_v40  ;;  %v5853_v30 = vadd.f32 %v5852_v52, %v15935_v35  ;;  %12814 = vtanh.f32 %v5851_v0 }
 0x4ec   : > { %v12803_v21 = vpop.eup %12802  ;;  %7898 = vmatprep.subr.bf16.mxu1 %v12144_v47  ;;  %v5854_v3 = vpop.f32.mrf.mxu0  ;;  %v12174_v47 = vld [vmem:[%s17864_s7 + $0x4b4] ss:$24 sps:$4 sm:$0xff]  }
 0x4ed   : > { %v16016_v18 = vpack.c.bf16 %v12803_v21, %v12799_v55  ;;  %v5855_v10 = vadd.f32 %v5854_v3, %v15945_v59  ;;  %12816 = vtanh.f32 %v5853_v30  ;;  %v12172_v21 = vld [vmem:[%s17864_s7 + $0x4b0] ss:$24 sps:$4 sm:$0xff]  }
 0x4ee   : > { %10775 = vmatmul.mubr.msk.bf16.gmra.mxu1 %vm3049_vm0, %v15726_v63  ;;  %v12150_v63 = vld [vmem:[%s17864_s7 + $0x5d4] ss:$24 sps:$4 sm:$0xff]   ;;  %v5858_v50 = vpop.f32.mrf.mxu0  ;;  %v12805_v22 = vpop.eup %12804 }
 0x4ef   : > { %7899 = vmatpush1.bf16.msra.mxu1 %v12142_v43  ;;  %7845 = vmatprep.mubr.bf16.mxu0 %v16016_v18  ;;  %12818 = vtanh.f32 %v5855_v10  ;;  %v5859_v56 = vadd.f32 %v5858_v50, %v15935_v35  ;;  %v17909_v50 = vld [vmem:[#allocation10_spill] sm:$0xff] }
 0x4f0   : > { %7900 = vmatprep.subr.bf16.mxu1 %v12147_v60  ;;  %7846 = vmatmul.mubr.bf16.vlgmr.msra.gmra.mxu0 %v16011_v20  ;;  %v5860_v32 = vpop.f32.mrf.mxu0  ;;  %v12807_v41 = vpop.eup %12806  ;;  %v12310_v60 = vld [vmem:[%s17864_s7 + $0x600] ss:$24 sps:$4 sm:$0xff]  }
 0x4f1   : > { %7960 = vmatpush1.bf16.msra.mxu0 %v12268_v38  ;;  %v5861_v7 = vadd.f32 %v5860_v32, %v15945_v59  ;;  %12820 = vtanh.f32 %v5859_v56  ;;  %v12178_v38 = vld [vmem:[%s17864_s7 + $0x480] ss:$24 sps:$4 sm:$0xff]  }
 0x4f2   : > { %7961 = vmatprep.subr.bf16.mxu0 %v12276_v46  ;;  %v5862_v17 = vpop.f32.mrf.mxu0  ;;  %v12809_v14 = vpop.eup %12808  ;;  %v12324_v46 = vld [vmem:[%s17864_s7 + $0x8a4] ss:$24 sps:$4 sm:$0xff]  }
 0x4f3   : > { %7901 = vmatpush1.bf16.msra.mxu1 %v12145_v12  ;;  %v5863_v25 = vadd.f32 %v5862_v17, %v15935_v35  ;;  %12822 = vtanh.f32 %v5861_v7  ;;  %v12304_v35 = vld [vmem:[%s17864_s7 + $0x630] ss:$24 sps:$4 sm:$0xff]   ;;  %v16117_v40 = vpack.c.bf16 %v12809_v14, %v12805_v22  ;;  %v12318_v12 = vld [vmem:[%s17864_s7 + $0x8d4] ss:$24 sps:$4 sm:$0xff]   ;;  %v12346_v14 = vld [vmem:[%s17864_s7 + $0x7e0] ss:$24 sps:$4 sm:$0xff]  }
 0x4f4   : > { %7902 = vmatprep.subr.bf16.mxu1 %v12150_v63  ;;  %v5864_v33 = vpop.f32.mrf.mxu0  ;;  %v12811_v37 = vpop.eup %12810  ;;  %v12340_v22 = vld [vmem:[%s17864_s7 + $0x810] ss:$24 sps:$4 sm:$0xff]  }
 0x4f5   : > { %7962 = vmatpush1.bf16.msra.mxu0 %v12274_v61  ;;  %v5865_v15 = vadd.f32 %v5864_v33, %v15945_v59  ;;  %v12306_v59 = vld [vmem:[%s17864_s7 + $0x634] ss:$24 sps:$4 sm:$0xff]   ;;  %v16115_v53 = vpack.c.bf16 %v12811_v37, %v12807_v41  ;;  %v12348_v33 = vld [vmem:[%s17864_s7 + $0x7e4] ss:$24 sps:$4 sm:$0xff]  }
 0x4f6   : > { %7963 = vmatprep.subr.bf16.mxu0 %v12282_v13  ;;  %v12813_v55 = vpop.eup %12812  ;;  %v16162_v13 = vrot.slane %v15922_v11, %v17909_v50  ;;  %v12354_v37 = vld [vmem:[%s17864_s7 + $0x7b4] ss:$24 sps:$4 sm:$0xff]  }
 0x4f7   : > { %7903 = vmatpush2.bf16.msra.mxu1 %v12148_v58  ;;  %12824 = vtanh.f32 %v5865_v15  ;;  %7855 = vmatprep.mubr.bf16.mxu0 %v16115_v53  ;;  %v12322_v58 = vld [vmem:[%s17864_s7 + $0x8a0] ss:$24 sps:$4 sm:$0xff]  }
 0x4f8   : > { %7904 = vmatprep.subr.bf16.mxu1 %v12153_v48  ;;  %12826 = vtanh.f32 %v5863_v25  ;;  %v12815_v57 = vpop.eup %12814  ;;  %7856 = vmatmul.mubr.bf16.gmra.mxu0 %v16117_v40 }
 0x4f9   : > { %7964 = vmatpush1.bf16.msra.mxu0 %v12280_v51  ;;  %v17910_v51 = vld [vmem:[#allocation11_spill] sm:$0xff] }
 0x4fa   : > { %7965 = vmatprep.subr.bf16.mxu0 %v12288_v31  ;;  %v12817_v43 = vpop.eup %12816  ;;  %v16169_v44 = vrot.slane %v15922_v11, %v17910_v51 }
 0x4fb   : > { %7905 = vmatpush2.bf16.msra.mxu1 %v12151_v8  ;;  %v16147_v19 = vpack.c.bf16 %v12817_v43, %v12813_v55  ;;  %v12330_v8 = vld [vmem:[%s17864_s7 + $0x874] ss:$24 sps:$4 sm:$0xff]   ;;  %v12360_v55 = vld [vmem:[%s17864_s7 + $0x784] ss:$24 sps:$4 sm:$0xff]   ;;  %v12358_v43 = vld [vmem:[%s17864_s7 + $0x780] ss:$24 sps:$4 sm:$0xff]  }
 0x4fc   : > { %7906 = vmatprep.subr.bf16.mxu1 %v12156_v27  ;;  %v12819_v52 = vpop.eup %12818  ;;  %v12328_v27 = vld [vmem:[%s17864_s7 + $0x870] ss:$24 sps:$4 sm:$0xff]  }
 0x4fd   : > { %7966 = vmatpush1.bf16.msra.mxu0 %v12286_v9  ;;  %v16145_v63 = vpack.c.bf16 %v12819_v52, %v12815_v57 }
 0x4fe   : > { %7967 = vmatprep.subr.bf16.mxu0 %v12294_v26  ;;  %v12821_v3 = vpop.eup %12820 }
 0x4ff   : > { %7907 = vmatpush2.bf16.msra.mxu1 %v12154_v4  ;;  %7865 = vmatprep.mubr.bf16.mxu0 %v16145_v63  ;;  %v12336_v4 = vld [vmem:[%s17864_s7 + $0x844] ss:$24 sps:$4 sm:$0xff]  }
 0x500   : > { %7908 = vmatprep.subr.bf16.mxu1 %v12159_v49  ;;  %v12823_v24 = vpop.eup %12822  ;;  %7866 = vmatmul.mubr.bf16.gmra.mxu0 %v16147_v19  ;;  %v12334_v49 = vld [vmem:[%s17864_s7 + $0x840] ss:$24 sps:$4 sm:$0xff]  }
 0x501   : > { %7968 = vmatpush1.bf16.msra.mxu0 %v12292_v36  ;;  %v12342_v36 = vld [vmem:[%s17864_s7 + $0x814] ss:$24 sps:$4 sm:$0xff]  }
 0x502   : > { %7969 = vmatprep.subr.bf16.mxu0 %v12300_v6 }
 0x503   : > { %7909 = vmatpush2.bf16.msra.mxu1 %v12157_v54 }
 0x504   : > { %7910 = vmatprep.subr.bf16.mxu1 %v12162_v45  ;;  %v12825_v61 = vpop.eup %12824 }
 0x505   : > { %7970 = vmatpush1.bf16.msra.mxu0 %v12298_v28  ;;  %v12827_v48 = vpop.eup %12826  ;;  %v16174_v0 = vpack.c.bf16 %v12825_v61, %v12823_v24  ;;  %v12192_v24 = vld [vmem:[%s17864_s7 + $0x12c] ss:$24 sps:$4 sm:$0xff]  }
 0x506   : > { %7971 = vmatprep.subr.bf16.mxu0 %v12306_v59  ;;  %v16176_v32 = vpack.c.bf16 %v12827_v48, %v12821_v3  ;;  %v12184_v3 = vld [vmem:[%s17864_s7 + $0x158] ss:$24 sps:$4 sm:$0xff]  }
 0x507   : > { %7911 = vmatpush2.bf16.msra.mxu1 %v12160_v34  ;;  %7875 = vmatprep.mubr.bf16.mxu0 %v16174_v0 }
 0x508   : > { %7912 = vmatprep.subr.bf16.mxu1 %v12168_v23  ;;  %7876 = vmatmul.mubr.bf16.gmra.mxu0 %v16176_v32  ;;  %v12352_v23 = vld [vmem:[%s17864_s7 + $0x7b0] ss:$24 sps:$4 sm:$0xff]  }
 0x509   : > { %7972 = vmatpush1.bf16.msra.mxu0 %v12304_v35 }
 0x50a   : > { %7973 = vmatprep.subr.bf16.mxu0 %v12312_v1 }
 0x50b   : > { %7913 = vmatpush2.bf16.msra.mxu1 %v12166_v16 }
 0x50c   : > { %7914 = vmatprep.subr.bf16.mxu1 %v12174_v47 }
 0x50d   : > { %7974 = vmatpush1.bf16.msra.mxu0 %v12310_v60 }
 0x50e   : > { %7975 = vmatprep.subr.bf16.mxu0 %v12318_v12 }
 0x50f   : > { %7915 = vmatpush2.bf16.msra.mxu1 %v12172_v21 }
 0x510   : > { %7916 = vmatprep.subr.bf16.mxu1 %v12180_v62 }
 0x511   : > { %7976 = vmatpush2.bf16.msra.mxu0 %v12316_v39  ;;  %v12366_v39 = vld [vmem:[%s17864_s7 + $0x45c] ss:$24 sps:$4 sm:$0xff]  }
 0x512   : > { %7977 = vmatprep.subr.bf16.mxu0 %v12324_v46 }
 0x513   : > { %7917 = vmatpush2.bf16.msra.mxu1 %v12178_v38 }
 0x514   : > { %8032 = vmatprep.subr.bf16.mxu1 %v12186_v29 }
 0x515   : > { %7978 = vmatpush2.bf16.msra.mxu0 %v12322_v58 }
 0x516   : > { %7979 = vmatprep.subr.bf16.mxu0 %v12330_v8 }
 0x518   : > { %v5901_v30 = vpop.f32.mrf.mxu0 }
 0x519   : > { %v5902_v31 = vadd.f32 %v5901_v30, %v16162_v13  ;;  %7980 = vmatpush2.bf16.msra.mxu0 %v12328_v27  ;;  %v12190_v30 = vld [vmem:[%s17864_s7 + $0x128] ss:$24 sps:$4 sm:$0xff]  }
 0x51a   : > { %v5903_v10 = vpop.f32.mrf.mxu0  ;;  %7981 = vmatprep.subr.bf16.mxu0 %v12336_v4  ;;  %v12198_v4 = vld [vmem:[%s17864_s7 + $0xfc] ss:$24 sps:$4 sm:$0xff]  }
 0x51b   : > { %v5904_v9 = vadd.f32 %v5903_v10, %v16169_v44  ;;  %12828 = vtanh.f32 %v5902_v31 }
 0x51c   : > { %v5905_v17 = vpop.f32.mrf.mxu0 }
 0x51d   : > { %v5906_v26 = vadd.f32 %v5905_v17, %v16162_v13  ;;  %12830 = vtanh.f32 %v5904_v9  ;;  %7982 = vmatpush2.bf16.msra.mxu0 %v12334_v49 }
 0x51e   : > { %v5907_v54 = vpop.f32.mrf.mxu0  ;;  %7983 = vmatprep.subr.bf16.mxu0 %v12342_v36  ;;  %v12196_v36 = vld [vmem:[%s17864_s7 + $0xf8] ss:$24 sps:$4 sm:$0xff]  }
 0x51f   : > { %12832 = vtanh.f32 %v5906_v26  ;;  %v5908_v45 = vadd.f32 %v5907_v54, %v16169_v44 }
 0x520   : > { %v5911_v56 = vpop.f32.mrf.mxu0 }
 0x521   : > { %12834 = vtanh.f32 %v5908_v45  ;;  %v5912_v41 = vadd.f32 %v5911_v56, %v16162_v13  ;;  %7984 = vmatpush2.bf16.msra.mxu0 %v12340_v22 }
 0x522   : > { %v5913_v7 = vpop.f32.mrf.mxu0  ;;  %7985 = vmatprep.subr.bf16.mxu0 %v12348_v33  ;;  %v12210_v33 = vld [vmem:[%s17864_s7 + $0x9c] ss:$24 sps:$4 sm:$0xff]  }
 0x523   : > { %v5914_v6 = vadd.f32 %v5913_v7, %v16169_v44  ;;  %12836 = vtanh.f32 %v5912_v41  ;;  %v12202_v7 = vld [vmem:[%s17864_s7 + $0xc8] ss:$24 sps:$4 sm:$0xff]  }
 0x524   : > { %v5915_v15 = vpop.f32.mrf.mxu0 }
 0x525   : > { %v5916_v34 = vadd.f32 %v5915_v15, %v16162_v13  ;;  %12838 = vtanh.f32 %v5914_v6  ;;  %7986 = vmatpush2.bf16.msra.mxu0 %v12346_v14  ;;  %v12208_v15 = vld [vmem:[%s17864_s7 + $0x98] ss:$24 sps:$4 sm:$0xff]  }
 0x526   : > { %v5917_v28 = vpop.f32.mrf.mxu0  ;;  %7987 = vmatprep.subr.bf16.mxu0 %v12354_v37 }
 0x527   : > { %12840 = vtanh.f32 %v5916_v34  ;;  %v5918_v25 = vadd.f32 %v5917_v28, %v16169_v44  ;;  %v12216_v28 = vld [vmem:[%s17864_s7 + $0x6c] ss:$24 sps:$4 sm:$0xff]  }
 0x528   : > { %v5921_v59 = vpop.f32.mrf.mxu0  ;;  %v12829_v35 = vpop.eup %12828 }
 0x529   : > { %12842 = vtanh.f32 %v5918_v25  ;;  %v5922_v16 = vadd.f32 %v5921_v59, %v16162_v13  ;;  %7988 = vmatpush2.bf16.msra.mxu0 %v12352_v23  ;;  %v12214_v23 = vld [vmem:[%s17864_s7 + $0x68] ss:$24 sps:$4 sm:$0xff]  }
 0x52a   : > { %v5923_v47 = vpop.f32.mrf.mxu0  ;;  %v12831_v57 = vpop.eup %12830  ;;  %7989 = vmatprep.subr.bf16.mxu0 %v12360_v55  ;;  %v12220_v55 = vld [vmem:[%s17864_s7 + $0x38] ss:$24 sps:$4 sm:$0xff]  }
 0x52b   : > { %v5924_v1 = vadd.f32 %v5923_v47, %v16169_v44  ;;  %12844 = vtanh.f32 %v5922_v16  ;;  %v12222_v16 = vld [vmem:[%s17864_s7 + $0x3c] ss:$24 sps:$4 sm:$0xff]  }
 0x52c   : > { %v12833_v21 = vpop.eup %12832  ;;  %v5925_v60 = vpop.f32.mrf.mxu0 }
 0x52d   : > { %v5926_v52 = vadd.f32 %v5925_v60, %v16162_v13  ;;  %v16221_v12 = vpack.c.bf16 %v12833_v21, %v12829_v35  ;;  %12846 = vtanh.f32 %v5924_v1  ;;  %7990 = vmatpush2.bf16.msra.mxu0 %v12358_v43  ;;  %v12228_v1 = vld [vmem:[%s17864_s7 + $0xc] ss:$24 sps:$4 sm:$0xff]   ;;  %v12226_v43 = vld [vmem:[%s17864_s7 + $0x8] ss:$24 sps:$4 sm:$0xff]   ;;  %v12234_v21 = vld [vmem:[%s17864_s7 + $0x2dc] ss:$24 sps:$4 sm:$0xff]  }
 0x52e   : > { %v12835_v62 = vpop.eup %12834  ;;  %v5927_v38 = vpop.f32.mrf.mxu0  ;;  %8105 = vmatprep.subr.bf16.mxu0 %v12366_v39  ;;  %v12232_v60 = vld [vmem:[%s17864_s7 + $0x2d8] ss:$24 sps:$4 sm:$0xff]  }
 0x52f   : > { %v16226_v29 = vpack.c.bf16 %v12835_v62, %v12831_v57  ;;  %12848 = vtanh.f32 %v5926_v52  ;;  %v5928_v46 = vadd.f32 %v5927_v38, %v16169_v44  ;;  %v12240_v52 = vld [vmem:[%s17864_s7 + $0x2ac] ss:$24 sps:$4 sm:$0xff]   ;;  %v12238_v62 = vld [vmem:[%s17864_s7 + $0x2a8] ss:$24 sps:$4 sm:$0xff]   ;;  %v12246_v38 = vld [vmem:[%s17864_s7 + $0x27c] ss:$24 sps:$4 sm:$0xff]  }
 0x530   : > { %v5931_v58 = vpop.f32.mrf.mxu0  ;;  %v12837_v48 = vpop.eup %12836  ;;  %v12244_v39 = vld [vmem:[%s17864_s7 + $0x278] ss:$24 sps:$4 sm:$0xff]  }
 0x531   : > { %7918 = vmatprep.mubr.bf16.mxu1 %v16226_v29  ;;  %12850 = vtanh.f32 %v5928_v46  ;;  %v5932_v61 = vadd.f32 %v5931_v58, %v16162_v13  ;;  %v12250_v46 = vld [vmem:[%s17864_s7 + $0x248] ss:$24 sps:$4 sm:$0xff]   ;;  %v12256_v58 = vld [vmem:[%s17864_s7 + $0x218] ss:$24 sps:$4 sm:$0xff]  }
 0x532   : > { %7919 = vmatmul.mubr.bf16.vlgmr.msra.gmra.mxu1 %v16221_v12  ;;  %v5933_v8 = vpop.f32.mrf.mxu0  ;;  %v12839_v27 = vpop.eup %12838 }
 0x533   : > { %8033 = vmatpush1.bf16.msra.mxu1 %v12184_v3  ;;  %v5934_v31 = vadd.f32 %v5933_v8, %v16169_v44  ;;  %12852 = vtanh.f32 %v5932_v61  ;;  %v12252_v3 = vld [vmem:[%s17864_s7 + $0x24c] ss:$24 sps:$4 sm:$0xff]   ;;  %v12264_v8 = vld [vmem:[%s17864_s7 + $0x1bc] ss:$24 sps:$4 sm:$0xff]  }
 0x534   : > { %v12841_v10 = vpop.eup %12840  ;;  %8034 = vmatprep.subr.bf16.mxu1 %v12192_v24  ;;  %v5935_v9 = vpop.f32.mrf.mxu0  ;;  %v12258_v24 = vld [vmem:[%s17864_s7 + $0x21c] ss:$24 sps:$4 sm:$0xff]   ;;  %v12261_v61 = vld [vmem:[%s17864_s7 + $0x1ec] ss:$24 sps:$4 sm:$0xff]  }
 0x535   : > { %v5936_v49 = vadd.f32 %v5935_v9, %v16162_v13  ;;  %12854 = vtanh.f32 %v5934_v31  ;;  %v16246_v54 = vpack.c.bf16 %v12841_v10, %v12837_v48  ;;  %v12204_v13 = vld [vmem:[%s17864_s7 + $0xcc] ss:$24 sps:$4 sm:$0xff]   ;;  %v12259_v48 = vld [vmem:[%s17864_s7 + $0x1e8] ss:$24 sps:$4 sm:$0xff]   ;;  %v12273_v10 = vld [vmem:[%s17864_s7 + $0x75c] ss:$24 sps:$4 sm:$0xff]  }
 0x536   : > { %v12843_v17 = vpop.eup %12842  ;;  %v5937_v26 = vpop.f32.mrf.mxu0  ;;  %v12265_v31 = vld [vmem:[%s17864_s7 + $0x188] ss:$24 sps:$4 sm:$0xff]   ;;  %v12279_v9 = vld [vmem:[%s17864_s7 + $0x72c] ss:$24 sps:$4 sm:$0xff]  }
 0x537   : > { %8035 = vmatpush1.bf16.msra.mxu1 %v12190_v30  ;;  %12856 = vtanh.f32 %v5936_v49  ;;  %v5938_v45 = vadd.f32 %v5937_v26, %v16169_v44  ;;  %v16252_v22 = vpack.c.bf16 %v12843_v17, %v12839_v27  ;;  %v12262_v27 = vld [vmem:[%s17864_s7 + $0x1b8] ss:$24 sps:$4 sm:$0xff]   ;;  %v12267_v30 = vld [vmem:[%s17864_s7 + $0x18c] ss:$24 sps:$4 sm:$0xff]   ;;  %v12277_v49 = vld [vmem:[%s17864_s7 + $0x728] ss:$24 sps:$4 sm:$0xff]  }
 0x538   : > { %8036 = vmatprep.subr.bf16.mxu1 %v12198_v4  ;;  %v12845_v56 = vpop.eup %12844  ;;  %v12271_v4 = vld [vmem:[%s17864_s7 + $0x758] ss:$24 sps:$4 sm:$0xff]   ;;  %v12285_v17 = vld [vmem:[%s17864_s7 + $0x6fc] ss:$24 sps:$4 sm:$0xff]  }
 0x539   : > { %12858 = vtanh.f32 %v5938_v45  ;;  %7928 = vmatprep.mubr.bf16.mxu1 %v16252_v22  ;;  %v12283_v26 = vld [vmem:[%s17864_s7 + $0x6f8] ss:$24 sps:$4 sm:$0xff]   ;;  %v12289_v45 = vld [vmem:[%s17864_s7 + $0x6c8] ss:$24 sps:$4 sm:$0xff]  }
 0x53a   : > { %7929 = vmatmul.mubr.bf16.gmra.mxu1 %v16246_v54  ;;  %v12847_v41 = vpop.eup %12846 }
 0x53b   : > { %8037 = vmatpush1.bf16.msra.mxu1 %v12196_v36  ;;  %v12291_v36 = vld [vmem:[%s17864_s7 + $0x6cc] ss:$24 sps:$4 sm:$0xff]  }
 0x53c   : > { %v12849_v44 = vpop.eup %12848  ;;  %8038 = vmatprep.subr.bf16.mxu1 %v12204_v13  ;;  %v12297_v13 = vld [vmem:[%s17864_s7 + $0x69c] ss:$24 sps:$4 sm:$0xff]  }
 0x53d   : > { %v16265_v14 = vpack.c.bf16 %v12849_v44, %v12845_v56  ;;  %v12295_v56 = vld [vmem:[%s17864_s7 + $0x698] ss:$24 sps:$4 sm:$0xff]   ;;  %v12309_v44 = vld [vmem:[%s17864_s7 + $0x63c] ss:$24 sps:$4 sm:$0xff]  }
 0x53e   : > { %v12851_v6 = vpop.eup %12850 }
 0x53f   : > { %8039 = vmatpush1.bf16.msra.mxu1 %v12202_v7  ;;  %v16270_v34 = vpack.c.bf16 %v12851_v6, %v12847_v41  ;;  %v12303_v41 = vld [vmem:[%s17864_s7 + $0x66c] ss:$24 sps:$4 sm:$0xff]   ;;  %v12301_v7 = vld [vmem:[%s17864_s7 + $0x668] ss:$24 sps:$4 sm:$0xff]  }
 0x540   : > { %8040 = vmatprep.subr.bf16.mxu1 %v12210_v33  ;;  %v12853_v37 = vpop.eup %12852  ;;  %v12307_v33 = vld [vmem:[%s17864_s7 + $0x638] ss:$24 sps:$4 sm:$0xff]   ;;  %v12315_v6 = vld [vmem:[%s17864_s7 + $0x60c] ss:$24 sps:$4 sm:$0xff]  }
 0x541   : > { %7938 = vmatprep.mubr.bf16.mxu1 %v16270_v34 }
 0x542   : > { %7939 = vmatmul.mubr.bf16.gmra.mxu1 %v16265_v14  ;;  %v12855_v25 = vpop.eup %12854 }
 0x543   : > { %8041 = vmatpush1.bf16.msra.mxu1 %v12208_v15  ;;  %v12313_v15 = vld [vmem:[%s17864_s7 + $0x608] ss:$24 sps:$4 sm:$0xff]  }
 0x544   : > { %v12857_v59 = vpop.eup %12856  ;;  %8042 = vmatprep.subr.bf16.mxu1 %v12216_v28  ;;  %v12321_v28 = vld [vmem:[%s17864_s7 + $0x8dc] ss:$24 sps:$4 sm:$0xff]  }
 0x545   : > { %v16283_v47 = vpack.c.bf16 %v12857_v59, %v12853_v37  ;;  %v12319_v37 = vld [vmem:[%s17864_s7 + $0x8d8] ss:$24 sps:$4 sm:$0xff]   ;;  %v12333_v59 = vld [vmem:[%s17864_s7 + $0x87c] ss:$24 sps:$4 sm:$0xff]  }
 0x546   : > { %v12859_v35 = vpop.eup %12858 }
 0x547   : > { %8043 = vmatpush1.bf16.msra.mxu1 %v12214_v23  ;;  %v16288_v57 = vpack.c.bf16 %v12859_v35, %v12855_v25  ;;  %v12327_v25 = vld [vmem:[%s17864_s7 + $0x8ac] ss:$24 sps:$4 sm:$0xff]   ;;  %v12325_v23 = vld [vmem:[%s17864_s7 + $0x8a8] ss:$24 sps:$4 sm:$0xff]  }
 0x548   : > { %8044 = vmatprep.subr.bf16.mxu1 %v12222_v16  ;;  %v17911_v16 = vld [vmem:[#allocation12_spill] sm:$0xff] }
 0x549   : > { %7948 = vmatprep.mubr.bf16.mxu1 %v16288_v57  ;;  %v16419_v35 = vrot.slane %v15922_v11, %v17911_v16 }
 0x54a   : > { %7949 = vmatmul.mubr.bf16.gmra.mxu1 %v16283_v47 }
 0x54b   : > { %8045 = vmatpush1.bf16.msra.mxu1 %v12220_v55  ;;  %8064 = vmatprep.mubr.bf16.mxu1 %v16016_v18 }
 0x54c   : > { %8046 = vmatprep.subr.bf16.mxu1 %v12228_v1  ;;  %v12331_v1 = vld [vmem:[%s17864_s7 + $0x878] ss:$24 sps:$4 sm:$0xff]  }
 0x54f   : > { %8047 = vmatpush1.bf16.msra.mxu1 %v12226_v43  ;;  %v17912_v43 = vld [vmem:[#allocation13_spill] sm:$0xff] }
 0x550   : > { %8048 = vmatprep.subr.bf16.mxu1 %v12234_v21  ;;  %v16426_v21 = vrot.slane %v15922_v11, %v17912_v43 }
 0x553   : > { %8049 = vmatpush2.bf16.msra.mxu1 %v12232_v60 }
 0x554   : > { %8050 = vmatprep.subr.bf16.mxu1 %v12240_v52  ;;  %v12339_v52 = vld [vmem:[%s17864_s7 + $0x84c] ss:$24 sps:$4 sm:$0xff]  }
 0x557   : > { %8051 = vmatpush2.bf16.msra.mxu1 %v12238_v62 }
 0x558   : > { %8052 = vmatprep.subr.bf16.mxu1 %v12246_v38 }
 0x55b   : > { %8053 = vmatpush2.bf16.msra.mxu1 %v12244_v39 }
 0x55c   : > { %8054 = vmatprep.subr.bf16.mxu1 %v12252_v3  ;;  %v12337_v3 = vld [vmem:[%s17864_s7 + $0x848] ss:$24 sps:$4 sm:$0xff]  }
 0x55f   : > { %8055 = vmatpush2.bf16.msra.mxu1 %v12250_v46 }
 0x560   : > { %8056 = vmatprep.subr.bf16.mxu1 %v12258_v24  ;;  %v12345_v24 = vld [vmem:[%s17864_s7 + $0x81c] ss:$24 sps:$4 sm:$0xff]  }
 0x563   : > { %8057 = vmatpush2.bf16.msra.mxu1 %v12256_v58 }
 0x564   : > { %8058 = vmatprep.subr.bf16.mxu1 %v12261_v61 }
 0x567   : > { %8059 = vmatpush2.bf16.msra.mxu1 %v12259_v48 }
 0x568   : > { %8060 = vmatprep.subr.bf16.mxu1 %v12264_v8  ;;  %v12343_v8 = vld [vmem:[%s17864_s7 + $0x818] ss:$24 sps:$4 sm:$0xff]  }
 0x56b   : > { %8061 = vmatpush2.bf16.msra.mxu1 %v12262_v27 }
 0x56c   : > { %8062 = vmatprep.subr.bf16.mxu1 %v12267_v30  ;;  %v12351_v30 = vld [vmem:[%s17864_s7 + $0x7ec] ss:$24 sps:$4 sm:$0xff]  }
 0x56f   : > { %8063 = vmatpush2.bf16.msra.mxu1 %v12265_v31 }
 0x570   : > { %8178 = vmatprep.subr.bf16.mxu1 %v12273_v10 }
 0x572   : > { %8065 = vmatmul.mubr.bf16.vlgmr.msra.gmra.mxu1 %v16011_v20 }
 0x573   : > { %8179 = vmatpush1.bf16.msra.mxu1 %v12271_v4  ;;  %8074 = vmatprep.mubr.bf16.mxu1 %v16115_v53 }
 0x574   : > { %8180 = vmatprep.subr.bf16.mxu1 %v12279_v9  ;;  %v12349_v9 = vld [vmem:[%s17864_s7 + $0x7e8] ss:$24 sps:$4 sm:$0xff]  }
 0x577   : > { %8181 = vmatpush1.bf16.msra.mxu1 %v12277_v49 }
 0x578   : > { %8182 = vmatprep.subr.bf16.mxu1 %v12285_v17  ;;  %v12357_v17 = vld [vmem:[%s17864_s7 + $0x7bc] ss:$24 sps:$4 sm:$0xff]  }
 0x57a   : > { %8075 = vmatmul.mubr.bf16.gmra.mxu1 %v16117_v40 }
 0x57b   : > { %8183 = vmatpush1.bf16.msra.mxu1 %v12283_v26  ;;  %8084 = vmatprep.mubr.bf16.mxu1 %v16145_v63 }
 0x57c   : > { %8184 = vmatprep.subr.bf16.mxu1 %v12291_v36 }
 0x57f   : > { %8185 = vmatpush1.bf16.msra.mxu1 %v12289_v45 }
 0x580   : > { %8186 = vmatprep.subr.bf16.mxu1 %v12297_v13  ;;  %v12355_v13 = vld [vmem:[%s17864_s7 + $0x7b8] ss:$24 sps:$4 sm:$0xff]  }
 0x582   : > { %8085 = vmatmul.mubr.bf16.gmra.mxu1 %v16147_v19 }
 0x583   : > { %8187 = vmatpush1.bf16.msra.mxu1 %v12295_v56  ;;  %8094 = vmatprep.mubr.bf16.mxu1 %v16174_v0 }
 0x584   : > { %8188 = vmatprep.subr.bf16.mxu1 %v12303_v41  ;;  %v12363_v41 = vld [vmem:[%s17864_s7 + $0x78c] ss:$24 sps:$4 sm:$0xff]  }
 0x587   : > { %8189 = vmatpush1.bf16.msra.mxu1 %v12301_v7 }
 0x588   : > { %8190 = vmatprep.subr.bf16.mxu1 %v12309_v44 }
 0x58a   : > { %8095 = vmatmul.mubr.bf16.gmra.mxu1 %v16176_v32 }
 0x58b   : > { %8191 = vmatpush1.bf16.msra.mxu1 %v12307_v33 }
 0x58c   : > { %8192 = vmatprep.subr.bf16.mxu1 %v12315_v6 }
 0x58f   : > { %8193 = vmatpush1.bf16.msra.mxu1 %v12313_v15 }
 0x590   : > { %8194 = vmatprep.subr.bf16.mxu1 %v12321_v28  ;;  %v12361_v28 = vld [vmem:[%s17864_s7 + $0x788] ss:$24 sps:$4 sm:$0xff]  }
 0x593   : > { %8195 = vmatpush2.bf16.msra.mxu1 %v12319_v37 }
 0x594   : > { %8196 = vmatprep.subr.bf16.mxu1 %v12327_v25 }
 0x596   : > { %v5974_v55 = vpop.f32.mrf.mxu1 }
 0x597   : > { %8197 = vmatpush2.bf16.msra.mxu1 %v12325_v23  ;;  %v5975_v46 = vadd.f32 %v5974_v55, %v16426_v21 }
 0x598   : > { %v5976_v60 = vpop.f32.mrf.mxu1  ;;  %8198 = vmatprep.subr.bf16.mxu1 %v12333_v59 }
 0x599   : > { %v5977_v62 = vadd.f32 %v5976_v60, %v16419_v35  ;;  %v12369_v60 = vld [vmem:[%s17864_s7 + $0x464] ss:$24 sps:$4 sm:$0xff]  }
 0x59a   : > { %v5978_v38 = vpop.f32.mrf.mxu1 }
 0x59b   : > { %v5979_v39 = vadd.f32 %v5978_v38, %v16426_v21  ;;  %8199 = vmatpush2.bf16.msra.mxu1 %v12331_v1  ;;  %12860 = vtanh.f32 %v5977_v62  ;;  %v12364_v1 = vld [vmem:[%s17864_s7 + $0x458] ss:$24 sps:$4 sm:$0xff]   ;;  %v12372_v38 = vld [vmem:[%s17864_s7 + $0x42c] ss:$24 sps:$4 sm:$0xff]  }
 0x59c   : > { %v5980_v11 = vpop.f32.mrf.mxu1  ;;  %8200 = vmatprep.subr.bf16.mxu1 %v12339_v52 }
 0x59d   : > { %v5981_v58 = vadd.f32 %v5980_v11, %v16419_v35  ;;  %12862 = vtanh.f32 %v5979_v39 }
 0x59e   : > { %v5984_v61 = vpop.f32.mrf.mxu1 }
 0x59f   : > { %12864 = vtanh.f32 %v5981_v58  ;;  %v5985_v48 = vadd.f32 %v5984_v61, %v16426_v21  ;;  %8201 = vmatpush2.bf16.msra.mxu1 %v12337_v3  ;;  %v12367_v3 = vld [vmem:[%s17864_s7 + $0x460] ss:$24 sps:$4 sm:$0xff]  }
 0x5a0   : > { %12866 = vtanh.f32 %v5975_v46  ;;  %v5986_v27 = vpop.f32.mrf.mxu1  ;;  %8202 = vmatprep.subr.bf16.mxu1 %v12345_v24  ;;  %v12375_v24 = vld [vmem:[%s17864_s7 + $0x434] ss:$24 sps:$4 sm:$0xff]  }
 0x5a1   : > { %v5987_v31 = vadd.f32 %v5986_v27, %v16419_v35  ;;  %12868 = vtanh.f32 %v5985_v48  ;;  %v12370_v48 = vld [vmem:[%s17864_s7 + $0x428] ss:$24 sps:$4 sm:$0xff]  }
 0x5a2   : > { %v5988_v10 = vpop.f32.mrf.mxu1 }
 0x5a3   : > { %v5989_v4 = vadd.f32 %v5988_v10, %v16426_v21  ;;  %8203 = vmatpush2.bf16.msra.mxu1 %v12343_v8  ;;  %12870 = vtanh.f32 %v5987_v31  ;;  %v12373_v10 = vld [vmem:[%s17864_s7 + $0x430] ss:$24 sps:$4 sm:$0xff]  }
 0x5a4   : > { %v5990_v49 = vpop.f32.mrf.mxu1  ;;  %8204 = vmatprep.subr.bf16.mxu1 %v12351_v30  ;;  %v12378_v30 = vld [vmem:[%s17864_s7 + $0x3fc] ss:$24 sps:$4 sm:$0xff]  }
 0x5a5   : > { %12872 = vtanh.f32 %v5989_v4  ;;  %v5991_v26 = vadd.f32 %v5990_v49, %v16419_v35 }
 0x5a6   : > { %v5994_v36 = vpop.f32.mrf.mxu1 }
 0x5a7   : > { %12874 = vtanh.f32 %v5991_v26  ;;  %v5995_v45 = vadd.f32 %v5994_v36, %v16426_v21  ;;  %8205 = vmatpush2.bf16.msra.mxu1 %v12349_v9  ;;  %v12381_v36 = vld [vmem:[%s17864_s7 + $0x404] ss:$24 sps:$4 sm:$0xff]  }
 0x5a8   : > { %v5996_v56 = vpop.f32.mrf.mxu1  ;;  %8206 = vmatprep.subr.bf16.mxu1 %v12357_v17  ;;  %v12861_v44 = vpop.eup %12860 }
 0x5a9   : > { %v5997_v7 = vadd.f32 %v5996_v56, %v16419_v35  ;;  %12876 = vtanh.f32 %v5995_v45  ;;  %v12384_v45 = vld [vmem:[%s17864_s7 + $0x3cc] ss:$24 sps:$4 sm:$0xff]  }
 0x5aa   : > { %v5998_v33 = vpop.f32.mrf.mxu1  ;;  %v12863_v6 = vpop.eup %12862  ;;  %v12387_v56 = vld [vmem:[%s17864_s7 + $0x3d4] ss:$24 sps:$4 sm:$0xff]  }
 0x5ab   : > { %v5999_v15 = vadd.f32 %v5998_v33, %v16426_v21  ;;  %8207 = vmatpush2.bf16.msra.mxu1 %v12355_v13  ;;  %12878 = vtanh.f32 %v5997_v7  ;;  %v12382_v7 = vld [vmem:[%s17864_s7 + $0x3c8] ss:$24 sps:$4 sm:$0xff]   ;;  %v12390_v33 = vld [vmem:[%s17864_s7 + $0x39c] ss:$24 sps:$4 sm:$0xff]  }
 0x5ac   : > { %v12865_v37 = vpop.eup %12864  ;;  %v6000_v25 = vpop.f32.mrf.mxu1  ;;  %8208 = vmatprep.subr.bf16.mxu1 %v12363_v41 }
 0x5ad   : > { %v12867_v23 = vpop.eup %12866  ;;  %12880 = vtanh.f32 %v5999_v15  ;;  %v6001_v59 = vadd.f32 %v6000_v25, %v16419_v35  ;;  %v16470_v55 = vpack.c.bf16 %v12865_v37, %v12861_v44  ;;  %v12388_v25 = vld [vmem:[%s17864_s7 + $0x398] ss:$24 sps:$4 sm:$0xff]  }
 0x5ae   : > { %v16478_v52 = vpack.c.bf16 %v12863_v6, %v12867_v23  ;;  %v6004_v62 = vpop.f32.mrf.mxu1  ;;  %v12869_v46 = vpop.eup %12868  ;;  %v12385_v6 = vld [vmem:[%s17864_s7 + $0x3d0] ss:$24 sps:$4 sm:$0xff]   ;;  %v12393_v23 = vld [vmem:[%s17864_s7 + $0x3a4] ss:$24 sps:$4 sm:$0xff]  }
 0x5af   : > { %12882 = vtanh.f32 %v6001_v59  ;;  %v6005_v39 = vadd.f32 %v6004_v62, %v16426_v21  ;;  %8209 = vmatpush2.bf16.msra.mxu1 %v12361_v28  ;;  %7991 = vmatprep.mubr.bf16.mxu0 %v16470_v55  ;;  %v12396_v59 = vld [vmem:[%s17864_s7 + $0x36c] ss:$24 sps:$4 sm:$0xff]  }
 0x5b0   : > { %8210 = vmatprep.mubr.bf16.mxu1 %v16470_v55  ;;  %v6006_v11 = vpop.f32.mrf.mxu1  ;;  %7992 = vmatmul.mubr.bf16.vlgmr.msra.gmra.mxu0 %v16478_v52  ;;  %v12871_v58 = vpop.eup %12870  ;;  %v12399_v62 = vld [vmem:[%s17864_s7 + $0x374] ss:$24 sps:$4 sm:$0xff]  }
 0x5b1   : > { %v6007_v61 = vadd.f32 %v6006_v11, %v16419_v35  ;;  %8106 = vmatpush1.bf16.msra.mxu0 %v12364_v1  ;;  %8324 = vmatprep.subr.bf16.mxu1 %v12369_v60  ;;  %12884 = vtanh.f32 %v6005_v39  ;;  %v12391_v1 = vld [vmem:[%s17864_s7 + $0x3a0] ss:$24 sps:$4 sm:$0xff]   ;;  %v12397_v11 = vld [vmem:[%s17864_s7 + $0x370] ss:$24 sps:$4 sm:$0xff]  }
 0x5b2   : > { %v12873_v8 = vpop.eup %12872  ;;  %8211 = vmatmul.mubr.bf16.vlgmr.msra.gmra.mxu1 %v16478_v52  ;;  %v6008_v27 = vpop.f32.mrf.mxu1  ;;  %8107 = vmatprep.subr.bf16.mxu0 %v12372_v38  ;;  %v12394_v39 = vld [vmem:[%s17864_s7 + $0x368] ss:$24 sps:$4 sm:$0xff]  }
 0x5b3   : > { %v6009_v31 = vadd.f32 %v6008_v27, %v16426_v21  ;;  %8325 = vmatpush1.bf16.msra.mxu1 %v12367_v3  ;;  %12886 = vtanh.f32 %v6007_v61  ;;  %v16505_v49 = vpack.c.bf16 %v12873_v8, %v12869_v46  ;;  %v12376_v21 = vld [vmem:[%s17864_s7 + $0x3f8] ss:$24 sps:$4 sm:$0xff]   ;;  %v12402_v46 = vld [vmem:[%s17864_s7 + $0x33c] ss:$24 sps:$4 sm:$0xff]  }
 0x5b4   : > { %v12875_v4 = vpop.eup %12874  ;;  %v6010_v9 = vpop.f32.mrf.mxu1  ;;  %8326 = vmatprep.subr.bf16.mxu1 %v12375_v24  ;;  %v12405_v8 = vld [vmem:[%s17864_s7 + $0x344] ss:$24 sps:$4 sm:$0xff]   ;;  %v12403_v27 = vld [vmem:[%s17864_s7 + $0x340] ss:$24 sps:$4 sm:$0xff]  }
 0x5b5   : > { %12888 = vtanh.f32 %v6009_v31  ;;  %v6011_v17 = vadd.f32 %v6010_v9, %v16419_v35  ;;  %8108 = vmatpush1.bf16.msra.mxu0 %v12370_v48  ;;  %v16508_v26 = vpack.c.bf16 %v12875_v4, %v12871_v58  ;;  %v12379_v35 = vld [vmem:[%s17864_s7 + $0x400] ss:$24 sps:$4 sm:$0xff]   ;;  %v12411_v31 = vld [vmem:[%s17864_s7 + $0x314] ss:$24 sps:$4 sm:$0xff]   ;;  %v12409_v9 = vld [vmem:[%s17864_s7 + $0x310] ss:$24 sps:$4 sm:$0xff]  }
 0x5b6   : > { %8109 = vmatprep.subr.bf16.mxu0 %v12378_v30  ;;  %v12877_v13 = vpop.eup %12876  ;;  %v12400_v48 = vld [vmem:[%s17864_s7 + $0x338] ss:$24 sps:$4 sm:$0xff]   ;;  %v12408_v30 = vld [vmem:[%s17864_s7 + $0x30c] ss:$24 sps:$4 sm:$0xff]   ;;  %v12414_v4 = vld [vmem:[%s17864_s7 + $0x5dc] ss:$24 sps:$4 sm:$0xff]  }
 0x5b7   : > { %12890 = vtanh.f32 %v6011_v17  ;;  %8327 = vmatpush1.bf16.msra.mxu1 %v12373_v10  ;;  %8001 = vmatprep.mubr.bf16.mxu0 %v16508_v26  ;;  %v12406_v10 = vld [vmem:[%s17864_s7 + $0x308] ss:$24 sps:$4 sm:$0xff]   ;;  %v12417_v17 = vld [vmem:[%s17864_s7 + $0x5e4] ss:$24 sps:$4 sm:$0xff]  }
 0x5b8   : > { %8002 = vmatmul.mubr.bf16.gmra.mxu0 %v16505_v49  ;;  %8220 = vmatprep.mubr.bf16.mxu1 %v16508_v26  ;;  %v12879_v41 = vpop.eup %12878 }
 0x5b9   : > { %8110 = vmatpush1.bf16.msra.mxu0 %v12376_v21  ;;  %8328 = vmatprep.subr.bf16.mxu1 %v12381_v36  ;;  %v12412_v21 = vld [vmem:[%s17864_s7 + $0x5d8] ss:$24 sps:$4 sm:$0xff]  }
 0x5ba   : > { %v12881_v44 = vpop.eup %12880  ;;  %8221 = vmatmul.mubr.bf16.gmra.mxu1 %v16505_v49  ;;  %8111 = vmatprep.subr.bf16.mxu0 %v12384_v45  ;;  %v12415_v36 = vld [vmem:[%s17864_s7 + $0x5e0] ss:$24 sps:$4 sm:$0xff]   ;;  %v12423_v45 = vld [vmem:[%s17864_s7 + $0x5b4] ss:$24 sps:$4 sm:$0xff]  }
 0x5bb   : > { %8329 = vmatpush1.bf16.msra.mxu1 %v12379_v35  ;;  %v16538_v28 = vpack.c.bf16 %v12881_v44, %v12877_v13  ;;  %v12418_v35 = vld [vmem:[%s17864_s7 + $0x5a8] ss:$24 sps:$4 sm:$0xff]   ;;  %v12426_v13 = vld [vmem:[%s17864_s7 + $0x57c] ss:$24 sps:$4 sm:$0xff]   ;;  %v12432_v44 = vld [vmem:[%s17864_s7 + $0x54c] ss:$24 sps:$4 sm:$0xff]  }
 0x5bc   : > { %v12883_v15 = vpop.eup %12882  ;;  %8330 = vmatprep.subr.bf16.mxu1 %v12387_v56  ;;  %v12421_v56 = vld [vmem:[%s17864_s7 + $0x5b0] ss:$24 sps:$4 sm:$0xff]  }
 0x5bd   : > { %8112 = vmatpush1.bf16.msra.mxu0 %v12382_v7  ;;  %v16540_v37 = vpack.c.bf16 %v12883_v15, %v12879_v41  ;;  %v12429_v41 = vld [vmem:[%s17864_s7 + $0x584] ss:$24 sps:$4 sm:$0xff]   ;;  %v12424_v7 = vld [vmem:[%s17864_s7 + $0x578] ss:$24 sps:$4 sm:$0xff]   ;;  %v12430_v15 = vld [vmem:[%s17864_s7 + $0x548] ss:$24 sps:$4 sm:$0xff]  }
 0x5be   : > { %8113 = vmatprep.subr.bf16.mxu0 %v12390_v33  ;;  %v12885_v60 = vpop.eup %12884  ;;  %v12427_v33 = vld [vmem:[%s17864_s7 + $0x580] ss:$24 sps:$4 sm:$0xff]  }
 0x5bf   : > { %8331 = vmatpush1.bf16.msra.mxu1 %v12385_v6  ;;  %8011 = vmatprep.mubr.bf16.mxu0 %v16540_v37  ;;  %v12435_v6 = vld [vmem:[%s17864_s7 + $0x554] ss:$24 sps:$4 sm:$0xff]  }
 0x5c0   : > { %8012 = vmatmul.mubr.bf16.gmra.mxu0 %v16538_v28  ;;  %8230 = vmatprep.mubr.bf16.mxu1 %v16540_v37  ;;  %v12887_v38 = vpop.eup %12886 }
 0x5c1   : > { %8114 = vmatpush1.bf16.msra.mxu0 %v12388_v25  ;;  %8332 = vmatprep.subr.bf16.mxu1 %v12393_v23  ;;  %v12438_v25 = vld [vmem:[%s17864_s7 + $0x51c] ss:$24 sps:$4 sm:$0xff]   ;;  %v12433_v23 = vld [vmem:[%s17864_s7 + $0x550] ss:$24 sps:$4 sm:$0xff]  }
 0x5c2   : > { %v12889_v3 = vpop.eup %12888  ;;  %8231 = vmatmul.mubr.bf16.gmra.mxu1 %v16538_v28  ;;  %8115 = vmatprep.subr.bf16.mxu0 %v12396_v59  ;;  %v12441_v59 = vld [vmem:[%s17864_s7 + $0x524] ss:$24 sps:$4 sm:$0xff]  }
 0x5c3   : > { %8333 = vmatpush1.bf16.msra.mxu1 %v12391_v1  ;;  %v16570_v58 = vpack.c.bf16 %v12889_v3, %v12885_v60  ;;  %v12436_v1 = vld [vmem:[%s17864_s7 + $0x518] ss:$24 sps:$4 sm:$0xff]   ;;  %v12444_v60 = vld [vmem:[%s17864_s7 + $0x4ec] ss:$24 sps:$4 sm:$0xff]   ;;  %v12450_v3 = vld [vmem:[%s17864_s7 + $0x4bc] ss:$24 sps:$4 sm:$0xff]  }
 0x5c4   : > { %v12891_v24 = vpop.eup %12890  ;;  %8334 = vmatprep.subr.bf16.mxu1 %v12399_v62  ;;  %v12439_v62 = vld [vmem:[%s17864_s7 + $0x520] ss:$24 sps:$4 sm:$0xff]  }
 0x5c5   : > { %8116 = vmatpush1.bf16.msra.mxu0 %v12394_v39  ;;  %v16572_v61 = vpack.c.bf16 %v12891_v24, %v12887_v38  ;;  %v12447_v38 = vld [vmem:[%s17864_s7 + $0x4f4] ss:$24 sps:$4 sm:$0xff]   ;;  %v12442_v39 = vld [vmem:[%s17864_s7 + $0x4e8] ss:$24 sps:$4 sm:$0xff]   ;;  %v12448_v24 = vld [vmem:[%s17864_s7 + $0x4b8] ss:$24 sps:$4 sm:$0xff]  }
 0x5c6   : > { %8117 = vmatprep.subr.bf16.mxu0 %v12402_v46  ;;  %v12445_v46 = vld [vmem:[%s17864_s7 + $0x4f0] ss:$24 sps:$4 sm:$0xff]  }
 0x5c7   : > { %8335 = vmatpush1.bf16.msra.mxu1 %v12397_v11  ;;  %8021 = vmatprep.mubr.bf16.mxu0 %v16572_v61  ;;  %v12453_v11 = vld [vmem:[%s17864_s7 + $0x4c4] ss:$24 sps:$4 sm:$0xff]  }
 0x5c8   : > { %8022 = vmatmul.mubr.bf16.gmra.mxu0 %v16570_v58  ;;  %8240 = vmatprep.mubr.bf16.mxu1 %v16572_v61 }
 0x5c9   : > { %8118 = vmatpush1.bf16.msra.mxu0 %v12400_v48  ;;  %8137 = vmatprep.mubr.bf16.mxu0 %v16226_v29  ;;  %v12456_v48 = vld [vmem:[%s17864_s7 + $0x48c] ss:$24 sps:$4 sm:$0xff]  }
 0x5ca   : > { %8241 = vmatmul.mubr.bf16.gmra.mxu1 %v16570_v58  ;;  %8336 = vmatprep.subr.bf16.mxu1 %v12405_v8  ;;  %v12451_v8 = vld [vmem:[%s17864_s7 + $0x4c0] ss:$24 sps:$4 sm:$0xff]  }
 0x5cb   : > { %8337 = vmatpush1.bf16.msra.mxu1 %v12403_v27  ;;  %8356 = vmatprep.mubr.bf16.mxu1 %v16226_v29  ;;  %v12420_v29 = vld [vmem:[%s17864_s7 + $0x5ac] ss:$24 sps:$4 sm:$0xff]  }
 0x5cc   : > { %8119 = vmatprep.subr.bf16.mxu0 %v12408_v30  ;;  %8338 = vmatprep.subr.bf16.mxu1 %v12411_v31  ;;  %v12459_v27 = vld [vmem:[%s17864_s7 + $0x494] ss:$24 sps:$4 sm:$0xff]   ;;  %v12454_v30 = vld [vmem:[%s17864_s7 + $0x488] ss:$24 sps:$4 sm:$0xff]   ;;  %v12462_v31 = vld [vmem:[%s17864_s7 + $0x164] ss:$24 sps:$4 sm:$0xff]  }
 0x5cd   : > { %8120 = vmatpush1.bf16.msra.mxu0 %v12406_v10  ;;  %v12457_v10 = vld [vmem:[%s17864_s7 + $0x490] ss:$24 sps:$4 sm:$0xff]  }
 0x5ce   : > { %8121 = vmatprep.subr.bf16.mxu0 %v12414_v4  ;;  %v12460_v4 = vld [vmem:[%s17864_s7 + $0x160] ss:$24 sps:$4 sm:$0xff]  }
 0x5cf   : > { %8339 = vmatpush1.bf16.msra.mxu1 %v12409_v9  ;;  %v12465_v9 = vld [vmem:[%s17864_s7 + $0x134] ss:$24 sps:$4 sm:$0xff]  }
 0x5d0   : > { %8340 = vmatprep.subr.bf16.mxu1 %v12417_v17  ;;  %v12463_v17 = vld [vmem:[%s17864_s7 + $0x130] ss:$24 sps:$4 sm:$0xff]  }
 0x5d1   : > { %8122 = vmatpush2.bf16.msra.mxu0 %v12412_v21  ;;  %v12468_v21 = vld [vmem:[%s17864_s7 + $0x104] ss:$24 sps:$4 sm:$0xff]  }
 0x5d2   : > { %8123 = vmatprep.subr.bf16.mxu0 %v12420_v29  ;;  %v12466_v29 = vld [vmem:[%s17864_s7 + $0x100] ss:$24 sps:$4 sm:$0xff]  }
 0x5d3   : > { %8341 = vmatpush2.bf16.msra.mxu1 %v12415_v36  ;;  %v12471_v36 = vld [vmem:[%s17864_s7 + $0xd4] ss:$24 sps:$4 sm:$0xff]  }
 0x5d4   : > { %8342 = vmatprep.subr.bf16.mxu1 %v12423_v45  ;;  %v12472_v45 = vld [vmem:[%s17864_s7 + $0xa0] ss:$24 sps:$4 sm:$0xff]  }
 0x5d5   : > { %8124 = vmatpush2.bf16.msra.mxu0 %v12418_v35  ;;  %v12477_v35 = vld [vmem:[%s17864_s7 + $0x74] ss:$24 sps:$4 sm:$0xff]  }
 0x5d6   : > { %8125 = vmatprep.subr.bf16.mxu0 %v12426_v13  ;;  %v12478_v13 = vld [vmem:[%s17864_s7 + $0x40] ss:$24 sps:$4 sm:$0xff]  }
 0x5d7   : > { %8343 = vmatpush2.bf16.msra.mxu1 %v12421_v56  ;;  %v12483_v56 = vld [vmem:[%s17864_s7 + $0x14] ss:$24 sps:$4 sm:$0xff]  }
 0x5d8   : > { %8344 = vmatprep.subr.bf16.mxu1 %v12429_v41  ;;  %v12484_v41 = vld [vmem:[%s17864_s7 + $0x2e0] ss:$24 sps:$4 sm:$0xff]  }
 0x5d9   : > { %8126 = vmatpush2.bf16.msra.mxu0 %v12424_v7  ;;  %v12492_v7 = vld [vmem:[%s17864_s7 + $0x284] ss:$24 sps:$4 sm:$0xff]  }
 0x5da   : > { %8127 = vmatprep.subr.bf16.mxu0 %v12432_v44  ;;  %v12490_v44 = vld [vmem:[%s17864_s7 + $0x280] ss:$24 sps:$4 sm:$0xff]  }
 0x5db   : > { %8345 = vmatpush2.bf16.msra.mxu1 %v12427_v33  ;;  %v12495_v33 = vld [vmem:[%s17864_s7 + $0x254] ss:$24 sps:$4 sm:$0xff]  }
 0x5dc   : > { %8346 = vmatprep.subr.bf16.mxu1 %v12435_v6  ;;  %v12493_v6 = vld [vmem:[%s17864_s7 + $0x250] ss:$24 sps:$4 sm:$0xff]  }
 0x5dd   : > { %8128 = vmatpush2.bf16.msra.mxu0 %v12430_v15 }
 0x5de   : > { %8129 = vmatprep.subr.bf16.mxu0 %v12438_v25  ;;  %v12498_v25 = vld [vmem:[%s17864_s7 + $0x224] ss:$24 sps:$4 sm:$0xff]  }
 0x5df   : > { %8347 = vmatpush2.bf16.msra.mxu1 %v12433_v23  ;;  %v12496_v23 = vld [vmem:[%s17864_s7 + $0x220] ss:$24 sps:$4 sm:$0xff]  }
 0x5e0   : > { %8348 = vmatprep.subr.bf16.mxu1 %v12441_v59 }
 0x5e1   : > { %8130 = vmatpush2.bf16.msra.mxu0 %v12436_v1  ;;  %v12501_v1 = vld [vmem:[%s17864_s7 + $0x1f4] ss:$24 sps:$4 sm:$0xff]  }
 0x5e2   : > { %8131 = vmatprep.subr.bf16.mxu0 %v12444_v60  ;;  %v12499_v60 = vld [vmem:[%s17864_s7 + $0x1f0] ss:$24 sps:$4 sm:$0xff]  }
 0x5e3   : > { %8349 = vmatpush2.bf16.msra.mxu1 %v12439_v62 }
 0x5e4   : > { %8350 = vmatprep.subr.bf16.mxu1 %v12447_v38  ;;  %v12504_v38 = vld [vmem:[%s17864_s7 + $0x1c4] ss:$24 sps:$4 sm:$0xff]  }
 0x5e5   : > { %8132 = vmatpush2.bf16.msra.mxu0 %v12442_v39  ;;  %v12502_v39 = vld [vmem:[%s17864_s7 + $0x1c0] ss:$24 sps:$4 sm:$0xff]  }
 0x5e6   : > { %8133 = vmatprep.subr.bf16.mxu0 %v12450_v3 }
 0x5e7   : > { %8351 = vmatpush2.bf16.msra.mxu1 %v12445_v46  ;;  %v12507_v46 = vld [vmem:[%s17864_s7 + $0x194] ss:$24 sps:$4 sm:$0xff]  }
 0x5e8   : > { %8352 = vmatprep.subr.bf16.mxu1 %v12453_v11  ;;  %v12505_v11 = vld [vmem:[%s17864_s7 + $0x190] ss:$24 sps:$4 sm:$0xff]  }
 0x5e9   : > { %8134 = vmatpush2.bf16.msra.mxu0 %v12448_v24 }
 0x5ea   : > { %8135 = vmatprep.subr.bf16.mxu0 %v12456_v48  ;;  %v12510_v48 = vld [vmem:[%s17864_s7 + $0x764] ss:$24 sps:$4 sm:$0xff]  }
 0x5eb   : > { %8353 = vmatpush2.bf16.msra.mxu1 %v12451_v8  ;;  %v12508_v8 = vld [vmem:[%s17864_s7 + $0x760] ss:$24 sps:$4 sm:$0xff]  }
 0x5ec   : > { %8354 = vmatprep.subr.bf16.mxu1 %v12459_v27 }
 0x5ed   : > { %8136 = vmatpush2.bf16.msra.mxu0 %v12454_v30  ;;  %v12513_v30 = vld [vmem:[%s17864_s7 + $0x734] ss:$24 sps:$4 sm:$0xff]  }
 0x5ee   : > { %8251 = vmatprep.subr.bf16.mxu0 %v12462_v31  ;;  %v12511_v31 = vld [vmem:[%s17864_s7 + $0x730] ss:$24 sps:$4 sm:$0xff]  }
 0x5ef   : > { %8355 = vmatpush2.bf16.msra.mxu1 %v12457_v10 }
 0x5f0   : > { %8138 = vmatmul.mubr.bf16.vlgmr.msra.gmra.mxu0 %v16221_v12 }
 0x5f1   : > { %8147 = vmatprep.mubr.bf16.mxu0 %v16252_v22  ;;  %8252 = vmatpush1.bf16.msra.mxu0 %v12460_v4  ;;  %v12516_v4 = vld [vmem:[%s17864_s7 + $0x704] ss:$24 sps:$4 sm:$0xff]  }
 0x5f2   : > { %8357 = vmatmul.mubr.bf16.vlgmr.msra.gmra.mxu1 %v16221_v12  ;;  %8253 = vmatprep.subr.bf16.mxu0 %v12465_v9  ;;  %v12469_v12 = vld [vmem:[%s17864_s7 + $0xd0] ss:$24 sps:$4 sm:$0xff]   ;;  %v16785_v15 = vpop.f32.mrf.mxu1  ;;  %v16840_v9 = vpop.f32.mrf.mxu0 }
 0x5f3   : > { %8366 = vmatprep.mubr.bf16.mxu1 %v16252_v22  ;;  %v12474_v22 = vld [vmem:[%s17864_s7 + $0xa4] ss:$24 sps:$4 sm:$0xff]  }
 0x5f4   : > { %v16793_v59 = vpop.f32.mrf.mxu1 }
 0x5f5   : > { %8254 = vmatpush1.bf16.msra.mxu0 %v12463_v17  ;;  %v12519_v17 = vld [vmem:[%s17864_s7 + $0x6d4] ss:$24 sps:$4 sm:$0xff]  }
 0x5f6   : > { %8255 = vmatprep.subr.bf16.mxu0 %v12468_v21  ;;  %v16801_v62 = vpop.f32.mrf.mxu1  ;;  %v16850_v21 = vpop.f32.mrf.mxu0 }
 0x5f8   : > { %8148 = vmatmul.mubr.bf16.gmra.mxu0 %v16246_v54  ;;  %v16809_v3 = vpop.f32.mrf.mxu1 }
 0x5f9   : > { %8157 = vmatprep.mubr.bf16.mxu0 %v16270_v34  ;;  %8256 = vmatpush1.bf16.msra.mxu0 %v12466_v29  ;;  %v12517_v29 = vld [vmem:[%s17864_s7 + $0x6d0] ss:$24 sps:$4 sm:$0xff]  }
 0x5fa   : > { %8367 = vmatmul.mubr.bf16.gmra.mxu1 %v16246_v54  ;;  %8257 = vmatprep.subr.bf16.mxu0 %v12471_v36  ;;  %v12475_v54 = vld [vmem:[%s17864_s7 + $0x70] ss:$24 sps:$4 sm:$0xff]   ;;  %v16817_v24 = vpop.f32.mrf.mxu1 }
 0x5fb   : > { %8376 = vmatprep.mubr.bf16.mxu1 %v16270_v34  ;;  %v12480_v34 = vld [vmem:[%s17864_s7 + $0x44] ss:$24 sps:$4 sm:$0xff]  }
 0x5fc   : > { %v16825_v27 = vpop.f32.mrf.mxu1 }
 0x5fd   : > { %8258 = vmatpush1.bf16.msra.mxu0 %v12469_v12  ;;  %v12522_v12 = vld [vmem:[%s17864_s7 + $0x6a4] ss:$24 sps:$4 sm:$0xff]  }
 0x5fe   : > { %8259 = vmatprep.subr.bf16.mxu0 %v12474_v22  ;;  %v16835_v10 = vpop.f32.mrf.mxu1  ;;  %v16862_v22 = vpop.f32.mrf.mxu0 }
 0x600   : > { %8158 = vmatmul.mubr.bf16.gmra.mxu0 %v16265_v14 }
 0x601   : > { %8167 = vmatprep.mubr.bf16.mxu0 %v16288_v57  ;;  %8260 = vmatpush1.bf16.msra.mxu0 %v12472_v45  ;;  %v12525_v45 = vld [vmem:[%s17864_s7 + $0x674] ss:$24 sps:$4 sm:$0xff]  }
 0x602   : > { %8377 = vmatmul.mubr.bf16.gmra.mxu1 %v16265_v14  ;;  %8261 = vmatprep.subr.bf16.mxu0 %v12477_v35  ;;  %v12481_v14 = vld [vmem:[%s17864_s7 + $0x10] ss:$24 sps:$4 sm:$0xff]   ;;  %v16872_v35 = vpop.f32.mrf.mxu0 }
 0x603   : > { %8386 = vmatprep.mubr.bf16.mxu1 %v16288_v57  ;;  %v12486_v57 = vld [vmem:[%s17864_s7 + $0x2e4] ss:$24 sps:$4 sm:$0xff]  }
 0x605   : > { %8262 = vmatpush1.bf16.msra.mxu0 %v12475_v54  ;;  %v12523_v54 = vld [vmem:[%s17864_s7 + $0x670] ss:$24 sps:$4 sm:$0xff]  }
 0x606   : > { %8263 = vmatprep.subr.bf16.mxu0 %v12480_v34 }
 0x608   : > { %8168 = vmatmul.mubr.bf16.gmra.mxu0 %v16283_v47 }
 0x609   : > { %8264 = vmatpush1.bf16.msra.mxu0 %v12478_v13  ;;  %8283 = vmatprep.mubr.bf16.mxu0 %v16016_v18  ;;  %v12489_v18 = vld [vmem:[%s17864_s7 + $0x2b4] ss:$24 sps:$4 sm:$0xff]   ;;  %v12528_v13 = vld [vmem:[%s17864_s7 + $0x644] ss:$24 sps:$4 sm:$0xff]  }
 0x60a   : > { %8387 = vmatmul.mubr.bf16.gmra.mxu1 %v16283_v47  ;;  %8265 = vmatprep.subr.bf16.mxu0 %v12483_v56  ;;  %v12487_v47 = vld [vmem:[%s17864_s7 + $0x2b0] ss:$24 sps:$4 sm:$0xff]   ;;  %v16884_v56 = vpop.f32.mrf.mxu0 }
 0x60b   : > { %8558 = vmatprep.mubr.bf16.mxu1 %v17902_v5 }
 0x60d   : > { %8266 = vmatpush1.bf16.msra.mxu0 %v12481_v14  ;;  %v16891_v14 = vpop.f32.mrf.mxu0 }
 0x60e   : > { %8267 = vmatprep.subr.bf16.mxu0 %v12486_v57  ;;  %v12531_v57 = vld [vmem:[%s17864_s7 + $0x614] ss:$24 sps:$4 sm:$0xff]  }
 0x611   : > { %8268 = vmatpush2.bf16.msra.mxu0 %v12484_v41  ;;  %v12529_v41 = vld [vmem:[%s17864_s7 + $0x610] ss:$24 sps:$4 sm:$0xff]  }
 0x612   : > { %8269 = vmatprep.subr.bf16.mxu0 %v12489_v18 }
 0x615   : > { %8270 = vmatpush2.bf16.msra.mxu0 %v12487_v47  ;;  %v16903_v47 = vpop.f32.mrf.mxu0 }
 0x616   : > { %8271 = vmatprep.subr.bf16.mxu0 %v12492_v7  ;;  %v12534_v7 = vld [vmem:[%s17864_s7 + $0x8e4] ss:$24 sps:$4 sm:$0xff]  }
 0x619   : > { %8272 = vmatpush2.bf16.msra.mxu0 %v12490_v44 }
 0x61a   : > { %8273 = vmatprep.subr.bf16.mxu0 %v12495_v33  ;;  %v12537_v33 = vld [vmem:[%s17864_s7 + $0x8b4] ss:$24 sps:$4 sm:$0xff]  }
 0x61d   : > { %8274 = vmatpush2.bf16.msra.mxu0 %v12493_v6  ;;  %v12535_v6 = vld [vmem:[%s17864_s7 + $0x8b0] ss:$24 sps:$4 sm:$0xff]  }
 0x61e   : > { %8275 = vmatprep.subr.bf16.mxu0 %v12498_v25 }
 0x621   : > { %8276 = vmatpush2.bf16.msra.mxu0 %v12496_v23 }
 0x622   : > { %8277 = vmatprep.subr.bf16.mxu0 %v12501_v1  ;;  %v12540_v1 = vld [vmem:[%s17864_s7 + $0x884] ss:$24 sps:$4 sm:$0xff]  }
 0x625   : > { %8278 = vmatpush2.bf16.msra.mxu0 %v12499_v60  ;;  %v12538_v60 = vld [vmem:[%s17864_s7 + $0x880] ss:$24 sps:$4 sm:$0xff]  }
 0x626   : > { %8279 = vmatprep.subr.bf16.mxu0 %v12504_v38 }
 0x629   : > { %8280 = vmatpush2.bf16.msra.mxu0 %v12502_v39 }
 0x62a   : > { %8281 = vmatprep.subr.bf16.mxu0 %v12507_v46  ;;  %v12543_v46 = vld [vmem:[%s17864_s7 + $0x854] ss:$24 sps:$4 sm:$0xff]  }
 0x62d   : > { %8282 = vmatpush2.bf16.msra.mxu0 %v12505_v11  ;;  %v12541_v11 = vld [vmem:[%s17864_s7 + $0x850] ss:$24 sps:$4 sm:$0xff]  }
 0x62e   : > { %8397 = vmatprep.subr.bf16.mxu0 %v12510_v48 }
 0x630   : > { %8284 = vmatmul.mubr.bf16.vlgmr.msra.gmra.mxu0 %v16011_v20  ;;  %v12514_v20 = vld [vmem:[%s17864_s7 + $0x700] ss:$24 sps:$4 sm:$0xff]  }
 0x631   : > { %8293 = vmatprep.mubr.bf16.mxu0 %v16115_v53  ;;  %8398 = vmatpush1.bf16.msra.mxu0 %v12508_v8  ;;  %v16845_v53 = vpop.f32.mrf.mxu1 }
 0x632   : > { %8399 = vmatprep.subr.bf16.mxu0 %v12513_v30  ;;  %v12546_v30 = vld [vmem:[%s17864_s7 + $0x824] ss:$24 sps:$4 sm:$0xff]  }
 0x633   : > { %v16857_v36 = vpop.f32.mrf.mxu1 }
 0x635   : > { %8400 = vmatpush1.bf16.msra.mxu0 %v12511_v31  ;;  %v12544_v31 = vld [vmem:[%s17864_s7 + $0x820] ss:$24 sps:$4 sm:$0xff]  }
 0x636   : > { %8401 = vmatprep.subr.bf16.mxu0 %v12516_v4 }
 0x638   : > { %8294 = vmatmul.mubr.bf16.gmra.mxu0 %v16117_v40  ;;  %v12520_v40 = vld [vmem:[%s17864_s7 + $0x6a0] ss:$24 sps:$4 sm:$0xff]  }
 0x639   : > { %8303 = vmatprep.mubr.bf16.mxu0 %v16145_v63  ;;  %8402 = vmatpush1.bf16.msra.mxu0 %v12514_v20  ;;  %v16867_v63 = vpop.f32.mrf.mxu1 }
 0x63a   : > { %8403 = vmatprep.subr.bf16.mxu0 %v12519_v17  ;;  %v12549_v17 = vld [vmem:[%s17864_s7 + $0x7f4] ss:$24 sps:$4 sm:$0xff]  }
 0x63b   : > { %v16879_v34 = vpop.f32.mrf.mxu1 }
 0x63d   : > { %8404 = vmatpush1.bf16.msra.mxu0 %v12517_v29  ;;  %v12547_v29 = vld [vmem:[%s17864_s7 + $0x7f0] ss:$24 sps:$4 sm:$0xff]  }
 0x63e   : > { %8405 = vmatprep.subr.bf16.mxu0 %v12522_v12 }
 0x640   : > { %8304 = vmatmul.mubr.bf16.gmra.mxu0 %v16147_v19  ;;  %v12526_v19 = vld [vmem:[%s17864_s7 + $0x640] ss:$24 sps:$4 sm:$0xff]  }
 0x641   : > { %8313 = vmatprep.mubr.bf16.mxu0 %v16174_v0  ;;  %8406 = vmatpush1.bf16.msra.mxu0 %v12520_v40  ;;  %v16889_v0 = vpop.f32.mrf.mxu1 }
 0x642   : > { %8407 = vmatprep.subr.bf16.mxu0 %v12525_v45  ;;  %v12552_v45 = vld [vmem:[%s17864_s7 + $0x7c4] ss:$24 sps:$4 sm:$0xff]  }
 0x643   : > { %v16901_v18 = vpop.f32.mrf.mxu1 }
 0x645   : > { %8408 = vmatpush1.bf16.msra.mxu0 %v12523_v54  ;;  %v16911_v44 = vpop.f32.mrf.mxu1  ;;  %v12550_v54 = vld [vmem:[%s17864_s7 + $0x7c0] ss:$24 sps:$4 sm:$0xff]  }
 0x646   : > { %8409 = vmatprep.subr.bf16.mxu0 %v12528_v13 }
 0x647   : > { %v16921_v25 = vpop.f32.mrf.mxu1 }
 0x648   : > { %8314 = vmatmul.mubr.bf16.gmra.mxu0 %v16176_v32  ;;  %v12532_v32 = vld [vmem:[%s17864_s7 + $0x8e0] ss:$24 sps:$4 sm:$0xff]  }
 0x649   : > { %8410 = vmatpush1.bf16.msra.mxu0 %v12526_v19  ;;  %8429 = vmatprep.mubr.bf16.mxu0 %v16470_v55  ;;  %v16913_v55 = vpop.f32.mrf.mxu0  ;;  %v16931_v38 = vpop.f32.mrf.mxu1 }
 0x64a   : > { %8411 = vmatprep.subr.bf16.mxu0 %v12531_v57  ;;  %v12555_v57 = vld [vmem:[%s17864_s7 + $0x794] ss:$24 sps:$4 sm:$0xff]  }
 0x64b   : > { %v16923_v23 = vpop.f32.mrf.mxu0  ;;  %v16941_v48 = vpop.f32.mrf.mxu1 }
 0x64c   : > { %17913 = vst [vmem:[#allocation17_spill] sm:$0xff] %v16941_v48 }
 0x64d   : > { %8412 = vmatpush1.bf16.msra.mxu0 %v12529_v41  ;;  %v16933_v39 = vpop.f32.mrf.mxu0  ;;  %v16951_v4 = vpop.f32.mrf.mxu1 }
 0x64e   : > { %8413 = vmatprep.subr.bf16.mxu0 %v12534_v7  ;;  %17914 = vst [vmem:[#allocation15_spill] sm:$0xff] %v16951_v4  ;;  %v12553_v7 = vld [vmem:[%s17864_s7 + $0x790] ss:$24 sps:$4 sm:$0xff]  }
 0x64f   : > { %v16943_v8 = vpop.f32.mrf.mxu0  ;;  %v16959_v12 = vpop.f32.mrf.mxu1 }
 0x650   : > { %17915 = vst [vmem:[#allocation16_spill] sm:$0xff] %v16959_v12 }
 0x651   : > { %8414 = vmatpush2.bf16.msra.mxu0 %v12532_v32  ;;  %v7873_v20 = vpop.f32.mrf.mxu0  ;;  %v16967_v13 = vpop.f32.mrf.mxu1 }
 0x652   : > { %8415 = vmatprep.subr.bf16.mxu0 %v12537_v33  ;;  %17916 = vst [vmem:[#allocation14_spill] sm:$0xff] %v16967_v13 }
 0x653   : > { %v7877_v40 = vpop.f32.mrf.mxu0  ;;  %v16972_v41 = vpop.f32.mrf.mxu1 }
 0x654   : > { %17917 = vst [vmem:[#allocation18_spill] sm:$0xff] %v16972_v41  ;;  %v7951_v41 = vadd.f32 %v16901_v18, %v7877_v40  ;;  %v7941_v18 = vadd.f32 %v16857_v36, %v16923_v23  ;;  %v7925_v23 = vadd.f32 %v16801_v62, %v16862_v22 }
 0x655   : > { %8416 = vmatpush2.bf16.msra.mxu0 %v12535_v6  ;;  %v7879_v19 = vpop.f32.mrf.mxu0  ;;  %v16977_v33 = vpop.f32.mrf.mxu1 }
 0x656   : > { %8417 = vmatprep.subr.bf16.mxu0 %v12540_v1  ;;  %17918 = vst [vmem:[#allocation19_spill] sm:$0xff] %v16977_v33  ;;  %v7953_v12 = vadd.f32 %v16911_v44, %v7879_v19  ;;  %v7937_v44 = vadd.f32 %v16845_v53, %v16913_v55  ;;  %v7923_v55 = vadd.f32 %v16793_v59, %v16850_v21 }
 0x657   : > { %v7881_v32 = vpop.f32.mrf.mxu0  ;;  %v16979_v1 = vpop.f32.mrf.mxu1 }
 0x658   : > { %17919 = vst [vmem:[#allocation20_spill] sm:$0xff] %v16979_v1 }
 0x659   : > { %8418 = vmatpush2.bf16.msra.mxu0 %v12538_v60  ;;  %v7883_v6 = vpop.f32.mrf.mxu0 }
 0x65a   : > { %8419 = vmatprep.subr.bf16.mxu0 %v12543_v46  ;;  %v7957_v4 = vadd.f32 %v16931_v38, %v7883_v6 }
 0x65d   : > { %8420 = vmatpush2.bf16.msra.mxu0 %v12541_v11  ;;  %v16987_v11 = vpop.f32.mrf.mxu1 }
 0x65e   : > { %8421 = vmatprep.subr.bf16.mxu0 %v12546_v30  ;;  %17920 = vst [vmem:[#allocation21_spill] sm:$0xff] %v16987_v11 }
 0x661   : > { %8422 = vmatpush2.bf16.msra.mxu0 %v12544_v31 }
 0x662   : > { %8423 = vmatprep.subr.bf16.mxu0 %v12549_v17  ;;  %v16991_v17 = vpop.f32.mrf.mxu1 }
 0x663   : > { %17921 = vst [vmem:[#allocation22_spill] sm:$0xff] %v16991_v17 }
 0x665   : > { %8424 = vmatpush2.bf16.msra.mxu0 %v12547_v29 }
 0x666   : > { %8425 = vmatprep.subr.bf16.mxu0 %v12552_v45 }
 0x669   : > { %8426 = vmatpush2.bf16.msra.mxu0 %v12550_v54 }
 0x66a   : > { %8427 = vmatprep.subr.bf16.mxu0 %v12555_v57 }
 0x66d   : > { %8428 = vmatpush2.bf16.msra.mxu0 %v12553_v7 }
 0x670   : > { %8430 = vmatmul.mubr.bf16.vlgmr.msra.gmra.mxu0 %v16478_v52  ;;  %v16982_v60 = vpop.f32.mrf.mxu0  ;;  %v16995_v52 = vpop.f32.mrf.mxu1 }
 0x671   : > { %8439 = vmatprep.mubr.bf16.mxu0 %v16508_v26 }
 0x672   : > { %v16985_v46 = vpop.f32.mrf.mxu0  ;;  %v16997_v26 = vpop.f32.mrf.mxu1 }
 0x674   : > { %v16989_v30 = vpop.f32.mrf.mxu0  ;;  %v17001_v43 = vpop.f32.mrf.mxu1 }
 0x676   : > { %v7999_v31 = vpop.f32.mrf.mxu0  ;;  %v17003_v50 = vpop.f32.mrf.mxu1 }
 0x678   : > { %8440 = vmatmul.mubr.bf16.gmra.mxu0 %v16505_v49  ;;  %v8003_v29 = vpop.f32.mrf.mxu0  ;;  %v17007_v42 = vpop.f32.mrf.mxu1 }
 0x679   : > { %8449 = vmatprep.mubr.bf16.mxu0 %v16540_v37 }
 0x67a   : > { %v8005_v45 = vpop.f32.mrf.mxu0 }
 0x67c   : > { %v8007_v54 = vpop.f32.mrf.mxu0 }
 0x67e   : > { %v8009_v57 = vpop.f32.mrf.mxu0 }
 0x680   : > { %8450 = vmatmul.mubr.bf16.gmra.mxu0 %v16538_v28  ;;  %v8013_v7 = vpop.f32.mrf.mxu0  ;;  %v7955_v28 = vadd.f32 %v16921_v25, %v7881_v32  ;;  %v7945_v25 = vadd.f32 %v16879_v34, %v16943_v8  ;;  %v17018_v32 = vpop.f32.mrf.mxu1  ;;  %v7935_v34 = vadd.f32 %v16835_v10, %v16903_v47 }
 0x681   : > { %8459 = vmatprep.mubr.bf16.mxu0 %v16572_v61  ;;  %v7947_v61 = vadd.f32 %v16889_v0, %v7873_v20 }
 0x682   : > { %v8015_v16 = vpop.f32.mrf.mxu0  ;;  %v17028_v8 = vpop.f32.mrf.mxu1 }
 0x684   : > { %v8017_v51 = vpop.f32.mrf.mxu0  ;;  %v17034_v36 = vpop.f32.mrf.mxu1 }
 0x686   : > { %v8019_v49 = vpop.f32.mrf.mxu0 }
 0x687   : > { %v8020_v33 = vadd.f32 %v8019_v49, %v7947_v61 }
 0x688   : > { %8460 = vmatmul.mubr.bf16.gmra.mxu0 %v16570_v58  ;;  %v8023_v37 = vpop.f32.mrf.mxu0  ;;  %v7943_v58 = vadd.f32 %v16867_v63, %v16933_v39  ;;  %v8010_v63 = vadd.f32 %v8009_v57, %v7937_v44  ;;  %v17078_v57 = vld [vmem:[%s14219_s22 + $0x18] sm:$0xff]  }
 0x689   : > { %8704 = vmatprep.mubr.bf16.mxu0 %v17902_v5  ;;  %v8024_v0 = vadd.f32 %v8023_v37, %v7951_v41  ;;  %v17052_v41 = vld [vmem:[%s14219_s22] sm:$0xff]  }
 0x68a   : > { %v8025_v2 = vpop.f32.mrf.mxu0  ;;  %v8016_v38 = vadd.f32 %v8015_v16, %v7943_v58  ;;  %v7927_v16 = vadd.f32 %v16809_v3, %v16872_v35  ;;  %v7996_v3 = vadd.f32 %v16985_v46, %v7923_v55  ;;  %v17043_v35 = vpop.f32.mrf.mxu1  ;;  %v17922_v55 = vld [vmem:[#allocation21_spill] sm:$0xff] }
 0x68b   : > { %v8026_v17 = vadd.f32 %v8025_v2, %v7953_v12  ;;  %v7933_v2 = vadd.f32 %v16825_v27, %v16891_v14  ;;  %v8008_v27 = vadd.f32 %v8007_v54, %v7935_v34 }
 0x68c   : > { %v8027_v48 = vpop.f32.mrf.mxu0  ;;  %v8483_v39 = vpack.c.bf16 %v8020_v33, %v8016_v38  ;;  %v8000_v10 = vadd.f32 %v7999_v31, %v7927_v16  ;;  %v17047_v22 = vpop.f32.mrf.mxu1  ;;  %v17062_v33 = vld [vmem:[%s14219_s22 + $0x8] sm:$0xff]  }
 0x68d   : > { %v8028_v13 = vadd.f32 %v8027_v48, %v7955_v28  ;;  %v8018_v48 = vadd.f32 %v8017_v51, %v7945_v25  ;;  %v8006_v53 = vadd.f32 %v8005_v45, %v7933_v2  ;;  %v7931_v51 = vadd.f32 %v16817_v24, %v16884_v56 }
 0x68e   : > { %v8029_v1 = vpop.f32.mrf.mxu0  ;;  %v7921_v24 = vadd.f32 %v16785_v15, %v16840_v9  ;;  %v7998_v56 = vadd.f32 %v16989_v30, %v7925_v23  ;;  %v8471_v21 = vpack.c.bf16 %v8000_v10, %v7996_v3  ;;  %v17049_v19 = vpop.f32.mrf.mxu1 }
 0x68f   : > { %v8030_v11 = vadd.f32 %v8029_v1, %v7957_v4  ;;  %v8488_v40 = vpack.c.bf16 %v8028_v13, %v8024_v0  ;;  %v8014_v4 = vadd.f32 %v8013_v7, %v7941_v18  ;;  %v8477_v47 = vpack.c.bf16 %v8010_v63, %v8006_v53 }
 0x690   : > { %v8004_v12 = vadd.f32 %v8003_v29, %v7931_v51  ;;  %v7994_v13 = vadd.f32 %v16982_v60, %v7921_v24  ;;  %v17056_v15 = vpop.f32.mrf.mxu1 }
 0x691   : > { %v8489_v20 = vpack.c.bf16 %v8030_v11, %v8026_v17  ;;  %v8482_v14 = vpack.c.bf16 %v8018_v48, %v8014_v4  ;;  %v17072_v11 = vld [vmem:[%s14219_s22 + $0x10] sm:$0xff]   ;;  %s10147_s22 = sshll.u32 %s17943_s24, 3  ;;  %s13083_s24 = smov [#allocation2]  }
 0x692   : > { %v8476_v59 = vpack.c.bf16 %v8008_v27, %v8004_v12  ;;  %v8470_v62 = vpack.c.bf16 %v7998_v56, %v7994_v13  ;;  %v17059_v9 = vpop.f32.mrf.mxu1  ;;  %v17923_v12 = vld [vmem:[#allocation22_spill] sm:$0xff]  ;;  %s17104_s25 = scalar_lea.vmem %s17859_s2, %s10147_s22  ;;  %s13024_s29 = sshll.u32 %s13083_s24, 4  ;;  %s13025_s29 = int_to_ptr.vmem [resolvable:$false] %s13024_s29 }
 0x693   : > { %8534 = vmatprep.subr.bf16.mxu1 %v8489_v20  ;;  %v17926_v13 = vld [vmem:[#allocation14_spill] sm:$0xff] }
 0x694   : > { %8535 = vmatpush1.bf16.msra.mxu1 %v8488_v40  ;;  %v17066_v6 = vpop.f32.mrf.mxu1 }
 0x695   : > { %8536 = vmatprep.subr.bf16.mxu1 %v8483_v39 }
 0x696   : > { %v8228_v1 = vpop.f32.mrf.mxu1 }
 0x698   : > { %8537 = vmatpush1.bf16.msra.mxu1 %v8482_v14  ;;  %v8232_v30 = vpop.f32.mrf.mxu1 }
 0x699   : > { %8538 = vmatprep.subr.bf16.mxu1 %v8477_v47 }
 0x69a   : > { %v8234_v29 = vpop.f32.mrf.mxu1 }
 0x69c   : > { %8539 = vmatpush1.bf16.msra.mxu1 %v8476_v59  ;;  %v8236_v7 = vpop.f32.mrf.mxu1 }
 0x69d   : > { %8540 = vmatprep.subr.bf16.mxu1 %v8471_v21 }
 0x69e   : > { %v8238_v28 = vpop.f32.mrf.mxu1 }
 0x6a0   : > { %8541 = vmatpush1.bf16.msra.mxu1 %v8470_v62  ;;  %v8242_v25 = vpop.f32.mrf.mxu1 }
 0x6a2   : > { %v8244_v38 = vpop.f32.mrf.mxu1 }
 0x6a3   : > { %11064 = vmatmul.mubr.msk.bf16.vlgmr.msra.gmra.mxu1 %vm3049_vm0, %v17052_v41 }
 0x6a4   : > { %8568 = vmatprep.mubr.bf16.mxu1 %v17902_v5  ;;  %v8246_v48 = vpop.f32.mrf.mxu1 }
 0x6a6   : > { %v8248_v51 = vpop.f32.mrf.mxu1 }
 0x6ab   : > { %11065 = vmatmul.mubr.msk.bf16.gmra.mxu1 %vm3049_vm0, %v17062_v33 }
 0x6ac   : > { %8578 = vmatprep.mubr.bf16.mxu1 %v17902_v5 }
 0x6b0   : > { %v17069_v60 = vpop.f32.mrf.mxu0 }
 0x6b2   : > { %v8141_v46 = vpop.f32.mrf.mxu0 }
 0x6b3   : > { %11066 = vmatmul.mubr.msk.bf16.gmra.mxu1 %vm3049_vm0, %v17072_v11 }
 0x6b4   : > { %v8143_v31 = vpop.f32.mrf.mxu0  ;;  %8588 = vmatprep.mubr.bf16.mxu1 %v17902_v5 }
 0x6b6   : > { %v8145_v17 = vpop.f32.mrf.mxu0 }
 0x6b8   : > { %v8149_v45 = vpop.f32.mrf.mxu0 }
 0x6ba   : > { %v8151_v54 = vpop.f32.mrf.mxu0 }
 0x6bb   : > { %11067 = vmatmul.mubr.msk.bf16.gmra.mxu1 %vm3049_vm0, %v17078_v57 }
 0x6bc   : > { %v8153_v49 = vpop.f32.mrf.mxu0  ;;  %8631 = vmatprep.mubr.bf16.mxu1 %v17902_v5 }
 0x6be   : > { %v8155_v37 = vpop.f32.mrf.mxu0 }
 0x6bf   : > { %v8156_v10 = vadd.f32 %v8155_v37, %v17922_v55 }
 0x6c0   : > { %v8159_v61 = vpop.f32.mrf.mxu0 }
 0x6c1   : > { %v8229_v62 = vadd.f32 %v8228_v1, %v8156_v10  ;;  %v12556_v10 = vld [vmem:[%s17866_s9 + $0x70] ss:$8 sps:$4 sm:$0xff]  }
 0x6c2   : > { %v8161_v58 = vpop.f32.mrf.mxu0 }
 0x6c3   : > { %v8162_v16 = vadd.f32 %v8161_v58, %v16995_v52  ;;  %v17925_v52 = vld [vmem:[#allocation20_spill] sm:$0xff] }
 0x6c4   : > { %v8163_v0 = vpop.f32.mrf.mxu0  ;;  %v8154_v59 = vadd.f32 %v8153_v49, %v17925_v52  ;;  %v12582_v52 = vld [vmem:[%s17866_s9 + $0x34] ss:$8 sps:$4 sm:$0xff]  }
 0x6c5   : > { %v8164_v27 = vadd.f32 %v8163_v0, %v16997_v26  ;;  %v8146_v26 = vadd.f32 %v8145_v17, %v17926_v13  ;;  %v17930_v17 = vld [vmem:[#allocation17_spill] sm:$0xff] }
 0x6c6   : > { %v8165_v44 = vpop.f32.mrf.mxu0 }
 0x6c7   : > { %v8166_v2 = vadd.f32 %v8165_v44, %v17001_v43  ;;  %v8219_v1 = vadd.f32 %v17049_v19, %v8146_v26  ;;  %v12586_v26 = vld [vmem:[%s17866_s9 + $0x20] ss:$8 sps:$4 sm:$0xff]  }
 0x6c8   : > { %v8169_v20 = vpop.f32.mrf.mxu0 }
 0x6c9   : > { %v8170_v34 = vadd.f32 %v8169_v20, %v17003_v50  ;;  %v8239_v47 = vadd.f32 %v8238_v28, %v8166_v2  ;;  %v8235_v50 = vadd.f32 %v8234_v29, %v8162_v16  ;;  %v17927_v28 = vld [vmem:[#allocation18_spill] sm:$0xff]  ;;  %v17929_v29 = vld [vmem:[#allocation16_spill] sm:$0xff] }
 0x6ca   : > { %v8171_v18 = vpop.f32.mrf.mxu0  ;;  %v8150_v58 = vadd.f32 %v8149_v45, %v17927_v28  ;;  %v8144_v44 = vadd.f32 %v8143_v31, %v17929_v29  ;;  %v8821_v2 = vld [vmem:[%s17104_s25 + $0x20] sm:$0xff]  ;;  %v8823_v16 = vld [vmem:[%s17104_s25 + $0x30] sm:$0xff] }
 0x6cb   : > { %v8172_v63 = vadd.f32 %v8171_v18, %v17007_v42  ;;  %v8160_v42 = vadd.f32 %v8159_v61, %v17923_v12  ;;  %v8243_v3 = vadd.f32 %v8242_v25, %v8170_v34  ;;  %v8485_v37 = vpack.c.bf16 %v8239_v47, %v8235_v50  ;;  %v17928_v61 = vld [vmem:[#allocation15_spill] sm:$0xff]  ;;  %v8818_v18 = vld [vmem:[%s17104_s25 + $0x8] sm:$0xff] }
 0x6cc   : > { %v8173_v40 = vpop.f32.mrf.mxu0  ;;  %v8142_v25 = vadd.f32 %v8141_v46, %v17928_v61  ;;  %v8817_v46 = vld [vmem:[%s17104_s25] sm:$0xff]  ;;  %v8223_v45 = vadd.f32 %v17056_v15, %v8150_v58  ;;  %v12558_v47 = vld [vmem:[%s17866_s9 + $0x74] ss:$8 sps:$4 sm:$0xff]   ;;  %v12592_v58 = vld [vmem:[%s17866_s9 + $0x10] ss:$8 sps:$4 sm:$0xff]  }
 0x6cd   : > { %v8174_v39 = vadd.f32 %v8173_v40, %v17018_v32  ;;  %v8245_v23 = vadd.f32 %v8244_v38, %v8172_v63  ;;  %v17924_v32 = vld [vmem:[#allocation19_spill] sm:$0xff]  ;;  %v8233_v0 = vadd.f32 %v8232_v30, %v8160_v42  ;;  %8875 = vperm.xlu0 %11230, %v8817_v46   ;;  %v8217_v38 = vadd.f32 %v17047_v22, %v8144_v44  ;;  %v8822_v63 = vld [vmem:[%s17104_s25 + $0x28] sm:$0xff] }
 0x6ce   : > { %v8175_v4 = vpop.f32.mrf.mxu0  ;;  %v8152_v24 = vadd.f32 %v8151_v54, %v17924_v32  ;;  %v8215_v31 = vadd.f32 %v17043_v35, %v8142_v25  ;;  %v8819_v35 = vld [vmem:[%s17104_s25 + $0x10] sm:$0xff]  ;;  %v8820_v40 = vld [vmem:[%s17104_s25 + $0x18] sm:$0xff]  ;;  %v8966_v34 = vsub.f32 1.0, %v8822_v63  ;;  %v12562_v12 = vld [vmem:[%s17866_s9 + $0x60] ss:$8 sps:$4 sm:$0xff]  }
 0x6cf   : > { %v8176_v53 = vadd.f32 %v8175_v4, %v17028_v8  ;;  %v8247_v14 = vadd.f32 %v8246_v48, %v8174_v39  ;;  %v8237_v8 = vadd.f32 %v8236_v7, %v8164_v27  ;;  %v8227_v7 = vadd.f32 %v17066_v6, %v8154_v59  ;;  %v12570_v42 = vld [vmem:[%s17866_s9 + $0x54] ss:$8 sps:$4 sm:$0xff]   ;;  %v12568_v32 = vld [vmem:[%s17866_s9 + $0x50] ss:$8 sps:$4 sm:$0xff]  }
 0x6d0   : > { %v8225_v54 = vadd.f32 %v17059_v9, %v8152_v24  ;;  %v8140_v9 = vadd.f32 %v17069_v60, %v17930_v17  ;;  %v8961_v6 = vsub.f32 1.0, %v8817_v46  ;;  %v8473_v19 = vpack.c.bf16 %v8219_v1, %v8215_v31  ;;  %v12576_v24 = vld [vmem:[%s17866_s9 + $0x44] ss:$8 sps:$4 sm:$0xff]   ;;  %v12606_v31 = vld [vmem:[%s17866_s9 + $0xf4] ss:$8 sps:$4 sm:$0xff]  }
 0x6d1   : > { %v8249_v43 = vadd.f32 %v8248_v51, %v8176_v53  ;;  %v8490_v21 = vpack.c.bf16 %v8247_v14, %v8243_v3  ;;  %v8484_v49 = vpack.c.bf16 %v8237_v8, %v8233_v0  ;;  %v8478_v20 = vpack.c.bf16 %v8227_v7, %v8223_v45  ;;  %8880 = vperm.xlu0 %11230, %v8818_v18   ;;  %v8824_v53 = vld [vmem:[%s17104_s25 + $0x38] sm:$0xff]  ;;  %v12600_v0 = vld [vmem:[%s17866_s9 + $0x4] ss:$8 sps:$4 sm:$0xff]  }
 0x6d2   : > { %v8479_v30 = vpack.c.bf16 %v8229_v62, %v8225_v54  ;;  %9019 = vperm.xlu1 %11231, %v8961_v6   ;;  %v8213_v48 = vadd.f32 %v17034_v36, %v8140_v9  ;;  %v8962_v60 = vsub.f32 1.0, %v8818_v18  ;;  %v8963_v36 = vsub.f32 1.0, %v8819_v35  ;;  %v12580_v8 = vld [vmem:[%s17866_s9 + $0x30] ss:$8 sps:$4 sm:$0xff]   ;;  %v12594_v62 = vld [vmem:[%s17866_s9 + $0x14] ss:$8 sps:$4 sm:$0xff]  }
 0x6d3   : > { %v8491_v56 = vpack.c.bf16 %v8249_v43, %v8245_v23  ;;  %v8964_v22 = vsub.f32 1.0, %v8820_v40  ;;  %v8965_v39 = vsub.f32 1.0, %v8821_v2  ;;  %v8967_v27 = vsub.f32 1.0, %v8823_v16  ;;  %v12564_v23 = vld [vmem:[%s17866_s9 + $0x64] ss:$8 sps:$4 sm:$0xff]  }
 0x6d4   : > { %v8472_v15 = vpack.c.bf16 %v8217_v38, %v8213_v48  ;;  %v8968_v14 = vsub.f32 1.0, %v8824_v53  ;;  %v12598_v54 = vld [vmem:[%s17866_s9] ss:$8 sps:$4 sm:$0xff]   ;;  %v12604_v6 = vld [vmem:[%s17866_s9 + $0xf0] ss:$8 sps:$4 sm:$0xff]  }
 0x6d5   : > { %8607 = vmatprep.subr.bf16.mxu1 %v8491_v56  ;;  %8885 = vperm.xlu0 %11230, %v8819_v35   ;;  %v12574_v56 = vld [vmem:[%s17866_s9 + $0x40] ss:$8 sps:$4 sm:$0xff]  }
 0x6d6   : > { %8608 = vmatpush1.bf16.msra.mxu1 %v8490_v21  ;;  %9024 = vperm.xlu1 %11231, %v8962_v60   ;;  %v12588_v21 = vld [vmem:[%s17866_s9 + $0x24] ss:$8 sps:$4 sm:$0xff]  }
 0x6d7   : > { %8609 = vmatprep.subr.bf16.mxu1 %v8485_v37  ;;  %v8358_v37 = vpop.f32.mrf.mxu1 }
 0x6d9   : > { %9029 = vperm.xlu0 %11230, %v8963_v36   ;;  %v8360_v61 = vpop.f32.mrf.mxu1 }
 0x6da   : > { %8610 = vmatpush1.bf16.msra.mxu1 %v8484_v49  ;;  %8890 = vperm.xlu1 %11231, %v8820_v40  }
 0x6db   : > { %8611 = vmatprep.subr.bf16.mxu1 %v8479_v30  ;;  %v8362_v29 = vpop.f32.mrf.mxu1 }
 0x6dd   : > { %8895 = vperm.xlu0 %11230, %v8821_v2   ;;  %v8364_v7 = vpop.f32.mrf.mxu1 }
 0x6de   : > { %8612 = vmatpush1.bf16.msra.mxu1 %v8478_v20  ;;  %9034 = vperm.xlu1 %11231, %v8964_v22  }
 0x6df   : > { %8613 = vmatprep.subr.bf16.mxu1 %v8473_v19  ;;  %v17202_v1 = vpop.f32.mrf.mxu1 }
 0x6e1   : > { %9039 = vperm.xlu0 %11230, %v8965_v39   ;;  %v17206_v46 = vpop.f32.mrf.mxu1 }
 0x6e2   : > { %8614 = vmatpush1.bf16.msra.mxu1 %v8472_v15  ;;  %8900 = vperm.xlu1 %11231, %v8822_v63  }
 0x6e3   : > { %9753 = vmatprep.subr.bf16.mxu1 %v12558_v47  ;;  %v17210_v9 = vpop.f32.mrf.mxu1  ;;  %v12618_v47 = vld [vmem:[%s17866_s9 + $0xd4] ss:$8 sps:$4 sm:$0xff]  }
 0x6e5   : > { %11068 = vmatmul.mubr.msk.bf16.vlgmr.msra.gmra.mxu1 %vm3049_vm0, %v17052_v41  ;;  %8905 = vperm.xlu0 %11230, %v8823_v16   ;;  %v17218_v38 = vpop.f32.mrf.mxu1 }
 0x6e6   : > { %8641 = vmatprep.mubr.bf16.mxu1 %v17902_v5  ;;  %9044 = vperm.xlu1 %11231, %v8966_v34  }
 0x6e7   : > { %9754 = vmatpush1.bf16.msra.mxu1 %v12556_v10  ;;  %v17220_v19 = vpop.f32.mrf.mxu1  ;;  %v12612_v10 = vld [vmem:[%s17866_s9 + $0xe4] ss:$8 sps:$4 sm:$0xff]  }
 0x6e8   : > { %9755 = vmatprep.subr.bf16.mxu1 %v12564_v23 }
 0x6e9   : > { %9049 = vperm.xlu0 %11230, %v8967_v27   ;;  %v8380_v35 = vpop.f32.mrf.mxu1 }
 0x6ea   : > { %8910 = vperm.xlu1 %11231, %v8824_v53  }
 0x6eb   : > { %9756 = vmatpush1.bf16.msra.mxu1 %v12562_v12  ;;  %v12616_v12 = vld [vmem:[%s17866_s9 + $0xd0] ss:$8 sps:$4 sm:$0xff]  }
 0x6ec   : > { %9757 = vmatprep.subr.bf16.mxu1 %v12570_v42 }
 0x6ed   : > { %11069 = vmatmul.mubr.msk.bf16.gmra.mxu1 %vm3049_vm0, %v17062_v33 }
 0x6ee   : > { %8651 = vmatprep.mubr.bf16.mxu1 %v17902_v5  ;;  %9054 = vperm.xlu1 %11231, %v8968_v14  }
 0x6ef   : > { %9758 = vmatpush1.bf16.msra.mxu1 %v12568_v32 }
 0x6f0   : > { %v17125_v4 = vpop.f32.mrf.mxu0  ;;  %9759 = vmatprep.subr.bf16.mxu1 %v12576_v24 }
 0x6f1   : > { %v8359_v60 = vadd.f32 %v8358_v37, %v17125_v4  ;;  %v8382_v4 = vpop.f32.mrf.mxu1  ;;  %v12628_v37 = vld [vmem:[%s17866_s9 + $0xb0] ss:$8 sps:$4 sm:$0xff]  }
 0x6f2   : > { %v17131_v51 = vpop.f32.mrf.mxu0 }
 0x6f3   : > { %9760 = vmatpush1.bf16.msra.mxu1 %v12574_v56  ;;  %v8361_v36 = vadd.f32 %v8360_v61, %v17131_v51  ;;  %v8384_v23 = vpop.f32.mrf.mxu1 }
 0x6f4   : > { %v17134_v55 = vpop.f32.mrf.mxu0  ;;  %9761 = vmatprep.subr.bf16.mxu1 %v12582_v52  ;;  %v12622_v52 = vld [vmem:[%s17866_s9 + $0xc0] ss:$8 sps:$4 sm:$0xff]  }
 0x6f5   : > { %11070 = vmatmul.mubr.msk.bf16.gmra.mxu1 %vm3049_vm0, %v17072_v11  ;;  %v8363_v15 = vadd.f32 %v8362_v29, %v17134_v55  ;;  %v12610_v55 = vld [vmem:[%s17866_s9 + $0xe0] ss:$8 sps:$4 sm:$0xff]   ;;  %v8388_v32 = vpop.f32.mrf.mxu1 }
 0x6f6   : > { %8661 = vmatprep.mubr.bf16.mxu1 %v17902_v5  ;;  %v8291_v43 = vpop.f32.mrf.mxu0  ;;  %v12634_v29 = vld [vmem:[%s17866_s9 + $0xa0] ss:$8 sps:$4 sm:$0xff]  }
 0x6f7   : > { %9762 = vmatpush1.bf16.msra.mxu1 %v12580_v8  ;;  %v8365_v22 = vadd.f32 %v8364_v7, %v8291_v43  ;;  %v12624_v8 = vld [vmem:[%s17866_s9 + $0xc4] ss:$8 sps:$4 sm:$0xff]  }
 0x6f8   : > { %v17153_v3 = vpop.f32.mrf.mxu0  ;;  %9763 = vmatprep.subr.bf16.mxu1 %v12588_v21  ;;  %v12630_v21 = vld [vmem:[%s17866_s9 + $0xb4] ss:$8 sps:$4 sm:$0xff]   ;;  %v12636_v7 = vld [vmem:[%s17866_s9 + $0xa4] ss:$8 sps:$4 sm:$0xff]  }
 0x6fa   : > { %v17161_v50 = vpop.f32.mrf.mxu0 }
 0x6fb   : > { %9764 = vmatpush1.bf16.msra.mxu1 %v12586_v26  ;;  %v8390_v26 = vpop.f32.mrf.mxu1 }
 0x6fc   : > { %v17169_v59 = vpop.f32.mrf.mxu0  ;;  %9765 = vmatprep.subr.bf16.mxu1 %v12594_v62 }
 0x6fd   : > { %11071 = vmatmul.mubr.msk.bf16.gmra.mxu1 %vm3049_vm0, %v17078_v57 }
 0x6fe   : > { %v17177_v13 = vpop.f32.mrf.mxu0 }
 0x6ff   : > { %9766 = vmatpush1.bf16.msra.mxu1 %v12592_v58 }
 0x700   : > { %v17185_v28 = vpop.f32.mrf.mxu0  ;;  %9767 = vmatprep.subr.bf16.mxu1 %v12600_v0  ;;  %v8392_v0 = vpop.f32.mrf.mxu1 }
 0x702   : > { %v17193_v25 = vpop.f32.mrf.mxu0 }
 0x703   : > { %9768 = vmatpush1.bf16.msra.mxu1 %v12598_v54 }
 0x704   : > { %v17198_v44 = vpop.f32.mrf.mxu0  ;;  %9769 = vmatprep.subr.bf16.mxu1 %v12606_v31  ;;  %v8394_v31 = vpop.f32.mrf.mxu1 }
 0x706   : > { %v17200_v49 = vpop.f32.mrf.mxu0 }
 0x707   : > { %9770 = vmatpush2.bf16.msra.mxu1 %v12604_v6  ;;  %v12642_v6 = vld [vmem:[%s17866_s9 + $0x94] ss:$8 sps:$4 sm:$0xff]  }
 0x708   : > { %v17204_v30 = vpop.f32.mrf.mxu0  ;;  %9771 = vmatprep.subr.bf16.mxu1 %v12612_v10  ;;  %v8381_v10 = vadd.f32 %v8380_v35, %v17193_v25  ;;  %v12646_v25 = vld [vmem:[%s17866_s9 + $0x80] ss:$8 sps:$4 sm:$0xff]   ;;  %v8371_v35 = vadd.f32 %v17206_v46, %v17161_v50 }
 0x70a   : > { %v17208_v17 = vpop.f32.mrf.mxu0 }
 0x70b   : > { %9772 = vmatpush2.bf16.msra.mxu1 %v12610_v55 }
 0x70c   : > { %v8319_v45 = vpop.f32.mrf.mxu0  ;;  %9773 = vmatprep.subr.bf16.mxu1 %v12618_v47 }
 0x70e   : > { %v8321_v20 = vpop.f32.mrf.mxu0 }
 0x70f   : > { %9774 = vmatpush2.bf16.msra.mxu1 %v12616_v12 }
 0x710   : > { %9775 = vmatprep.subr.bf16.mxu1 %v12624_v8 }
 0x713   : > { %9776 = vmatpush2.bf16.msra.mxu1 %v12622_v52 }
 0x714   : > { %9777 = vmatprep.subr.bf16.mxu1 %v12630_v21 }
 0x717   : > { %9778 = vmatpush2.bf16.msra.mxu1 %v12628_v37 }
 0x718   : > { %9779 = vmatprep.subr.bf16.mxu1 %v12636_v7 }
 0x71b   : > { %9780 = vmatpush2.bf16.msra.mxu1 %v12634_v29  ;;  %v12579_v29 = vld [vmem:[%s17866_s9 + $0x144] ss:$8 sps:$4 sm:$0xff]  }
 0x71c   : > { %9781 = vmatprep.subr.bf16.mxu1 %v12642_v6 }
 0x730   : > { %v8431_v18 = vpop.f32.mrf.mxu0 }
 0x731   : > { %v17225_v2 = vadd.f32 %v8431_v18, %v8359_v60  ;;  %v8393_v18 = vadd.f32 %v8392_v0, %v8319_v45  ;;  %v8385_v60 = vadd.f32 %v8384_v23, %v17200_v49  ;;  %v8383_v49 = vadd.f32 %v8382_v4, %v17198_v44  ;;  %v12648_v44 = vld [vmem:[%s17866_s9 + $0x84] ss:$8 sps:$4 sm:$0xff]  }
 0x732   : > { %v8433_v48 = vpop.f32.mrf.mxu0  ;;  %v8373_v4 = vadd.f32 %v17210_v9, %v17169_v59  ;;  %v12654_v59 = vld [vmem:[%s17866_s9 + $0x274] ss:$8 sps:$4 sm:$0xff]  }
 0x733   : > { %v17229_v34 = vadd.f32 %v8433_v48, %v8361_v36  ;;  %v12640_v36 = vld [vmem:[%s17866_s9 + $0x90] ss:$8 sps:$4 sm:$0xff]  }
 0x734   : > { %v8435_v40 = vpop.f32.mrf.mxu0  ;;  %9782 = vmatpush2.bf16.msra.mxu1 %v12640_v36 }
 0x735   : > { %v17227_v63 = vadd.f32 %v8435_v40, %v8363_v15  ;;  %v8391_v15 = vadd.f32 %v8390_v26, %v17208_v17  ;;  %v8395_v40 = vadd.f32 %v8394_v31, %v8321_v20  ;;  %v8375_v17 = vadd.f32 %v17218_v38, %v17177_v13  ;;  %9783 = vmatprep.subr.bf16.mxu1 %v12648_v44 }
 0x736   : > { %v8437_v39 = vpop.f32.mrf.mxu0 }
 0x737   : > { %v8474_v16 = vpack.c.bf16 %v17227_v63, %v17225_v2  ;;  %v17233_v53 = vadd.f32 %v8437_v39, %v8365_v22  ;;  %v8389_v22 = vadd.f32 %v8388_v32, %v17204_v30  ;;  %v8379_v30 = vadd.f32 %v17220_v19, %v17185_v28 }
 0x738   : > { %v17235_v27 = vpop.f32.mrf.mxu0  ;;  %9784 = vmatpush2.bf16.msra.mxu1 %v12646_v25 }
 0x739   : > { %v8475_v14 = vpack.c.bf16 %v17233_v53, %v17229_v34  ;;  %9899 = vmatprep.subr.bf16.mxu1 %v12654_v59  ;;  %v12559_v34 = vld [vmem:[%s17866_s9 + $0x170] ss:$8 sps:$4 sm:$0xff]   ;;  %v12567_v53 = vld [vmem:[%s17866_s9 + $0x164] ss:$8 sps:$4 sm:$0xff]  }
 0x73a   : > { %v17239_v51 = vpop.f32.mrf.mxu0 }
 0x73b   : > { %v8444_v19 = vadd.f32 %v17239_v51, %v8371_v35 }
 0x73c   : > { %v17250_v43 = vpop.f32.mrf.mxu0 }
 0x73d   : > { %v8446_v21 = vadd.f32 %v17250_v43, %v8373_v4  ;;  %v17932_v43 = vld [vmem:[#allocation9_spill] sm:$0xff] }
 0x73e   : > { %v8447_v42 = vpop.f32.mrf.mxu0 }
 0x73f   : > { %v8448_v13 = vadd.f32 %v8447_v42, %v8375_v17  ;;  %v12589_v17 = vld [vmem:[%s17866_s9 + $0x120] ss:$8 sps:$4 sm:$0xff]  }
 0x740   : > { %v8451_v24 = vpop.f32.mrf.mxu0 }
 0x741   : > { %v8452_v28 = vadd.f32 %v8451_v24, %v8379_v30  ;;  %v8481_v50 = vpack.c.bf16 %v8448_v13, %v8444_v19 }
 0x742   : > { %v8453_v56 = vpop.f32.mrf.mxu0 }
 0x743   : > { %v8454_v20 = vadd.f32 %v8453_v56, %v8381_v10  ;;  %v8369_v56 = vadd.f32 %v17202_v1, %v17153_v3  ;;  %v17312_v3 = vld [vmem:[%s17865_s8] sm:$0x3f]  ;;  %v12561_v1 = vld [vmem:[%s17866_s9 + $0x174] ss:$8 sps:$4 sm:$0xff]  }
 0x744   : > { %v8455_v62 = vpop.f32.mrf.mxu0  ;;  %v17334_v2 = vrot.slane %v17312_v3, %v17932_v43 }
 0x745   : > { %v8456_v32 = vadd.f32 %v8455_v62, %v8383_v49  ;;  %v8442_v46 = vadd.f32 %v17235_v27, %v8369_v56  ;;  %v17931_v27 = vld [vmem:[#allocation8_spill] sm:$0xff]  ;;  %v12595_v56 = vld [vmem:[%s17866_s9 + $0x110] ss:$8 sps:$4 sm:$0xff]  }
 0x746   : > { %v8457_v58 = vpop.f32.mrf.mxu0  ;;  %v17322_v51 = vrot.slane %v17312_v3, %v17931_v27 }
 0x747   : > { %v8458_v45 = vadd.f32 %v8457_v58, %v8385_v60  ;;  %v8486_v26 = vpack.c.bf16 %v8456_v32, %v8452_v28  ;;  %v8480_v9 = vpack.c.bf16 %v8446_v21, %v8442_v46  ;;  %v12577_v60 = vld [vmem:[%s17866_s9 + $0x140] ss:$8 sps:$4 sm:$0xff]   ;;  %v12997_v32 = vld [vmem:[%s13333_s23 + $0x18] sm:$0xff]  ;;  %v12603_v46 = vld [vmem:[%s17866_s9 + $0x104] ss:$8 sps:$4 sm:$0xff]  }
 0x748   : > { %v8461_v61 = vpop.f32.mrf.mxu0  ;;  %v17341_v42 = vpop.permute.xlu0 %8875 }
 0x749   : > { %v8462_v23 = vadd.f32 %v8461_v61, %v8389_v22  ;;  %v8487_v38 = vpack.c.bf16 %v8458_v45, %v8454_v20  ;;  %v12571_v61 = vld [vmem:[%s17866_s9 + $0x150] ss:$8 sps:$4 sm:$0xff]  }
 0x74a   : > { %v8463_v54 = vpop.f32.mrf.mxu0 }
 0x74b   : > { %v8464_v47 = vadd.f32 %v8463_v54, %v8391_v15 }
 0x74c   : > { %v8465_v48 = vpop.f32.mrf.mxu0  ;;  %v17357_v6 = vpop.permute.xlu0 %8880 }
 0x74d   : > { %v8466_v39 = vadd.f32 %v8465_v48, %v8393_v18  ;;  %v17343_v24 = vpop.permute.xlu1 %9019 }
 0x74e   : > { %v8467_v55 = vpop.f32.mrf.mxu0 }
 0x74f   : > { %v8468_v12 = vadd.f32 %v8467_v55, %v8395_v40  ;;  %v8492_v8 = vpack.c.bf16 %v8466_v39, %v8462_v23  ;;  %v12585_v40 = vld [vmem:[%s17866_s9 + $0x134] ss:$8 sps:$4 sm:$0xff]   ;;  %v12583_v39 = vld [vmem:[%s17866_s9 + $0x130] ss:$8 sps:$4 sm:$0xff]  }
 0x750   : > { %v17376_v55 = vpop.permute.xlu0 %8885 }
 0x751   : > { %v8493_v52 = vpack.c.bf16 %v8468_v12, %v8464_v47  ;;  %v17359_v31 = vpop.permute.xlu1 %9024  ;;  %v12591_v47 = vld [vmem:[%s17866_s9 + $0x124] ss:$8 sps:$4 sm:$0xff]  }
 0x753   : > { %8680 = vmatprep.subr.bf16.mxu0 %v8493_v52  ;;  %v12996_v52 = vld [vmem:[%s13333_s23] sm:$0xff] }
 0x754   : > { %8681 = vmatpush1.bf16.msra.mxu0 %v8492_v8  ;;  %v8969_v30 = vunpack.c.l.bf16 %v12996_v52  ;;  %v8975_v8 = vunpack.c.l.bf16 %v12997_v32  ;;  %v17397_v44 = vpop.permute.xlu0 %9029  ;;  %v8970_v21 = vunpack.c.h.bf16 %v12996_v52 }
 0x755   : > { %8682 = vmatprep.subr.bf16.mxu0 %v8487_v38  ;;  %v17378_v10 = vpop.permute.xlu1 %8890 }
 0x756   : > { %v9057_v59 = vmul.f32 %v17343_v24, %v8969_v30 }
 0x758   : > { %8683 = vmatpush1.bf16.msra.mxu0 %v8486_v26 }
 0x759   : > { %8684 = vmatprep.subr.bf16.mxu0 %v8481_v50  ;;  %v17399_v35 = vpop.permute.xlu1 %9034 }
 0x75c   : > { %8685 = vmatpush1.bf16.msra.mxu0 %v8480_v9  ;;  %v9063_v9 = vmul.f32 %v17359_v31, %v8975_v8 }
 0x75d   : > { %8686 = vmatprep.subr.bf16.mxu0 %v8475_v14 }
 0x760   : > { %8687 = vmatpush1.bf16.msra.mxu0 %v8474_v16  ;;  %v12565_v16 = vld [vmem:[%s17866_s9 + $0x160] ss:$8 sps:$4 sm:$0xff]  }
 0x761   : > { %9826 = vmatprep.subr.bf16.mxu0 %v12561_v1  ;;  %v8976_v1 = vunpack.c.h.bf16 %v12997_v32  ;;  %v12607_v32 = vld [vmem:[%s17866_s9 + $0x1f0] ss:$8 sps:$4 sm:$0xff]  }
 0x763   : > { %11072 = vmatmul.mubr.msk.bf16.vlgmr.msra.gmra.mxu0 %vm3049_vm0, %v17052_v41  ;;  %v8560_v14 = vpop.f32.mrf.mxu1  ;;  %v12573_v41 = vld [vmem:[%s17866_s9 + $0x154] ss:$8 sps:$4 sm:$0xff]  }
 0x764   : > { %8714 = vmatprep.mubr.bf16.mxu0 %v17902_v5  ;;  %v8561_v63 = vadd.f32 %v8560_v14, %v17322_v51  ;;  %9827 = vmatpush1.bf16.msra.mxu0 %v12559_v34  ;;  %v12998_v14 = vld [vmem:[%s13333_s23 + $0x30] sm:$0xff] }
 0x765   : > { %v8562_v62 = vpop.f32.mrf.mxu1  ;;  %9828 = vmatprep.subr.bf16.mxu0 %v12567_v53  ;;  %v8981_v43 = vunpack.c.l.bf16 %v12998_v14 }
 0x766   : > { %v8563_v37 = vadd.f32 %v8562_v62, %v17334_v2  ;;  %12892 = vtanh.f32 %v8561_v63  ;;  %v8982_v62 = vunpack.c.h.bf16 %v12998_v14 }
 0x767   : > { %v8564_v58 = vpop.f32.mrf.mxu1  ;;  %v9069_v8 = vmul.f32 %v17397_v44, %v8981_v43  ;;  %v13000_v43 = vld [vmem:[%s13333_s23 + $0x60] sm:$0xff] }
 0x768   : > { %v8565_v0 = vadd.f32 %v8564_v58, %v17322_v51  ;;  %9829 = vmatpush1.bf16.msra.mxu0 %v12565_v16 }
 0x769   : > { %v8566_v54 = vpop.f32.mrf.mxu1  ;;  %9830 = vmatprep.subr.bf16.mxu0 %v12573_v41 }
 0x76a   : > { %12894 = vtanh.f32 %v8565_v0  ;;  %v8567_v7 = vadd.f32 %v8566_v54, %v17334_v2  ;;  %v17422_v54 = vpop.permute.xlu1 %8900 }
 0x76b   : > { %11073 = vmatmul.mubr.msk.bf16.gmra.mxu0 %vm3049_vm0, %v17062_v33  ;;  %12896 = vtanh.f32 %v8563_v37  ;;  %v8570_v18 = vpop.f32.mrf.mxu1  ;;  %v12601_v37 = vld [vmem:[%s17866_s9 + $0x100] ss:$8 sps:$4 sm:$0xff]  }
 0x76c   : > { %8724 = vmatprep.mubr.bf16.mxu0 %v17902_v5  ;;  %12898 = vtanh.f32 %v8567_v7  ;;  %v8571_v48 = vadd.f32 %v8570_v18, %v17322_v51  ;;  %9831 = vmatpush1.bf16.msra.mxu0 %v12571_v61  ;;  %v17420_v61 = vpop.permute.xlu0 %8895  ;;  %v12609_v7 = vld [vmem:[%s17866_s9 + $0x1f4] ss:$8 sps:$4 sm:$0xff]  }
 0x76d   : > { %v8572_v15 = vpop.f32.mrf.mxu1  ;;  %9832 = vmatprep.subr.bf16.mxu0 %v12579_v29 }
 0x76e   : > { %v8573_v33 = vadd.f32 %v8572_v15, %v17334_v2  ;;  %12900 = vtanh.f32 %v8571_v48  ;;  %v9064_v15 = vmul.f32 %v17359_v31, %v8976_v1 }
 0x76f   : > { %v8574_v36 = vpop.f32.mrf.mxu1 }
 0x770   : > { %v8575_v22 = vadd.f32 %v8574_v36, %v17322_v51  ;;  %9833 = vmatpush1.bf16.msra.mxu0 %v12577_v60  ;;  %12902 = vtanh.f32 %v8573_v33  ;;  %v9058_v60 = vmul.f32 %v17343_v24, %v8970_v21  ;;  %v12999_v33 = vld [vmem:[%s13333_s23 + $0x48] sm:$0xff] }
 0x771   : > { %v8576_v45 = vpop.f32.mrf.mxu1  ;;  %9834 = vmatprep.subr.bf16.mxu0 %v12585_v40  ;;  %v8987_v36 = vunpack.c.l.bf16 %v12999_v33 }
 0x772   : > { %12904 = vtanh.f32 %v8575_v22  ;;  %v8577_v12 = vadd.f32 %v8576_v45, %v17334_v2 }
 0x773   : > { %11074 = vmatmul.mubr.msk.bf16.gmra.mxu0 %vm3049_vm0, %v17072_v11  ;;  %v8580_v49 = vpop.f32.mrf.mxu1  ;;  %v12893_v20 = vpop.eup %12892  ;;  %v12597_v11 = vld [vmem:[%s17866_s9 + $0x114] ss:$8 sps:$4 sm:$0xff]  }
 0x774   : > { %8734 = vmatprep.mubr.bf16.mxu0 %v17902_v5  ;;  %12906 = vtanh.f32 %v8577_v12  ;;  %v8581_v23 = vadd.f32 %v8580_v49, %v17322_v51  ;;  %9835 = vmatpush1.bf16.msra.mxu0 %v12583_v39 }
 0x775   : > { %v8582_v25 = vpop.f32.mrf.mxu1  ;;  %9836 = vmatprep.subr.bf16.mxu0 %v12591_v47 }
 0x776   : > { %v8583_v5 = vadd.f32 %v8582_v25, %v17334_v2  ;;  %12908 = vtanh.f32 %v8581_v23 }
 0x777   : > { %v12895_v13 = vpop.eup %12894  ;;  %v8584_v38 = vpop.f32.mrf.mxu1 }
 0x778   : > { %v12897_v4 = vpop.eup %12896  ;;  %v8793_v28 = vpack.c.bf16 %v12895_v13, %v12893_v20  ;;  %v8585_v19 = vadd.f32 %v8584_v38, %v17322_v51  ;;  %9837 = vmatpush1.bf16.msra.mxu0 %v12589_v17  ;;  %12910 = vtanh.f32 %v8583_v5  ;;  %v8988_v17 = vunpack.c.h.bf16 %v12999_v33  ;;  %v12615_v5 = vld [vmem:[%s17866_s9 + $0x1e4] ss:$8 sps:$4 sm:$0xff]   ;;  %v12619_v33 = vld [vmem:[%s17866_s9 + $0x1d0] ss:$8 sps:$4 sm:$0xff]  }
 0x779   : > { %v12899_v26 = vpop.eup %12898  ;;  %v8586_v50 = vpop.f32.mrf.mxu1  ;;  %9838 = vmatprep.subr.bf16.mxu0 %v12597_v11  ;;  %v9070_v20 = vmul.f32 %v17397_v44, %v8982_v62 }
 0x77a   : > { %12912 = vtanh.f32 %v8585_v19  ;;  %v8587_v27 = vadd.f32 %v8586_v50, %v17334_v2  ;;  %v8825_v34 = vunpack.c.l.bf16 %v8793_v28  ;;  %v8831_v53 = vunpack.c.h.bf16 %v8793_v28  ;;  %v17443_v19 = vpop.permute.xlu0 %9039 }
 0x77b   : > { %11075 = vmatmul.mubr.msk.bf16.gmra.mxu0 %vm3049_vm0, %v17078_v57  ;;  %v8590_v63 = vpop.f32.mrf.mxu1  ;;  %v8794_v16 = vpack.c.bf16 %v12899_v26, %v12897_v4  ;;  %v12901_v57 = vpop.eup %12900  ;;  %v9076_v50 = vmul.f32 %v17399_v35, %v8988_v17 }
 0x77c   : > { %12914 = vtanh.f32 %v8587_v27  ;;  %v8591_v41 = vadd.f32 %v8590_v63, %v17322_v51  ;;  %9839 = vmatpush1.bf16.msra.mxu0 %v12595_v56  ;;  %v8913_v58 = vmul.f32 %v17341_v42, %v8825_v34  ;;  %v8919_v0 = vmul.f32 %v17357_v6, %v8831_v53  ;;  %v17445_v56 = vpop.permute.xlu1 %9044  ;;  %v12657_v53 = vld [vmem:[%s17866_s9 + $0x264] ss:$8 sps:$4 sm:$0xff]  }
 0x77d   : > { %v8592_v29 = vpop.f32.mrf.mxu1  ;;  %9840 = vmatprep.subr.bf16.mxu0 %v12603_v46  ;;  %v8826_v18 = vunpack.c.l.bf16 %v8794_v16  ;;  %v8832_v48 = vunpack.c.h.bf16 %v8794_v16  ;;  %v12903_v40 = vpop.eup %12902  ;;  %v8993_v63 = vunpack.c.l.bf16 %v13000_v43  ;;  %v13001_v16 = vld [vmem:[%s13333_s23 + $0x78] sm:$0xff] }
 0x77e   : > { %v8593_v22 = vadd.f32 %v8592_v29, %v17334_v2  ;;  %v9105_v39 = vadd.f32 %v9057_v59, %v8913_v58  ;;  %v9111_v45 = vadd.f32 %v9063_v9, %v8919_v0  ;;  %12916 = vtanh.f32 %v8591_v41  ;;  %v12652_v9 = vld [vmem:[%s17866_s9 + $0x270] ss:$8 sps:$4 sm:$0xff]   ;;  %v12621_v41 = vld [vmem:[%s17866_s9 + $0x1d4] ss:$8 sps:$4 sm:$0xff]  }
 0x77f   : > { %v12905_v47 = vpop.eup %12904  ;;  %v8594_v12 = vpop.f32.mrf.mxu1  ;;  %v8914_v49 = vmul.f32 %v17341_v42, %v8826_v18  ;;  %v8920_v23 = vmul.f32 %v17357_v6, %v8832_v48  ;;  %v9075_v59 = vmul.f32 %v17399_v35, %v8987_v36  ;;  %v8999_v62 = vunpack.c.l.bf16 %v13001_v16 }
 0x780   : > { %v8799_v52 = vpack.c.bf16 %v12905_v47, %v12901_v57  ;;  %v8595_v30 = vadd.f32 %v8594_v12, %v17322_v51  ;;  %9841 = vmatpush1.bf16.msra.mxu0 %v12601_v37  ;;  %12918 = vtanh.f32 %v8593_v22  ;;  %v9153_v13 = vpack.c.bf16 %v9111_v45, %v9105_v39  ;;  %v17473_v39 = vpop.permute.xlu0 %8905  ;;  %v17475_v45 = vpop.permute.xlu1 %8910  ;;  %v12627_v12 = vld [vmem:[%s17866_s9 + $0x1c4] ss:$8 sps:$4 sm:$0xff]  }
 0x781   : > { %v12907_v25 = vpop.eup %12906  ;;  %v8596_v11 = vpop.f32.mrf.mxu1  ;;  %9842 = vmatprep.subr.bf16.mxu0 %v12609_v7  ;;  %v9106_v38 = vadd.f32 %v9058_v60, %v8914_v49  ;;  %v9112_v4 = vadd.f32 %v9064_v15, %v8920_v23  ;;  %v8994_v48 = vunpack.c.h.bf16 %v13000_v43  ;;  %v9000_v60 = vunpack.c.h.bf16 %v13001_v16  ;;  %v12655_v15 = vld [vmem:[%s17866_s9 + $0x260] ss:$8 sps:$4 sm:$0xff]  }
 0x782   : > { %12920 = vtanh.f32 %v8595_v30  ;;  %v8597_v51 = vadd.f32 %v8596_v11, %v17334_v2  ;;  %v8800_v28 = vpack.c.bf16 %v12907_v25, %v12903_v40  ;;  %v8837_v21 = vunpack.c.l.bf16 %v8799_v52  ;;  %v12613_v2 = vld [vmem:[%s17866_s9 + $0x1e0] ss:$8 sps:$4 sm:$0xff]  }
 0x783   : > { %v9154_v26 = vpack.c.bf16 %v9112_v4, %v9106_v38  ;;  %v8843_v46 = vunpack.c.h.bf16 %v8799_v52  ;;  %v12909_v14 = vpop.eup %12908  ;;  %v9081_v23 = vmul.f32 %v17443_v19, %v8993_v63  ;;  %v9087_v17 = vmul.f32 %v17445_v56, %v8999_v62 }
 0x784   : > { %12922 = vtanh.f32 %v8597_v51  ;;  %9843 = vmatpush2.bf16.msra.mxu0 %v12607_v32  ;;  %v8838_v1 = vunpack.c.l.bf16 %v8800_v28  ;;  %v8844_v27 = vunpack.c.h.bf16 %v8800_v28  ;;  %v8925_v34 = vmul.f32 %v17376_v55, %v8837_v21 }
 0x785   : > { %9844 = vmatprep.subr.bf16.mxu0 %v12615_v5  ;;  %9785 = vmatprep.mubr.bf16.mxu1 %v9154_v26  ;;  %v8931_v37 = vmul.f32 %v17378_v10, %v8843_v46  ;;  %v12911_v58 = vpop.eup %12910  ;;  %v9082_v25 = vmul.f32 %v17443_v19, %v8994_v48  ;;  %v9088_v11 = vmul.f32 %v17445_v56, %v9000_v60  ;;  %v12658_v5 = vld [vmem:[%s17866_s9 + $0x250] ss:$8 sps:$4 sm:$0xff]   ;;  %v12633_v26 = vld [vmem:[%s17866_s9 + $0x1b4] ss:$8 sps:$4 sm:$0xff]  }
 0x786   : > { %9786 = vmatmul.mubr.bf16.vlgmr.msra.gmra.mxu1 %v9153_v13  ;;  %v8926_v0 = vmul.f32 %v17376_v55, %v8838_v1  ;;  %v8932_v57 = vmul.f32 %v17378_v10, %v8844_v27  ;;  %v9117_v29 = vadd.f32 %v9069_v8, %v8925_v34  ;;  %v12625_v13 = vld [vmem:[%s17866_s9 + $0x1c0] ss:$8 sps:$4 sm:$0xff]  }
 0x787   : > { %v12913_v7 = vpop.eup %12912  ;;  %v9123_v18 = vadd.f32 %v9075_v59, %v8931_v37  ;;  %9900 = vmatpush1.bf16.msra.mxu1 %v12652_v9  ;;  %v13003_v59 = vld [vmem:[%s13333_s23 + $0xa8] sm:$0xff] }
 0x788   : > { %v8805_v40 = vpack.c.bf16 %v12913_v7, %v12909_v14  ;;  %9845 = vmatpush2.bf16.msra.mxu0 %v12613_v2  ;;  %v9118_v36 = vadd.f32 %v9070_v20, %v8926_v0  ;;  %v9124_v22 = vadd.f32 %v9076_v50, %v8932_v57  ;;  %9901 = vmatprep.subr.bf16.mxu1 %v12657_v53  ;;  %v12660_v20 = vld [vmem:[%s17866_s9 + $0x254] ss:$8 sps:$4 sm:$0xff]   ;;  %v9011_v9 = vunpack.c.l.bf16 %v13003_v59  ;;  %v12663_v2 = vld [vmem:[%s17866_s9 + $0x244] ss:$8 sps:$4 sm:$0xff]   ;;  %v17505_v53 = vpop.permute.xlu0 %9049  ;;  %v17507_v14 = vpop.permute.xlu1 %9054  ;;  %v12661_v37 = vld [vmem:[%s17866_s9 + $0x240] ss:$8 sps:$4 sm:$0xff]  }
 0x789   : > { %v12915_v47 = vpop.eup %12914  ;;  %9846 = vmatprep.subr.bf16.mxu0 %v12621_v41  ;;  %v9159_v49 = vpack.c.bf16 %v9123_v18, %v9117_v29  ;;  %v13002_v50 = vld [vmem:[%s13333_s23 + $0x90] sm:$0xff]  ;;  %v9012_v41 = vunpack.c.h.bf16 %v13003_v59  ;;  %v12639_v18 = vld [vmem:[%s17866_s9 + $0x1a4] ss:$8 sps:$4 sm:$0xff]  }
 0x78a   : > { %v9160_v52 = vpack.c.bf16 %v9124_v22, %v9118_v36  ;;  %v8806_v30 = vpack.c.bf16 %v12915_v47, %v12911_v58  ;;  %v8849_v32 = vunpack.c.l.bf16 %v8805_v40  ;;  %v8855_v8 = vunpack.c.h.bf16 %v8805_v40  ;;  %v12631_v0 = vld [vmem:[%s17866_s9 + $0x1b0] ss:$8 sps:$4 sm:$0xff]   ;;  %v12666_v40 = vld [vmem:[%s17866_s9 + $0x234] ss:$8 sps:$4 sm:$0xff]  }
 0x78b   : > { %9902 = vmatpush1.bf16.msra.mxu1 %v12655_v15  ;;  %v12917_v21 = vpop.eup %12916  ;;  %v9005_v46 = vunpack.c.l.bf16 %v13002_v50  ;;  %v9006_v62 = vunpack.c.h.bf16 %v13002_v50  ;;  %v9099_v60 = vmul.f32 %v17507_v14, %v9011_v9  ;;  %v12672_v50 = vld [vmem:[%s17866_s9 + $0x214] ss:$8 sps:$4 sm:$0xff]   ;;  %v12670_v9 = vld [vmem:[%s17866_s9 + $0x210] ss:$8 sps:$4 sm:$0xff]  }
 0x78c   : > { %9847 = vmatpush2.bf16.msra.mxu0 %v12619_v33  ;;  %9795 = vmatprep.mubr.bf16.mxu1 %v9160_v52  ;;  %v8850_v38 = vunpack.c.l.bf16 %v8806_v30  ;;  %v8856_v4 = vunpack.c.h.bf16 %v8806_v30  ;;  %v8937_v51 = vmul.f32 %v17420_v61, %v8849_v32  ;;  %v8943_v28 = vmul.f32 %v17422_v54, %v8855_v8  ;;  %v12669_v8 = vld [vmem:[%s17866_s9 + $0x224] ss:$8 sps:$4 sm:$0xff]  }
 0x78d   : > { %9848 = vmatprep.subr.bf16.mxu0 %v12627_v12  ;;  %9903 = vmatprep.subr.bf16.mxu1 %v12660_v20  ;;  %v12919_v1 = vpop.eup %12918  ;;  %v9093_v48 = vmul.f32 %v17505_v53, %v9005_v46  ;;  %v9094_v12 = vmul.f32 %v17505_v53, %v9006_v62 }
 0x78e   : > { %9796 = vmatmul.mubr.bf16.gmra.mxu1 %v9159_v49  ;;  %v8938_v27 = vmul.f32 %v17420_v61, %v8850_v38  ;;  %v8944_v34 = vmul.f32 %v17422_v54, %v8856_v4  ;;  %v9129_v43 = vadd.f32 %v9081_v23, %v8937_v51  ;;  %v9135_v63 = vadd.f32 %v9087_v17, %v8943_v28  ;;  %v12664_v23 = vld [vmem:[%s17866_s9 + $0x230] ss:$8 sps:$4 sm:$0xff]   ;;  %v12637_v17 = vld [vmem:[%s17866_s9 + $0x1a0] ss:$8 sps:$4 sm:$0xff]  }
 0x78f   : > { %v12921_v16 = vpop.eup %12920  ;;  %9904 = vmatpush1.bf16.msra.mxu1 %v12658_v5  ;;  %v9100_v49 = vmul.f32 %v17507_v14, %v9012_v41  ;;  %v12667_v4 = vld [vmem:[%s17866_s9 + $0x220] ss:$8 sps:$4 sm:$0xff]   ;;  %v12643_v51 = vld [vmem:[%s17866_s9 + $0x190] ss:$8 sps:$4 sm:$0xff]  }
 0x790   : > { %v8811_v58 = vpack.c.bf16 %v12921_v16, %v12917_v21  ;;  %9849 = vmatpush2.bf16.msra.mxu0 %v12625_v13  ;;  %v9130_v57 = vadd.f32 %v9082_v25, %v8938_v27  ;;  %v9136_v29 = vadd.f32 %v9088_v11, %v8944_v34  ;;  %v9165_v15 = vpack.c.bf16 %v9135_v63, %v9129_v43  ;;  %v12645_v25 = vld [vmem:[%s17866_s9 + $0x194] ss:$8 sps:$4 sm:$0xff]   ;;  %v12673_v27 = vld [vmem:[%s17866_s9 + $0x200] ss:$8 sps:$4 sm:$0xff]   ;;  %v12676_v16 = vld [vmem:[%s17866_s9 + $0x2f0] ss:$8 sps:$4 sm:$0xff]  }
 0x791   : > { %v12923_v7 = vpop.eup %12922  ;;  %9850 = vmatprep.subr.bf16.mxu0 %v12633_v26  ;;  %9905 = vmatprep.subr.bf16.mxu1 %v12663_v2  ;;  %v12651_v26 = vld [vmem:[%s17866_s9 + $0x184] ss:$8 sps:$4 sm:$0xff]   ;;  %v12649_v2 = vld [vmem:[%s17866_s9 + $0x180] ss:$8 sps:$4 sm:$0xff]   ;;  %v17933_v34 = vld [vmem:[#allocation10_spill] sm:$0xff] }
 0x792   : > { %v9166_v33 = vpack.c.bf16 %v9136_v29, %v9130_v57  ;;  %v8812_v36 = vpack.c.bf16 %v12923_v7, %v12919_v1  ;;  %v8861_v22 = vunpack.c.l.bf16 %v8811_v58  ;;  %v8867_v47 = vunpack.c.h.bf16 %v8811_v58  ;;  %v12675_v1 = vld [vmem:[%s17866_s9 + $0x204] ss:$8 sps:$4 sm:$0xff]   ;;  %v12678_v63 = vld [vmem:[%s17866_s9 + $0x2f4] ss:$8 sps:$4 sm:$0xff]   ;;  %v12679_v29 = vld [vmem:[%s17866_s9 + $0x2e0] ss:$8 sps:$4 sm:$0xff]  }
 0x793   : > { %9906 = vmatpush1.bf16.msra.mxu1 %v12661_v37  ;;  %v17567_v43 = vrot.slane %v17312_v3, %v17933_v34  ;;  %v17934_v41 = vld [vmem:[#allocation11_spill] sm:$0xff]  ;;  %v12681_v57 = vld [vmem:[%s17866_s9 + $0x2e4] ss:$8 sps:$4 sm:$0xff]  }
 0x794   : > { %9851 = vmatpush2.bf16.msra.mxu0 %v12631_v0  ;;  %9805 = vmatprep.mubr.bf16.mxu1 %v9166_v33  ;;  %v8862_v20 = vunpack.c.l.bf16 %v8812_v36  ;;  %v8868_v52 = vunpack.c.h.bf16 %v8812_v36  ;;  %v8949_v30 = vmul.f32 %v17473_v39, %v8861_v22  ;;  %v8955_v32 = vmul.f32 %v17475_v45, %v8867_v47  ;;  %v12682_v33 = vld [vmem:[%s17866_s9 + $0x2d0] ss:$8 sps:$4 sm:$0xff]  }
 0x795   : > { %9852 = vmatprep.subr.bf16.mxu0 %v12639_v18  ;;  %9907 = vmatprep.subr.bf16.mxu1 %v12666_v40  ;;  %v17577_v37 = vrot.slane %v17312_v3, %v17934_v41 }
 0x796   : > { %9806 = vmatmul.mubr.bf16.gmra.mxu1 %v9165_v15  ;;  %v8950_v11 = vmul.f32 %v17473_v39, %v8862_v20  ;;  %v8956_v5 = vmul.f32 %v17475_v45, %v8868_v52  ;;  %v9141_v13 = vadd.f32 %v9093_v48, %v8949_v30  ;;  %v9147_v38 = vadd.f32 %v9099_v60, %v8955_v32  ;;  %v12684_v15 = vld [vmem:[%s17866_s9 + $0x2d4] ss:$8 sps:$4 sm:$0xff]  }
 0x797   : > { %9908 = vmatpush1.bf16.msra.mxu1 %v12664_v23  ;;  %v12685_v23 = vld [vmem:[%s17866_s9 + $0x2c0] ss:$8 sps:$4 sm:$0xff]   ;;  %v12690_v30 = vld [vmem:[%s17866_s9 + $0x2b4] ss:$8 sps:$4 sm:$0xff]  }
 0x798   : > { %9853 = vmatpush2.bf16.msra.mxu0 %v12637_v17  ;;  %v9142_v28 = vadd.f32 %v9094_v12, %v8950_v11  ;;  %v9148_v21 = vadd.f32 %v9100_v49, %v8956_v5  ;;  %9909 = vmatprep.subr.bf16.mxu1 %v12669_v8  ;;  %v9171_v59 = vpack.c.bf16 %v9147_v38, %v9141_v13  ;;  %v12687_v12 = vld [vmem:[%s17866_s9 + $0x2c4] ss:$8 sps:$4 sm:$0xff]   ;;  %v12688_v8 = vld [vmem:[%s17866_s9 + $0x2b0] ss:$8 sps:$4 sm:$0xff]  }
 0x799   : > { %9854 = vmatprep.subr.bf16.mxu0 %v12645_v25  ;;  %v13004_v13 = vld [vmem:[%s13333_s23 + $0x8] sm:$0xff] }
 0x79a   : > { %v9172_v46 = vpack.c.bf16 %v9148_v21, %v9142_v28  ;;  %v8971_v38 = vunpack.c.l.bf16 %v13004_v13  ;;  %v12693_v21 = vld [vmem:[%s17866_s9 + $0x2a4] ss:$8 sps:$4 sm:$0xff]  }
 0x79b   : > { %9910 = vmatpush1.bf16.msra.mxu1 %v12667_v4  ;;  %v13005_v4 = vld [vmem:[%s13333_s23 + $0x20] sm:$0xff] }
 0x79c   : > { %9855 = vmatpush2.bf16.msra.mxu0 %v12643_v51  ;;  %9815 = vmatprep.mubr.bf16.mxu1 %v9172_v46  ;;  %v8977_v51 = vunpack.c.l.bf16 %v13005_v4  ;;  %v8978_v41 = vunpack.c.h.bf16 %v13005_v4 }
 0x79d   : > { %9856 = vmatprep.subr.bf16.mxu0 %v12651_v26  ;;  %9911 = vmatprep.subr.bf16.mxu1 %v12672_v50  ;;  %v12691_v50 = vld [vmem:[%s17866_s9 + $0x2a0] ss:$8 sps:$4 sm:$0xff]  }
 0x79e   : > { %9816 = vmatmul.mubr.bf16.gmra.mxu1 %v9171_v59 }
 0x79f   : > { %9912 = vmatpush1.bf16.msra.mxu1 %v12670_v9 }
 0x7a0   : > { %9857 = vmatpush2.bf16.msra.mxu0 %v12649_v2  ;;  %9913 = vmatprep.subr.bf16.mxu1 %v12675_v1 }
 0x7a3   : > { %9914 = vmatpush1.bf16.msra.mxu1 %v12673_v27  ;;  %v8972_v27 = vunpack.c.h.bf16 %v13004_v13  ;;  %v12697_v13 = vld [vmem:[%s17866_s9 + $0x280] ss:$8 sps:$4 sm:$0xff]  }
 0x7a4   : > { %9915 = vmatprep.subr.bf16.mxu1 %v12678_v63  ;;  %v9059_v63 = vmul.f32 %v17343_v24, %v8971_v38 }
 0x7a5   : > { %v8633_v62 = vpop.f32.mrf.mxu1 }
 0x7a6   : > { %v8634_v58 = vadd.f32 %v8633_v62, %v17567_v43  ;;  %v9065_v62 = vmul.f32 %v17359_v31, %v8977_v51 }
 0x7a7   : > { %v8635_v0 = vpop.f32.mrf.mxu1  ;;  %9916 = vmatpush2.bf16.msra.mxu1 %v12676_v16 }
 0x7a8   : > { %v8636_v7 = vadd.f32 %v8635_v0, %v17577_v37  ;;  %9917 = vmatprep.subr.bf16.mxu1 %v12681_v57  ;;  %12924 = vtanh.f32 %v8634_v58  ;;  %v12696_v58 = vld [vmem:[%s17866_s9 + $0x294] ss:$8 sps:$4 sm:$0xff]  }
 0x7a9   : > { %v8637_v18 = vpop.f32.mrf.mxu1 }
 0x7aa   : > { %v8638_v48 = vadd.f32 %v8637_v18, %v17567_v43  ;;  %v13006_v18 = vld [vmem:[%s13333_s23 + $0x38] sm:$0xff] }
 0x7ab   : > { %v8639_v60 = vpop.f32.mrf.mxu1  ;;  %9918 = vmatpush2.bf16.msra.mxu1 %v12679_v29 }
 0x7ac   : > { %12926 = vtanh.f32 %v8638_v48  ;;  %v8640_v40 = vadd.f32 %v8639_v60, %v17577_v37  ;;  %9919 = vmatprep.subr.bf16.mxu1 %v12684_v15  ;;  %v8983_v48 = vunpack.c.l.bf16 %v13006_v18 }
 0x7ad   : > { %12928 = vtanh.f32 %v8636_v7  ;;  %v8643_v36 = vpop.f32.mrf.mxu1  ;;  %v12694_v7 = vld [vmem:[%s17866_s9 + $0x290] ss:$8 sps:$4 sm:$0xff]  }
 0x7ae   : > { %12930 = vtanh.f32 %v8640_v40  ;;  %v8644_v22 = vadd.f32 %v8643_v36, %v17567_v43  ;;  %v8984_v40 = vunpack.c.h.bf16 %v13006_v18 }
 0x7af   : > { %v8645_v47 = vpop.f32.mrf.mxu1  ;;  %9920 = vmatpush2.bf16.msra.mxu1 %v12682_v33 }
 0x7b0   : > { %v8646_v49 = vadd.f32 %v8645_v47, %v17577_v37  ;;  %9921 = vmatprep.subr.bf16.mxu1 %v12687_v12  ;;  %12932 = vtanh.f32 %v8644_v22 }
 0x7b1   : > { %v8647_v17 = vpop.f32.mrf.mxu1 }
 0x7b2   : > { %v8648_v20 = vadd.f32 %v8647_v17, %v17567_v43  ;;  %12934 = vtanh.f32 %v8646_v49  ;;  %v9060_v17 = vmul.f32 %v17343_v24, %v8972_v27 }
 0x7b3   : > { %v8649_v52 = vpop.f32.mrf.mxu1  ;;  %9922 = vmatpush2.bf16.msra.mxu1 %v12685_v23 }
 0x7b4   : > { %12936 = vtanh.f32 %v8648_v20  ;;  %v8650_v32 = vadd.f32 %v8649_v52, %v17577_v37  ;;  %9923 = vmatprep.subr.bf16.mxu1 %v12690_v30  ;;  %v9066_v20 = vmul.f32 %v17359_v31, %v8978_v41  ;;  %v12699_v52 = vld [vmem:[%s17866_s9 + $0x284] ss:$8 sps:$4 sm:$0xff]  }
 0x7b5   : > { %v8653_v25 = vpop.f32.mrf.mxu1  ;;  %v12925_v5 = vpop.eup %12924 }
 0x7b6   : > { %12938 = vtanh.f32 %v8650_v32  ;;  %v8654_v11 = vadd.f32 %v8653_v25, %v17567_v43  ;;  %v13007_v32 = vld [vmem:[%s13333_s23 + $0x50] sm:$0xff] }
 0x7b7   : > { %v8655_v28 = vpop.f32.mrf.mxu1  ;;  %9924 = vmatpush2.bf16.msra.mxu1 %v12688_v8  ;;  %v8989_v8 = vunpack.c.l.bf16 %v13007_v32 }
 0x7b8   : > { %v8656_v26 = vadd.f32 %v8655_v28, %v17577_v37  ;;  %9925 = vmatprep.subr.bf16.mxu1 %v12693_v21  ;;  %12940 = vtanh.f32 %v8654_v11  ;;  %v8990_v21 = vunpack.c.h.bf16 %v13007_v32 }
 0x7b9   : > { %v12927_v46 = vpop.eup %12926  ;;  %v8657_v59 = vpop.f32.mrf.mxu1 }
 0x7ba   : > { %v12929_v9 = vpop.eup %12928  ;;  %v8795_v2 = vpack.c.bf16 %v12927_v46, %v12925_v5  ;;  %v8658_v1 = vadd.f32 %v8657_v59, %v17567_v43  ;;  %12942 = vtanh.f32 %v8656_v26  ;;  %v9072_v26 = vmul.f32 %v17397_v44, %v8984_v40 }
 0x7bb   : > { %v12931_v34 = vpop.eup %12930  ;;  %v8659_v16 = vpop.f32.mrf.mxu1  ;;  %9926 = vmatpush2.bf16.msra.mxu1 %v12691_v50 }
 0x7bc   : > { %12944 = vtanh.f32 %v8658_v1  ;;  %v8827_v0 = vunpack.c.l.bf16 %v8795_v2  ;;  %v8660_v57 = vadd.f32 %v8659_v16, %v17577_v37  ;;  %v8833_v29 = vunpack.c.h.bf16 %v8795_v2  ;;  %9927 = vmatprep.subr.bf16.mxu1 %v12696_v58 }
 0x7bd   : > { %v8663_v60 = vpop.f32.mrf.mxu1  ;;  %v8796_v15 = vpack.c.bf16 %v12931_v34, %v12929_v9  ;;  %v12933_v47 = vpop.eup %12932  ;;  %v9071_v34 = vmul.f32 %v17397_v44, %v8983_v48  ;;  %v9078_v58 = vmul.f32 %v17399_v35, %v8990_v21  ;;  %v13008_v48 = vld [vmem:[%s13333_s23 + $0x68] sm:$0xff] }
 0x7be   : > { %v8915_v33 = vmul.f32 %v17341_v42, %v8827_v0  ;;  %12946 = vtanh.f32 %v8660_v57  ;;  %v8664_v36 = vadd.f32 %v8663_v60, %v17567_v43  ;;  %v8921_v22 = vmul.f32 %v17357_v6, %v8833_v29 }
 0x7bf   : > { %v8665_v12 = vpop.f32.mrf.mxu1  ;;  %v8828_v49 = vunpack.c.l.bf16 %v8796_v15  ;;  %v8834_v23 = vunpack.c.h.bf16 %v8796_v15  ;;  %9928 = vmatpush2.bf16.msra.mxu1 %v12694_v7  ;;  %v12935_v30 = vpop.eup %12934  ;;  %v8995_v60 = vunpack.c.l.bf16 %v13008_v48  ;;  %v13009_v15 = vld [vmem:[%s13333_s23 + $0x80] sm:$0xff] }
 0x7c0   : > { %v9107_v25 = vadd.f32 %v9059_v63, %v8915_v33  ;;  %v9113_v11 = vadd.f32 %v9065_v62, %v8921_v22  ;;  %v8666_v5 = vadd.f32 %v8665_v12, %v17577_v37  ;;  %9929 = vmatprep.subr.bf16.mxu1 %v12699_v52  ;;  %12948 = vtanh.f32 %v8664_v36 }
 0x7c1   : > { %v12937_v38 = vpop.eup %12936  ;;  %v8667_v4 = vpop.f32.mrf.mxu1  ;;  %v8916_v51 = vmul.f32 %v17341_v42, %v8828_v49  ;;  %v8922_v28 = vmul.f32 %v17357_v6, %v8834_v23  ;;  %v9001_v40 = vunpack.c.l.bf16 %v13009_v15  ;;  %v8996_v23 = vunpack.c.h.bf16 %v13008_v48 }
 0x7c2   : > { %v8801_v50 = vpack.c.bf16 %v12937_v38, %v12933_v47  ;;  %v9155_v46 = vpack.c.bf16 %v9113_v11, %v9107_v25  ;;  %v8668_v59 = vadd.f32 %v8667_v4, %v17567_v43  ;;  %12950 = vtanh.f32 %v8666_v5 }
 0x7c3   : > { %v12939_v9 = vpop.eup %12938  ;;  %v8669_v2 = vpop.f32.mrf.mxu1  ;;  %v9108_v1 = vadd.f32 %v9060_v17, %v8916_v51  ;;  %v9114_v27 = vadd.f32 %v9066_v20, %v8922_v28  ;;  %9930 = vmatpush2.bf16.msra.mxu1 %v12697_v13  ;;  %v9077_v43 = vmul.f32 %v17399_v35, %v8989_v8  ;;  %v9002_v17 = vunpack.c.h.bf16 %v13009_v15 }
 0x7c4   : > { %12952 = vtanh.f32 %v8668_v59  ;;  %v8670_v63 = vadd.f32 %v8669_v2, %v17577_v37  ;;  %v8802_v16 = vpack.c.bf16 %v12939_v9, %v12935_v30  ;;  %v8839_v62 = vunpack.c.l.bf16 %v8801_v50  ;;  %v13010_v9 = vld [vmem:[%s13333_s23 + $0x98] sm:$0xff] }
 0x7c5   : > { %v9156_v41 = vpack.c.bf16 %v9114_v27, %v9108_v1  ;;  %v8845_v0 = vunpack.c.h.bf16 %v8801_v50  ;;  %v12941_v18 = vpop.eup %12940  ;;  %v9083_v25 = vmul.f32 %v17443_v19, %v8995_v60  ;;  %v9089_v11 = vmul.f32 %v17445_v56, %v9001_v40  ;;  %v13011_v1 = vld [vmem:[%s13333_s23 + $0xb0] sm:$0xff] }
 0x7c6   : > { %12954 = vtanh.f32 %v8670_v63  ;;  %v8840_v57 = vunpack.c.l.bf16 %v8802_v16  ;;  %v8846_v29 = vunpack.c.h.bf16 %v8802_v16  ;;  %v8927_v7 = vmul.f32 %v17376_v55, %v8839_v62 }
 0x7c7   : > { %9858 = vmatprep.mubr.bf16.mxu0 %v9156_v41  ;;  %v8933_v37 = vmul.f32 %v17378_v10, %v8845_v0  ;;  %v12943_v33 = vpop.eup %12942  ;;  %v9084_v51 = vmul.f32 %v17443_v19, %v8996_v23  ;;  %v9090_v28 = vmul.f32 %v17445_v56, %v9002_v17  ;;  %v9007_v2 = vunpack.c.l.bf16 %v13010_v9 }
 0x7c8   : > { %9859 = vmatmul.mubr.bf16.vlgmr.msra.gmra.mxu0 %v9155_v46  ;;  %v8928_v36 = vmul.f32 %v17376_v55, %v8840_v57  ;;  %v8934_v22 = vmul.f32 %v17378_v10, %v8846_v29  ;;  %v9119_v47 = vadd.f32 %v9071_v34, %v8927_v7  ;;  %v9013_v27 = vunpack.c.l.bf16 %v13011_v1 }
 0x7c9   : > { %v12945_v12 = vpop.eup %12944  ;;  %v9125_v49 = vadd.f32 %v9077_v43, %v8933_v37  ;;  %v9008_v0 = vunpack.c.h.bf16 %v13010_v9  ;;  %v9014_v43 = vunpack.c.h.bf16 %v13011_v1  ;;  %v9095_v60 = vmul.f32 %v17505_v53, %v9007_v2 }
 0x7ca   : > { %v8807_v20 = vpack.c.bf16 %v12945_v12, %v12941_v18  ;;  %v9120_v52 = vadd.f32 %v9072_v26, %v8928_v36  ;;  %v9126_v30 = vadd.f32 %v9078_v58, %v8934_v22  ;;  %v9101_v15 = vmul.f32 %v17507_v14, %v9013_v27 }
 0x7cb   : > { %v12947_v32 = vpop.eup %12946  ;;  %v9161_v8 = vpack.c.bf16 %v9125_v49, %v9119_v47  ;;  %v9096_v22 = vmul.f32 %v17505_v53, %v9008_v0  ;;  %v9102_v47 = vmul.f32 %v17507_v14, %v9014_v43 }
 0x7cc   : > { %v9162_v5 = vpack.c.bf16 %v9126_v30, %v9120_v52  ;;  %v8808_v13 = vpack.c.bf16 %v12947_v32, %v12943_v33  ;;  %v8851_v38 = vunpack.c.l.bf16 %v8807_v20  ;;  %v8857_v4 = vunpack.c.h.bf16 %v8807_v20 }
 0x7cd   : > { %v12949_v59 = vpop.eup %12948 }
 0x7ce   : > { %9868 = vmatprep.mubr.bf16.mxu0 %v9162_v5  ;;  %v8852_v21 = vunpack.c.l.bf16 %v8808_v13  ;;  %v8858_v26 = vunpack.c.h.bf16 %v8808_v13  ;;  %v8939_v50 = vmul.f32 %v17420_v61, %v8851_v38  ;;  %v8945_v46 = vmul.f32 %v17422_v54, %v8857_v4  ;;  %v17935_v13 = vld [vmem:[#allocation13_spill] sm:$0xff] }
 0x7cf   : > { %v12951_v34 = vpop.eup %12950  ;;  %v17679_v38 = vrot.slane %v17312_v3, %v17935_v13 }
 0x7d0   : > { %9869 = vmatmul.mubr.bf16.gmra.mxu0 %v9161_v8  ;;  %v8940_v63 = vmul.f32 %v17420_v61, %v8852_v21  ;;  %v8946_v16 = vmul.f32 %v17422_v54, %v8858_v26  ;;  %v9131_v62 = vadd.f32 %v9083_v25, %v8939_v50  ;;  %v9137_v41 = vadd.f32 %v9089_v11, %v8945_v46 }
 0x7d1   : > { %v12953_v58 = vpop.eup %12952 }
 0x7d2   : > { %v8813_v57 = vpack.c.bf16 %v12953_v58, %v12949_v59  ;;  %v9132_v29 = vadd.f32 %v9084_v51, %v8940_v63  ;;  %v9138_v7 = vadd.f32 %v9090_v28, %v8946_v16  ;;  %v9167_v18 = vpack.c.bf16 %v9137_v41, %v9131_v62  ;;  %v17936_v28 = vld [vmem:[#allocation12_spill] sm:$0xff] }
 0x7d3   : > { %v12955_v48 = vpop.eup %12954  ;;  %v17684_v21 = vrot.slane %v17312_v3, %v17936_v28 }
 0x7d4   : > { %v9168_v40 = vpack.c.bf16 %v9138_v7, %v9132_v29  ;;  %v8814_v37 = vpack.c.bf16 %v12955_v48, %v12951_v34  ;;  %v8863_v33 = vunpack.c.l.bf16 %v8813_v57  ;;  %v8869_v36 = vunpack.c.h.bf16 %v8813_v57  ;;  %v13012_v7 = vld [vmem:[%s13333_s23 + $0x10] sm:$0xff] }
 0x7d6   : > { %9878 = vmatprep.mubr.bf16.mxu0 %v9168_v40  ;;  %v8864_v12 = vunpack.c.l.bf16 %v8814_v37  ;;  %v8870_v49 = vunpack.c.h.bf16 %v8814_v37  ;;  %v8951_v23 = vmul.f32 %v17473_v39, %v8863_v33  ;;  %v8957_v17 = vmul.f32 %v17475_v45, %v8869_v36 }
 0x7d8   : > { %9879 = vmatmul.mubr.bf16.gmra.mxu0 %v9167_v18  ;;  %v8952_v20 = vmul.f32 %v17473_v39, %v8864_v12  ;;  %v8958_v52 = vmul.f32 %v17475_v45, %v8870_v49  ;;  %v9143_v30 = vadd.f32 %v9095_v60, %v8951_v23  ;;  %v9149_v32 = vadd.f32 %v9101_v15, %v8957_v17  ;;  %v13013_v15 = vld [vmem:[%s13333_s23 + $0x28] sm:$0xff] }
 0x7d9   : > { %v8973_v18 = vunpack.c.l.bf16 %v13012_v7  ;;  %v8979_v40 = vunpack.c.l.bf16 %v13013_v15 }
 0x7da   : > { %v9144_v8 = vadd.f32 %v9096_v22, %v8952_v20  ;;  %v9150_v25 = vadd.f32 %v9102_v47, %v8958_v52  ;;  %v9173_v11 = vpack.c.bf16 %v9149_v32, %v9143_v30  ;;  %v8974_v47 = vunpack.c.h.bf16 %v13012_v7 }
 0x7db   : > { %v9061_v20 = vmul.f32 %v17343_v24, %v8973_v18  ;;  %v8980_v32 = vunpack.c.h.bf16 %v13013_v15 }
 0x7dc   : > { %v9174_v5 = vpack.c.bf16 %v9150_v25, %v9144_v8  ;;  %v9067_v8 = vmul.f32 %v17359_v31, %v8979_v40 }
 0x7de   : > { %9888 = vmatprep.mubr.bf16.mxu0 %v9174_v5  ;;  %v13014_v5 = vld [vmem:[%s13333_s23 + $0x40] sm:$0xff] }
 0x7df   : > { %v8985_v13 = vunpack.c.l.bf16 %v13014_v5 }
 0x7e0   : > { %9889 = vmatmul.mubr.bf16.gmra.mxu0 %v9173_v11 }
 0x7e1   : > { %v9073_v40 = vmul.f32 %v17397_v44, %v8985_v13 }
 0x823   : > { %v8706_v4 = vpop.f32.mrf.mxu0 }
 0x824   : > { %v8707_v51 = vadd.f32 %v8706_v4, %v17679_v38 }
 0x825   : > { %v8708_v26 = vpop.f32.mrf.mxu0 }
 0x826   : > { %12956 = vtanh.f32 %v8707_v51  ;;  %v8709_v59 = vadd.f32 %v8708_v26, %v17684_v21 }
 0x827   : > { %v8710_v50 = vpop.f32.mrf.mxu0 }
 0x828   : > { %v8711_v46 = vadd.f32 %v8710_v50, %v17679_v38 }
 0x829   : > { %v8712_v9 = vpop.f32.mrf.mxu0 }
 0x82a   : > { %12958 = vtanh.f32 %v8711_v46  ;;  %v8713_v2 = vadd.f32 %v8712_v9, %v17684_v21  ;;  %v13015_v46 = vld [vmem:[%s13333_s23 + $0x58] sm:$0xff]  ;;  %v9062_v9 = vmul.f32 %v17343_v24, %v8974_v47 }
 0x82b   : > { %v8716_v1 = vpop.f32.mrf.mxu0 }
 0x82c   : > { %12960 = vtanh.f32 %v8713_v2  ;;  %v8717_v27 = vadd.f32 %v8716_v1, %v17679_v38 }
 0x82d   : > { %12962 = vtanh.f32 %v8709_v59  ;;  %v8718_v34 = vpop.f32.mrf.mxu0  ;;  %v8991_v59 = vunpack.c.l.bf16 %v13015_v46 }
 0x82e   : > { %v8719_v3 = vadd.f32 %v8718_v34, %v17684_v21  ;;  %12964 = vtanh.f32 %v8717_v27 }
 0x82f   : > { %v8720_v63 = vpop.f32.mrf.mxu0 }
 0x830   : > { %v8721_v16 = vadd.f32 %v8720_v63, %v17679_v38 }
 0x831   : > { %v8722_v62 = vpop.f32.mrf.mxu0 }
 0x832   : > { %12966 = vtanh.f32 %v8721_v16  ;;  %v8723_v41 = vadd.f32 %v8722_v62, %v17684_v21  ;;  %v9068_v62 = vmul.f32 %v17359_v31, %v8980_v32  ;;  %v13017_v32 = vld [vmem:[%s13333_s23 + $0x88] sm:$0xff] }
 0x833   : > { %12968 = vtanh.f32 %v8719_v3  ;;  %v8726_v58 = vpop.f32.mrf.mxu0  ;;  %v12957_v57 = vpop.eup %12956 }
 0x834   : > { %12970 = vtanh.f32 %v8723_v41  ;;  %v8727_v0 = vadd.f32 %v8726_v58, %v17679_v38 }
 0x835   : > { %v8728_v43 = vpop.f32.mrf.mxu0 }
 0x836   : > { %v8729_v48 = vadd.f32 %v8728_v43, %v17684_v21  ;;  %12972 = vtanh.f32 %v8727_v0 }
 0x837   : > { %v12959_v29 = vpop.eup %12958  ;;  %v8730_v60 = vpop.f32.mrf.mxu0 }
 0x838   : > { %v8797_v37 = vpack.c.bf16 %v12959_v29, %v12957_v57  ;;  %v8731_v33 = vadd.f32 %v8730_v60, %v17679_v38  ;;  %v8986_v57 = vunpack.c.h.bf16 %v13014_v5 }
 0x839   : > { %v12961_v36 = vpop.eup %12960  ;;  %v8732_v22 = vpop.f32.mrf.mxu0 }
 0x83a   : > { %v12963_v12 = vpop.eup %12962  ;;  %v8829_v49 = vunpack.c.l.bf16 %v8797_v37  ;;  %v8835_v23 = vunpack.c.h.bf16 %v8797_v37  ;;  %12974 = vtanh.f32 %v8731_v33  ;;  %v8733_v17 = vadd.f32 %v8732_v22, %v17684_v21 }
 0x83b   : > { %12976 = vtanh.f32 %v8729_v48  ;;  %v8736_v52 = vpop.f32.mrf.mxu0  ;;  %v8798_v30 = vpack.c.bf16 %v12961_v36, %v12963_v12  ;;  %v12965_v50 = vpop.eup %12964  ;;  %v8992_v48 = vunpack.c.h.bf16 %v13015_v46  ;;  %v9074_v36 = vmul.f32 %v17397_v44, %v8986_v57 }
 0x83c   : > { %v8917_v25 = vmul.f32 %v17341_v42, %v8829_v49  ;;  %v8923_v11 = vmul.f32 %v17357_v6, %v8835_v23  ;;  %12978 = vtanh.f32 %v8733_v17  ;;  %v8737_v4 = vadd.f32 %v8736_v52, %v17679_v38  ;;  %v13016_v52 = vld [vmem:[%s13333_s23 + $0x70] sm:$0xff] }
 0x83d   : > { %v8738_v51 = vpop.f32.mrf.mxu0  ;;  %v8830_v28 = vunpack.c.l.bf16 %v8798_v30  ;;  %v8836_v26 = vunpack.c.h.bf16 %v8798_v30  ;;  %v9080_v23 = vmul.f32 %v17399_v35, %v8992_v48  ;;  %v8997_v30 = vunpack.c.l.bf16 %v13016_v52 }
 0x83e   : > { %v9109_v2 = vadd.f32 %v9061_v20, %v8917_v25  ;;  %v9115_v1 = vadd.f32 %v9067_v8, %v8923_v11  ;;  %v8739_v34 = vadd.f32 %v8738_v51, %v17684_v21  ;;  %12980 = vtanh.f32 %v8737_v4 }
 0x83f   : > { %v12967_v27 = vpop.eup %12966  ;;  %v8740_v3 = vpop.f32.mrf.mxu0  ;;  %v8918_v63 = vmul.f32 %v17341_v42, %v8830_v28  ;;  %v8924_v16 = vmul.f32 %v17357_v6, %v8836_v26  ;;  %v9003_v8 = vunpack.c.l.bf16 %v13017_v32  ;;  %v8998_v28 = vunpack.c.h.bf16 %v13016_v52 }
 0x840   : > { %v12969_v41 = vpop.eup %12968  ;;  %v8803_v58 = vpack.c.bf16 %v12967_v27, %v12965_v50  ;;  %v8741_v0 = vadd.f32 %v8740_v3, %v17679_v38  ;;  %v9157_v43 = vpack.c.bf16 %v9115_v1, %v9109_v2  ;;  %v9004_v26 = vunpack.c.h.bf16 %v13017_v32 }
 0x841   : > { %v12971_v29 = vpop.eup %12970  ;;  %v8742_v24 = vpop.f32.mrf.mxu0  ;;  %v9110_v7 = vadd.f32 %v9062_v9, %v8918_v63  ;;  %v9116_v18 = vadd.f32 %v9068_v62, %v8924_v16 }
 0x842   : > { %12982 = vtanh.f32 %v8741_v0  ;;  %v8743_v60 = vadd.f32 %v8742_v24, %v17684_v21  ;;  %v8804_v42 = vpack.c.bf16 %v12971_v29, %v12969_v41  ;;  %v8841_v15 = vunpack.c.l.bf16 %v8803_v58  ;;  %v13019_v29 = vld [vmem:[%s13333_s23 + $0xb8] sm:$0xff] }
 0x843   : > { %12984 = vtanh.f32 %v8739_v34  ;;  %v9158_v6 = vpack.c.bf16 %v9116_v18, %v9110_v7  ;;  %v8847_v31 = vunpack.c.h.bf16 %v8803_v58  ;;  %v9079_v21 = vmul.f32 %v17399_v35, %v8991_v59  ;;  %v12973_v47 = vpop.eup %12972 }
 0x844   : > { %12986 = vtanh.f32 %v8743_v60  ;;  %v8842_v38 = vunpack.c.l.bf16 %v8804_v42  ;;  %v8848_v37 = vunpack.c.h.bf16 %v8804_v42  ;;  %v8929_v33 = vmul.f32 %v17376_v55, %v8841_v15 }
 0x845   : > { %9931 = vmatprep.mubr.bf16.mxu1 %v9158_v6  ;;  %v8935_v22 = vmul.f32 %v17378_v10, %v8847_v31  ;;  %v9085_v35 = vmul.f32 %v17443_v19, %v8997_v30  ;;  %v9091_v59 = vmul.f32 %v17445_v56, %v9003_v8  ;;  %v9086_v34 = vmul.f32 %v17443_v19, %v8998_v28 }
 0x846   : > { %9932 = vmatmul.mubr.bf16.vlgmr.msra.gmra.mxu1 %v9157_v43  ;;  %v8930_v12 = vmul.f32 %v17376_v55, %v8842_v38  ;;  %v8936_v49 = vmul.f32 %v17378_v10, %v8848_v37  ;;  %v9121_v17 = vadd.f32 %v9073_v40, %v8929_v33  ;;  %v9092_v3 = vmul.f32 %v17445_v56, %v9004_v26  ;;  %v13018_v43 = vld [vmem:[%s13333_s23 + $0xa0] sm:$0xff]  ;;  %v9787_v8 = vpop.f32.mrf.mxu1  ;;  %s412_s23 = sand.u32 1, %s13072_s18  }
 0x847   : > { %v12975_v20 = vpop.eup %12974  ;;  %v9127_v25 = vadd.f32 %v9079_v21, %v8935_v22  ;;  %v9009_v57 = vunpack.c.l.bf16 %v13018_v43  ;;  %v9015_v24 = vunpack.c.l.bf16 %v13019_v29  ;;  %v9010_v56 = vunpack.c.h.bf16 %v13018_v43  ;;  %s10141_s30 = sshll.u32 %s412_s23, 6  ;;  %s17817_s21 = scalar_lea.sflag [#allocation3], %s412_s23 }
 0x848   : > { %v12977_v44 = vpop.eup %12976  ;;  %v8809_v11 = vpack.c.bf16 %v12975_v20, %v12973_v47  ;;  %v9122_v5 = vadd.f32 %v9074_v36, %v8930_v12  ;;  %v9128_v13 = vadd.f32 %v9080_v23, %v8936_v49  ;;  %v9016_v15 = vunpack.c.h.bf16 %v13019_v29  ;;  %s17773_s14 = scalar_lea.vmem [#allocation2], %s10141_s30  ;;  %s13026_s30 = scalar_lea.vmem %s13025_s29, 2048 }
 0x849   : > { %v12979_v4 = vpop.eup %12978  ;;  %v9163_v51 = vpack.c.bf16 %v9127_v25, %v9121_v17  ;;  %v9103_v38 = vmul.f32 %v17507_v14, %v9015_v24  ;;  %v9098_v21 = vmul.f32 %v17505_v53, %v9010_v56  ;;  %v9789_v25 = vpop.f32.mrf.mxu1  ;;  %s10051_s15 = sshll.u32 %s17773_s14, 4  ;;  %s17809_s15 = int_to_ptr.vmem [resolvable:$true] %s10051_s15 }
 0x84a   : > { %v9164_v55 = vpack.c.bf16 %v9128_v13, %v9122_v5  ;;  %v8810_v50 = vpack.c.bf16 %v12979_v4, %v12977_v44  ;;  %v8853_v10 = vunpack.c.l.bf16 %v8809_v11  ;;  %v8859_v46 = vunpack.c.h.bf16 %v8809_v11  ;;  %s13020_s25 = scalar_lea.vmem %s17809_s15, 1024  ;;  %p13027_p0 = scmp.lt.s32.totalorder %s17809_s15, %s13025_s29 }
 0x84b   : > { %v12981_v63 = vpop.eup %12980  ;;  %v9104_v47 = vmul.f32 %v17507_v14, %v9016_v15  ;;  %v9791_v44 = vpop.f32.mrf.mxu1  ;;  %p13021_p11 = scmp.ne.s32.totalorder %s17809_s15, %s13020_s25  ;;  %p13028_p1 = scmp.lt.s32.totalorder %s13026_s30, %s13020_s25 }
 0x84c   : > { %9941 = vmatprep.mubr.bf16.mxu1 %v9164_v55  ;;  %v8854_v9 = vunpack.c.l.bf16 %v8810_v50  ;;  %v8860_v2 = vunpack.c.h.bf16 %v8810_v50  ;;  %v8941_v1 = vmul.f32 %v17420_v61, %v8853_v10  ;;  %v8947_v27 = vmul.f32 %v17422_v54, %v8859_v46 }
 0x84d   : > { %v9793_v11 = vpop.f32.mrf.mxu1  ;;  %p13022_p12 = pnand %p13021_p11, %p13184_p5  ;;  %p13029_p2 = por %p13028_p1, %p13027_p0 }
 0x84e   : > { %9942 = vmatmul.mubr.bf16.gmra.mxu1 %v9163_v51  ;;  %v8942_v16 = vmul.f32 %v17420_v61, %v8854_v9  ;;  %v8948_v62 = vmul.f32 %v17422_v54, %v8860_v2  ;;  %v9133_v41 = vadd.f32 %v9085_v35, %v8941_v1  ;;  %v9139_v58 = vadd.f32 %v9091_v59, %v8947_v27 }
 0x84f   : > { %v12983_v0 = vpop.eup %12982  ;;  %v9097_v54 = vmul.f32 %v17505_v53, %v9009_v57  ;;  %v9797_v53 = vpop.f32.mrf.mxu1  ;;  %p13023_p13 = pneg %p13022_p12 }
 0x850   : > { %v12985_v7 = vpop.eup %12984  ;;  %v8815_v18 = vpack.c.bf16 %v12983_v0, %v12981_v63  ;;  %v9134_v48 = vadd.f32 %v9086_v34, %v8942_v16  ;;  %v9140_v60 = vadd.f32 %v9092_v3, %v8948_v62  ;;  %v9169_v19 = vpack.c.bf16 %v9139_v58, %v9133_v41 }
 0x851   : > { %v12987_v42 = vpop.eup %12986  ;;  %v9799_v5 = vpop.f32.mrf.mxu1  ;;  %p13030_p3 = pnand %p13029_p2, %p13023_p13 }
 0x852   : > { %v9170_v6 = vpack.c.bf16 %v9140_v60, %v9134_v48  ;;  %v8816_v31 = vpack.c.bf16 %v12987_v42, %v12985_v7  ;;  %v8865_v61 = vunpack.c.l.bf16 %v8815_v18  ;;  %v8871_v40 = vunpack.c.h.bf16 %v8815_v18 }
 0x853   : > { %v17741_v14 = vpop.f32.mrf.mxu1 }
 0x854   : > { %9951 = vmatprep.mubr.bf16.mxu1 %v9170_v6  ;;  %v8866_v37 = vunpack.c.l.bf16 %v8816_v31  ;;  %v8872_v33 = vunpack.c.h.bf16 %v8816_v31  ;;  %v8953_v36 = vmul.f32 %v17473_v39, %v8865_v61  ;;  %v8959_v22 = vmul.f32 %v17475_v45, %v8871_v40  ;;  %v17769_v6 = vld [vmem:[%s17867_s10] ss:$0 sm:$0xff] }
 0x856   : > { %9952 = vmatmul.mubr.bf16.gmra.mxu1 %v9169_v19  ;;  %v8954_v12 = vmul.f32 %v17473_v39, %v8866_v37  ;;  %v8960_v49 = vmul.f32 %v17475_v45, %v8872_v33  ;;  %v9145_v23 = vadd.f32 %v9097_v54, %v8953_v36  ;;  %v9151_v17 = vadd.f32 %v9103_v38, %v8959_v22  ;;  %v9803_v39 = vpop.f32.mrf.mxu1 }
 0x858   : > { %v9146_v20 = vadd.f32 %v9098_v21, %v8954_v12  ;;  %v9152_v52 = vadd.f32 %v9104_v47, %v8960_v49  ;;  %v9175_v30 = vpack.c.bf16 %v9151_v17, %v9145_v23  ;;  %v17743_v45 = vpop.f32.mrf.mxu1 }
 0x85a   : > { %v9176_v32 = vpack.c.bf16 %v9152_v52, %v9146_v20  ;;  %v9809_v28 = vpop.f32.mrf.mxu1 }
 0x85c   : > { %9961 = vmatprep.mubr.bf16.mxu1 %v9176_v32  ;;  %v17745_v55 = vpop.f32.mrf.mxu1 }
 0x85e   : > { %9962 = vmatmul.mubr.bf16.gmra.mxu1 %v9175_v30  ;;  %v9813_v10 = vpop.f32.mrf.mxu1 }
 0x860   : > { %v17747_v35 = vpop.f32.mrf.mxu1 }
 0x862   : > { %v17749_v9 = vpop.f32.mrf.mxu1 }
 0x864   : > { %v17751_v1 = vpop.f32.mrf.mxu1 }
 0x866   : > { %v17753_v34 = vpop.f32.mrf.mxu1 }
 0x888   : > { %v9860_v13 = vpop.f32.mrf.mxu0 }
 0x889   : > { %v9861_v24 = vadd.f32 %v9860_v13, %v9787_v8 }
 0x88a   : > { %v9862_v4 = vpop.f32.mrf.mxu0 }
 0x88b   : > { %v9863_v62 = vadd.f32 %v9862_v4, %v9789_v25 }
 0x88c   : > { %v9864_v51 = vpop.f32.mrf.mxu0 }
 0x88d   : > { %v9865_v61 = vadd.f32 %v9864_v51, %v9791_v44 }
 0x88e   : > { %v9866_v26 = vpop.f32.mrf.mxu0 }
 0x88f   : > { %v9867_v58 = vadd.f32 %v9866_v26, %v9793_v11 }
 0x890   : > { %v9870_v50 = vpop.f32.mrf.mxu0 }
 0x891   : > { %v9871_v49 = vadd.f32 %v9870_v50, %v9797_v53 }
 0x892   : > { %v9872_v46 = vpop.f32.mrf.mxu0 }
 0x893   : > { %v9873_v18 = vadd.f32 %v9872_v46, %v9799_v5 }
 0x894   : > { %v9874_v59 = vpop.f32.mrf.mxu0 }
 0x895   : > { %v9875_v53 = vadd.f32 %v9874_v59, %v17741_v14 }
 0x896   : > { %v9876_v2 = vpop.f32.mrf.mxu0 }
 0x897   : > { %v9877_v38 = vadd.f32 %v9876_v2, %v9803_v39 }
 0x898   : > { %v9880_v27 = vpop.f32.mrf.mxu0 }
 0x89a   : > { %v9882_v63 = vpop.f32.mrf.mxu0 }
 0x89b   : > { %v9883_v20 = vadd.f32 %v9882_v63, %v9809_v28 }
 0x89c   : > { %v17757_v43 = vpop.f32.mrf.mxu0 }
 0x89e   : > { %v9886_v19 = vpop.f32.mrf.mxu0 }
 0x89f   : > { %v9887_v39 = vadd.f32 %v9886_v19, %v9813_v10 }
 0x8a0   : > { %v9890_v33 = vpop.f32.mrf.mxu0 }
 0x8a2   : > { %v9892_v30 = vpop.f32.mrf.mxu0 }
 0x8a3   : > { %v9893_v14 = vadd.f32 %v9892_v30, %v17749_v9 }
 0x8a4   : > { %v9894_v51 = vpop.f32.mrf.mxu0 }
 0x906   : > { %v9933_v3 = vpop.f32.mrf.mxu1 }
 0x907   : > { %v9934_v42 = vadd.f32 %v9933_v3, %v9861_v24  ;;  %v9881_v3 = vadd.f32 %v9880_v27, %v17743_v45  ;;  %v9885_v24 = vadd.f32 %v17757_v43, %v17745_v55  ;;  %v9895_v55 = vadd.f32 %v9894_v51, %v17751_v1 }
 0x908   : > { %v9935_v16 = vpop.f32.mrf.mxu1 }
 0x909   : > { %v17755_v0 = vadd.f32 %v9935_v16, %v9863_v62  ;;  %v9896_v62 = vpop.f32.mrf.mxu0 }
 0x90a   : > { %v9937_v41 = vpop.f32.mrf.mxu1 }
 0x90b   : > { %v9981_v48 = vrot.slane %v17755_v0, 1  ;;  %v9938_v36 = vadd.f32 %v9937_v41, %v9865_v61 }
 0x90c   : > { %v9939_v57 = vpop.f32.mrf.mxu1 }
 0x90d   : > { %v9940_v29 = vadd.f32 %v9939_v57, %v9867_v58 }
 0x90e   : > { %v9943_v7 = vpop.f32.mrf.mxu1 }
 0x90f   : > { %v9982_v60 = vrot.slane %v9940_v29, 1  ;;  %v9944_v32 = vadd.f32 %v9943_v7, %v9871_v49  ;;  %v9897_v7 = vadd.f32 %v9896_v62, %v17753_v34 }
 0x910   : > { %v9945_v56 = vpop.f32.mrf.mxu1 }
 0x911   : > { %v9983_v15 = vsel %vm9980_vm1, %v9981_v48, %v9982_v60  ;;  %v9946_v31 = vadd.f32 %v9945_v56, %v9873_v18 }
 0x912   : > { %v10006_v40 = vadd.f32 %v9983_v15, %v9934_v42  ;;  %v9947_v54 = vpop.f32.mrf.mxu1  ;;  %v9891_v15 = vadd.f32 %v9890_v33, %v17747_v35 }
 0x913   : > { %v9984_v37 = vrot.slane %v9946_v31, 1  ;;  %v9948_v26 = vadd.f32 %v9947_v54, %v9875_v53 }
 0x914   : > { %v10021_v22 = vadd.f32 %v17769_v6, %v10006_v40  ;;  %v9949_v21 = vpop.f32.mrf.mxu1 }
 0x915   : > { %v9985_v47 = vsel %vm9980_vm1, %v9982_v60, %v9984_v37  ;;  %v9950_v12 = vadd.f32 %v9949_v21, %v9877_v38 }
 0x916   : > { %10029 = vst [vmem:[%s17773_s14] sm:$0xff] %v10021_v22  ;;  %v10007_v23 = vadd.f32 %v9985_v47, %v9938_v36  ;;  %v9953_v17 = vpop.f32.mrf.mxu1 }
 0x917   : > { %v9986_v52 = vrot.slane %v9950_v12, 1  ;;  %v9954_v10 = vadd.f32 %v9953_v17, %v9881_v3 }
 0x918   : > { %v10022_v8 = vadd.f32 %v17769_v6, %v10007_v23  ;;  %v9955_v25 = vpop.f32.mrf.mxu1 }
 0x919   : > { %v9987_v44 = vsel %vm9980_vm1, %v9984_v37, %v9986_v52  ;;  %v9956_v11 = vadd.f32 %v9955_v25, %v9883_v20 }
 0x91a   : > { %10030 = vst [vmem:[%s17773_s14 + $0x8] sm:$0xff] %v10022_v8  ;;  %v10008_v5 = vadd.f32 %v9987_v44, %v9944_v32  ;;  %v9957_v13 = vpop.f32.mrf.mxu1 }
 0x91b   : > { %v9988_v4 = vrot.slane %v9956_v11, 1  ;;  %v9958_v18 = vadd.f32 %v9957_v13, %v9885_v24 }
 0x91c   : > { %v10023_v28 = vadd.f32 %v17769_v6, %v10008_v5  ;;  %v9959_v50 = vpop.f32.mrf.mxu1 }
 0x91d   : > { %v9989_v46 = vsel %vm9980_vm1, %v9986_v52, %v9988_v4  ;;  %v9960_v2 = vadd.f32 %v9959_v50, %v9887_v39 }
 0x91e   : > { %10031 = vst [vmem:[%s17773_s14 + $0x10] sm:$0xff] %v10023_v28  ;;  %v10009_v63 = vadd.f32 %v9989_v46, %v9948_v26  ;;  %v9963_v16 = vpop.f32.mrf.mxu1 }
 0x91f   : > { %v9990_v59 = vrot.slane %v9960_v2, 1  ;;  %v9964_v34 = vadd.f32 %v9963_v16, %v9891_v15 }
 0x920   : > { %v10024_v41 = vadd.f32 %v17769_v6, %v10009_v63  ;;  %v9965_v58 = vpop.f32.mrf.mxu1 }
 0x921   : > { %v9991_v57 = vsel %vm9980_vm1, %v9988_v4, %v9990_v59  ;;  %v9966_v29 = vadd.f32 %v9965_v58, %v9893_v14 }
 0x922   : > { %10032 = vst [vmem:[%s17773_s14 + $0x18] sm:$0xff] %v10024_v41  ;;  %v10010_v45 = vadd.f32 %v9991_v57, %v9954_v10  ;;  %v9967_v27 = vpop.f32.mrf.mxu1 }
 0x923   : > { %v9992_v9 = vrot.slane %v9966_v29, 1  ;;  %v9968_v40 = vadd.f32 %v9967_v27, %v9895_v55 }
 0x924   : > { %v10025_v60 = vadd.f32 %v17769_v6, %v10010_v45  ;;  %v9969_v19 = vpop.f32.mrf.mxu1 }
 0x925   : > { %v9993_v42 = vsel %vm9980_vm1, %v9990_v59, %v9992_v9  ;;  %v9970_v56 = vadd.f32 %v9969_v19, %v9897_v7 }
 0x926   : > { %10033 = vst [vmem:[%s17773_s14 + $0x20] sm:$0xff] %v10025_v60  ;;  %v10011_v43 = vadd.f32 %v9993_v42, %v9958_v18 }
 0x927   : > { %v9994_v31 = vrot.slane %v9970_v56, 1 }
 0x928   : > { %v10026_v61 = vadd.f32 %v17769_v6, %v10011_v43 }
 0x929   : > { %v9995_v54 = vsel %vm9980_vm1, %v9992_v9, %v9994_v31  ;;  %v10005_v35 = vsel %vm9980_vm1, %v9994_v31, %v9981_v48 }
 0x92a   : > { %10034 = vst [vmem:[%s17773_s14 + $0x28] sm:$0xff] %v10026_v61  ;;  %v10012_v1 = vadd.f32 %v9995_v54, %v9964_v34  ;;  %v10013_v38 = vadd.f32 %v10005_v35, %v9968_v40 }
 0x92c   : > { %v10027_v37 = vadd.f32 %v17769_v6, %v10012_v1  ;;  %v10028_v33 = vadd.f32 %v17769_v6, %v10013_v38 }
 0x92e   : > { %10035 = vst [vmem:[%s17773_s14 + $0x30] sm:$0xff] %v10027_v37  ;;  %10036 = vst [vmem:[%s17773_s14 + $0x38] sm:$0xff] %v10028_v33 }
 0x92f   : > { %13033 = shalt.err (!%p13030_p3)
}
 0x930   : > { %s13034_s23 = scalar_lea.hbm %s17807_s26, 1024  ;;  %s13038_s14 = scalar_lea.hbm %s17868_s11, 2048 }
 0x931   : > { %p13035_p4 = scmp.ne.s32.totalorder %s17807_s26, %s13034_s23  ;;  %p13039_p9 = scmp.lt.s32.totalorder %s17807_s26, %s17868_s11 }
 0x932   : > { %p13040_p10 = scmp.lt.s32.totalorder %s13038_s14, %s13034_s23 }
 0x933   : > { %p13036_p7 = pnand %p13035_p4, %p13184_p5 }
 0x934   : > { %p13041_p11 = por %p13040_p10, %p13039_p9 }
 0x935   : > { %p13037_p8 = pneg %p13036_p7 }
 0x937   : > { %p13042_p12 = pnand %p13041_p11, %p13037_p8 }
 0x939   : > { %13045 = shalt.err (!%p13042_p12)
}
 0x93a   : > { %s13084_s16 = smov 128   ;;  %s13085_s25 = smov 8  }
 0x93b   : > { %11188 = dma.vmem_to_hbm [thread:$0]  (%p13184_p5), %s17809_s15, 1024, %s17807_s26, %s17817_s21, %s13084_s16, %s13084_s16, %s13085_s25  }
 0x93c PF: > { %p11194_p13 = scmp.ge.s32.totalorder %s13080_s20, 2  ;;  %s10066_s24 = sand.u32 1, %s13068_s17  }
 0x93d   : > { %s10067_s29 = scalar_lea.sflag [#allocation3], %s10066_s24 }
 0x93e   : > { %p11191_p0 = pnand %p11194_p13, %p13188_p6 }
 0x940   : > { %p11192_p1 = pneg %p11191_p0 }
 0x942   : > { %13063 = dma.done.wait (%p11192_p1), %s10067_s29, 1024  }
 0x943   : > { %13065 = vsyncadd (%p11192_p1), %s10067_s29, 4294966272  ;;  %s17937_s20 = sld [smem:[#allocation6_spill]]  ;;  %s17940_s17 = smov %s13072_s18 }
 0x944   : > { %s17938_s30 = sld [smem:[#allocation5_spill]] }
 0x945   : > { %s17939_s19 = sld [smem:[#allocation7_spill]] }
 0x949   : > { %p21_p2 = scmp.ge.s32.totalorder %s17937_s20, 4  }
 0x94a   : > { %s17941_s18 = smov %s17938_s30 }
 0x94b   :  { %23 = sbr.rel (!%p21_p2) target bundleno = 3 (0x3), region = 105 }
 0x950   :  { %10072 = vsyncpa [#allocation3], 1 }
 0x951   :  { %10074 = vsyncpa [#allocation3 + $0x1], 1 }

</bundles_post_ra>
